<compile_context>
chip_gen: v6e
topology: v6e:2x2x1
jax: 0.10.0
libtpu: 0.0.40
codegen_flags: <defaults>
</compile_context>

<pallas_src>
import jax
import jax.numpy as jnp
from jax.experimental import pallas as pl
from jax.experimental.pallas import tpu as pltpu

# ----------------------------- configuration --------------------------------
B = 2            # batch
IN_SIZE = 16     # spatial size (H = W)
IN_CHAN = 3      # input channels
CHAN = 8         # conv channels
HIDD = 32        # hidden representation size
NB_LAY = 3       # number of conv layers (encoder and decoder each)
KER = 3          # square kernel size
MAXPL1 = 2       # first max-pool
MAXPL2 = 2       # second max-pool
BN_EPS = 1e-5

assert NB_LAY == 3 and KER == 3 and MAXPL1 == 2 and MAXPL2 == 2
assert IN_SIZE % (MAXPL1 * MAXPL2) == 0

H1 = IN_SIZE                        # 16 : encoder layer 0 / decoder layers 1,2
H2 = IN_SIZE // MAXPL1              # 8  : encoder layers 1,2 / decoder layer 0
CS = IN_SIZE // (MAXPL1 * MAXPL2)   # 4  : bottleneck resolution
SS = CS * CS                        # 16 : bottleneck spatial size
N16 = B * H1 * H1                   # 512 lanes at 16x16
N8 = B * H2 * H2                    # 128 lanes at 8x8
N4 = B * SS                         # 32  lanes at 4x4
XPAD = 128                          # lane padding of the conv staging buffer
XW = N16 + 2 * XPAD                 # staging buffer width

_VMEM = pl.BlockSpec(memory_space=pltpu.MemorySpace.VMEM)

# Residual-connection gating, exactly as in the PyTorch module.
# encoder built with (inChan=IN_CHAN, chan=CHAN, outChan=CHAN)
_ENC_RES = [(i != NB_LAY - 1 or CHAN == CHAN) and (i != 0 or CHAN == IN_CHAN)
            for i in range(NB_LAY)]                    # -> [False, True, True]
# decoder built with (inChan=CHAN, chan=CHAN, outChan=IN_CHAN)
_DEC_RES = [(i != 0 or CHAN == CHAN) and (i != NB_LAY - 1 or CHAN == IN_CHAN)
            for i in range(NB_LAY)]                    # -> [True, True, False]


# ------------------------------ Pallas kernel --------------------------------
def _cae_kernel(x_ref, we0_ref, we12_ref, wd01_ref, wd2_ref,
                sh8_ref, sh_last_ref,
                m16_ref, m8_ref, off16_ref, off8_ref,
                s16_ref, s8_ref, u8_ref, u16_ref,
                wenc_ref, benc_ref, wdec_ref, bdec_ref,
                o_ref,
                xpad_ref, stk_ref, p2s_ref, dec4_ref):
    """Whole CAE forward in one kernel invocation.

    Activations are [channels, B*H*W] f32 (lane-dense). Convs are 9 shifted-tap
    MXU GEMMs (BN scale already folded into the taps); shift / ReLU /
    zero-border / residuals live in the epilogue.  Pool: max of 4 shifted views
    + one fused 0/1 gather GEMM (values + argmax codes).  Unpool: one fused 0/1
    broadcast GEMM (values + argmax codes) followed by an argmax-mask select.
    """
    f32 = jnp.float32

    # Zero the staging buffer once so masked out-of-range taps always read 0.0
    # (avoids NaN/Inf from uninitialized VMEM under the 0-multiply masks).
    xpad_ref[...] = jnp.zeros(xpad_ref.shape, xpad_ref.dtype)

    def conv_same(x_val, cin, cout, w_img, n, masks_ref, load_w):
        """3x3 SAME correlation on a [cin, n] activation (n = B*H*W, width w_img)."""
        xpad_ref[0:cin, XPAD:XPAD + n] = x_val
        acc = jnp.zeros((cout, n), f32)
        for t in range(9):
            dki, dkj = t // 3 - 1, t % 3 - 1
            shift = dki * w_img + dkj
            xs = xpad_ref[0:cin, XPAD + shift:XPAD + shift + n]
            if t != 4:                      # centre tap never reads out of range
                xs = xs * masks_ref[t:t + 1, :]
            acc = acc + jnp.dot(load_w(t), xs, preferred_element_type=f32)
        return acc

    def pool2x2(y, w_img, n, s_ref):
        """2x2 max-pool (first-max tie-break).

        Returns (pooled [C, n//4], argmax codes [C, n//4]); the value gather and
        the code gather share a single MXU GEMM (stacked along sublanes)."""
        c = y.shape[0]
        xpad_ref[0:c, XPAD:XPAD + n] = y
        r0 = y
        r1 = xpad_ref[0:c, XPAD + 1:XPAD + 1 + n]
        r2 = xpad_ref[0:c, XPAD + w_img:XPAD + w_img + n]
        r3 = xpad_ref[0:c, XPAD + w_img + 1:XPAD + w_img + 1 + n]
        m = jnp.maximum(jnp.maximum(r0, r1), jnp.maximum(r2, r3))
        idx = jnp.where(r0 == m, 0.0,
              jnp.where(r1 == m, 1.0,
              jnp.where(r2 == m, 2.0, 3.0)))
        stk_ref[0:c, 0:n] = m
        stk_ref[c:2 * c, 0:n] = idx
        g = jnp.dot(stk_ref[0:2 * c, 0:n], s_ref[...], preferred_element_type=f32)
        return g[0:c, :], g[c:2 * c, :]

    def unpool2x2(xc, p_idx, nc, u_ref, off_ref):
        """2x2 max-unpool: fused broadcast of (values, argmax codes) + mask select."""
        c = xc.shape[0]
        stk_ref[0:c, 0:nc] = xc
        stk_ref[c:2 * c, 0:nc] = p_idx
        g = jnp.dot(stk_ref[0:2 * c, 0:nc], u_ref[...], preferred_element_type=f32)
        up_val = g[0:c, :]
        up_idx = g[c:2 * c, :]
        return up_val * (off_ref[...] == up_idx).astype(f32)

    def relu(v):
        return jnp.maximum(v, 0.0)

    # interior mask == ZeroPad2d(1) applied to a VALID conv output
    int16 = m16_ref[0:1, :] * m16_ref[8:9, :]
    int8 = m8_ref[0:1, :] * m8_ref[8:9, :]

    # TODO(synk): eval-mode only: Dropout2d = identity, BatchNorm folded affine.

    # ------------------------------ encoder ----------------------------------
    x = x_ref[...]                                                        # [3, 512]
    a = conv_same(x, IN_CHAN, CHAN, H1, N16, m16_ref, lambda t: we0_ref[t])
    y = relu(a + sh8_ref[0]) * int16
    y0 = (y + x) if _ENC_RES[0] else y
    p1, pidx1 = pool2x2(y0, H1, N16, s16_ref)                             # [8,128] x2

    a = conv_same(p1, CHAN, CHAN, H2, N8, m8_ref, lambda t: we12_ref[0, t])
    y = relu(a + sh8_ref[1]) * int8
    y1 = (y + p1) if _ENC_RES[1] else y

    a = conv_same(y1, CHAN, CHAN, H2, N8, m8_ref, lambda t: we12_ref[1, t])
    y = relu(a + sh8_ref[2]) * int8
    y2 = (y + y1) if _ENC_RES[2] else y
    p2, pidx2 = pool2x2(y2, H2, N8, s8_ref)                               # [8,32] x2

    # -------------------------- dense bottleneck -----------------------------
    # PyTorch flatten order k = c*SS + h*CS + w matches the per-batch lane order
    # of p2; the dense weights were pre-reshaped host-side into per-channel
    # blocks so only [1,SS]/[1,HIDD] GEMMs (K=16/32 weight loads) are needed.
    p2s_ref[...] = p2
    hidd = []
    for b in range(B):
        acc = benc_ref[...]                                               # [1, HIDD]
        for c in range(CHAN):
            row = p2s_ref[c:c + 1, b * SS:(b + 1) * SS]                   # [1, SS]
            acc = acc + jnp.dot(row, wenc_ref[c], preferred_element_type=f32)
        hidd.append(acc)
    for b in range(B):
        for c in range(CHAN):
            blk = (jnp.dot(hidd[b], wdec_ref[c], preferred_element_type=f32)
                   + bdec_ref[c:c + 1, :])                                # [1, SS]
            dec4_ref[c:c + 1, b * SS:(b + 1) * SS] = blk
    dec4 = dec4_ref[...]                                                  # [8, 32]

    # ------------------------------ decoder ----------------------------------
    # (computeUnpoolPaddingSize is (0,0,0,0) for this config -> F.pad is a no-op)
    u0 = unpool2x2(dec4, pidx2, N4, u8_ref, off8_ref)                     # [8, 128]
    a = conv_same(u0, CHAN, CHAN, H2, N8, m8_ref, lambda t: wd01_ref[0, t])
    y = relu(a + sh8_ref[3])
    d0 = (y + u0) if _DEC_RES[0] else y

    u1 = unpool2x2(d0, pidx1, N8, u16_ref, off16_ref)                     # [8, 512]
    a = conv_same(u1, CHAN, CHAN, H1, N16, m16_ref, lambda t: wd01_ref[1, t])
    y = relu(a + sh8_ref[4])
    d1 = (y + u1) if _DEC_RES[1] else y

    a = conv_same(d1, CHAN, IN_CHAN, H1, N16, m16_ref, lambda t: wd2_ref[t])
    y = relu(a + sh_last_ref[...])
    o_ref[...] = (y + d1) if _DEC_RES[2] else y


# --------------------------- host-side preparation ---------------------------
def _conv_taps(w):
    """Conv2d weight [Cout, Cin, 3, 3] -> per-tap matrices [9, Cout, Cin]."""
    return jnp.transpose(w, (2, 3, 0, 1)).reshape(9, w.shape[0], w.shape[1])


def _tconv_taps(wt):
    """ConvTranspose2d weight [Cin, Cout, 3, 3] -> equivalent SAME-conv taps [9, Cout, Cin]."""
    w_eq = jnp.transpose(wt[:, :, ::-1, ::-1], (1, 0, 2, 3))
    return _conv_taps(w_eq)


def _bn_fold(taps, prm):
    """Fold eval-mode BatchNorm scale into the taps; return (scaled taps, shift [C,1])."""
    scale = prm['gamma'] / jnp.sqrt(prm['var'] + BN_EPS)
    shift = prm['beta'] - prm['mean'] * scale
    c = scale.shape[0]
    return (taps * scale[None, :, None]).astype(jnp.float32), \
        shift.reshape(c, 1).astype(jnp.float32)


def _tap_masks(h_img, w_img, bn):
    """[9, bn*h*w] validity of each 3x3 tap (0 where the neighbour is out of range)."""
    n = bn * h_img * w_img
    lane = jnp.arange(n)
    hh = (lane // w_img) % h_img
    ww = lane % w_img
    rows = []
    for t in range(9):
        dki, dkj = t // 3 - 1, t % 3 - 1
        ok = (hh + dki >= 0) & (hh + dki < h_img) & (ww + dkj >= 0) & (ww + dkj < w_img)
        rows.append(ok)
    return jnp.stack(rows).astype(jnp.float32)


def _pool_consts(h_img, w_img, bn):
    """Constant gather (S [n, n/4]), broadcast (U [n/4, n]) matrices and
    within-window offset codes (off [1, n]) for 2x2 max-pool/unpool."""
    n = bn * h_img * w_img
    oh, ow = h_img // 2, w_img // 2
    ns = bn * oh * ow
    lane = jnp.arange(n)
    b = lane // (h_img * w_img)
    r = lane % (h_img * w_img)
    hh = r // w_img
    ww = r % w_img
    k_of_lane = b * (oh * ow) + (hh // 2) * ow + (ww // 2)
    ks = jnp.arange(ns)
    kb = ks // (oh * ow)
    kr = ks % (oh * ow)
    anchor = kb * (h_img * w_img) + (2 * (kr // ow)) * w_img + 2 * (kr % ow)
    s_mat = (lane[:, None] == anchor[None, :]).astype(jnp.float32)
    u_mat = (ks[:, None] == k_of_lane[None, :]).astype(jnp.float32)
    off = ((hh % 2) * 2 + (ww % 2)).astype(jnp.float32).reshape(1, n)
    return s_mat, u_mat, off


def cae_forward(x, params):
    """CAE forward pass (eval mode). x: [B, IN_CHAN, IN_SIZE, IN_SIZE] (NCHW)."""
    enc, dec = params['enc_convs'], params['dec_convs']

    we0, sh_e0 = _bn_fold(_conv_taps(enc[0]['w']), enc[0])                 # [9, 8, 3]
    we1, sh_e1 = _bn_fold(_conv_taps(enc[1]['w']), enc[1])
    we2, sh_e2 = _bn_fold(_conv_taps(enc[2]['w']), enc[2])
    wd0, sh_d0 = _bn_fold(_tconv_taps(dec[0]['w']), dec[0])
    wd1, sh_d1 = _bn_fold(_tconv_taps(dec[1]['w']), dec[1])
    wd2, sh_last = _bn_fold(_tconv_taps(dec[2]['w']), dec[2])              # [9, 3, 8]

    we12 = jnp.stack([we1, we2])                                           # [2, 9, 8, 8]
    wd01 = jnp.stack([wd0, wd1])                                           # [2, 9, 8, 8]
    sh8 = jnp.stack([sh_e0, sh_e1, sh_e2, sh_d0, sh_d1])                   # [5, 8, 1]

    m16 = _tap_masks(H1, H1, B)                                            # [9, 512]
    m8 = _tap_masks(H2, H2, B)                                             # [9, 128]
    s16, u16, off16 = _pool_consts(H1, H1, B)                              # [512,128],[128,512],[1,512]
    s8, u8, off8 = _pool_consts(H2, H2, B)                                 # [128,32],[32,128],[1,128]

    # dense weights pre-permuted into per-channel blocks (PyTorch flatten order)
    wenc_cb = params['dense_enc_w'].reshape(HIDD, CHAN, SS).transpose(1, 2, 0)  # [8, 16, 32]
    benc = params['dense_enc_b'].reshape(1, HIDD)                               # [1, 32]
    wdec_cb = params['dense_dec_w'].reshape(CHAN, SS, HIDD).transpose(0, 2, 1)  # [8, 32, 16]
    bdec_r = params['dense_dec_b'].reshape(CHAN, SS)                            # [8, 16]

    # NCHW -> lane-dense conv layout [C, B*H*W] (single boundary conversion)
    x_cm = jnp.transpose(x, (1, 0, 2, 3)).reshape(IN_CHAN, N16)

    out = pl.pallas_call(
        _cae_kernel,
        out_shape=jax.ShapeDtypeStruct((IN_CHAN, N16), jnp.float32),
        in_specs=[_VMEM] * 19,
        out_specs=_VMEM,
        scratch_shapes=[
            pltpu.VMEM((CHAN, XW), jnp.float32),       # zero-padded conv/pool staging buffer
            pltpu.VMEM((2 * CHAN, N16), jnp.float32),  # value/argmax-code stack for fused GEMMs
            pltpu.VMEM((CHAN, N4), jnp.float32),       # bottleneck activation staging
            pltpu.VMEM((CHAN, N4), jnp.float32),       # dense-decoder assembly buffer
        ],
        cost_estimate=pl.CostEstimate(flops=7_000_000, transcendentals=0,
                                      bytes_accessed=800_000),
    )(x_cm, we0, we12, wd01, wd2, sh8, sh_last,
      m16, m8, off16, off8, s16, s8, u8, u16,
      wenc_cb, benc, wdec_cb, bdec_r)

    # conv layout [C, B*H*W] -> NCHW
    return jnp.transpose(out.reshape(IN_CHAN, B, IN_SIZE, IN_SIZE), (1, 0, 2, 3))


# ------------------------------ parameter init --------------------------------
def init_params(key):
    keys = iter(jax.random.split(key, 64))

    def nrm(shape, s=0.1):
        return jax.random.normal(next(keys), shape, jnp.float32) * s

    def bn(c):
        return dict(gamma=1.0 + nrm((c,)), beta=nrm((c,)), mean=nrm((c,)),
                    var=0.5 + jax.random.uniform(next(keys), (c,), jnp.float32))

    enc_convs = [dict(w=nrm((CHAN, IN_CHAN, KER, KER)), **bn(CHAN))]
    for _ in range(NB_LAY - 2):
        enc_convs.append(dict(w=nrm((CHAN, CHAN, KER, KER)), **bn(CHAN)))
    enc_convs.append(dict(w=nrm((CHAN, CHAN, KER, KER)), **bn(CHAN)))

    # ConvTranspose2d weights are [Cin, Cout, k, k]
    dec_convs = [dict(w=nrm((CHAN, CHAN, KER, KER)), **bn(CHAN))]
    for _ in range(NB_LAY - 2):
        dec_convs.append(dict(w=nrm((CHAN, CHAN, KER, KER)), **bn(CHAN)))
    dec_convs.append(dict(w=nrm((CHAN, IN_CHAN, KER, KER)), **bn(IN_CHAN)))

    feat = CHAN * CS * CS
    return dict(enc_convs=enc_convs, dec_convs=dec_convs,
                dense_enc_w=nrm((HIDD, feat)), dense_enc_b=nrm((HIDD,)),
                dense_dec_w=nrm((feat, HIDD)), dense_dec_b=nrm((feat,)))


# ----------------------------------- main -------------------------------------
if __name__ == "__main__":
    key = jax.random.PRNGKey(0)
    k_x, k_p = jax.random.split(key)
    x = jax.random.normal(k_x, (B, IN_CHAN, IN_SIZE, IN_SIZE), jnp.float32)
    params = init_params(k_p)

    fwd = jax.jit(cae_forward)
    out = fwd(x, params)
    out = jax.block_until_ready(out)

    assert out.shape == (B, IN_CHAN, IN_SIZE, IN_SIZE), out.shape
    assert out.dtype == jnp.float32
    assert bool(jnp.all(jnp.isfinite(out)))
    print("KERNEL_OK")
</pallas_src>

<mosaic_0001>
module attributes {stable_mosaic.version = 11 : i64} {
  func.func @_cae_kernel(%arg0: memref<3x512xf32, #tpu.memory_space<vmem>>, %arg1: memref<9x8x3xf32, #tpu.memory_space<vmem>>, %arg2: memref<2x9x8x8xf32, #tpu.memory_space<vmem>>, %arg3: memref<2x9x8x8xf32, #tpu.memory_space<vmem>>, %arg4: memref<9x3x8xf32, #tpu.memory_space<vmem>>, %arg5: memref<5x8x1xf32, #tpu.memory_space<vmem>>, %arg6: memref<3x1xf32, #tpu.memory_space<vmem>>, %arg7: memref<9x512xf32, #tpu.memory_space<vmem>>, %arg8: memref<9x128xf32, #tpu.memory_space<vmem>>, %arg9: memref<1x512xf32, #tpu.memory_space<vmem>>, %arg10: memref<1x128xf32, #tpu.memory_space<vmem>>, %arg11: memref<512x128xf32, #tpu.memory_space<vmem>>, %arg12: memref<128x32xf32, #tpu.memory_space<vmem>>, %arg13: memref<32x128xf32, #tpu.memory_space<vmem>>, %arg14: memref<128x512xf32, #tpu.memory_space<vmem>>, %arg15: memref<8x16x32xf32, #tpu.memory_space<vmem>>, %arg16: memref<1x32xf32, #tpu.memory_space<vmem>>, %arg17: memref<8x32x16xf32, #tpu.memory_space<vmem>>, %arg18: memref<8x16xf32, #tpu.memory_space<vmem>>, %arg19: memref<3x512xf32, #tpu.memory_space<vmem>>, %arg20: memref<8x768xf32, #tpu.memory_space<vmem>>, %arg21: memref<16x512xf32, #tpu.memory_space<vmem>>, %arg22: memref<8x32xf32, #tpu.memory_space<vmem>>, %arg23: memref<8x32xf32, #tpu.memory_space<vmem>>) attributes {dimension_semantics = [], scalar_prefetch = 0 : i64, scratch_operands = 4 : i64, tpu.core_type = #tpu.core_type<tc>} {
    %cst = arith.constant 0.000000e+00 : f32
    %0 = vector.broadcast %cst : f32 to vector<8x768xf32>
    %c0 = arith.constant 0 : index
    %c0_0 = arith.constant 0 : index
    %1 = vector.load %arg20[%c0, %c0_0] : memref<8x768xf32, #tpu.memory_space<vmem>>, vector<8x768xf32>
    tpu.vector_store %arg20[%c0, %c0_0], %0 {strides = array<i32>} : memref<8x768xf32, #tpu.memory_space<vmem>>, vector<8x768xf32>,
    %c0_1 = arith.constant 0 : index
    %c0_2 = arith.constant 0 : index
    %2 = vector.load %arg7[%c0_1, %c0_2] : memref<9x512xf32, #tpu.memory_space<vmem>>, vector<1x512xf32>
    %c8 = arith.constant 8 : index
    %c0_3 = arith.constant 0 : index
    %3 = vector.load %arg7[%c8, %c0_3] : memref<9x512xf32, #tpu.memory_space<vmem>>, vector<1x512xf32>
    %4 = arith.mulf %2, %3 : vector<1x512xf32>
    %c0_4 = arith.constant 0 : index
    %c0_5 = arith.constant 0 : index
    %5 = vector.load %arg8[%c0_4, %c0_5] : memref<9x128xf32, #tpu.memory_space<vmem>>, vector<1x128xf32>
    %c8_6 = arith.constant 8 : index
    %c0_7 = arith.constant 0 : index
    %6 = vector.load %arg8[%c8_6, %c0_7] : memref<9x128xf32, #tpu.memory_space<vmem>>, vector<1x128xf32>
    %7 = arith.mulf %5, %6 : vector<1x128xf32>
    %c0_8 = arith.constant 0 : index
    %c0_9 = arith.constant 0 : index
    %8 = vector.load %arg0[%c0_8, %c0_9] : memref<3x512xf32, #tpu.memory_space<vmem>>, vector<3x512xf32>
    %c0_10 = arith.constant 0 : index
    %c128 = arith.constant 128 : index
    %9 = vector.load %arg20[%c0_10, %c128] : memref<8x768xf32, #tpu.memory_space<vmem>>, vector<3x512xf32>
    tpu.vector_store %arg20[%c0_10, %c128], %8 {strides = array<i32>} : memref<8x768xf32, #tpu.memory_space<vmem>>, vector<3x512xf32>,
    %cst_11 = arith.constant 0.000000e+00 : f32
    %10 = vector.broadcast %cst_11 : f32 to vector<8x512xf32>
    %c0_12 = arith.constant 0 : index
    %c111 = arith.constant 111 : index
    %11 = vector.load %arg20[%c0_12, %c111] : memref<8x768xf32, #tpu.memory_space<vmem>>, vector<3x512xf32>
    %c0_13 = arith.constant 0 : index
    %c0_14 = arith.constant 0 : index
    %12 = vector.load %arg7[%c0_13, %c0_14] : memref<9x512xf32, #tpu.memory_space<vmem>>, vector<1x512xf32>
    %13 = vector.broadcast %12 : vector<1x512xf32> to vector<3x512xf32>
    %14 = arith.mulf %11, %13 : vector<3x512xf32>
    %c0_15 = arith.constant 0 : index
    %c0_16 = arith.constant 0 : index
    %c0_17 = arith.constant 0 : index
    %15 = vector.load %arg1[%c0_15, %c0_16, %c0_17] : memref<9x8x3xf32, #tpu.memory_space<vmem>>, vector<1x8x3xf32>
    %16 = vector.shape_cast %15 : vector<1x8x3xf32> to vector<8x3xf32>
    %cst_18 = arith.constant dense<0.000000e+00> : vector<8x512xf32>
    %17 = tpu.matmul %16, %14, %cst_18 {dimension_numbers = #tpu.dot_dimension_numbers<[1], [0], [0], [1], [0, 0, 1, 1], [], []>} : vector<8x3xf32>, vector<3x512xf32>, vector<8x512xf32> -> vector<8x512xf32>
    %18 = arith.addf %10, %17 : vector<8x512xf32>
    %c0_19 = arith.constant 0 : index
    %c112 = arith.constant 112 : index
    %19 = vector.load %arg20[%c0_19, %c112] : memref<8x768xf32, #tpu.memory_space<vmem>>, vector<3x512xf32>
    %c1 = arith.constant 1 : index
    %c0_20 = arith.constant 0 : index
    %20 = vector.load %arg7[%c1, %c0_20] : memref<9x512xf32, #tpu.memory_space<vmem>>, vector<1x512xf32>
    %21 = vector.broadcast %20 : vector<1x512xf32> to vector<3x512xf32>
    %22 = arith.mulf %19, %21 : vector<3x512xf32>
    %c1_21 = arith.constant 1 : index
    %c0_22 = arith.constant 0 : index
    %c0_23 = arith.constant 0 : index
    %23 = vector.load %arg1[%c1_21, %c0_22, %c0_23] : memref<9x8x3xf32, #tpu.memory_space<vmem>>, vector<1x8x3xf32>
    %24 = vector.shape_cast %23 : vector<1x8x3xf32> to vector<8x3xf32>
    %cst_24 = arith.constant dense<0.000000e+00> : vector<8x512xf32>
    %25 = tpu.matmul %24, %22, %cst_24 {dimension_numbers = #tpu.dot_dimension_numbers<[1], [0], [0], [1], [0, 0, 1, 1], [], []>} : vector<8x3xf32>, vector<3x512xf32>, vector<8x512xf32> -> vector<8x512xf32>
    %26 = arith.addf %18, %25 : vector<8x512xf32>
    %c0_25 = arith.constant 0 : index
    %c113 = arith.constant 113 : index
    %27 = vector.load %arg20[%c0_25, %c113] : memref<8x768xf32, #tpu.memory_space<vmem>>, vector<3x512xf32>
    %c2 = arith.constant 2 : index
    %c0_26 = arith.constant 0 : index
    %28 = vector.load %arg7[%c2, %c0_26] : memref<9x512xf32, #tpu.memory_space<vmem>>, vector<1x512xf32>
    %29 = vector.broadcast %28 : vector<1x512xf32> to vector<3x512xf32>
    %30 = arith.mulf %27, %29 : vector<3x512xf32>
    %c2_27 = arith.constant 2 : index
    %c0_28 = arith.constant 0 : index
    %c0_29 = arith.constant 0 : index
    %31 = vector.load %arg1[%c2_27, %c0_28, %c0_29] : memref<9x8x3xf32, #tpu.memory_space<vmem>>, vector<1x8x3xf32>
    %32 = vector.shape_cast %31 : vector<1x8x3xf32> to vector<8x3xf32>
    %cst_30 = arith.constant dense<0.000000e+00> : vector<8x512xf32>
    %33 = tpu.matmul %32, %30, %cst_30 {dimension_numbers = #tpu.dot_dimension_numbers<[1], [0], [0], [1], [0, 0, 1, 1], [], []>} : vector<8x3xf32>, vector<3x512xf32>, vector<8x512xf32> -> vector<8x512xf32>
    %34 = arith.addf %26, %33 : vector<8x512xf32>
    %c0_31 = arith.constant 0 : index
    %c127 = arith.constant 127 : index
    %35 = vector.load %arg20[%c0_31, %c127] : memref<8x768xf32, #tpu.memory_space<vmem>>, vector<3x512xf32>
    %c3 = arith.constant 3 : index
    %c0_32 = arith.constant 0 : index
    %36 = vector.load %arg7[%c3, %c0_32] : memref<9x512xf32, #tpu.memory_space<vmem>>, vector<1x512xf32>
    %37 = vector.broadcast %36 : vector<1x512xf32> to vector<3x512xf32>
    %38 = arith.mulf %35, %37 : vector<3x512xf32>
    %c3_33 = arith.constant 3 : index
    %c0_34 = arith.constant 0 : index
    %c0_35 = arith.constant 0 : index
    %39 = vector.load %arg1[%c3_33, %c0_34, %c0_35] : memref<9x8x3xf32, #tpu.memory_space<vmem>>, vector<1x8x3xf32>
    %40 = vector.shape_cast %39 : vector<1x8x3xf32> to vector<8x3xf32>
    %cst_36 = arith.constant dense<0.000000e+00> : vector<8x512xf32>
    %41 = tpu.matmul %40, %38, %cst_36 {dimension_numbers = #tpu.dot_dimension_numbers<[1], [0], [0], [1], [0, 0, 1, 1], [], []>} : vector<8x3xf32>, vector<3x512xf32>, vector<8x512xf32> -> vector<8x512xf32>
    %42 = arith.addf %34, %41 : vector<8x512xf32>
    %c0_37 = arith.constant 0 : index
    %c128_38 = arith.constant 128 : index
    %43 = vector.load %arg20[%c0_37, %c128_38] : memref<8x768xf32, #tpu.memory_space<vmem>>, vector<3x512xf32>
    %c4 = arith.constant 4 : index
    %c0_39 = arith.constant 0 : index
    %c0_40 = arith.constant 0 : index
    %44 = vector.load %arg1[%c4, %c0_39, %c0_40] : memref<9x8x3xf32, #tpu.memory_space<vmem>>, vector<1x8x3xf32>
    %45 = vector.shape_cast %44 : vector<1x8x3xf32> to vector<8x3xf32>
    %cst_41 = arith.constant dense<0.000000e+00> : vector<8x512xf32>
    %46 = tpu.matmul %45, %43, %cst_41 {dimension_numbers = #tpu.dot_dimension_numbers<[1], [0], [0], [1], [0, 0, 1, 1], [], []>} : vector<8x3xf32>, vector<3x512xf32>, vector<8x512xf32> -> vector<8x512xf32>
    %47 = arith.addf %42, %46 : vector<8x512xf32>
    %c0_42 = arith.constant 0 : index
    %c129 = arith.constant 129 : index
    %48 = vector.load %arg20[%c0_42, %c129] : memref<8x768xf32, #tpu.memory_space<vmem>>, vector<3x512xf32>
    %c5 = arith.constant 5 : index
    %c0_43 = arith.constant 0 : index
    %49 = vector.load %arg7[%c5, %c0_43] : memref<9x512xf32, #tpu.memory_space<vmem>>, vector<1x512xf32>
    %50 = vector.broadcast %49 : vector<1x512xf32> to vector<3x512xf32>
    %51 = arith.mulf %48, %50 : vector<3x512xf32>
    %c5_44 = arith.constant 5 : index
    %c0_45 = arith.constant 0 : index
    %c0_46 = arith.constant 0 : index
    %52 = vector.load %arg1[%c5_44, %c0_45, %c0_46] : memref<9x8x3xf32, #tpu.memory_space<vmem>>, vector<1x8x3xf32>
    %53 = vector.shape_cast %52 : vector<1x8x3xf32> to vector<8x3xf32>
    %cst_47 = arith.constant dense<0.000000e+00> : vector<8x512xf32>
    %54 = tpu.matmul %53, %51, %cst_47 {dimension_numbers = #tpu.dot_dimension_numbers<[1], [0], [0], [1], [0, 0, 1, 1], [], []>} : vector<8x3xf32>, vector<3x512xf32>, vector<8x512xf32> -> vector<8x512xf32>
    %55 = arith.addf %47, %54 : vector<8x512xf32>
    %c0_48 = arith.constant 0 : index
    %c143 = arith.constant 143 : index
    %56 = vector.load %arg20[%c0_48, %c143] : memref<8x768xf32, #tpu.memory_space<vmem>>, vector<3x512xf32>
    %c6 = arith.constant 6 : index
    %c0_49 = arith.constant 0 : index
    %57 = vector.load %arg7[%c6, %c0_49] : memref<9x512xf32, #tpu.memory_space<vmem>>, vector<1x512xf32>
    %58 = vector.broadcast %57 : vector<1x512xf32> to vector<3x512xf32>
    %59 = arith.mulf %56, %58 : vector<3x512xf32>
    %c6_50 = arith.constant 6 : index
    %c0_51 = arith.constant 0 : index
    %c0_52 = arith.constant 0 : index
    %60 = vector.load %arg1[%c6_50, %c0_51, %c0_52] : memref<9x8x3xf32, #tpu.memory_space<vmem>>, vector<1x8x3xf32>
    %61 = vector.shape_cast %60 : vector<1x8x3xf32> to vector<8x3xf32>
    %cst_53 = arith.constant dense<0.000000e+00> : vector<8x512xf32>
    %62 = tpu.matmul %61, %59, %cst_53 {dimension_numbers = #tpu.dot_dimension_numbers<[1], [0], [0], [1], [0, 0, 1, 1], [], []>} : vector<8x3xf32>, vector<3x512xf32>, vector<8x512xf32> -> vector<8x512xf32>
    %63 = arith.addf %55, %62 : vector<8x512xf32>
    %c0_54 = arith.constant 0 : index
    %c144 = arith.constant 144 : index
    %64 = vector.load %arg20[%c0_54, %c144] : memref<8x768xf32, #tpu.memory_space<vmem>>, vector<3x512xf32>
    %c7 = arith.constant 7 : index
    %c0_55 = arith.constant 0 : index
    %65 = vector.load %arg7[%c7, %c0_55] : memref<9x512xf32, #tpu.memory_space<vmem>>, vector<1x512xf32>
    %66 = vector.broadcast %65 : vector<1x512xf32> to vector<3x512xf32>
    %67 = arith.mulf %64, %66 : vector<3x512xf32>
    %c7_56 = arith.constant 7 : index
    %c0_57 = arith.constant 0 : index
    %c0_58 = arith.constant 0 : index
    %68 = vector.load %arg1[%c7_56, %c0_57, %c0_58] : memref<9x8x3xf32, #tpu.memory_space<vmem>>, vector<1x8x3xf32>
    %69 = vector.shape_cast %68 : vector<1x8x3xf32> to vector<8x3xf32>
    %cst_59 = arith.constant dense<0.000000e+00> : vector<8x512xf32>
    %70 = tpu.matmul %69, %67, %cst_59 {dimension_numbers = #tpu.dot_dimension_numbers<[1], [0], [0], [1], [0, 0, 1, 1], [], []>} : vector<8x3xf32>, vector<3x512xf32>, vector<8x512xf32> -> vector<8x512xf32>
    %71 = arith.addf %63, %70 : vector<8x512xf32>
    %c0_60 = arith.constant 0 : index
    %c145 = arith.constant 145 : index
    %72 = vector.load %arg20[%c0_60, %c145] : memref<8x768xf32, #tpu.memory_space<vmem>>, vector<3x512xf32>
    %c8_61 = arith.constant 8 : index
    %c0_62 = arith.constant 0 : index
    %73 = vector.load %arg7[%c8_61, %c0_62] : memref<9x512xf32, #tpu.memory_space<vmem>>, vector<1x512xf32>
    %74 = vector.broadcast %73 : vector<1x512xf32> to vector<3x512xf32>
    %75 = arith.mulf %72, %74 : vector<3x512xf32>
    %c8_63 = arith.constant 8 : index
    %c0_64 = arith.constant 0 : index
    %c0_65 = arith.constant 0 : index
    %76 = vector.load %arg1[%c8_63, %c0_64, %c0_65] : memref<9x8x3xf32, #tpu.memory_space<vmem>>, vector<1x8x3xf32>
    %77 = vector.shape_cast %76 : vector<1x8x3xf32> to vector<8x3xf32>
    %cst_66 = arith.constant dense<0.000000e+00> : vector<8x512xf32>
    %78 = tpu.matmul %77, %75, %cst_66 {dimension_numbers = #tpu.dot_dimension_numbers<[1], [0], [0], [1], [0, 0, 1, 1], [], []>} : vector<8x3xf32>, vector<3x512xf32>, vector<8x512xf32> -> vector<8x512xf32>
    %79 = arith.addf %71, %78 : vector<8x512xf32>
    %c0_67 = arith.constant 0 : index
    %c0_68 = arith.constant 0 : index
    %c0_69 = arith.constant 0 : index
    %80 = vector.load %arg5[%c0_67, %c0_68, %c0_69] : memref<5x8x1xf32, #tpu.memory_space<vmem>>, vector<1x8x1xf32>
    %81 = vector.shape_cast %80 : vector<1x8x1xf32> to vector<8x1xf32>
    %82 = vector.broadcast %81 : vector<8x1xf32> to vector<8x512xf32>
    %83 = arith.addf %79, %82 : vector<8x512xf32>
    %cst_70 = arith.constant 0.000000e+00 : f32
    %84 = vector.broadcast %cst_70 : f32 to vector<8x512xf32>
    %85 = arith.maximumf %83, %84 : vector<8x512xf32>
    %86 = vector.broadcast %4 : vector<1x512xf32> to vector<8x512xf32>
    %87 = arith.mulf %85, %86 : vector<8x512xf32>
    %c0_71 = arith.constant 0 : index
    %c128_72 = arith.constant 128 : index
    %88 = vector.load %arg20[%c0_71, %c128_72] : memref<8x768xf32, #tpu.memory_space<vmem>>, vector<8x512xf32>
    tpu.vector_store %arg20[%c0_71, %c128_72], %87 {strides = array<i32>} : memref<8x768xf32, #tpu.memory_space<vmem>>, vector<8x512xf32>,
    %c0_73 = arith.constant 0 : index
    %c129_74 = arith.constant 129 : index
    %89 = vector.load %arg20[%c0_73, %c129_74] : memref<8x768xf32, #tpu.memory_space<vmem>>, vector<8x512xf32>
    %c0_75 = arith.constant 0 : index
    %c144_76 = arith.constant 144 : index
    %90 = vector.load %arg20[%c0_75, %c144_76] : memref<8x768xf32, #tpu.memory_space<vmem>>, vector<8x512xf32>
    %c0_77 = arith.constant 0 : index
    %c145_78 = arith.constant 145 : index
    %91 = vector.load %arg20[%c0_77, %c145_78] : memref<8x768xf32, #tpu.memory_space<vmem>>, vector<8x512xf32>
    %92 = arith.maximumf %87, %89 : vector<8x512xf32>
    %93 = arith.maximumf %90, %91 : vector<8x512xf32>
    %94 = arith.maximumf %92, %93 : vector<8x512xf32>
    %95 = arith.cmpf oeq, %87, %94 : vector<8x512xf32>
    %96 = arith.cmpf oeq, %89, %94 : vector<8x512xf32>
    %97 = arith.cmpf oeq, %90, %94 : vector<8x512xf32>
    %cst_79 = arith.constant 2.000000e+00 : f32
    %cst_80 = arith.constant 3.000000e+00 : f32
    %98 = vector.broadcast %cst_79 : f32 to vector<8x512xf32>
    %99 = vector.broadcast %cst_80 : f32 to vector<8x512xf32>
    %100 = arith.select %97, %98, %99 : vector<8x512xi1>, vector<8x512xf32>
    %cst_81 = arith.constant 1.000000e+00 : f32
    %101 = vector.broadcast %cst_81 : f32 to vector<8x512xf32>
    %102 = arith.select %96, %101, %100 : vector<8x512xi1>, vector<8x512xf32>
    %cst_82 = arith.constant 0.000000e+00 : f32
    %103 = vector.broadcast %cst_82 : f32 to vector<8x512xf32>
    %104 = arith.select %95, %103, %102 : vector<8x512xi1>, vector<8x512xf32>
    %c0_83 = arith.constant 0 : index
    %c0_84 = arith.constant 0 : index
    %105 = vector.load %arg21[%c0_83, %c0_84] : memref<16x512xf32, #tpu.memory_space<vmem>>, vector<8x512xf32>
    tpu.vector_store %arg21[%c0_83, %c0_84], %94 {strides = array<i32>} : memref<16x512xf32, #tpu.memory_space<vmem>>, vector<8x512xf32>,
    %c8_85 = arith.constant 8 : index
    %c0_86 = arith.constant 0 : index
    %106 = vector.load %arg21[%c8_85, %c0_86] : memref<16x512xf32, #tpu.memory_space<vmem>>, vector<8x512xf32>
    tpu.vector_store %arg21[%c8_85, %c0_86], %104 {strides = array<i32>} : memref<16x512xf32, #tpu.memory_space<vmem>>, vector<8x512xf32>,
    %c0_87 = arith.constant 0 : index
    %c0_88 = arith.constant 0 : index
    %107 = vector.load %arg21[%c0_87, %c0_88] : memref<16x512xf32, #tpu.memory_space<vmem>>, vector<16x512xf32>
    %c0_89 = arith.constant 0 : index
    %c0_90 = arith.constant 0 : index
    %108 = vector.load %arg11[%c0_89, %c0_90] : memref<512x128xf32, #tpu.memory_space<vmem>>, vector<512x128xf32>
    %cst_91 = arith.constant dense<0.000000e+00> : vector<16x128xf32>
    %109 = tpu.matmul %107, %108, %cst_91 {dimension_numbers = #tpu.dot_dimension_numbers<[1], [0], [0], [1], [0, 0, 1, 1], [], []>} : vector<16x512xf32>, vector<512x128xf32>, vector<16x128xf32> -> vector<16x128xf32>
    %110 = vector.extract_strided_slice %109 {offsets = [0, 0], sizes = [8, 128], strides = [1, 1]} : vector<16x128xf32> to vector<8x128xf32>
    %111 = vector.extract_strided_slice %109 {offsets = [8, 0], sizes = [8, 128], strides = [1, 1]} : vector<16x128xf32> to vector<8x128xf32>
    %c0_92 = arith.constant 0 : index
    %c128_93 = arith.constant 128 : index
    %112 = vector.load %arg20[%c0_92, %c128_93] : memref<8x768xf32, #tpu.memory_space<vmem>>, vector<8x128xf32>
    tpu.vector_store %arg20[%c0_92, %c128_93], %110 {strides = array<i32>} : memref<8x768xf32, #tpu.memory_space<vmem>>, vector<8x128xf32>,
    %cst_94 = arith.constant 0.000000e+00 : f32
    %113 = vector.broadcast %cst_94 : f32 to vector<8x128xf32>
    %c0_95 = arith.constant 0 : index
    %c119 = arith.constant 119 : index
    %114 = vector.load %arg20[%c0_95, %c119] : memref<8x768xf32, #tpu.memory_space<vmem>>, vector<8x128xf32>
    %c0_96 = arith.constant 0 : index
    %c0_97 = arith.constant 0 : index
    %115 = vector.load %arg8[%c0_96, %c0_97] : memref<9x128xf32, #tpu.memory_space<vmem>>, vector<1x128xf32>
    %116 = vector.broadcast %115 : vector<1x128xf32> to vector<8x128xf32>
    %117 = arith.mulf %114, %116 : vector<8x128xf32>
    %c0_98 = arith.constant 0 : index
    %c0_99 = arith.constant 0 : index
    %c0_100 = arith.constant 0 : index
    %c0_101 = arith.constant 0 : index
    %118 = vector.load %arg2[%c0_98, %c0_99, %c0_100, %c0_101] : memref<2x9x8x8xf32, #tpu.memory_space<vmem>>, vector<1x1x8x8xf32>
    %119 = vector.shape_cast %118 : vector<1x1x8x8xf32> to vector<8x8xf32>
    %cst_102 = arith.constant dense<0.000000e+00> : vector<8x128xf32>
    %120 = tpu.matmul %119, %117, %cst_102 {dimension_numbers = #tpu.dot_dimension_numbers<[1], [0], [0], [1], [0, 0, 1, 1], [], []>} : vector<8x8xf32>, vector<8x128xf32>, vector<8x128xf32> -> vector<8x128xf32>
    %121 = arith.addf %113, %120 : vector<8x128xf32>
    %c0_103 = arith.constant 0 : index
    %c120 = arith.constant 120 : index
    %122 = vector.load %arg20[%c0_103, %c120] : memref<8x768xf32, #tpu.memory_space<vmem>>, vector<8x128xf32>
    %c1_104 = arith.constant 1 : index
    %c0_105 = arith.constant 0 : index
    %123 = vector.load %arg8[%c1_104, %c0_105] : memref<9x128xf32, #tpu.memory_space<vmem>>, vector<1x128xf32>
    %124 = vector.broadcast %123 : vector<1x128xf32> to vector<8x128xf32>
    %125 = arith.mulf %122, %124 : vector<8x128xf32>
    %c0_106 = arith.constant 0 : index
    %c1_107 = arith.constant 1 : index
    %c0_108 = arith.constant 0 : index
    %c0_109 = arith.constant 0 : index
    %126 = vector.load %arg2[%c0_106, %c1_107, %c0_108, %c0_109] : memref<2x9x8x8xf32, #tpu.memory_space<vmem>>, vector<1x1x8x8xf32>
    %127 = vector.shape_cast %126 : vector<1x1x8x8xf32> to vector<8x8xf32>
    %cst_110 = arith.constant dense<0.000000e+00> : vector<8x128xf32>
    %128 = tpu.matmul %127, %125, %cst_110 {dimension_numbers = #tpu.dot_dimension_numbers<[1], [0], [0], [1], [0, 0, 1, 1], [], []>} : vector<8x8xf32>, vector<8x128xf32>, vector<8x128xf32> -> vector<8x128xf32>
    %129 = arith.addf %121, %128 : vector<8x128xf32>
    %c0_111 = arith.constant 0 : index
    %c121 = arith.constant 121 : index
    %130 = vector.load %arg20[%c0_111, %c121] : memref<8x768xf32, #tpu.memory_space<vmem>>, vector<8x128xf32>
    %c2_112 = arith.constant 2 : index
    %c0_113 = arith.constant 0 : index
    %131 = vector.load %arg8[%c2_112, %c0_113] : memref<9x128xf32, #tpu.memory_space<vmem>>, vector<1x128xf32>
    %132 = vector.broadcast %131 : vector<1x128xf32> to vector<8x128xf32>
    %133 = arith.mulf %130, %132 : vector<8x128xf32>
    %c0_114 = arith.constant 0 : index
    %c2_115 = arith.constant 2 : index
    %c0_116 = arith.constant 0 : index
    %c0_117 = arith.constant 0 : index
    %134 = vector.load %arg2[%c0_114, %c2_115, %c0_116, %c0_117] : memref<2x9x8x8xf32, #tpu.memory_space<vmem>>, vector<1x1x8x8xf32>
    %135 = vector.shape_cast %134 : vector<1x1x8x8xf32> to vector<8x8xf32>
    %cst_118 = arith.constant dense<0.000000e+00> : vector<8x128xf32>
    %136 = tpu.matmul %135, %133, %cst_118 {dimension_numbers = #tpu.dot_dimension_numbers<[1], [0], [0], [1], [0, 0, 1, 1], [], []>} : vector<8x8xf32>, vector<8x128xf32>, vector<8x128xf32> -> vector<8x128xf32>
    %137 = arith.addf %129, %136 : vector<8x128xf32>
    %c0_119 = arith.constant 0 : index
    %c127_120 = arith.constant 127 : index
    %138 = vector.load %arg20[%c0_119, %c127_120] : memref<8x768xf32, #tpu.memory_space<vmem>>, vector<8x128xf32>
    %c3_121 = arith.constant 3 : index
    %c0_122 = arith.constant 0 : index
    %139 = vector.load %arg8[%c3_121, %c0_122] : memref<9x128xf32, #tpu.memory_space<vmem>>, vector<1x128xf32>
    %140 = vector.broadcast %139 : vector<1x128xf32> to vector<8x128xf32>
    %141 = arith.mulf %138, %140 : vector<8x128xf32>
    %c0_123 = arith.constant 0 : index
    %c3_124 = arith.constant 3 : index
    %c0_125 = arith.constant 0 : index
    %c0_126 = arith.constant 0 : index
    %142 = vector.load %arg2[%c0_123, %c3_124, %c0_125, %c0_126] : memref<2x9x8x8xf32, #tpu.memory_space<vmem>>, vector<1x1x8x8xf32>
    %143 = vector.shape_cast %142 : vector<1x1x8x8xf32> to vector<8x8xf32>
    %cst_127 = arith.constant dense<0.000000e+00> : vector<8x128xf32>
    %144 = tpu.matmul %143, %141, %cst_127 {dimension_numbers = #tpu.dot_dimension_numbers<[1], [0], [0], [1], [0, 0, 1, 1], [], []>} : vector<8x8xf32>, vector<8x128xf32>, vector<8x128xf32> -> vector<8x128xf32>
    %145 = arith.addf %137, %144 : vector<8x128xf32>
    %c0_128 = arith.constant 0 : index
    %c128_129 = arith.constant 128 : index
    %146 = vector.load %arg20[%c0_128, %c128_129] : memref<8x768xf32, #tpu.memory_space<vmem>>, vector<8x128xf32>
    %c0_130 = arith.constant 0 : index
    %c4_131 = arith.constant 4 : index
    %c0_132 = arith.constant 0 : index
    %c0_133 = arith.constant 0 : index
    %147 = vector.load %arg2[%c0_130, %c4_131, %c0_132, %c0_133] : memref<2x9x8x8xf32, #tpu.memory_space<vmem>>, vector<1x1x8x8xf32>
    %148 = vector.shape_cast %147 : vector<1x1x8x8xf32> to vector<8x8xf32>
    %cst_134 = arith.constant dense<0.000000e+00> : vector<8x128xf32>
    %149 = tpu.matmul %148, %146, %cst_134 {dimension_numbers = #tpu.dot_dimension_numbers<[1], [0], [0], [1], [0, 0, 1, 1], [], []>} : vector<8x8xf32>, vector<8x128xf32>, vector<8x128xf32> -> vector<8x128xf32>
    %150 = arith.addf %145, %149 : vector<8x128xf32>
    %c0_135 = arith.constant 0 : index
    %c129_136 = arith.constant 129 : index
    %151 = vector.load %arg20[%c0_135, %c129_136] : memref<8x768xf32, #tpu.memory_space<vmem>>, vector<8x128xf32>
    %c5_137 = arith.constant 5 : index
    %c0_138 = arith.constant 0 : index
    %152 = vector.load %arg8[%c5_137, %c0_138] : memref<9x128xf32, #tpu.memory_space<vmem>>, vector<1x128xf32>
    %153 = vector.broadcast %152 : vector<1x128xf32> to vector<8x128xf32>
    %154 = arith.mulf %151, %153 : vector<8x128xf32>
    %c0_139 = arith.constant 0 : index
    %c5_140 = arith.constant 5 : index
    %c0_141 = arith.constant 0 : index
    %c0_142 = arith.constant 0 : index
    %155 = vector.load %arg2[%c0_139, %c5_140, %c0_141, %c0_142] : memref<2x9x8x8xf32, #tpu.memory_space<vmem>>, vector<1x1x8x8xf32>
    %156 = vector.shape_cast %155 : vector<1x1x8x8xf32> to vector<8x8xf32>
    %cst_143 = arith.constant dense<0.000000e+00> : vector<8x128xf32>
    %157 = tpu.matmul %156, %154, %cst_143 {dimension_numbers = #tpu.dot_dimension_numbers<[1], [0], [0], [1], [0, 0, 1, 1], [], []>} : vector<8x8xf32>, vector<8x128xf32>, vector<8x128xf32> -> vector<8x128xf32>
    %158 = arith.addf %150, %157 : vector<8x128xf32>
    %c0_144 = arith.constant 0 : index
    %c135 = arith.constant 135 : index
    %159 = vector.load %arg20[%c0_144, %c135] : memref<8x768xf32, #tpu.memory_space<vmem>>, vector<8x128xf32>
    %c6_145 = arith.constant 6 : index
    %c0_146 = arith.constant 0 : index
    %160 = vector.load %arg8[%c6_145, %c0_146] : memref<9x128xf32, #tpu.memory_space<vmem>>, vector<1x128xf32>
    %161 = vector.broadcast %160 : vector<1x128xf32> to vector<8x128xf32>
    %162 = arith.mulf %159, %161 : vector<8x128xf32>
    %c0_147 = arith.constant 0 : index
    %c6_148 = arith.constant 6 : index
    %c0_149 = arith.constant 0 : index
    %c0_150 = arith.constant 0 : index
    %163 = vector.load %arg2[%c0_147, %c6_148, %c0_149, %c0_150] : memref<2x9x8x8xf32, #tpu.memory_space<vmem>>, vector<1x1x8x8xf32>
    %164 = vector.shape_cast %163 : vector<1x1x8x8xf32> to vector<8x8xf32>
    %cst_151 = arith.constant dense<0.000000e+00> : vector<8x128xf32>
    %165 = tpu.matmul %164, %162, %cst_151 {dimension_numbers = #tpu.dot_dimension_numbers<[1], [0], [0], [1], [0, 0, 1, 1], [], []>} : vector<8x8xf32>, vector<8x128xf32>, vector<8x128xf32> -> vector<8x128xf32>
    %166 = arith.addf %158, %165 : vector<8x128xf32>
    %c0_152 = arith.constant 0 : index
    %c136 = arith.constant 136 : index
    %167 = vector.load %arg20[%c0_152, %c136] : memref<8x768xf32, #tpu.memory_space<vmem>>, vector<8x128xf32>
    %c7_153 = arith.constant 7 : index
    %c0_154 = arith.constant 0 : index
    %168 = vector.load %arg8[%c7_153, %c0_154] : memref<9x128xf32, #tpu.memory_space<vmem>>, vector<1x128xf32>
    %169 = vector.broadcast %168 : vector<1x128xf32> to vector<8x128xf32>
    %170 = arith.mulf %167, %169 : vector<8x128xf32>
    %c0_155 = arith.constant 0 : index
    %c7_156 = arith.constant 7 : index
    %c0_157 = arith.constant 0 : index
    %c0_158 = arith.constant 0 : index
    %171 = vector.load %arg2[%c0_155, %c7_156, %c0_157, %c0_158] : memref<2x9x8x8xf32, #tpu.memory_space<vmem>>, vector<1x1x8x8xf32>
    %172 = vector.shape_cast %171 : vector<1x1x8x8xf32> to vector<8x8xf32>
    %cst_159 = arith.constant dense<0.000000e+00> : vector<8x128xf32>
    %173 = tpu.matmul %172, %170, %cst_159 {dimension_numbers = #tpu.dot_dimension_numbers<[1], [0], [0], [1], [0, 0, 1, 1], [], []>} : vector<8x8xf32>, vector<8x128xf32>, vector<8x128xf32> -> vector<8x128xf32>
    %174 = arith.addf %166, %173 : vector<8x128xf32>
    %c0_160 = arith.constant 0 : index
    %c137 = arith.constant 137 : index
    %175 = vector.load %arg20[%c0_160, %c137] : memref<8x768xf32, #tpu.memory_space<vmem>>, vector<8x128xf32>
    %c8_161 = arith.constant 8 : index
    %c0_162 = arith.constant 0 : index
    %176 = vector.load %arg8[%c8_161, %c0_162] : memref<9x128xf32, #tpu.memory_space<vmem>>, vector<1x128xf32>
    %177 = vector.broadcast %176 : vector<1x128xf32> to vector<8x128xf32>
    %178 = arith.mulf %175, %177 : vector<8x128xf32>
    %c0_163 = arith.constant 0 : index
    %c8_164 = arith.constant 8 : index
    %c0_165 = arith.constant 0 : index
    %c0_166 = arith.constant 0 : index
    %179 = vector.load %arg2[%c0_163, %c8_164, %c0_165, %c0_166] : memref<2x9x8x8xf32, #tpu.memory_space<vmem>>, vector<1x1x8x8xf32>
    %180 = vector.shape_cast %179 : vector<1x1x8x8xf32> to vector<8x8xf32>
    %cst_167 = arith.constant dense<0.000000e+00> : vector<8x128xf32>
    %181 = tpu.matmul %180, %178, %cst_167 {dimension_numbers = #tpu.dot_dimension_numbers<[1], [0], [0], [1], [0, 0, 1, 1], [], []>} : vector<8x8xf32>, vector<8x128xf32>, vector<8x128xf32> -> vector<8x128xf32>
    %182 = arith.addf %174, %181 : vector<8x128xf32>
    %c1_168 = arith.constant 1 : index
    %c0_169 = arith.constant 0 : index
    %c0_170 = arith.constant 0 : index
    %183 = vector.load %arg5[%c1_168, %c0_169, %c0_170] : memref<5x8x1xf32, #tpu.memory_space<vmem>>, vector<1x8x1xf32>
    %184 = vector.shape_cast %183 : vector<1x8x1xf32> to vector<8x1xf32>
    %185 = vector.broadcast %184 : vector<8x1xf32> to vector<8x128xf32>
    %186 = arith.addf %182, %185 : vector<8x128xf32>
    %cst_171 = arith.constant 0.000000e+00 : f32
    %187 = vector.broadcast %cst_171 : f32 to vector<8x128xf32>
    %188 = arith.maximumf %186, %187 : vector<8x128xf32>
    %189 = vector.broadcast %7 : vector<1x128xf32> to vector<8x128xf32>
    %190 = arith.mulf %188, %189 : vector<8x128xf32>
    %191 = arith.addf %190, %110 : vector<8x128xf32>
    %c0_172 = arith.constant 0 : index
    %c128_173 = arith.constant 128 : index
    %192 = vector.load %arg20[%c0_172, %c128_173] : memref<8x768xf32, #tpu.memory_space<vmem>>, vector<8x128xf32>
    tpu.vector_store %arg20[%c0_172, %c128_173], %191 {strides = array<i32>} : memref<8x768xf32, #tpu.memory_space<vmem>>, vector<8x128xf32>,
    %cst_174 = arith.constant 0.000000e+00 : f32
    %193 = vector.broadcast %cst_174 : f32 to vector<8x128xf32>
    %c0_175 = arith.constant 0 : index
    %c119_176 = arith.constant 119 : index
    %194 = vector.load %arg20[%c0_175, %c119_176] : memref<8x768xf32, #tpu.memory_space<vmem>>, vector<8x128xf32>
    %c0_177 = arith.constant 0 : index
    %c0_178 = arith.constant 0 : index
    %195 = vector.load %arg8[%c0_177, %c0_178] : memref<9x128xf32, #tpu.memory_space<vmem>>, vector<1x128xf32>
    %196 = vector.broadcast %195 : vector<1x128xf32> to vector<8x128xf32>
    %197 = arith.mulf %194, %196 : vector<8x128xf32>
    %c1_179 = arith.constant 1 : index
    %c0_180 = arith.constant 0 : index
    %c0_181 = arith.constant 0 : index
    %c0_182 = arith.constant 0 : index
    %198 = vector.load %arg2[%c1_179, %c0_180, %c0_181, %c0_182] : memref<2x9x8x8xf32, #tpu.memory_space<vmem>>, vector<1x1x8x8xf32>
    %199 = vector.shape_cast %198 : vector<1x1x8x8xf32> to vector<8x8xf32>
    %cst_183 = arith.constant dense<0.000000e+00> : vector<8x128xf32>
    %200 = tpu.matmul %199, %197, %cst_183 {dimension_numbers = #tpu.dot_dimension_numbers<[1], [0], [0], [1], [0, 0, 1, 1], [], []>} : vector<8x8xf32>, vector<8x128xf32>, vector<8x128xf32> -> vector<8x128xf32>
    %201 = arith.addf %193, %200 : vector<8x128xf32>
    %c0_184 = arith.constant 0 : index
    %c120_185 = arith.constant 120 : index
    %202 = vector.load %arg20[%c0_184, %c120_185] : memref<8x768xf32, #tpu.memory_space<vmem>>, vector<8x128xf32>
    %c1_186 = arith.constant 1 : index
    %c0_187 = arith.constant 0 : index
    %203 = vector.load %arg8[%c1_186, %c0_187] : memref<9x128xf32, #tpu.memory_space<vmem>>, vector<1x128xf32>
    %204 = vector.broadcast %203 : vector<1x128xf32> to vector<8x128xf32>
    %205 = arith.mulf %202, %204 : vector<8x128xf32>
    %c1_188 = arith.constant 1 : index
    %c1_189 = arith.constant 1 : index
    %c0_190 = arith.constant 0 : index
    %c0_191 = arith.constant 0 : index
    %206 = vector.load %arg2[%c1_188, %c1_189, %c0_190, %c0_191] : memref<2x9x8x8xf32, #tpu.memory_space<vmem>>, vector<1x1x8x8xf32>
    %207 = vector.shape_cast %206 : vector<1x1x8x8xf32> to vector<8x8xf32>
    %cst_192 = arith.constant dense<0.000000e+00> : vector<8x128xf32>
    %208 = tpu.matmul %207, %205, %cst_192 {dimension_numbers = #tpu.dot_dimension_numbers<[1], [0], [0], [1], [0, 0, 1, 1], [], []>} : vector<8x8xf32>, vector<8x128xf32>, vector<8x128xf32> -> vector<8x128xf32>
    %209 = arith.addf %201, %208 : vector<8x128xf32>
    %c0_193 = arith.constant 0 : index
    %c121_194 = arith.constant 121 : index
    %210 = vector.load %arg20[%c0_193, %c121_194] : memref<8x768xf32, #tpu.memory_space<vmem>>, vector<8x128xf32>
    %c2_195 = arith.constant 2 : index
    %c0_196 = arith.constant 0 : index
    %211 = vector.load %arg8[%c2_195, %c0_196] : memref<9x128xf32, #tpu.memory_space<vmem>>, vector<1x128xf32>
    %212 = vector.broadcast %211 : vector<1x128xf32> to vector<8x128xf32>
    %213 = arith.mulf %210, %212 : vector<8x128xf32>
    %c1_197 = arith.constant 1 : index
    %c2_198 = arith.constant 2 : index
    %c0_199 = arith.constant 0 : index
    %c0_200 = arith.constant 0 : index
    %214 = vector.load %arg2[%c1_197, %c2_198, %c0_199, %c0_200] : memref<2x9x8x8xf32, #tpu.memory_space<vmem>>, vector<1x1x8x8xf32>
    %215 = vector.shape_cast %214 : vector<1x1x8x8xf32> to vector<8x8xf32>
    %cst_201 = arith.constant dense<0.000000e+00> : vector<8x128xf32>
    %216 = tpu.matmul %215, %213, %cst_201 {dimension_numbers = #tpu.dot_dimension_numbers<[1], [0], [0], [1], [0, 0, 1, 1], [], []>} : vector<8x8xf32>, vector<8x128xf32>, vector<8x128xf32> -> vector<8x128xf32>
    %217 = arith.addf %209, %216 : vector<8x128xf32>
    %c0_202 = arith.constant 0 : index
    %c127_203 = arith.constant 127 : index
    %218 = vector.load %arg20[%c0_202, %c127_203] : memref<8x768xf32, #tpu.memory_space<vmem>>, vector<8x128xf32>
    %c3_204 = arith.constant 3 : index
    %c0_205 = arith.constant 0 : index
    %219 = vector.load %arg8[%c3_204, %c0_205] : memref<9x128xf32, #tpu.memory_space<vmem>>, vector<1x128xf32>
    %220 = vector.broadcast %219 : vector<1x128xf32> to vector<8x128xf32>
    %221 = arith.mulf %218, %220 : vector<8x128xf32>
    %c1_206 = arith.constant 1 : index
    %c3_207 = arith.constant 3 : index
    %c0_208 = arith.constant 0 : index
    %c0_209 = arith.constant 0 : index
    %222 = vector.load %arg2[%c1_206, %c3_207, %c0_208, %c0_209] : memref<2x9x8x8xf32, #tpu.memory_space<vmem>>, vector<1x1x8x8xf32>
    %223 = vector.shape_cast %222 : vector<1x1x8x8xf32> to vector<8x8xf32>
    %cst_210 = arith.constant dense<0.000000e+00> : vector<8x128xf32>
    %224 = tpu.matmul %223, %221, %cst_210 {dimension_numbers = #tpu.dot_dimension_numbers<[1], [0], [0], [1], [0, 0, 1, 1], [], []>} : vector<8x8xf32>, vector<8x128xf32>, vector<8x128xf32> -> vector<8x128xf32>
    %225 = arith.addf %217, %224 : vector<8x128xf32>
    %c0_211 = arith.constant 0 : index
    %c128_212 = arith.constant 128 : index
    %226 = vector.load %arg20[%c0_211, %c128_212] : memref<8x768xf32, #tpu.memory_space<vmem>>, vector<8x128xf32>
    %c1_213 = arith.constant 1 : index
    %c4_214 = arith.constant 4 : index
    %c0_215 = arith.constant 0 : index
    %c0_216 = arith.constant 0 : index
    %227 = vector.load %arg2[%c1_213, %c4_214, %c0_215, %c0_216] : memref<2x9x8x8xf32, #tpu.memory_space<vmem>>, vector<1x1x8x8xf32>
    %228 = vector.shape_cast %227 : vector<1x1x8x8xf32> to vector<8x8xf32>
    %cst_217 = arith.constant dense<0.000000e+00> : vector<8x128xf32>
    %229 = tpu.matmul %228, %226, %cst_217 {dimension_numbers = #tpu.dot_dimension_numbers<[1], [0], [0], [1], [0, 0, 1, 1], [], []>} : vector<8x8xf32>, vector<8x128xf32>, vector<8x128xf32> -> vector<8x128xf32>
    %230 = arith.addf %225, %229 : vector<8x128xf32>
    %c0_218 = arith.constant 0 : index
    %c129_219 = arith.constant 129 : index
    %231 = vector.load %arg20[%c0_218, %c129_219] : memref<8x768xf32, #tpu.memory_space<vmem>>, vector<8x128xf32>
    %c5_220 = arith.constant 5 : index
    %c0_221 = arith.constant 0 : index
    %232 = vector.load %arg8[%c5_220, %c0_221] : memref<9x128xf32, #tpu.memory_space<vmem>>, vector<1x128xf32>
    %233 = vector.broadcast %232 : vector<1x128xf32> to vector<8x128xf32>
    %234 = arith.mulf %231, %233 : vector<8x128xf32>
    %c1_222 = arith.constant 1 : index
    %c5_223 = arith.constant 5 : index
    %c0_224 = arith.constant 0 : index
    %c0_225 = arith.constant 0 : index
    %235 = vector.load %arg2[%c1_222, %c5_223, %c0_224, %c0_225] : memref<2x9x8x8xf32, #tpu.memory_space<vmem>>, vector<1x1x8x8xf32>
    %236 = vector.shape_cast %235 : vector<1x1x8x8xf32> to vector<8x8xf32>
    %cst_226 = arith.constant dense<0.000000e+00> : vector<8x128xf32>
    %237 = tpu.matmul %236, %234, %cst_226 {dimension_numbers = #tpu.dot_dimension_numbers<[1], [0], [0], [1], [0, 0, 1, 1], [], []>} : vector<8x8xf32>, vector<8x128xf32>, vector<8x128xf32> -> vector<8x128xf32>
    %238 = arith.addf %230, %237 : vector<8x128xf32>
    %c0_227 = arith.constant 0 : index
    %c135_228 = arith.constant 135 : index
    %239 = vector.load %arg20[%c0_227, %c135_228] : memref<8x768xf32, #tpu.memory_space<vmem>>, vector<8x128xf32>
    %c6_229 = arith.constant 6 : index
    %c0_230 = arith.constant 0 : index
    %240 = vector.load %arg8[%c6_229, %c0_230] : memref<9x128xf32, #tpu.memory_space<vmem>>, vector<1x128xf32>
    %241 = vector.broadcast %240 : vector<1x128xf32> to vector<8x128xf32>
    %242 = arith.mulf %239, %241 : vector<8x128xf32>
    %c1_231 = arith.constant 1 : index
    %c6_232 = arith.constant 6 : index
    %c0_233 = arith.constant 0 : index
    %c0_234 = arith.constant 0 : index
    %243 = vector.load %arg2[%c1_231, %c6_232, %c0_233, %c0_234] : memref<2x9x8x8xf32, #tpu.memory_space<vmem>>, vector<1x1x8x8xf32>
    %244 = vector.shape_cast %243 : vector<1x1x8x8xf32> to vector<8x8xf32>
    %cst_235 = arith.constant dense<0.000000e+00> : vector<8x128xf32>
    %245 = tpu.matmul %244, %242, %cst_235 {dimension_numbers = #tpu.dot_dimension_numbers<[1], [0], [0], [1], [0, 0, 1, 1], [], []>} : vector<8x8xf32>, vector<8x128xf32>, vector<8x128xf32> -> vector<8x128xf32>
    %246 = arith.addf %238, %245 : vector<8x128xf32>
    %c0_236 = arith.constant 0 : index
    %c136_237 = arith.constant 136 : index
    %247 = vector.load %arg20[%c0_236, %c136_237] : memref<8x768xf32, #tpu.memory_space<vmem>>, vector<8x128xf32>
    %c7_238 = arith.constant 7 : index
    %c0_239 = arith.constant 0 : index
    %248 = vector.load %arg8[%c7_238, %c0_239] : memref<9x128xf32, #tpu.memory_space<vmem>>, vector<1x128xf32>
    %249 = vector.broadcast %248 : vector<1x128xf32> to vector<8x128xf32>
    %250 = arith.mulf %247, %249 : vector<8x128xf32>
    %c1_240 = arith.constant 1 : index
    %c7_241 = arith.constant 7 : index
    %c0_242 = arith.constant 0 : index
    %c0_243 = arith.constant 0 : index
    %251 = vector.load %arg2[%c1_240, %c7_241, %c0_242, %c0_243] : memref<2x9x8x8xf32, #tpu.memory_space<vmem>>, vector<1x1x8x8xf32>
    %252 = vector.shape_cast %251 : vector<1x1x8x8xf32> to vector<8x8xf32>
    %cst_244 = arith.constant dense<0.000000e+00> : vector<8x128xf32>
    %253 = tpu.matmul %252, %250, %cst_244 {dimension_numbers = #tpu.dot_dimension_numbers<[1], [0], [0], [1], [0, 0, 1, 1], [], []>} : vector<8x8xf32>, vector<8x128xf32>, vector<8x128xf32> -> vector<8x128xf32>
    %254 = arith.addf %246, %253 : vector<8x128xf32>
    %c0_245 = arith.constant 0 : index
    %c137_246 = arith.constant 137 : index
    %255 = vector.load %arg20[%c0_245, %c137_246] : memref<8x768xf32, #tpu.memory_space<vmem>>, vector<8x128xf32>
    %c8_247 = arith.constant 8 : index
    %c0_248 = arith.constant 0 : index
    %256 = vector.load %arg8[%c8_247, %c0_248] : memref<9x128xf32, #tpu.memory_space<vmem>>, vector<1x128xf32>
    %257 = vector.broadcast %256 : vector<1x128xf32> to vector<8x128xf32>
    %258 = arith.mulf %255, %257 : vector<8x128xf32>
    %c1_249 = arith.constant 1 : index
    %c8_250 = arith.constant 8 : index
    %c0_251 = arith.constant 0 : index
    %c0_252 = arith.constant 0 : index
    %259 = vector.load %arg2[%c1_249, %c8_250, %c0_251, %c0_252] : memref<2x9x8x8xf32, #tpu.memory_space<vmem>>, vector<1x1x8x8xf32>
    %260 = vector.shape_cast %259 : vector<1x1x8x8xf32> to vector<8x8xf32>
    %cst_253 = arith.constant dense<0.000000e+00> : vector<8x128xf32>
    %261 = tpu.matmul %260, %258, %cst_253 {dimension_numbers = #tpu.dot_dimension_numbers<[1], [0], [0], [1], [0, 0, 1, 1], [], []>} : vector<8x8xf32>, vector<8x128xf32>, vector<8x128xf32> -> vector<8x128xf32>
    %262 = arith.addf %254, %261 : vector<8x128xf32>
    %c2_254 = arith.constant 2 : index
    %c0_255 = arith.constant 0 : index
    %c0_256 = arith.constant 0 : index
    %263 = vector.load %arg5[%c2_254, %c0_255, %c0_256] : memref<5x8x1xf32, #tpu.memory_space<vmem>>, vector<1x8x1xf32>
    %264 = vector.shape_cast %263 : vector<1x8x1xf32> to vector<8x1xf32>
    %265 = vector.broadcast %264 : vector<8x1xf32> to vector<8x128xf32>
    %266 = arith.addf %262, %265 : vector<8x128xf32>
    %cst_257 = arith.constant 0.000000e+00 : f32
    %267 = vector.broadcast %cst_257 : f32 to vector<8x128xf32>
    %268 = arith.maximumf %266, %267 : vector<8x128xf32>
    %269 = vector.broadcast %7 : vector<1x128xf32> to vector<8x128xf32>
    %270 = arith.mulf %268, %269 : vector<8x128xf32>
    %271 = arith.addf %270, %191 : vector<8x128xf32>
    %c0_258 = arith.constant 0 : index
    %c128_259 = arith.constant 128 : index
    %272 = vector.load %arg20[%c0_258, %c128_259] : memref<8x768xf32, #tpu.memory_space<vmem>>, vector<8x128xf32>
    tpu.vector_store %arg20[%c0_258, %c128_259], %271 {strides = array<i32>} : memref<8x768xf32, #tpu.memory_space<vmem>>, vector<8x128xf32>,
    %c0_260 = arith.constant 0 : index
    %c129_261 = arith.constant 129 : index
    %273 = vector.load %arg20[%c0_260, %c129_261] : memref<8x768xf32, #tpu.memory_space<vmem>>, vector<8x128xf32>
    %c0_262 = arith.constant 0 : index
    %c136_263 = arith.constant 136 : index
    %274 = vector.load %arg20[%c0_262, %c136_263] : memref<8x768xf32, #tpu.memory_space<vmem>>, vector<8x128xf32>
    %c0_264 = arith.constant 0 : index
    %c137_265 = arith.constant 137 : index
    %275 = vector.load %arg20[%c0_264, %c137_265] : memref<8x768xf32, #tpu.memory_space<vmem>>, vector<8x128xf32>
    %276 = arith.maximumf %271, %273 : vector<8x128xf32>
    %277 = arith.maximumf %274, %275 : vector<8x128xf32>
    %278 = arith.maximumf %276, %277 : vector<8x128xf32>
    %279 = arith.cmpf oeq, %271, %278 : vector<8x128xf32>
    %280 = arith.cmpf oeq, %273, %278 : vector<8x128xf32>
    %281 = arith.cmpf oeq, %274, %278 : vector<8x128xf32>
    %cst_266 = arith.constant 2.000000e+00 : f32
    %cst_267 = arith.constant 3.000000e+00 : f32
    %282 = vector.broadcast %cst_266 : f32 to vector<8x128xf32>
    %283 = vector.broadcast %cst_267 : f32 to vector<8x128xf32>
    %284 = arith.select %281, %282, %283 : vector<8x128xi1>, vector<8x128xf32>
    %cst_268 = arith.constant 1.000000e+00 : f32
    %285 = vector.broadcast %cst_268 : f32 to vector<8x128xf32>
    %286 = arith.select %280, %285, %284 : vector<8x128xi1>, vector<8x128xf32>
    %cst_269 = arith.constant 0.000000e+00 : f32
    %287 = vector.broadcast %cst_269 : f32 to vector<8x128xf32>
    %288 = arith.select %279, %287, %286 : vector<8x128xi1>, vector<8x128xf32>
    %c0_270 = arith.constant 0 : index
    %c0_271 = arith.constant 0 : index
    %289 = vector.load %arg21[%c0_270, %c0_271] : memref<16x512xf32, #tpu.memory_space<vmem>>, vector<8x128xf32>
    tpu.vector_store %arg21[%c0_270, %c0_271], %278 {strides = array<i32>} : memref<16x512xf32, #tpu.memory_space<vmem>>, vector<8x128xf32>,
    %c8_272 = arith.constant 8 : index
    %c0_273 = arith.constant 0 : index
    %290 = vector.load %arg21[%c8_272, %c0_273] : memref<16x512xf32, #tpu.memory_space<vmem>>, vector<8x128xf32>
    tpu.vector_store %arg21[%c8_272, %c0_273], %288 {strides = array<i32>} : memref<16x512xf32, #tpu.memory_space<vmem>>, vector<8x128xf32>,
    %c0_274 = arith.constant 0 : index
    %c0_275 = arith.constant 0 : index
    %291 = vector.load %arg21[%c0_274, %c0_275] : memref<16x512xf32, #tpu.memory_space<vmem>>, vector<16x128xf32>
    %c0_276 = arith.constant 0 : index
    %c0_277 = arith.constant 0 : index
    %292 = vector.load %arg12[%c0_276, %c0_277] : memref<128x32xf32, #tpu.memory_space<vmem>>, vector<128x32xf32>
    %cst_278 = arith.constant dense<0.000000e+00> : vector<16x32xf32>
    %293 = tpu.matmul %291, %292, %cst_278 {dimension_numbers = #tpu.dot_dimension_numbers<[1], [0], [0], [1], [0, 0, 1, 1], [], []>} : vector<16x128xf32>, vector<128x32xf32>, vector<16x32xf32> -> vector<16x32xf32>
    %294 = vector.extract_strided_slice %293 {offsets = [0, 0], sizes = [8, 32], strides = [1, 1]} : vector<16x32xf32> to vector<8x32xf32>
    %295 = vector.extract_strided_slice %293 {offsets = [8, 0], sizes = [8, 32], strides = [1, 1]} : vector<16x32xf32> to vector<8x32xf32>
    %c0_279 = arith.constant 0 : index
    %c0_280 = arith.constant 0 : index
    %296 = vector.load %arg22[%c0_279, %c0_280] : memref<8x32xf32, #tpu.memory_space<vmem>>, vector<8x32xf32>
    tpu.vector_store %arg22[%c0_279, %c0_280], %294 {strides = array<i32>} : memref<8x32xf32, #tpu.memory_space<vmem>>, vector<8x32xf32>,
    %c0_281 = arith.constant 0 : index
    %c0_282 = arith.constant 0 : index
    %297 = vector.load %arg16[%c0_281, %c0_282] : memref<1x32xf32, #tpu.memory_space<vmem>>, vector<1x32xf32>
    %c0_283 = arith.constant 0 : index
    %c0_284 = arith.constant 0 : index
    %298 = vector.load %arg22[%c0_283, %c0_284] : memref<8x32xf32, #tpu.memory_space<vmem>>, vector<1x16xf32>
    %c0_285 = arith.constant 0 : index
    %c0_286 = arith.constant 0 : index
    %c0_287 = arith.constant 0 : index
    %299 = vector.load %arg15[%c0_285, %c0_286, %c0_287] : memref<8x16x32xf32, #tpu.memory_space<vmem>>, vector<1x16x32xf32>
    %300 = vector.shape_cast %299 : vector<1x16x32xf32> to vector<16x32xf32>
    %cst_288 = arith.constant dense<0.000000e+00> : vector<1x32xf32>
    %301 = tpu.matmul %298, %300, %cst_288 {dimension_numbers = #tpu.dot_dimension_numbers<[1], [0], [0], [1], [0, 0, 1, 1], [], []>} : vector<1x16xf32>, vector<16x32xf32>, vector<1x32xf32> -> vector<1x32xf32>
    %302 = arith.addf %297, %301 : vector<1x32xf32>
    %c1_289 = arith.constant 1 : index
    %c0_290 = arith.constant 0 : index
    %303 = vector.load %arg22[%c1_289, %c0_290] : memref<8x32xf32, #tpu.memory_space<vmem>>, vector<1x16xf32>
    %c1_291 = arith.constant 1 : index
    %c0_292 = arith.constant 0 : index
    %c0_293 = arith.constant 0 : index
    %304 = vector.load %arg15[%c1_291, %c0_292, %c0_293] : memref<8x16x32xf32, #tpu.memory_space<vmem>>, vector<1x16x32xf32>
    %305 = vector.shape_cast %304 : vector<1x16x32xf32> to vector<16x32xf32>
    %cst_294 = arith.constant dense<0.000000e+00> : vector<1x32xf32>
    %306 = tpu.matmul %303, %305, %cst_294 {dimension_numbers = #tpu.dot_dimension_numbers<[1], [0], [0], [1], [0, 0, 1, 1], [], []>} : vector<1x16xf32>, vector<16x32xf32>, vector<1x32xf32> -> vector<1x32xf32>
    %307 = arith.addf %302, %306 : vector<1x32xf32>
    %c2_295 = arith.constant 2 : index
    %c0_296 = arith.constant 0 : index
    %308 = vector.load %arg22[%c2_295, %c0_296] : memref<8x32xf32, #tpu.memory_space<vmem>>, vector<1x16xf32>
    %c2_297 = arith.constant 2 : index
    %c0_298 = arith.constant 0 : index
    %c0_299 = arith.constant 0 : index
    %309 = vector.load %arg15[%c2_297, %c0_298, %c0_299] : memref<8x16x32xf32, #tpu.memory_space<vmem>>, vector<1x16x32xf32>
    %310 = vector.shape_cast %309 : vector<1x16x32xf32> to vector<16x32xf32>
    %cst_300 = arith.constant dense<0.000000e+00> : vector<1x32xf32>
    %311 = tpu.matmul %308, %310, %cst_300 {dimension_numbers = #tpu.dot_dimension_numbers<[1], [0], [0], [1], [0, 0, 1, 1], [], []>} : vector<1x16xf32>, vector<16x32xf32>, vector<1x32xf32> -> vector<1x32xf32>
    %312 = arith.addf %307, %311 : vector<1x32xf32>
    %c3_301 = arith.constant 3 : index
    %c0_302 = arith.constant 0 : index
    %313 = vector.load %arg22[%c3_301, %c0_302] : memref<8x32xf32, #tpu.memory_space<vmem>>, vector<1x16xf32>
    %c3_303 = arith.constant 3 : index
    %c0_304 = arith.constant 0 : index
    %c0_305 = arith.constant 0 : index
    %314 = vector.load %arg15[%c3_303, %c0_304, %c0_305] : memref<8x16x32xf32, #tpu.memory_space<vmem>>, vector<1x16x32xf32>
    %315 = vector.shape_cast %314 : vector<1x16x32xf32> to vector<16x32xf32>
    %cst_306 = arith.constant dense<0.000000e+00> : vector<1x32xf32>
    %316 = tpu.matmul %313, %315, %cst_306 {dimension_numbers = #tpu.dot_dimension_numbers<[1], [0], [0], [1], [0, 0, 1, 1], [], []>} : vector<1x16xf32>, vector<16x32xf32>, vector<1x32xf32> -> vector<1x32xf32>
    %317 = arith.addf %312, %316 : vector<1x32xf32>
    %c4_307 = arith.constant 4 : index
    %c0_308 = arith.constant 0 : index
    %318 = vector.load %arg22[%c4_307, %c0_308] : memref<8x32xf32, #tpu.memory_space<vmem>>, vector<1x16xf32>
    %c4_309 = arith.constant 4 : index
    %c0_310 = arith.constant 0 : index
    %c0_311 = arith.constant 0 : index
    %319 = vector.load %arg15[%c4_309, %c0_310, %c0_311] : memref<8x16x32xf32, #tpu.memory_space<vmem>>, vector<1x16x32xf32>
    %320 = vector.shape_cast %319 : vector<1x16x32xf32> to vector<16x32xf32>
    %cst_312 = arith.constant dense<0.000000e+00> : vector<1x32xf32>
    %321 = tpu.matmul %318, %320, %cst_312 {dimension_numbers = #tpu.dot_dimension_numbers<[1], [0], [0], [1], [0, 0, 1, 1], [], []>} : vector<1x16xf32>, vector<16x32xf32>, vector<1x32xf32> -> vector<1x32xf32>
    %322 = arith.addf %317, %321 : vector<1x32xf32>
    %c5_313 = arith.constant 5 : index
    %c0_314 = arith.constant 0 : index
    %323 = vector.load %arg22[%c5_313, %c0_314] : memref<8x32xf32, #tpu.memory_space<vmem>>, vector<1x16xf32>
    %c5_315 = arith.constant 5 : index
    %c0_316 = arith.constant 0 : index
    %c0_317 = arith.constant 0 : index
    %324 = vector.load %arg15[%c5_315, %c0_316, %c0_317] : memref<8x16x32xf32, #tpu.memory_space<vmem>>, vector<1x16x32xf32>
    %325 = vector.shape_cast %324 : vector<1x16x32xf32> to vector<16x32xf32>
    %cst_318 = arith.constant dense<0.000000e+00> : vector<1x32xf32>
    %326 = tpu.matmul %323, %325, %cst_318 {dimension_numbers = #tpu.dot_dimension_numbers<[1], [0], [0], [1], [0, 0, 1, 1], [], []>} : vector<1x16xf32>, vector<16x32xf32>, vector<1x32xf32> -> vector<1x32xf32>
    %327 = arith.addf %322, %326 : vector<1x32xf32>
    %c6_319 = arith.constant 6 : index
    %c0_320 = arith.constant 0 : index
    %328 = vector.load %arg22[%c6_319, %c0_320] : memref<8x32xf32, #tpu.memory_space<vmem>>, vector<1x16xf32>
    %c6_321 = arith.constant 6 : index
    %c0_322 = arith.constant 0 : index
    %c0_323 = arith.constant 0 : index
    %329 = vector.load %arg15[%c6_321, %c0_322, %c0_323] : memref<8x16x32xf32, #tpu.memory_space<vmem>>, vector<1x16x32xf32>
    %330 = vector.shape_cast %329 : vector<1x16x32xf32> to vector<16x32xf32>
    %cst_324 = arith.constant dense<0.000000e+00> : vector<1x32xf32>
    %331 = tpu.matmul %328, %330, %cst_324 {dimension_numbers = #tpu.dot_dimension_numbers<[1], [0], [0], [1], [0, 0, 1, 1], [], []>} : vector<1x16xf32>, vector<16x32xf32>, vector<1x32xf32> -> vector<1x32xf32>
    %332 = arith.addf %327, %331 : vector<1x32xf32>
    %c7_325 = arith.constant 7 : index
    %c0_326 = arith.constant 0 : index
    %333 = vector.load %arg22[%c7_325, %c0_326] : memref<8x32xf32, #tpu.memory_space<vmem>>, vector<1x16xf32>
    %c7_327 = arith.constant 7 : index
    %c0_328 = arith.constant 0 : index
    %c0_329 = arith.constant 0 : index
    %334 = vector.load %arg15[%c7_327, %c0_328, %c0_329] : memref<8x16x32xf32, #tpu.memory_space<vmem>>, vector<1x16x32xf32>
    %335 = vector.shape_cast %334 : vector<1x16x32xf32> to vector<16x32xf32>
    %cst_330 = arith.constant dense<0.000000e+00> : vector<1x32xf32>
    %336 = tpu.matmul %333, %335, %cst_330 {dimension_numbers = #tpu.dot_dimension_numbers<[1], [0], [0], [1], [0, 0, 1, 1], [], []>} : vector<1x16xf32>, vector<16x32xf32>, vector<1x32xf32> -> vector<1x32xf32>
    %337 = arith.addf %332, %336 : vector<1x32xf32>
    %c0_331 = arith.constant 0 : index
    %c0_332 = arith.constant 0 : index
    %338 = vector.load %arg16[%c0_331, %c0_332] : memref<1x32xf32, #tpu.memory_space<vmem>>, vector<1x32xf32>
    %c0_333 = arith.constant 0 : index
    %c16 = arith.constant 16 : index
    %339 = vector.load %arg22[%c0_333, %c16] : memref<8x32xf32, #tpu.memory_space<vmem>>, vector<1x16xf32>
    %c0_334 = arith.constant 0 : index
    %c0_335 = arith.constant 0 : index
    %c0_336 = arith.constant 0 : index
    %340 = vector.load %arg15[%c0_334, %c0_335, %c0_336] : memref<8x16x32xf32, #tpu.memory_space<vmem>>, vector<1x16x32xf32>
    %341 = vector.shape_cast %340 : vector<1x16x32xf32> to vector<16x32xf32>
    %cst_337 = arith.constant dense<0.000000e+00> : vector<1x32xf32>
    %342 = tpu.matmul %339, %341, %cst_337 {dimension_numbers = #tpu.dot_dimension_numbers<[1], [0], [0], [1], [0, 0, 1, 1], [], []>} : vector<1x16xf32>, vector<16x32xf32>, vector<1x32xf32> -> vector<1x32xf32>
    %343 = arith.addf %338, %342 : vector<1x32xf32>
    %c1_338 = arith.constant 1 : index
    %c16_339 = arith.constant 16 : index
    %344 = vector.load %arg22[%c1_338, %c16_339] : memref<8x32xf32, #tpu.memory_space<vmem>>, vector<1x16xf32>
    %c1_340 = arith.constant 1 : index
    %c0_341 = arith.constant 0 : index
    %c0_342 = arith.constant 0 : index
    %345 = vector.load %arg15[%c1_340, %c0_341, %c0_342] : memref<8x16x32xf32, #tpu.memory_space<vmem>>, vector<1x16x32xf32>
    %346 = vector.shape_cast %345 : vector<1x16x32xf32> to vector<16x32xf32>
    %cst_343 = arith.constant dense<0.000000e+00> : vector<1x32xf32>
    %347 = tpu.matmul %344, %346, %cst_343 {dimension_numbers = #tpu.dot_dimension_numbers<[1], [0], [0], [1], [0, 0, 1, 1], [], []>} : vector<1x16xf32>, vector<16x32xf32>, vector<1x32xf32> -> vector<1x32xf32>
    %348 = arith.addf %343, %347 : vector<1x32xf32>
    %c2_344 = arith.constant 2 : index
    %c16_345 = arith.constant 16 : index
    %349 = vector.load %arg22[%c2_344, %c16_345] : memref<8x32xf32, #tpu.memory_space<vmem>>, vector<1x16xf32>
    %c2_346 = arith.constant 2 : index
    %c0_347 = arith.constant 0 : index
    %c0_348 = arith.constant 0 : index
    %350 = vector.load %arg15[%c2_346, %c0_347, %c0_348] : memref<8x16x32xf32, #tpu.memory_space<vmem>>, vector<1x16x32xf32>
    %351 = vector.shape_cast %350 : vector<1x16x32xf32> to vector<16x32xf32>
    %cst_349 = arith.constant dense<0.000000e+00> : vector<1x32xf32>
    %352 = tpu.matmul %349, %351, %cst_349 {dimension_numbers = #tpu.dot_dimension_numbers<[1], [0], [0], [1], [0, 0, 1, 1], [], []>} : vector<1x16xf32>, vector<16x32xf32>, vector<1x32xf32> -> vector<1x32xf32>
    %353 = arith.addf %348, %352 : vector<1x32xf32>
    %c3_350 = arith.constant 3 : index
    %c16_351 = arith.constant 16 : index
    %354 = vector.load %arg22[%c3_350, %c16_351] : memref<8x32xf32, #tpu.memory_space<vmem>>, vector<1x16xf32>
    %c3_352 = arith.constant 3 : index
    %c0_353 = arith.constant 0 : index
    %c0_354 = arith.constant 0 : index
    %355 = vector.load %arg15[%c3_352, %c0_353, %c0_354] : memref<8x16x32xf32, #tpu.memory_space<vmem>>, vector<1x16x32xf32>
    %356 = vector.shape_cast %355 : vector<1x16x32xf32> to vector<16x32xf32>
    %cst_355 = arith.constant dense<0.000000e+00> : vector<1x32xf32>
    %357 = tpu.matmul %354, %356, %cst_355 {dimension_numbers = #tpu.dot_dimension_numbers<[1], [0], [0], [1], [0, 0, 1, 1], [], []>} : vector<1x16xf32>, vector<16x32xf32>, vector<1x32xf32> -> vector<1x32xf32>
    %358 = arith.addf %353, %357 : vector<1x32xf32>
    %c4_356 = arith.constant 4 : index
    %c16_357 = arith.constant 16 : index
    %359 = vector.load %arg22[%c4_356, %c16_357] : memref<8x32xf32, #tpu.memory_space<vmem>>, vector<1x16xf32>
    %c4_358 = arith.constant 4 : index
    %c0_359 = arith.constant 0 : index
    %c0_360 = arith.constant 0 : index
    %360 = vector.load %arg15[%c4_358, %c0_359, %c0_360] : memref<8x16x32xf32, #tpu.memory_space<vmem>>, vector<1x16x32xf32>
    %361 = vector.shape_cast %360 : vector<1x16x32xf32> to vector<16x32xf32>
    %cst_361 = arith.constant dense<0.000000e+00> : vector<1x32xf32>
    %362 = tpu.matmul %359, %361, %cst_361 {dimension_numbers = #tpu.dot_dimension_numbers<[1], [0], [0], [1], [0, 0, 1, 1], [], []>} : vector<1x16xf32>, vector<16x32xf32>, vector<1x32xf32> -> vector<1x32xf32>
    %363 = arith.addf %358, %362 : vector<1x32xf32>
    %c5_362 = arith.constant 5 : index
    %c16_363 = arith.constant 16 : index
    %364 = vector.load %arg22[%c5_362, %c16_363] : memref<8x32xf32, #tpu.memory_space<vmem>>, vector<1x16xf32>
    %c5_364 = arith.constant 5 : index
    %c0_365 = arith.constant 0 : index
    %c0_366 = arith.constant 0 : index
    %365 = vector.load %arg15[%c5_364, %c0_365, %c0_366] : memref<8x16x32xf32, #tpu.memory_space<vmem>>, vector<1x16x32xf32>
    %366 = vector.shape_cast %365 : vector<1x16x32xf32> to vector<16x32xf32>
    %cst_367 = arith.constant dense<0.000000e+00> : vector<1x32xf32>
    %367 = tpu.matmul %364, %366, %cst_367 {dimension_numbers = #tpu.dot_dimension_numbers<[1], [0], [0], [1], [0, 0, 1, 1], [], []>} : vector<1x16xf32>, vector<16x32xf32>, vector<1x32xf32> -> vector<1x32xf32>
    %368 = arith.addf %363, %367 : vector<1x32xf32>
    %c6_368 = arith.constant 6 : index
    %c16_369 = arith.constant 16 : index
    %369 = vector.load %arg22[%c6_368, %c16_369] : memref<8x32xf32, #tpu.memory_space<vmem>>, vector<1x16xf32>
    %c6_370 = arith.constant 6 : index
    %c0_371 = arith.constant 0 : index
    %c0_372 = arith.constant 0 : index
    %370 = vector.load %arg15[%c6_370, %c0_371, %c0_372] : memref<8x16x32xf32, #tpu.memory_space<vmem>>, vector<1x16x32xf32>
    %371 = vector.shape_cast %370 : vector<1x16x32xf32> to vector<16x32xf32>
    %cst_373 = arith.constant dense<0.000000e+00> : vector<1x32xf32>
    %372 = tpu.matmul %369, %371, %cst_373 {dimension_numbers = #tpu.dot_dimension_numbers<[1], [0], [0], [1], [0, 0, 1, 1], [], []>} : vector<1x16xf32>, vector<16x32xf32>, vector<1x32xf32> -> vector<1x32xf32>
    %373 = arith.addf %368, %372 : vector<1x32xf32>
    %c7_374 = arith.constant 7 : index
    %c16_375 = arith.constant 16 : index
    %374 = vector.load %arg22[%c7_374, %c16_375] : memref<8x32xf32, #tpu.memory_space<vmem>>, vector<1x16xf32>
    %c7_376 = arith.constant 7 : index
    %c0_377 = arith.constant 0 : index
    %c0_378 = arith.constant 0 : index
    %375 = vector.load %arg15[%c7_376, %c0_377, %c0_378] : memref<8x16x32xf32, #tpu.memory_space<vmem>>, vector<1x16x32xf32>
    %376 = vector.shape_cast %375 : vector<1x16x32xf32> to vector<16x32xf32>
    %cst_379 = arith.constant dense<0.000000e+00> : vector<1x32xf32>
    %377 = tpu.matmul %374, %376, %cst_379 {dimension_numbers = #tpu.dot_dimension_numbers<[1], [0], [0], [1], [0, 0, 1, 1], [], []>} : vector<1x16xf32>, vector<16x32xf32>, vector<1x32xf32> -> vector<1x32xf32>
    %378 = arith.addf %373, %377 : vector<1x32xf32>
    %c0_380 = arith.constant 0 : index
    %c0_381 = arith.constant 0 : index
    %c0_382 = arith.constant 0 : index
    %379 = vector.load %arg17[%c0_380, %c0_381, %c0_382] : memref<8x32x16xf32, #tpu.memory_space<vmem>>, vector<1x32x16xf32>
    %380 = vector.shape_cast %379 : vector<1x32x16xf32> to vector<32x16xf32>
    %cst_383 = arith.constant dense<0.000000e+00> : vector<1x16xf32>
    %381 = tpu.matmul %337, %380, %cst_383 {dimension_numbers = #tpu.dot_dimension_numbers<[1], [0], [0], [1], [0, 0, 1, 1], [], []>} : vector<1x32xf32>, vector<32x16xf32>, vector<1x16xf32> -> vector<1x16xf32>
    %c0_384 = arith.constant 0 : index
    %c0_385 = arith.constant 0 : index
    %382 = vector.load %arg18[%c0_384, %c0_385] : memref<8x16xf32, #tpu.memory_space<vmem>>, vector<1x16xf32>
    %383 = arith.addf %381, %382 : vector<1x16xf32>
    %c0_386 = arith.constant 0 : index
    %c0_387 = arith.constant 0 : index
    %384 = vector.load %arg23[%c0_386, %c0_387] : memref<8x32xf32, #tpu.memory_space<vmem>>, vector<1x16xf32>
    tpu.vector_store %arg23[%c0_386, %c0_387], %383 {strides = array<i32>} : memref<8x32xf32, #tpu.memory_space<vmem>>, vector<1x16xf32>,
    %c1_388 = arith.constant 1 : index
    %c0_389 = arith.constant 0 : index
    %c0_390 = arith.constant 0 : index
    %385 = vector.load %arg17[%c1_388, %c0_389, %c0_390] : memref<8x32x16xf32, #tpu.memory_space<vmem>>, vector<1x32x16xf32>
    %386 = vector.shape_cast %385 : vector<1x32x16xf32> to vector<32x16xf32>
    %cst_391 = arith.constant dense<0.000000e+00> : vector<1x16xf32>
    %387 = tpu.matmul %337, %386, %cst_391 {dimension_numbers = #tpu.dot_dimension_numbers<[1], [0], [0], [1], [0, 0, 1, 1], [], []>} : vector<1x32xf32>, vector<32x16xf32>, vector<1x16xf32> -> vector<1x16xf32>
    %c1_392 = arith.constant 1 : index
    %c0_393 = arith.constant 0 : index
    %388 = vector.load %arg18[%c1_392, %c0_393] : memref<8x16xf32, #tpu.memory_space<vmem>>, vector<1x16xf32>
    %389 = arith.addf %387, %388 : vector<1x16xf32>
    %c1_394 = arith.constant 1 : index
    %c0_395 = arith.constant 0 : index
    %390 = vector.load %arg23[%c1_394, %c0_395] : memref<8x32xf32, #tpu.memory_space<vmem>>, vector<1x16xf32>
    tpu.vector_store %arg23[%c1_394, %c0_395], %389 {strides = array<i32>} : memref<8x32xf32, #tpu.memory_space<vmem>>, vector<1x16xf32>,
    %c2_396 = arith.constant 2 : index
    %c0_397 = arith.constant 0 : index
    %c0_398 = arith.constant 0 : index
    %391 = vector.load %arg17[%c2_396, %c0_397, %c0_398] : memref<8x32x16xf32, #tpu.memory_space<vmem>>, vector<1x32x16xf32>
    %392 = vector.shape_cast %391 : vector<1x32x16xf32> to vector<32x16xf32>
    %cst_399 = arith.constant dense<0.000000e+00> : vector<1x16xf32>
    %393 = tpu.matmul %337, %392, %cst_399 {dimension_numbers = #tpu.dot_dimension_numbers<[1], [0], [0], [1], [0, 0, 1, 1], [], []>} : vector<1x32xf32>, vector<32x16xf32>, vector<1x16xf32> -> vector<1x16xf32>
    %c2_400 = arith.constant 2 : index
    %c0_401 = arith.constant 0 : index
    %394 = vector.load %arg18[%c2_400, %c0_401] : memref<8x16xf32, #tpu.memory_space<vmem>>, vector<1x16xf32>
    %395 = arith.addf %393, %394 : vector<1x16xf32>
    %c2_402 = arith.constant 2 : index
    %c0_403 = arith.constant 0 : index
    %396 = vector.load %arg23[%c2_402, %c0_403] : memref<8x32xf32, #tpu.memory_space<vmem>>, vector<1x16xf32>
    tpu.vector_store %arg23[%c2_402, %c0_403], %395 {strides = array<i32>} : memref<8x32xf32, #tpu.memory_space<vmem>>, vector<1x16xf32>,
    %c3_404 = arith.constant 3 : index
    %c0_405 = arith.constant 0 : index
    %c0_406 = arith.constant 0 : index
    %397 = vector.load %arg17[%c3_404, %c0_405, %c0_406] : memref<8x32x16xf32, #tpu.memory_space<vmem>>, vector<1x32x16xf32>
    %398 = vector.shape_cast %397 : vector<1x32x16xf32> to vector<32x16xf32>
    %cst_407 = arith.constant dense<0.000000e+00> : vector<1x16xf32>
    %399 = tpu.matmul %337, %398, %cst_407 {dimension_numbers = #tpu.dot_dimension_numbers<[1], [0], [0], [1], [0, 0, 1, 1], [], []>} : vector<1x32xf32>, vector<32x16xf32>, vector<1x16xf32> -> vector<1x16xf32>
    %c3_408 = arith.constant 3 : index
    %c0_409 = arith.constant 0 : index
    %400 = vector.load %arg18[%c3_408, %c0_409] : memref<8x16xf32, #tpu.memory_space<vmem>>, vector<1x16xf32>
    %401 = arith.addf %399, %400 : vector<1x16xf32>
    %c3_410 = arith.constant 3 : index
    %c0_411 = arith.constant 0 : index
    %402 = vector.load %arg23[%c3_410, %c0_411] : memref<8x32xf32, #tpu.memory_space<vmem>>, vector<1x16xf32>
    tpu.vector_store %arg23[%c3_410, %c0_411], %401 {strides = array<i32>} : memref<8x32xf32, #tpu.memory_space<vmem>>, vector<1x16xf32>,
    %c4_412 = arith.constant 4 : index
    %c0_413 = arith.constant 0 : index
    %c0_414 = arith.constant 0 : index
    %403 = vector.load %arg17[%c4_412, %c0_413, %c0_414] : memref<8x32x16xf32, #tpu.memory_space<vmem>>, vector<1x32x16xf32>
    %404 = vector.shape_cast %403 : vector<1x32x16xf32> to vector<32x16xf32>
    %cst_415 = arith.constant dense<0.000000e+00> : vector<1x16xf32>
    %405 = tpu.matmul %337, %404, %cst_415 {dimension_numbers = #tpu.dot_dimension_numbers<[1], [0], [0], [1], [0, 0, 1, 1], [], []>} : vector<1x32xf32>, vector<32x16xf32>, vector<1x16xf32> -> vector<1x16xf32>
    %c4_416 = arith.constant 4 : index
    %c0_417 = arith.constant 0 : index
    %406 = vector.load %arg18[%c4_416, %c0_417] : memref<8x16xf32, #tpu.memory_space<vmem>>, vector<1x16xf32>
    %407 = arith.addf %405, %406 : vector<1x16xf32>
    %c4_418 = arith.constant 4 : index
    %c0_419 = arith.constant 0 : index
    %408 = vector.load %arg23[%c4_418, %c0_419] : memref<8x32xf32, #tpu.memory_space<vmem>>, vector<1x16xf32>
    tpu.vector_store %arg23[%c4_418, %c0_419], %407 {strides = array<i32>} : memref<8x32xf32, #tpu.memory_space<vmem>>, vector<1x16xf32>,
    %c5_420 = arith.constant 5 : index
    %c0_421 = arith.constant 0 : index
    %c0_422 = arith.constant 0 : index
    %409 = vector.load %arg17[%c5_420, %c0_421, %c0_422] : memref<8x32x16xf32, #tpu.memory_space<vmem>>, vector<1x32x16xf32>
    %410 = vector.shape_cast %409 : vector<1x32x16xf32> to vector<32x16xf32>
    %cst_423 = arith.constant dense<0.000000e+00> : vector<1x16xf32>
    %411 = tpu.matmul %337, %410, %cst_423 {dimension_numbers = #tpu.dot_dimension_numbers<[1], [0], [0], [1], [0, 0, 1, 1], [], []>} : vector<1x32xf32>, vector<32x16xf32>, vector<1x16xf32> -> vector<1x16xf32>
    %c5_424 = arith.constant 5 : index
    %c0_425 = arith.constant 0 : index
    %412 = vector.load %arg18[%c5_424, %c0_425] : memref<8x16xf32, #tpu.memory_space<vmem>>, vector<1x16xf32>
    %413 = arith.addf %411, %412 : vector<1x16xf32>
    %c5_426 = arith.constant 5 : index
    %c0_427 = arith.constant 0 : index
    %414 = vector.load %arg23[%c5_426, %c0_427] : memref<8x32xf32, #tpu.memory_space<vmem>>, vector<1x16xf32>
    tpu.vector_store %arg23[%c5_426, %c0_427], %413 {strides = array<i32>} : memref<8x32xf32, #tpu.memory_space<vmem>>, vector<1x16xf32>,
    %c6_428 = arith.constant 6 : index
    %c0_429 = arith.constant 0 : index
    %c0_430 = arith.constant 0 : index
    %415 = vector.load %arg17[%c6_428, %c0_429, %c0_430] : memref<8x32x16xf32, #tpu.memory_space<vmem>>, vector<1x32x16xf32>
    %416 = vector.shape_cast %415 : vector<1x32x16xf32> to vector<32x16xf32>
    %cst_431 = arith.constant dense<0.000000e+00> : vector<1x16xf32>
    %417 = tpu.matmul %337, %416, %cst_431 {dimension_numbers = #tpu.dot_dimension_numbers<[1], [0], [0], [1], [0, 0, 1, 1], [], []>} : vector<1x32xf32>, vector<32x16xf32>, vector<1x16xf32> -> vector<1x16xf32>
    %c6_432 = arith.constant 6 : index
    %c0_433 = arith.constant 0 : index
    %418 = vector.load %arg18[%c6_432, %c0_433] : memref<8x16xf32, #tpu.memory_space<vmem>>, vector<1x16xf32>
    %419 = arith.addf %417, %418 : vector<1x16xf32>
    %c6_434 = arith.constant 6 : index
    %c0_435 = arith.constant 0 : index
    %420 = vector.load %arg23[%c6_434, %c0_435] : memref<8x32xf32, #tpu.memory_space<vmem>>, vector<1x16xf32>
    tpu.vector_store %arg23[%c6_434, %c0_435], %419 {strides = array<i32>} : memref<8x32xf32, #tpu.memory_space<vmem>>, vector<1x16xf32>,
    %c7_436 = arith.constant 7 : index
    %c0_437 = arith.constant 0 : index
    %c0_438 = arith.constant 0 : index
    %421 = vector.load %arg17[%c7_436, %c0_437, %c0_438] : memref<8x32x16xf32, #tpu.memory_space<vmem>>, vector<1x32x16xf32>
    %422 = vector.shape_cast %421 : vector<1x32x16xf32> to vector<32x16xf32>
    %cst_439 = arith.constant dense<0.000000e+00> : vector<1x16xf32>
    %423 = tpu.matmul %337, %422, %cst_439 {dimension_numbers = #tpu.dot_dimension_numbers<[1], [0], [0], [1], [0, 0, 1, 1], [], []>} : vector<1x32xf32>, vector<32x16xf32>, vector<1x16xf32> -> vector<1x16xf32>
    %c7_440 = arith.constant 7 : index
    %c0_441 = arith.constant 0 : index
    %424 = vector.load %arg18[%c7_440, %c0_441] : memref<8x16xf32, #tpu.memory_space<vmem>>, vector<1x16xf32>
    %425 = arith.addf %423, %424 : vector<1x16xf32>
    %c7_442 = arith.constant 7 : index
    %c0_443 = arith.constant 0 : index
    %426 = vector.load %arg23[%c7_442, %c0_443] : memref<8x32xf32, #tpu.memory_space<vmem>>, vector<1x16xf32>
    tpu.vector_store %arg23[%c7_442, %c0_443], %425 {strides = array<i32>} : memref<8x32xf32, #tpu.memory_space<vmem>>, vector<1x16xf32>,
    %c0_444 = arith.constant 0 : index
    %c0_445 = arith.constant 0 : index
    %c0_446 = arith.constant 0 : index
    %427 = vector.load %arg17[%c0_444, %c0_445, %c0_446] : memref<8x32x16xf32, #tpu.memory_space<vmem>>, vector<1x32x16xf32>
    %428 = vector.shape_cast %427 : vector<1x32x16xf32> to vector<32x16xf32>
    %cst_447 = arith.constant dense<0.000000e+00> : vector<1x16xf32>
    %429 = tpu.matmul %378, %428, %cst_447 {dimension_numbers = #tpu.dot_dimension_numbers<[1], [0], [0], [1], [0, 0, 1, 1], [], []>} : vector<1x32xf32>, vector<32x16xf32>, vector<1x16xf32> -> vector<1x16xf32>
    %c0_448 = arith.constant 0 : index
    %c0_449 = arith.constant 0 : index
    %430 = vector.load %arg18[%c0_448, %c0_449] : memref<8x16xf32, #tpu.memory_space<vmem>>, vector<1x16xf32>
    %431 = arith.addf %429, %430 : vector<1x16xf32>
    %c0_450 = arith.constant 0 : index
    %c16_451 = arith.constant 16 : index
    %432 = vector.load %arg23[%c0_450, %c16_451] : memref<8x32xf32, #tpu.memory_space<vmem>>, vector<1x16xf32>
    tpu.vector_store %arg23[%c0_450, %c16_451], %431 {strides = array<i32>} : memref<8x32xf32, #tpu.memory_space<vmem>>, vector<1x16xf32>,
    %c1_452 = arith.constant 1 : index
    %c0_453 = arith.constant 0 : index
    %c0_454 = arith.constant 0 : index
    %433 = vector.load %arg17[%c1_452, %c0_453, %c0_454] : memref<8x32x16xf32, #tpu.memory_space<vmem>>, vector<1x32x16xf32>
    %434 = vector.shape_cast %433 : vector<1x32x16xf32> to vector<32x16xf32>
    %cst_455 = arith.constant dense<0.000000e+00> : vector<1x16xf32>
    %435 = tpu.matmul %378, %434, %cst_455 {dimension_numbers = #tpu.dot_dimension_numbers<[1], [0], [0], [1], [0, 0, 1, 1], [], []>} : vector<1x32xf32>, vector<32x16xf32>, vector<1x16xf32> -> vector<1x16xf32>
    %c1_456 = arith.constant 1 : index
    %c0_457 = arith.constant 0 : index
    %436 = vector.load %arg18[%c1_456, %c0_457] : memref<8x16xf32, #tpu.memory_space<vmem>>, vector<1x16xf32>
    %437 = arith.addf %435, %436 : vector<1x16xf32>
    %c1_458 = arith.constant 1 : index
    %c16_459 = arith.constant 16 : index
    %438 = vector.load %arg23[%c1_458, %c16_459] : memref<8x32xf32, #tpu.memory_space<vmem>>, vector<1x16xf32>
    tpu.vector_store %arg23[%c1_458, %c16_459], %437 {strides = array<i32>} : memref<8x32xf32, #tpu.memory_space<vmem>>, vector<1x16xf32>,
    %c2_460 = arith.constant 2 : index
    %c0_461 = arith.constant 0 : index
    %c0_462 = arith.constant 0 : index
    %439 = vector.load %arg17[%c2_460, %c0_461, %c0_462] : memref<8x32x16xf32, #tpu.memory_space<vmem>>, vector<1x32x16xf32>
    %440 = vector.shape_cast %439 : vector<1x32x16xf32> to vector<32x16xf32>
    %cst_463 = arith.constant dense<0.000000e+00> : vector<1x16xf32>
    %441 = tpu.matmul %378, %440, %cst_463 {dimension_numbers = #tpu.dot_dimension_numbers<[1], [0], [0], [1], [0, 0, 1, 1], [], []>} : vector<1x32xf32>, vector<32x16xf32>, vector<1x16xf32> -> vector<1x16xf32>
    %c2_464 = arith.constant 2 : index
    %c0_465 = arith.constant 0 : index
    %442 = vector.load %arg18[%c2_464, %c0_465] : memref<8x16xf32, #tpu.memory_space<vmem>>, vector<1x16xf32>
    %443 = arith.addf %441, %442 : vector<1x16xf32>
    %c2_466 = arith.constant 2 : index
    %c16_467 = arith.constant 16 : index
    %444 = vector.load %arg23[%c2_466, %c16_467] : memref<8x32xf32, #tpu.memory_space<vmem>>, vector<1x16xf32>
    tpu.vector_store %arg23[%c2_466, %c16_467], %443 {strides = array<i32>} : memref<8x32xf32, #tpu.memory_space<vmem>>, vector<1x16xf32>,
    %c3_468 = arith.constant 3 : index
    %c0_469 = arith.constant 0 : index
    %c0_470 = arith.constant 0 : index
    %445 = vector.load %arg17[%c3_468, %c0_469, %c0_470] : memref<8x32x16xf32, #tpu.memory_space<vmem>>, vector<1x32x16xf32>
    %446 = vector.shape_cast %445 : vector<1x32x16xf32> to vector<32x16xf32>
    %cst_471 = arith.constant dense<0.000000e+00> : vector<1x16xf32>
    %447 = tpu.matmul %378, %446, %cst_471 {dimension_numbers = #tpu.dot_dimension_numbers<[1], [0], [0], [1], [0, 0, 1, 1], [], []>} : vector<1x32xf32>, vector<32x16xf32>, vector<1x16xf32> -> vector<1x16xf32>
    %c3_472 = arith.constant 3 : index
    %c0_473 = arith.constant 0 : index
    %448 = vector.load %arg18[%c3_472, %c0_473] : memref<8x16xf32, #tpu.memory_space<vmem>>, vector<1x16xf32>
    %449 = arith.addf %447, %448 : vector<1x16xf32>
    %c3_474 = arith.constant 3 : index
    %c16_475 = arith.constant 16 : index
    %450 = vector.load %arg23[%c3_474, %c16_475] : memref<8x32xf32, #tpu.memory_space<vmem>>, vector<1x16xf32>
    tpu.vector_store %arg23[%c3_474, %c16_475], %449 {strides = array<i32>} : memref<8x32xf32, #tpu.memory_space<vmem>>, vector<1x16xf32>,
    %c4_476 = arith.constant 4 : index
    %c0_477 = arith.constant 0 : index
    %c0_478 = arith.constant 0 : index
    %451 = vector.load %arg17[%c4_476, %c0_477, %c0_478] : memref<8x32x16xf32, #tpu.memory_space<vmem>>, vector<1x32x16xf32>
    %452 = vector.shape_cast %451 : vector<1x32x16xf32> to vector<32x16xf32>
    %cst_479 = arith.constant dense<0.000000e+00> : vector<1x16xf32>
    %453 = tpu.matmul %378, %452, %cst_479 {dimension_numbers = #tpu.dot_dimension_numbers<[1], [0], [0], [1], [0, 0, 1, 1], [], []>} : vector<1x32xf32>, vector<32x16xf32>, vector<1x16xf32> -> vector<1x16xf32>
    %c4_480 = arith.constant 4 : index
    %c0_481 = arith.constant 0 : index
    %454 = vector.load %arg18[%c4_480, %c0_481] : memref<8x16xf32, #tpu.memory_space<vmem>>, vector<1x16xf32>
    %455 = arith.addf %453, %454 : vector<1x16xf32>
    %c4_482 = arith.constant 4 : index
    %c16_483 = arith.constant 16 : index
    %456 = vector.load %arg23[%c4_482, %c16_483] : memref<8x32xf32, #tpu.memory_space<vmem>>, vector<1x16xf32>
    tpu.vector_store %arg23[%c4_482, %c16_483], %455 {strides = array<i32>} : memref<8x32xf32, #tpu.memory_space<vmem>>, vector<1x16xf32>,
    %c5_484 = arith.constant 5 : index
    %c0_485 = arith.constant 0 : index
    %c0_486 = arith.constant 0 : index
    %457 = vector.load %arg17[%c5_484, %c0_485, %c0_486] : memref<8x32x16xf32, #tpu.memory_space<vmem>>, vector<1x32x16xf32>
    %458 = vector.shape_cast %457 : vector<1x32x16xf32> to vector<32x16xf32>
    %cst_487 = arith.constant dense<0.000000e+00> : vector<1x16xf32>
    %459 = tpu.matmul %378, %458, %cst_487 {dimension_numbers = #tpu.dot_dimension_numbers<[1], [0], [0], [1], [0, 0, 1, 1], [], []>} : vector<1x32xf32>, vector<32x16xf32>, vector<1x16xf32> -> vector<1x16xf32>
    %c5_488 = arith.constant 5 : index
    %c0_489 = arith.constant 0 : index
    %460 = vector.load %arg18[%c5_488, %c0_489] : memref<8x16xf32, #tpu.memory_space<vmem>>, vector<1x16xf32>
    %461 = arith.addf %459, %460 : vector<1x16xf32>
    %c5_490 = arith.constant 5 : index
    %c16_491 = arith.constant 16 : index
    %462 = vector.load %arg23[%c5_490, %c16_491] : memref<8x32xf32, #tpu.memory_space<vmem>>, vector<1x16xf32>
    tpu.vector_store %arg23[%c5_490, %c16_491], %461 {strides = array<i32>} : memref<8x32xf32, #tpu.memory_space<vmem>>, vector<1x16xf32>,
    %c6_492 = arith.constant 6 : index
    %c0_493 = arith.constant 0 : index
    %c0_494 = arith.constant 0 : index
    %463 = vector.load %arg17[%c6_492, %c0_493, %c0_494] : memref<8x32x16xf32, #tpu.memory_space<vmem>>, vector<1x32x16xf32>
    %464 = vector.shape_cast %463 : vector<1x32x16xf32> to vector<32x16xf32>
    %cst_495 = arith.constant dense<0.000000e+00> : vector<1x16xf32>
    %465 = tpu.matmul %378, %464, %cst_495 {dimension_numbers = #tpu.dot_dimension_numbers<[1], [0], [0], [1], [0, 0, 1, 1], [], []>} : vector<1x32xf32>, vector<32x16xf32>, vector<1x16xf32> -> vector<1x16xf32>
    %c6_496 = arith.constant 6 : index
    %c0_497 = arith.constant 0 : index
    %466 = vector.load %arg18[%c6_496, %c0_497] : memref<8x16xf32, #tpu.memory_space<vmem>>, vector<1x16xf32>
    %467 = arith.addf %465, %466 : vector<1x16xf32>
    %c6_498 = arith.constant 6 : index
    %c16_499 = arith.constant 16 : index
    %468 = vector.load %arg23[%c6_498, %c16_499] : memref<8x32xf32, #tpu.memory_space<vmem>>, vector<1x16xf32>
    tpu.vector_store %arg23[%c6_498, %c16_499], %467 {strides = array<i32>} : memref<8x32xf32, #tpu.memory_space<vmem>>, vector<1x16xf32>,
    %c7_500 = arith.constant 7 : index
    %c0_501 = arith.constant 0 : index
    %c0_502 = arith.constant 0 : index
    %469 = vector.load %arg17[%c7_500, %c0_501, %c0_502] : memref<8x32x16xf32, #tpu.memory_space<vmem>>, vector<1x32x16xf32>
    %470 = vector.shape_cast %469 : vector<1x32x16xf32> to vector<32x16xf32>
    %cst_503 = arith.constant dense<0.000000e+00> : vector<1x16xf32>
    %471 = tpu.matmul %378, %470, %cst_503 {dimension_numbers = #tpu.dot_dimension_numbers<[1], [0], [0], [1], [0, 0, 1, 1], [], []>} : vector<1x32xf32>, vector<32x16xf32>, vector<1x16xf32> -> vector<1x16xf32>
    %c7_504 = arith.constant 7 : index
    %c0_505 = arith.constant 0 : index
    %472 = vector.load %arg18[%c7_504, %c0_505] : memref<8x16xf32, #tpu.memory_space<vmem>>, vector<1x16xf32>
    %473 = arith.addf %471, %472 : vector<1x16xf32>
    %c7_506 = arith.constant 7 : index
    %c16_507 = arith.constant 16 : index
    %474 = vector.load %arg23[%c7_506, %c16_507] : memref<8x32xf32, #tpu.memory_space<vmem>>, vector<1x16xf32>
    tpu.vector_store %arg23[%c7_506, %c16_507], %473 {strides = array<i32>} : memref<8x32xf32, #tpu.memory_space<vmem>>, vector<1x16xf32>,
    %c0_508 = arith.constant 0 : index
    %c0_509 = arith.constant 0 : index
    %475 = vector.load %arg23[%c0_508, %c0_509] : memref<8x32xf32, #tpu.memory_space<vmem>>, vector<8x32xf32>
    %c0_510 = arith.constant 0 : index
    %c0_511 = arith.constant 0 : index
    %476 = vector.load %arg21[%c0_510, %c0_511] : memref<16x512xf32, #tpu.memory_space<vmem>>, vector<8x32xf32>
    tpu.vector_store %arg21[%c0_510, %c0_511], %475 {strides = array<i32>} : memref<16x512xf32, #tpu.memory_space<vmem>>, vector<8x32xf32>,
    %c8_512 = arith.constant 8 : index
    %c0_513 = arith.constant 0 : index
    %477 = vector.load %arg21[%c8_512, %c0_513] : memref<16x512xf32, #tpu.memory_space<vmem>>, vector<8x32xf32>
    tpu.vector_store %arg21[%c8_512, %c0_513], %295 {strides = array<i32>} : memref<16x512xf32, #tpu.memory_space<vmem>>, vector<8x32xf32>,
    %c0_514 = arith.constant 0 : index
    %c0_515 = arith.constant 0 : index
    %478 = vector.load %arg21[%c0_514, %c0_515] : memref<16x512xf32, #tpu.memory_space<vmem>>, vector<16x32xf32>
    %c0_516 = arith.constant 0 : index
    %c0_517 = arith.constant 0 : index
    %479 = vector.load %arg13[%c0_516, %c0_517] : memref<32x128xf32, #tpu.memory_space<vmem>>, vector<32x128xf32>
    %cst_518 = arith.constant dense<0.000000e+00> : vector<16x128xf32>
    %480 = tpu.matmul %478, %479, %cst_518 {dimension_numbers = #tpu.dot_dimension_numbers<[1], [0], [0], [1], [0, 0, 1, 1], [], []>} : vector<16x32xf32>, vector<32x128xf32>, vector<16x128xf32> -> vector<16x128xf32>
    %481 = vector.extract_strided_slice %480 {offsets = [0, 0], sizes = [8, 128], strides = [1, 1]} : vector<16x128xf32> to vector<8x128xf32>
    %482 = vector.extract_strided_slice %480 {offsets = [8, 0], sizes = [8, 128], strides = [1, 1]} : vector<16x128xf32> to vector<8x128xf32>
    %c0_519 = arith.constant 0 : index
    %c0_520 = arith.constant 0 : index
    %483 = vector.load %arg10[%c0_519, %c0_520] : memref<1x128xf32, #tpu.memory_space<vmem>>, vector<1x128xf32>
    %484 = vector.broadcast %483 : vector<1x128xf32> to vector<8x128xf32>
    %485 = arith.cmpf oeq, %484, %482 : vector<8x128xf32>
    %486 = arith.extui %485 : vector<8x128xi1> to vector<8x128xi32>
    %487 = arith.sitofp %486 : vector<8x128xi32> to vector<8x128xf32>
    %488 = arith.mulf %481, %487 : vector<8x128xf32>
    %c0_521 = arith.constant 0 : index
    %c128_522 = arith.constant 128 : index
    %489 = vector.load %arg20[%c0_521, %c128_522] : memref<8x768xf32, #tpu.memory_space<vmem>>, vector<8x128xf32>
    tpu.vector_store %arg20[%c0_521, %c128_522], %488 {strides = array<i32>} : memref<8x768xf32, #tpu.memory_space<vmem>>, vector<8x128xf32>,
    %cst_523 = arith.constant 0.000000e+00 : f32
    %490 = vector.broadcast %cst_523 : f32 to vector<8x128xf32>
    %c0_524 = arith.constant 0 : index
    %c119_525 = arith.constant 119 : index
    %491 = vector.load %arg20[%c0_524, %c119_525] : memref<8x768xf32, #tpu.memory_space<vmem>>, vector<8x128xf32>
    %c0_526 = arith.constant 0 : index
    %c0_527 = arith.constant 0 : index
    %492 = vector.load %arg8[%c0_526, %c0_527] : memref<9x128xf32, #tpu.memory_space<vmem>>, vector<1x128xf32>
    %493 = vector.broadcast %492 : vector<1x128xf32> to vector<8x128xf32>
    %494 = arith.mulf %491, %493 : vector<8x128xf32>
    %c0_528 = arith.constant 0 : index
    %c0_529 = arith.constant 0 : index
    %c0_530 = arith.constant 0 : index
    %c0_531 = arith.constant 0 : index
    %495 = vector.load %arg3[%c0_528, %c0_529, %c0_530, %c0_531] : memref<2x9x8x8xf32, #tpu.memory_space<vmem>>, vector<1x1x8x8xf32>
    %496 = vector.shape_cast %495 : vector<1x1x8x8xf32> to vector<8x8xf32>
    %cst_532 = arith.constant dense<0.000000e+00> : vector<8x128xf32>
    %497 = tpu.matmul %496, %494, %cst_532 {dimension_numbers = #tpu.dot_dimension_numbers<[1], [0], [0], [1], [0, 0, 1, 1], [], []>} : vector<8x8xf32>, vector<8x128xf32>, vector<8x128xf32> -> vector<8x128xf32>
    %498 = arith.addf %490, %497 : vector<8x128xf32>
    %c0_533 = arith.constant 0 : index
    %c120_534 = arith.constant 120 : index
    %499 = vector.load %arg20[%c0_533, %c120_534] : memref<8x768xf32, #tpu.memory_space<vmem>>, vector<8x128xf32>
    %c1_535 = arith.constant 1 : index
    %c0_536 = arith.constant 0 : index
    %500 = vector.load %arg8[%c1_535, %c0_536] : memref<9x128xf32, #tpu.memory_space<vmem>>, vector<1x128xf32>
    %501 = vector.broadcast %500 : vector<1x128xf32> to vector<8x128xf32>
    %502 = arith.mulf %499, %501 : vector<8x128xf32>
    %c0_537 = arith.constant 0 : index
    %c1_538 = arith.constant 1 : index
    %c0_539 = arith.constant 0 : index
    %c0_540 = arith.constant 0 : index
    %503 = vector.load %arg3[%c0_537, %c1_538, %c0_539, %c0_540] : memref<2x9x8x8xf32, #tpu.memory_space<vmem>>, vector<1x1x8x8xf32>
    %504 = vector.shape_cast %503 : vector<1x1x8x8xf32> to vector<8x8xf32>
    %cst_541 = arith.constant dense<0.000000e+00> : vector<8x128xf32>
    %505 = tpu.matmul %504, %502, %cst_541 {dimension_numbers = #tpu.dot_dimension_numbers<[1], [0], [0], [1], [0, 0, 1, 1], [], []>} : vector<8x8xf32>, vector<8x128xf32>, vector<8x128xf32> -> vector<8x128xf32>
    %506 = arith.addf %498, %505 : vector<8x128xf32>
    %c0_542 = arith.constant 0 : index
    %c121_543 = arith.constant 121 : index
    %507 = vector.load %arg20[%c0_542, %c121_543] : memref<8x768xf32, #tpu.memory_space<vmem>>, vector<8x128xf32>
    %c2_544 = arith.constant 2 : index
    %c0_545 = arith.constant 0 : index
    %508 = vector.load %arg8[%c2_544, %c0_545] : memref<9x128xf32, #tpu.memory_space<vmem>>, vector<1x128xf32>
    %509 = vector.broadcast %508 : vector<1x128xf32> to vector<8x128xf32>
    %510 = arith.mulf %507, %509 : vector<8x128xf32>
    %c0_546 = arith.constant 0 : index
    %c2_547 = arith.constant 2 : index
    %c0_548 = arith.constant 0 : index
    %c0_549 = arith.constant 0 : index
    %511 = vector.load %arg3[%c0_546, %c2_547, %c0_548, %c0_549] : memref<2x9x8x8xf32, #tpu.memory_space<vmem>>, vector<1x1x8x8xf32>
    %512 = vector.shape_cast %511 : vector<1x1x8x8xf32> to vector<8x8xf32>
    %cst_550 = arith.constant dense<0.000000e+00> : vector<8x128xf32>
    %513 = tpu.matmul %512, %510, %cst_550 {dimension_numbers = #tpu.dot_dimension_numbers<[1], [0], [0], [1], [0, 0, 1, 1], [], []>} : vector<8x8xf32>, vector<8x128xf32>, vector<8x128xf32> -> vector<8x128xf32>
    %514 = arith.addf %506, %513 : vector<8x128xf32>
    %c0_551 = arith.constant 0 : index
    %c127_552 = arith.constant 127 : index
    %515 = vector.load %arg20[%c0_551, %c127_552] : memref<8x768xf32, #tpu.memory_space<vmem>>, vector<8x128xf32>
    %c3_553 = arith.constant 3 : index
    %c0_554 = arith.constant 0 : index
    %516 = vector.load %arg8[%c3_553, %c0_554] : memref<9x128xf32, #tpu.memory_space<vmem>>, vector<1x128xf32>
    %517 = vector.broadcast %516 : vector<1x128xf32> to vector<8x128xf32>
    %518 = arith.mulf %515, %517 : vector<8x128xf32>
    %c0_555 = arith.constant 0 : index
    %c3_556 = arith.constant 3 : index
    %c0_557 = arith.constant 0 : index
    %c0_558 = arith.constant 0 : index
    %519 = vector.load %arg3[%c0_555, %c3_556, %c0_557, %c0_558] : memref<2x9x8x8xf32, #tpu.memory_space<vmem>>, vector<1x1x8x8xf32>
    %520 = vector.shape_cast %519 : vector<1x1x8x8xf32> to vector<8x8xf32>
    %cst_559 = arith.constant dense<0.000000e+00> : vector<8x128xf32>
    %521 = tpu.matmul %520, %518, %cst_559 {dimension_numbers = #tpu.dot_dimension_numbers<[1], [0], [0], [1], [0, 0, 1, 1], [], []>} : vector<8x8xf32>, vector<8x128xf32>, vector<8x128xf32> -> vector<8x128xf32>
    %522 = arith.addf %514, %521 : vector<8x128xf32>
    %c0_560 = arith.constant 0 : index
    %c128_561 = arith.constant 128 : index
    %523 = vector.load %arg20[%c0_560, %c128_561] : memref<8x768xf32, #tpu.memory_space<vmem>>, vector<8x128xf32>
    %c0_562 = arith.constant 0 : index
    %c4_563 = arith.constant 4 : index
    %c0_564 = arith.constant 0 : index
    %c0_565 = arith.constant 0 : index
    %524 = vector.load %arg3[%c0_562, %c4_563, %c0_564, %c0_565] : memref<2x9x8x8xf32, #tpu.memory_space<vmem>>, vector<1x1x8x8xf32>
    %525 = vector.shape_cast %524 : vector<1x1x8x8xf32> to vector<8x8xf32>
    %cst_566 = arith.constant dense<0.000000e+00> : vector<8x128xf32>
    %526 = tpu.matmul %525, %523, %cst_566 {dimension_numbers = #tpu.dot_dimension_numbers<[1], [0], [0], [1], [0, 0, 1, 1], [], []>} : vector<8x8xf32>, vector<8x128xf32>, vector<8x128xf32> -> vector<8x128xf32>
    %527 = arith.addf %522, %526 : vector<8x128xf32>
    %c0_567 = arith.constant 0 : index
    %c129_568 = arith.constant 129 : index
    %528 = vector.load %arg20[%c0_567, %c129_568] : memref<8x768xf32, #tpu.memory_space<vmem>>, vector<8x128xf32>
    %c5_569 = arith.constant 5 : index
    %c0_570 = arith.constant 0 : index
    %529 = vector.load %arg8[%c5_569, %c0_570] : memref<9x128xf32, #tpu.memory_space<vmem>>, vector<1x128xf32>
    %530 = vector.broadcast %529 : vector<1x128xf32> to vector<8x128xf32>
    %531 = arith.mulf %528, %530 : vector<8x128xf32>
    %c0_571 = arith.constant 0 : index
    %c5_572 = arith.constant 5 : index
    %c0_573 = arith.constant 0 : index
    %c0_574 = arith.constant 0 : index
    %532 = vector.load %arg3[%c0_571, %c5_572, %c0_573, %c0_574] : memref<2x9x8x8xf32, #tpu.memory_space<vmem>>, vector<1x1x8x8xf32>
    %533 = vector.shape_cast %532 : vector<1x1x8x8xf32> to vector<8x8xf32>
    %cst_575 = arith.constant dense<0.000000e+00> : vector<8x128xf32>
    %534 = tpu.matmul %533, %531, %cst_575 {dimension_numbers = #tpu.dot_dimension_numbers<[1], [0], [0], [1], [0, 0, 1, 1], [], []>} : vector<8x8xf32>, vector<8x128xf32>, vector<8x128xf32> -> vector<8x128xf32>
    %535 = arith.addf %527, %534 : vector<8x128xf32>
    %c0_576 = arith.constant 0 : index
    %c135_577 = arith.constant 135 : index
    %536 = vector.load %arg20[%c0_576, %c135_577] : memref<8x768xf32, #tpu.memory_space<vmem>>, vector<8x128xf32>
    %c6_578 = arith.constant 6 : index
    %c0_579 = arith.constant 0 : index
    %537 = vector.load %arg8[%c6_578, %c0_579] : memref<9x128xf32, #tpu.memory_space<vmem>>, vector<1x128xf32>
    %538 = vector.broadcast %537 : vector<1x128xf32> to vector<8x128xf32>
    %539 = arith.mulf %536, %538 : vector<8x128xf32>
    %c0_580 = arith.constant 0 : index
    %c6_581 = arith.constant 6 : index
    %c0_582 = arith.constant 0 : index
    %c0_583 = arith.constant 0 : index
    %540 = vector.load %arg3[%c0_580, %c6_581, %c0_582, %c0_583] : memref<2x9x8x8xf32, #tpu.memory_space<vmem>>, vector<1x1x8x8xf32>
    %541 = vector.shape_cast %540 : vector<1x1x8x8xf32> to vector<8x8xf32>
    %cst_584 = arith.constant dense<0.000000e+00> : vector<8x128xf32>
    %542 = tpu.matmul %541, %539, %cst_584 {dimension_numbers = #tpu.dot_dimension_numbers<[1], [0], [0], [1], [0, 0, 1, 1], [], []>} : vector<8x8xf32>, vector<8x128xf32>, vector<8x128xf32> -> vector<8x128xf32>
    %543 = arith.addf %535, %542 : vector<8x128xf32>
    %c0_585 = arith.constant 0 : index
    %c136_586 = arith.constant 136 : index
    %544 = vector.load %arg20[%c0_585, %c136_586] : memref<8x768xf32, #tpu.memory_space<vmem>>, vector<8x128xf32>
    %c7_587 = arith.constant 7 : index
    %c0_588 = arith.constant 0 : index
    %545 = vector.load %arg8[%c7_587, %c0_588] : memref<9x128xf32, #tpu.memory_space<vmem>>, vector<1x128xf32>
    %546 = vector.broadcast %545 : vector<1x128xf32> to vector<8x128xf32>
    %547 = arith.mulf %544, %546 : vector<8x128xf32>
    %c0_589 = arith.constant 0 : index
    %c7_590 = arith.constant 7 : index
    %c0_591 = arith.constant 0 : index
    %c0_592 = arith.constant 0 : index
    %548 = vector.load %arg3[%c0_589, %c7_590, %c0_591, %c0_592] : memref<2x9x8x8xf32, #tpu.memory_space<vmem>>, vector<1x1x8x8xf32>
    %549 = vector.shape_cast %548 : vector<1x1x8x8xf32> to vector<8x8xf32>
    %cst_593 = arith.constant dense<0.000000e+00> : vector<8x128xf32>
    %550 = tpu.matmul %549, %547, %cst_593 {dimension_numbers = #tpu.dot_dimension_numbers<[1], [0], [0], [1], [0, 0, 1, 1], [], []>} : vector<8x8xf32>, vector<8x128xf32>, vector<8x128xf32> -> vector<8x128xf32>
    %551 = arith.addf %543, %550 : vector<8x128xf32>
    %c0_594 = arith.constant 0 : index
    %c137_595 = arith.constant 137 : index
    %552 = vector.load %arg20[%c0_594, %c137_595] : memref<8x768xf32, #tpu.memory_space<vmem>>, vector<8x128xf32>
    %c8_596 = arith.constant 8 : index
    %c0_597 = arith.constant 0 : index
    %553 = vector.load %arg8[%c8_596, %c0_597] : memref<9x128xf32, #tpu.memory_space<vmem>>, vector<1x128xf32>
    %554 = vector.broadcast %553 : vector<1x128xf32> to vector<8x128xf32>
    %555 = arith.mulf %552, %554 : vector<8x128xf32>
    %c0_598 = arith.constant 0 : index
    %c8_599 = arith.constant 8 : index
    %c0_600 = arith.constant 0 : index
    %c0_601 = arith.constant 0 : index
    %556 = vector.load %arg3[%c0_598, %c8_599, %c0_600, %c0_601] : memref<2x9x8x8xf32, #tpu.memory_space<vmem>>, vector<1x1x8x8xf32>
    %557 = vector.shape_cast %556 : vector<1x1x8x8xf32> to vector<8x8xf32>
    %cst_602 = arith.constant dense<0.000000e+00> : vector<8x128xf32>
    %558 = tpu.matmul %557, %555, %cst_602 {dimension_numbers = #tpu.dot_dimension_numbers<[1], [0], [0], [1], [0, 0, 1, 1], [], []>} : vector<8x8xf32>, vector<8x128xf32>, vector<8x128xf32> -> vector<8x128xf32>
    %559 = arith.addf %551, %558 : vector<8x128xf32>
    %c3_603 = arith.constant 3 : index
    %c0_604 = arith.constant 0 : index
    %c0_605 = arith.constant 0 : index
    %560 = vector.load %arg5[%c3_603, %c0_604, %c0_605] : memref<5x8x1xf32, #tpu.memory_space<vmem>>, vector<1x8x1xf32>
    %561 = vector.shape_cast %560 : vector<1x8x1xf32> to vector<8x1xf32>
    %562 = vector.broadcast %561 : vector<8x1xf32> to vector<8x128xf32>
    %563 = arith.addf %559, %562 : vector<8x128xf32>
    %cst_606 = arith.constant 0.000000e+00 : f32
    %564 = vector.broadcast %cst_606 : f32 to vector<8x128xf32>
    %565 = arith.maximumf %563, %564 : vector<8x128xf32>
    %566 = arith.addf %565, %488 : vector<8x128xf32>
    %c0_607 = arith.constant 0 : index
    %c0_608 = arith.constant 0 : index
    %567 = vector.load %arg21[%c0_607, %c0_608] : memref<16x512xf32, #tpu.memory_space<vmem>>, vector<8x128xf32>
    tpu.vector_store %arg21[%c0_607, %c0_608], %566 {strides = array<i32>} : memref<16x512xf32, #tpu.memory_space<vmem>>, vector<8x128xf32>,
    %c8_609 = arith.constant 8 : index
    %c0_610 = arith.constant 0 : index
    %568 = vector.load %arg21[%c8_609, %c0_610] : memref<16x512xf32, #tpu.memory_space<vmem>>, vector<8x128xf32>
    tpu.vector_store %arg21[%c8_609, %c0_610], %111 {strides = array<i32>} : memref<16x512xf32, #tpu.memory_space<vmem>>, vector<8x128xf32>,
    %c0_611 = arith.constant 0 : index
    %c0_612 = arith.constant 0 : index
    %569 = vector.load %arg21[%c0_611, %c0_612] : memref<16x512xf32, #tpu.memory_space<vmem>>, vector<16x128xf32>
    %c0_613 = arith.constant 0 : index
    %c0_614 = arith.constant 0 : index
    %570 = vector.load %arg14[%c0_613, %c0_614] : memref<128x512xf32, #tpu.memory_space<vmem>>, vector<128x512xf32>
    %cst_615 = arith.constant dense<0.000000e+00> : vector<16x512xf32>
    %571 = tpu.matmul %569, %570, %cst_615 {dimension_numbers = #tpu.dot_dimension_numbers<[1], [0], [0], [1], [0, 0, 1, 1], [], []>} : vector<16x128xf32>, vector<128x512xf32>, vector<16x512xf32> -> vector<16x512xf32>
    %572 = vector.extract_strided_slice %571 {offsets = [0, 0], sizes = [8, 512], strides = [1, 1]} : vector<16x512xf32> to vector<8x512xf32>
    %573 = vector.extract_strided_slice %571 {offsets = [8, 0], sizes = [8, 512], strides = [1, 1]} : vector<16x512xf32> to vector<8x512xf32>
    %c0_616 = arith.constant 0 : index
    %c0_617 = arith.constant 0 : index
    %574 = vector.load %arg9[%c0_616, %c0_617] : memref<1x512xf32, #tpu.memory_space<vmem>>, vector<1x512xf32>
    %575 = vector.broadcast %574 : vector<1x512xf32> to vector<8x512xf32>
    %576 = arith.cmpf oeq, %575, %573 : vector<8x512xf32>
    %577 = arith.extui %576 : vector<8x512xi1> to vector<8x512xi32>
    %578 = arith.sitofp %577 : vector<8x512xi32> to vector<8x512xf32>
    %579 = arith.mulf %572, %578 : vector<8x512xf32>
    %c0_618 = arith.constant 0 : index
    %c128_619 = arith.constant 128 : index
    %580 = vector.load %arg20[%c0_618, %c128_619] : memref<8x768xf32, #tpu.memory_space<vmem>>, vector<8x512xf32>
    tpu.vector_store %arg20[%c0_618, %c128_619], %579 {strides = array<i32>} : memref<8x768xf32, #tpu.memory_space<vmem>>, vector<8x512xf32>,
    %cst_620 = arith.constant 0.000000e+00 : f32
    %581 = vector.broadcast %cst_620 : f32 to vector<8x512xf32>
    %c0_621 = arith.constant 0 : index
    %c111_622 = arith.constant 111 : index
    %582 = vector.load %arg20[%c0_621, %c111_622] : memref<8x768xf32, #tpu.memory_space<vmem>>, vector<8x512xf32>
    %c0_623 = arith.constant 0 : index
    %c0_624 = arith.constant 0 : index
    %583 = vector.load %arg7[%c0_623, %c0_624] : memref<9x512xf32, #tpu.memory_space<vmem>>, vector<1x512xf32>
    %584 = vector.broadcast %583 : vector<1x512xf32> to vector<8x512xf32>
    %585 = arith.mulf %582, %584 : vector<8x512xf32>
    %c1_625 = arith.constant 1 : index
    %c0_626 = arith.constant 0 : index
    %c0_627 = arith.constant 0 : index
    %c0_628 = arith.constant 0 : index
    %586 = vector.load %arg3[%c1_625, %c0_626, %c0_627, %c0_628] : memref<2x9x8x8xf32, #tpu.memory_space<vmem>>, vector<1x1x8x8xf32>
    %587 = vector.shape_cast %586 : vector<1x1x8x8xf32> to vector<8x8xf32>
    %cst_629 = arith.constant dense<0.000000e+00> : vector<8x512xf32>
    %588 = tpu.matmul %587, %585, %cst_629 {dimension_numbers = #tpu.dot_dimension_numbers<[1], [0], [0], [1], [0, 0, 1, 1], [], []>} : vector<8x8xf32>, vector<8x512xf32>, vector<8x512xf32> -> vector<8x512xf32>
    %589 = arith.addf %581, %588 : vector<8x512xf32>
    %c0_630 = arith.constant 0 : index
    %c112_631 = arith.constant 112 : index
    %590 = vector.load %arg20[%c0_630, %c112_631] : memref<8x768xf32, #tpu.memory_space<vmem>>, vector<8x512xf32>
    %c1_632 = arith.constant 1 : index
    %c0_633 = arith.constant 0 : index
    %591 = vector.load %arg7[%c1_632, %c0_633] : memref<9x512xf32, #tpu.memory_space<vmem>>, vector<1x512xf32>
    %592 = vector.broadcast %591 : vector<1x512xf32> to vector<8x512xf32>
    %593 = arith.mulf %590, %592 : vector<8x512xf32>
    %c1_634 = arith.constant 1 : index
    %c1_635 = arith.constant 1 : index
    %c0_636 = arith.constant 0 : index
    %c0_637 = arith.constant 0 : index
    %594 = vector.load %arg3[%c1_634, %c1_635, %c0_636, %c0_637] : memref<2x9x8x8xf32, #tpu.memory_space<vmem>>, vector<1x1x8x8xf32>
    %595 = vector.shape_cast %594 : vector<1x1x8x8xf32> to vector<8x8xf32>
    %cst_638 = arith.constant dense<0.000000e+00> : vector<8x512xf32>
    %596 = tpu.matmul %595, %593, %cst_638 {dimension_numbers = #tpu.dot_dimension_numbers<[1], [0], [0], [1], [0, 0, 1, 1], [], []>} : vector<8x8xf32>, vector<8x512xf32>, vector<8x512xf32> -> vector<8x512xf32>
    %597 = arith.addf %589, %596 : vector<8x512xf32>
    %c0_639 = arith.constant 0 : index
    %c113_640 = arith.constant 113 : index
    %598 = vector.load %arg20[%c0_639, %c113_640] : memref<8x768xf32, #tpu.memory_space<vmem>>, vector<8x512xf32>
    %c2_641 = arith.constant 2 : index
    %c0_642 = arith.constant 0 : index
    %599 = vector.load %arg7[%c2_641, %c0_642] : memref<9x512xf32, #tpu.memory_space<vmem>>, vector<1x512xf32>
    %600 = vector.broadcast %599 : vector<1x512xf32> to vector<8x512xf32>
    %601 = arith.mulf %598, %600 : vector<8x512xf32>
    %c1_643 = arith.constant 1 : index
    %c2_644 = arith.constant 2 : index
    %c0_645 = arith.constant 0 : index
    %c0_646 = arith.constant 0 : index
    %602 = vector.load %arg3[%c1_643, %c2_644, %c0_645, %c0_646] : memref<2x9x8x8xf32, #tpu.memory_space<vmem>>, vector<1x1x8x8xf32>
    %603 = vector.shape_cast %602 : vector<1x1x8x8xf32> to vector<8x8xf32>
    %cst_647 = arith.constant dense<0.000000e+00> : vector<8x512xf32>
    %604 = tpu.matmul %603, %601, %cst_647 {dimension_numbers = #tpu.dot_dimension_numbers<[1], [0], [0], [1], [0, 0, 1, 1], [], []>} : vector<8x8xf32>, vector<8x512xf32>, vector<8x512xf32> -> vector<8x512xf32>
    %605 = arith.addf %597, %604 : vector<8x512xf32>
    %c0_648 = arith.constant 0 : index
    %c127_649 = arith.constant 127 : index
    %606 = vector.load %arg20[%c0_648, %c127_649] : memref<8x768xf32, #tpu.memory_space<vmem>>, vector<8x512xf32>
    %c3_650 = arith.constant 3 : index
    %c0_651 = arith.constant 0 : index
    %607 = vector.load %arg7[%c3_650, %c0_651] : memref<9x512xf32, #tpu.memory_space<vmem>>, vector<1x512xf32>
    %608 = vector.broadcast %607 : vector<1x512xf32> to vector<8x512xf32>
    %609 = arith.mulf %606, %608 : vector<8x512xf32>
    %c1_652 = arith.constant 1 : index
    %c3_653 = arith.constant 3 : index
    %c0_654 = arith.constant 0 : index
    %c0_655 = arith.constant 0 : index
    %610 = vector.load %arg3[%c1_652, %c3_653, %c0_654, %c0_655] : memref<2x9x8x8xf32, #tpu.memory_space<vmem>>, vector<1x1x8x8xf32>
    %611 = vector.shape_cast %610 : vector<1x1x8x8xf32> to vector<8x8xf32>
    %cst_656 = arith.constant dense<0.000000e+00> : vector<8x512xf32>
    %612 = tpu.matmul %611, %609, %cst_656 {dimension_numbers = #tpu.dot_dimension_numbers<[1], [0], [0], [1], [0, 0, 1, 1], [], []>} : vector<8x8xf32>, vector<8x512xf32>, vector<8x512xf32> -> vector<8x512xf32>
    %613 = arith.addf %605, %612 : vector<8x512xf32>
    %c0_657 = arith.constant 0 : index
    %c128_658 = arith.constant 128 : index
    %614 = vector.load %arg20[%c0_657, %c128_658] : memref<8x768xf32, #tpu.memory_space<vmem>>, vector<8x512xf32>
    %c1_659 = arith.constant 1 : index
    %c4_660 = arith.constant 4 : index
    %c0_661 = arith.constant 0 : index
    %c0_662 = arith.constant 0 : index
    %615 = vector.load %arg3[%c1_659, %c4_660, %c0_661, %c0_662] : memref<2x9x8x8xf32, #tpu.memory_space<vmem>>, vector<1x1x8x8xf32>
    %616 = vector.shape_cast %615 : vector<1x1x8x8xf32> to vector<8x8xf32>
    %cst_663 = arith.constant dense<0.000000e+00> : vector<8x512xf32>
    %617 = tpu.matmul %616, %614, %cst_663 {dimension_numbers = #tpu.dot_dimension_numbers<[1], [0], [0], [1], [0, 0, 1, 1], [], []>} : vector<8x8xf32>, vector<8x512xf32>, vector<8x512xf32> -> vector<8x512xf32>
    %618 = arith.addf %613, %617 : vector<8x512xf32>
    %c0_664 = arith.constant 0 : index
    %c129_665 = arith.constant 129 : index
    %619 = vector.load %arg20[%c0_664, %c129_665] : memref<8x768xf32, #tpu.memory_space<vmem>>, vector<8x512xf32>
    %c5_666 = arith.constant 5 : index
    %c0_667 = arith.constant 0 : index
    %620 = vector.load %arg7[%c5_666, %c0_667] : memref<9x512xf32, #tpu.memory_space<vmem>>, vector<1x512xf32>
    %621 = vector.broadcast %620 : vector<1x512xf32> to vector<8x512xf32>
    %622 = arith.mulf %619, %621 : vector<8x512xf32>
    %c1_668 = arith.constant 1 : index
    %c5_669 = arith.constant 5 : index
    %c0_670 = arith.constant 0 : index
    %c0_671 = arith.constant 0 : index
    %623 = vector.load %arg3[%c1_668, %c5_669, %c0_670, %c0_671] : memref<2x9x8x8xf32, #tpu.memory_space<vmem>>, vector<1x1x8x8xf32>
    %624 = vector.shape_cast %623 : vector<1x1x8x8xf32> to vector<8x8xf32>
    %cst_672 = arith.constant dense<0.000000e+00> : vector<8x512xf32>
    %625 = tpu.matmul %624, %622, %cst_672 {dimension_numbers = #tpu.dot_dimension_numbers<[1], [0], [0], [1], [0, 0, 1, 1], [], []>} : vector<8x8xf32>, vector<8x512xf32>, vector<8x512xf32> -> vector<8x512xf32>
    %626 = arith.addf %618, %625 : vector<8x512xf32>
    %c0_673 = arith.constant 0 : index
    %c143_674 = arith.constant 143 : index
    %627 = vector.load %arg20[%c0_673, %c143_674] : memref<8x768xf32, #tpu.memory_space<vmem>>, vector<8x512xf32>
    %c6_675 = arith.constant 6 : index
    %c0_676 = arith.constant 0 : index
    %628 = vector.load %arg7[%c6_675, %c0_676] : memref<9x512xf32, #tpu.memory_space<vmem>>, vector<1x512xf32>
    %629 = vector.broadcast %628 : vector<1x512xf32> to vector<8x512xf32>
    %630 = arith.mulf %627, %629 : vector<8x512xf32>
    %c1_677 = arith.constant 1 : index
    %c6_678 = arith.constant 6 : index
    %c0_679 = arith.constant 0 : index
    %c0_680 = arith.constant 0 : index
    %631 = vector.load %arg3[%c1_677, %c6_678, %c0_679, %c0_680] : memref<2x9x8x8xf32, #tpu.memory_space<vmem>>, vector<1x1x8x8xf32>
    %632 = vector.shape_cast %631 : vector<1x1x8x8xf32> to vector<8x8xf32>
    %cst_681 = arith.constant dense<0.000000e+00> : vector<8x512xf32>
    %633 = tpu.matmul %632, %630, %cst_681 {dimension_numbers = #tpu.dot_dimension_numbers<[1], [0], [0], [1], [0, 0, 1, 1], [], []>} : vector<8x8xf32>, vector<8x512xf32>, vector<8x512xf32> -> vector<8x512xf32>
    %634 = arith.addf %626, %633 : vector<8x512xf32>
    %c0_682 = arith.constant 0 : index
    %c144_683 = arith.constant 144 : index
    %635 = vector.load %arg20[%c0_682, %c144_683] : memref<8x768xf32, #tpu.memory_space<vmem>>, vector<8x512xf32>
    %c7_684 = arith.constant 7 : index
    %c0_685 = arith.constant 0 : index
    %636 = vector.load %arg7[%c7_684, %c0_685] : memref<9x512xf32, #tpu.memory_space<vmem>>, vector<1x512xf32>
    %637 = vector.broadcast %636 : vector<1x512xf32> to vector<8x512xf32>
    %638 = arith.mulf %635, %637 : vector<8x512xf32>
    %c1_686 = arith.constant 1 : index
    %c7_687 = arith.constant 7 : index
    %c0_688 = arith.constant 0 : index
    %c0_689 = arith.constant 0 : index
    %639 = vector.load %arg3[%c1_686, %c7_687, %c0_688, %c0_689] : memref<2x9x8x8xf32, #tpu.memory_space<vmem>>, vector<1x1x8x8xf32>
    %640 = vector.shape_cast %639 : vector<1x1x8x8xf32> to vector<8x8xf32>
    %cst_690 = arith.constant dense<0.000000e+00> : vector<8x512xf32>
    %641 = tpu.matmul %640, %638, %cst_690 {dimension_numbers = #tpu.dot_dimension_numbers<[1], [0], [0], [1], [0, 0, 1, 1], [], []>} : vector<8x8xf32>, vector<8x512xf32>, vector<8x512xf32> -> vector<8x512xf32>
    %642 = arith.addf %634, %641 : vector<8x512xf32>
    %c0_691 = arith.constant 0 : index
    %c145_692 = arith.constant 145 : index
    %643 = vector.load %arg20[%c0_691, %c145_692] : memref<8x768xf32, #tpu.memory_space<vmem>>, vector<8x512xf32>
    %c8_693 = arith.constant 8 : index
    %c0_694 = arith.constant 0 : index
    %644 = vector.load %arg7[%c8_693, %c0_694] : memref<9x512xf32, #tpu.memory_space<vmem>>, vector<1x512xf32>
    %645 = vector.broadcast %644 : vector<1x512xf32> to vector<8x512xf32>
    %646 = arith.mulf %643, %645 : vector<8x512xf32>
    %c1_695 = arith.constant 1 : index
    %c8_696 = arith.constant 8 : index
    %c0_697 = arith.constant 0 : index
    %c0_698 = arith.constant 0 : index
    %647 = vector.load %arg3[%c1_695, %c8_696, %c0_697, %c0_698] : memref<2x9x8x8xf32, #tpu.memory_space<vmem>>, vector<1x1x8x8xf32>
    %648 = vector.shape_cast %647 : vector<1x1x8x8xf32> to vector<8x8xf32>
    %cst_699 = arith.constant dense<0.000000e+00> : vector<8x512xf32>
    %649 = tpu.matmul %648, %646, %cst_699 {dimension_numbers = #tpu.dot_dimension_numbers<[1], [0], [0], [1], [0, 0, 1, 1], [], []>} : vector<8x8xf32>, vector<8x512xf32>, vector<8x512xf32> -> vector<8x512xf32>
    %650 = arith.addf %642, %649 : vector<8x512xf32>
    %c4_700 = arith.constant 4 : index
    %c0_701 = arith.constant 0 : index
    %c0_702 = arith.constant 0 : index
    %651 = vector.load %arg5[%c4_700, %c0_701, %c0_702] : memref<5x8x1xf32, #tpu.memory_space<vmem>>, vector<1x8x1xf32>
    %652 = vector.shape_cast %651 : vector<1x8x1xf32> to vector<8x1xf32>
    %653 = vector.broadcast %652 : vector<8x1xf32> to vector<8x512xf32>
    %654 = arith.addf %650, %653 : vector<8x512xf32>
    %cst_703 = arith.constant 0.000000e+00 : f32
    %655 = vector.broadcast %cst_703 : f32 to vector<8x512xf32>
    %656 = arith.maximumf %654, %655 : vector<8x512xf32>
    %657 = arith.addf %656, %579 : vector<8x512xf32>
    %c0_704 = arith.constant 0 : index
    %c128_705 = arith.constant 128 : index
    %658 = vector.load %arg20[%c0_704, %c128_705] : memref<8x768xf32, #tpu.memory_space<vmem>>, vector<8x512xf32>
    tpu.vector_store %arg20[%c0_704, %c128_705], %657 {strides = array<i32>} : memref<8x768xf32, #tpu.memory_space<vmem>>, vector<8x512xf32>,
    %cst_706 = arith.constant 0.000000e+00 : f32
    %659 = vector.broadcast %cst_706 : f32 to vector<3x512xf32>
    %c0_707 = arith.constant 0 : index
    %c111_708 = arith.constant 111 : index
    %660 = vector.load %arg20[%c0_707, %c111_708] : memref<8x768xf32, #tpu.memory_space<vmem>>, vector<8x512xf32>
    %c0_709 = arith.constant 0 : index
    %c0_710 = arith.constant 0 : index
    %661 = vector.load %arg7[%c0_709, %c0_710] : memref<9x512xf32, #tpu.memory_space<vmem>>, vector<1x512xf32>
    %662 = vector.broadcast %661 : vector<1x512xf32> to vector<8x512xf32>
    %663 = arith.mulf %660, %662 : vector<8x512xf32>
    %c0_711 = arith.constant 0 : index
    %c0_712 = arith.constant 0 : index
    %c0_713 = arith.constant 0 : index
    %664 = vector.load %arg4[%c0_711, %c0_712, %c0_713] : memref<9x3x8xf32, #tpu.memory_space<vmem>>, vector<1x3x8xf32>
    %665 = vector.shape_cast %664 : vector<1x3x8xf32> to vector<3x8xf32>
    %cst_714 = arith.constant dense<0.000000e+00> : vector<3x512xf32>
    %666 = tpu.matmul %665, %663, %cst_714 {dimension_numbers = #tpu.dot_dimension_numbers<[1], [0], [0], [1], [0, 0, 1, 1], [], []>} : vector<3x8xf32>, vector<8x512xf32>, vector<3x512xf32> -> vector<3x512xf32>
    %667 = arith.addf %659, %666 : vector<3x512xf32>
    %c0_715 = arith.constant 0 : index
    %c112_716 = arith.constant 112 : index
    %668 = vector.load %arg20[%c0_715, %c112_716] : memref<8x768xf32, #tpu.memory_space<vmem>>, vector<8x512xf32>
    %c1_717 = arith.constant 1 : index
    %c0_718 = arith.constant 0 : index
    %669 = vector.load %arg7[%c1_717, %c0_718] : memref<9x512xf32, #tpu.memory_space<vmem>>, vector<1x512xf32>
    %670 = vector.broadcast %669 : vector<1x512xf32> to vector<8x512xf32>
    %671 = arith.mulf %668, %670 : vector<8x512xf32>
    %c1_719 = arith.constant 1 : index
    %c0_720 = arith.constant 0 : index
    %c0_721 = arith.constant 0 : index
    %672 = vector.load %arg4[%c1_719, %c0_720, %c0_721] : memref<9x3x8xf32, #tpu.memory_space<vmem>>, vector<1x3x8xf32>
    %673 = vector.shape_cast %672 : vector<1x3x8xf32> to vector<3x8xf32>
    %cst_722 = arith.constant dense<0.000000e+00> : vector<3x512xf32>
    %674 = tpu.matmul %673, %671, %cst_722 {dimension_numbers = #tpu.dot_dimension_numbers<[1], [0], [0], [1], [0, 0, 1, 1], [], []>} : vector<3x8xf32>, vector<8x512xf32>, vector<3x512xf32> -> vector<3x512xf32>
    %675 = arith.addf %667, %674 : vector<3x512xf32>
    %c0_723 = arith.constant 0 : index
    %c113_724 = arith.constant 113 : index
    %676 = vector.load %arg20[%c0_723, %c113_724] : memref<8x768xf32, #tpu.memory_space<vmem>>, vector<8x512xf32>
    %c2_725 = arith.constant 2 : index
    %c0_726 = arith.constant 0 : index
    %677 = vector.load %arg7[%c2_725, %c0_726] : memref<9x512xf32, #tpu.memory_space<vmem>>, vector<1x512xf32>
    %678 = vector.broadcast %677 : vector<1x512xf32> to vector<8x512xf32>
    %679 = arith.mulf %676, %678 : vector<8x512xf32>
    %c2_727 = arith.constant 2 : index
    %c0_728 = arith.constant 0 : index
    %c0_729 = arith.constant 0 : index
    %680 = vector.load %arg4[%c2_727, %c0_728, %c0_729] : memref<9x3x8xf32, #tpu.memory_space<vmem>>, vector<1x3x8xf32>
    %681 = vector.shape_cast %680 : vector<1x3x8xf32> to vector<3x8xf32>
    %cst_730 = arith.constant dense<0.000000e+00> : vector<3x512xf32>
    %682 = tpu.matmul %681, %679, %cst_730 {dimension_numbers = #tpu.dot_dimension_numbers<[1], [0], [0], [1], [0, 0, 1, 1], [], []>} : vector<3x8xf32>, vector<8x512xf32>, vector<3x512xf32> -> vector<3x512xf32>
    %683 = arith.addf %675, %682 : vector<3x512xf32>
    %c0_731 = arith.constant 0 : index
    %c127_732 = arith.constant 127 : index
    %684 = vector.load %arg20[%c0_731, %c127_732] : memref<8x768xf32, #tpu.memory_space<vmem>>, vector<8x512xf32>
    %c3_733 = arith.constant 3 : index
    %c0_734 = arith.constant 0 : index
    %685 = vector.load %arg7[%c3_733, %c0_734] : memref<9x512xf32, #tpu.memory_space<vmem>>, vector<1x512xf32>
    %686 = vector.broadcast %685 : vector<1x512xf32> to vector<8x512xf32>
    %687 = arith.mulf %684, %686 : vector<8x512xf32>
    %c3_735 = arith.constant 3 : index
    %c0_736 = arith.constant 0 : index
    %c0_737 = arith.constant 0 : index
    %688 = vector.load %arg4[%c3_735, %c0_736, %c0_737] : memref<9x3x8xf32, #tpu.memory_space<vmem>>, vector<1x3x8xf32>
    %689 = vector.shape_cast %688 : vector<1x3x8xf32> to vector<3x8xf32>
    %cst_738 = arith.constant dense<0.000000e+00> : vector<3x512xf32>
    %690 = tpu.matmul %689, %687, %cst_738 {dimension_numbers = #tpu.dot_dimension_numbers<[1], [0], [0], [1], [0, 0, 1, 1], [], []>} : vector<3x8xf32>, vector<8x512xf32>, vector<3x512xf32> -> vector<3x512xf32>
    %691 = arith.addf %683, %690 : vector<3x512xf32>
    %c0_739 = arith.constant 0 : index
    %c128_740 = arith.constant 128 : index
    %692 = vector.load %arg20[%c0_739, %c128_740] : memref<8x768xf32, #tpu.memory_space<vmem>>, vector<8x512xf32>
    %c4_741 = arith.constant 4 : index
    %c0_742 = arith.constant 0 : index
    %c0_743 = arith.constant 0 : index
    %693 = vector.load %arg4[%c4_741, %c0_742, %c0_743] : memref<9x3x8xf32, #tpu.memory_space<vmem>>, vector<1x3x8xf32>
    %694 = vector.shape_cast %693 : vector<1x3x8xf32> to vector<3x8xf32>
    %cst_744 = arith.constant dense<0.000000e+00> : vector<3x512xf32>
    %695 = tpu.matmul %694, %692, %cst_744 {dimension_numbers = #tpu.dot_dimension_numbers<[1], [0], [0], [1], [0, 0, 1, 1], [], []>} : vector<3x8xf32>, vector<8x512xf32>, vector<3x512xf32> -> vector<3x512xf32>
    %696 = arith.addf %691, %695 : vector<3x512xf32>
    %c0_745 = arith.constant 0 : index
    %c129_746 = arith.constant 129 : index
    %697 = vector.load %arg20[%c0_745, %c129_746] : memref<8x768xf32, #tpu.memory_space<vmem>>, vector<8x512xf32>
    %c5_747 = arith.constant 5 : index
    %c0_748 = arith.constant 0 : index
    %698 = vector.load %arg7[%c5_747, %c0_748] : memref<9x512xf32, #tpu.memory_space<vmem>>, vector<1x512xf32>
    %699 = vector.broadcast %698 : vector<1x512xf32> to vector<8x512xf32>
    %700 = arith.mulf %697, %699 : vector<8x512xf32>
    %c5_749 = arith.constant 5 : index
    %c0_750 = arith.constant 0 : index
    %c0_751 = arith.constant 0 : index
    %701 = vector.load %arg4[%c5_749, %c0_750, %c0_751] : memref<9x3x8xf32, #tpu.memory_space<vmem>>, vector<1x3x8xf32>
    %702 = vector.shape_cast %701 : vector<1x3x8xf32> to vector<3x8xf32>
    %cst_752 = arith.constant dense<0.000000e+00> : vector<3x512xf32>
    %703 = tpu.matmul %702, %700, %cst_752 {dimension_numbers = #tpu.dot_dimension_numbers<[1], [0], [0], [1], [0, 0, 1, 1], [], []>} : vector<3x8xf32>, vector<8x512xf32>, vector<3x512xf32> -> vector<3x512xf32>
    %704 = arith.addf %696, %703 : vector<3x512xf32>
    %c0_753 = arith.constant 0 : index
    %c143_754 = arith.constant 143 : index
    %705 = vector.load %arg20[%c0_753, %c143_754] : memref<8x768xf32, #tpu.memory_space<vmem>>, vector<8x512xf32>
    %c6_755 = arith.constant 6 : index
    %c0_756 = arith.constant 0 : index
    %706 = vector.load %arg7[%c6_755, %c0_756] : memref<9x512xf32, #tpu.memory_space<vmem>>, vector<1x512xf32>
    %707 = vector.broadcast %706 : vector<1x512xf32> to vector<8x512xf32>
    %708 = arith.mulf %705, %707 : vector<8x512xf32>
    %c6_757 = arith.constant 6 : index
    %c0_758 = arith.constant 0 : index
    %c0_759 = arith.constant 0 : index
    %709 = vector.load %arg4[%c6_757, %c0_758, %c0_759] : memref<9x3x8xf32, #tpu.memory_space<vmem>>, vector<1x3x8xf32>
    %710 = vector.shape_cast %709 : vector<1x3x8xf32> to vector<3x8xf32>
    %cst_760 = arith.constant dense<0.000000e+00> : vector<3x512xf32>
    %711 = tpu.matmul %710, %708, %cst_760 {dimension_numbers = #tpu.dot_dimension_numbers<[1], [0], [0], [1], [0, 0, 1, 1], [], []>} : vector<3x8xf32>, vector<8x512xf32>, vector<3x512xf32> -> vector<3x512xf32>
    %712 = arith.addf %704, %711 : vector<3x512xf32>
    %c0_761 = arith.constant 0 : index
    %c144_762 = arith.constant 144 : index
    %713 = vector.load %arg20[%c0_761, %c144_762] : memref<8x768xf32, #tpu.memory_space<vmem>>, vector<8x512xf32>
    %c7_763 = arith.constant 7 : index
    %c0_764 = arith.constant 0 : index
    %714 = vector.load %arg7[%c7_763, %c0_764] : memref<9x512xf32, #tpu.memory_space<vmem>>, vector<1x512xf32>
    %715 = vector.broadcast %714 : vector<1x512xf32> to vector<8x512xf32>
    %716 = arith.mulf %713, %715 : vector<8x512xf32>
    %c7_765 = arith.constant 7 : index
    %c0_766 = arith.constant 0 : index
    %c0_767 = arith.constant 0 : index
    %717 = vector.load %arg4[%c7_765, %c0_766, %c0_767] : memref<9x3x8xf32, #tpu.memory_space<vmem>>, vector<1x3x8xf32>
    %718 = vector.shape_cast %717 : vector<1x3x8xf32> to vector<3x8xf32>
    %cst_768 = arith.constant dense<0.000000e+00> : vector<3x512xf32>
    %719 = tpu.matmul %718, %716, %cst_768 {dimension_numbers = #tpu.dot_dimension_numbers<[1], [0], [0], [1], [0, 0, 1, 1], [], []>} : vector<3x8xf32>, vector<8x512xf32>, vector<3x512xf32> -> vector<3x512xf32>
    %720 = arith.addf %712, %719 : vector<3x512xf32>
    %c0_769 = arith.constant 0 : index
    %c145_770 = arith.constant 145 : index
    %721 = vector.load %arg20[%c0_769, %c145_770] : memref<8x768xf32, #tpu.memory_space<vmem>>, vector<8x512xf32>
    %c8_771 = arith.constant 8 : index
    %c0_772 = arith.constant 0 : index
    %722 = vector.load %arg7[%c8_771, %c0_772] : memref<9x512xf32, #tpu.memory_space<vmem>>, vector<1x512xf32>
    %723 = vector.broadcast %722 : vector<1x512xf32> to vector<8x512xf32>
    %724 = arith.mulf %721, %723 : vector<8x512xf32>
    %c8_773 = arith.constant 8 : index
    %c0_774 = arith.constant 0 : index
    %c0_775 = arith.constant 0 : index
    %725 = vector.load %arg4[%c8_773, %c0_774, %c0_775] : memref<9x3x8xf32, #tpu.memory_space<vmem>>, vector<1x3x8xf32>
    %726 = vector.shape_cast %725 : vector<1x3x8xf32> to vector<3x8xf32>
    %cst_776 = arith.constant dense<0.000000e+00> : vector<3x512xf32>
    %727 = tpu.matmul %726, %724, %cst_776 {dimension_numbers = #tpu.dot_dimension_numbers<[1], [0], [0], [1], [0, 0, 1, 1], [], []>} : vector<3x8xf32>, vector<8x512xf32>, vector<3x512xf32> -> vector<3x512xf32>
    %728 = arith.addf %720, %727 : vector<3x512xf32>
    %c0_777 = arith.constant 0 : index
    %c0_778 = arith.constant 0 : index
    %729 = vector.load %arg6[%c0_777, %c0_778] : memref<3x1xf32, #tpu.memory_space<vmem>>, vector<3x1xf32>
    %730 = vector.broadcast %729 : vector<3x1xf32> to vector<3x512xf32>
    %731 = arith.addf %728, %730 : vector<3x512xf32>
    %cst_779 = arith.constant 0.000000e+00 : f32
    %732 = vector.broadcast %cst_779 : f32 to vector<3x512xf32>
    %733 = arith.maximumf %731, %732 : vector<3x512xf32>
    %c0_780 = arith.constant 0 : index
    %c0_781 = arith.constant 0 : index
    %734 = vector.load %arg19[%c0_780, %c0_781] : memref<3x512xf32, #tpu.memory_space<vmem>>, vector<3x512xf32>
    tpu.vector_store %arg19[%c0_780, %c0_781], %733 {strides = array<i32>} : memref<3x512xf32, #tpu.memory_space<vmem>>, vector<3x512xf32>,
    return
  }
}

</mosaic_0001>

<bundles_post_ra>
// kernel: cae_forward.1
= control target key start
LH: loop header
LB: loop body
LE: loop exit
PB: predicated region body
PF: predicated region fallthrough
CT: control target
= control target key end

     0   :  { %v94_v0 = vlaneseq  ;;  %v12926_v1 = vmov 0.0   ;;  %s12927_s24 = smov 112   ;;  %s16008_s26 = smov 111   ;;  %vm160_vm0 = vcmask 916480   ;;  %vm118_vm1 = vcmask 908288   ;;  %s15980_s7 = inlined_call_operand.vmem [shape: f32[9,512], index: 7, kind: input, shape index: {}]   ;;  %s15981_s0 = inlined_call_operand.vmem [shape: f32[3,512], index: 0, kind: input, shape index: {}]   ;;  %s15982_s5 = inlined_call_operand.vmem [shape: f32[5,8,1], index: 5, kind: input, shape index: {}]   ;;  %s15983_s1 = inlined_call_operand.vmem [shape: f32[9,8,3], index: 1, kind: input, shape index: {}]   ;;  %s15984_s11 = inlined_call_operand.vmem [shape: f32[512,128], index: 11, kind: input, shape index: {}]   ;;  %s15985_s8 = inlined_call_operand.vmem [shape: f32[9,128], index: 8, kind: input, shape index: {}]   ;;  %s15986_s2 = inlined_call_operand.vmem [shape: f32[2,9,8,8], index: 2, kind: input, shape index: {}]   ;;  %s15987_s12 = inlined_call_operand.vmem [shape: f32[128,32], index: 12, kind: input, shape index: {}]   ;;  %s15988_s15 = inlined_call_operand.vmem [shape: f32[8,16,32], index: 15, kind: input, shape index: {}]   ;;  %s15989_s17 = inlined_call_operand.vmem [shape: f32[8,32,16], index: 17, kind: input, shape index: {}]   ;;  %s15990_s16 = inlined_call_operand.vmem [shape: f32[1,32], index: 16, kind: input, shape index: {}]   ;;  %s15991_s18 = inlined_call_operand.vmem [shape: f32[8,16], index: 18, kind: input, shape index: {}]   ;;  %s15992_s13 = inlined_call_operand.vmem [shape: f32[32,128], index: 13, kind: input, shape index: {}]   ;;  %s15993_s10 = inlined_call_operand.vmem [shape: f32[1,128], index: 10, kind: input, shape index: {}]   ;;  %s15994_s3 = inlined_call_operand.vmem [shape: f32[2,9,8,8], index: 3, kind: input, shape index: {}]   ;;  %s15995_s14 = inlined_call_operand.vmem [shape: f32[128,512], index: 14, kind: input, shape index: {}]   ;;  %s15996_s9 = inlined_call_operand.vmem [shape: f32[1,512], index: 9, kind: input, shape index: {}]   ;;  %s15997_s6 = inlined_call_operand.vmem [shape: f32[3,1], index: 6, kind: input, shape index: {}]   ;;  %s15998_s4 = inlined_call_operand.vmem [shape: f32[9,3,8], index: 4, kind: input, shape index: {}]   ;;  %s15999_s19 = inlined_call_operand.vmem [shape: f32[3,512], index: 19, kind: output, shape index: {}]  }
   0x1   :  { %16024 = sst [smem:[#allocation6_spill]] %s15980_s7  ;;  %62 = vst [vmem:[#allocation2 + $0x28] sm:$0xff] %v12926_v1  ;;  %63 = vst [vmem:[#allocation2 + $0x10] sm:$0xff] %v12926_v1  ;;  %344 = vmatprep.mubr.f32.mxu1 %v12926_v1  ;;  %273 = vmatprep.mubr.f32.mxu0 %v12926_v1  ;;  %s16012_s29 = smov 113   ;;  %vm551_vm2 = vcmask 924672   ;;  %vm771_vm3 = vcmask 1039360  }
   0x2   :  { %16025 = sst [smem:[#allocation7_spill]] %s15981_s0  ;;  %64 = vst [vmem:[#allocation2 + $0x8] sm:$0xff] %v12926_v1  ;;  %65 = vst [vmem:[#allocation2] sm:$0xff] %v12926_v1  ;;  %v95_v2 = vshrl.u32 %v94_v0, 7  ;;  %s16010_s21 = smov 127   ;;  %vm802_vm4 = vcmask 7168  }
   0x3   :  { %16026 = sst [smem:[#allocation8_spill]] %s15982_s5  ;;  %66 = vst [vmem:[#allocation2 + $0x18] sm:$0xff] %v12926_v1  ;;  %67 = vst [vmem:[#allocation2 + $0x20] sm:$0xff] %v12926_v1  ;;  %s12931_s5 = smov 1   ;;  %vm16017_vm5 = vcmask 121856   ;;  %vm191_vm6 = vcmask 130048  }
   0x4   :  { %16027 = sst [smem:[#allocation9_spill]] %s15983_s1  ;;  %v13055_v4 = vsub.s32 0, %v95_v2  ;;  %v13057_v5 = vsub.s32 2, %v95_v2  ;;  %v13059_v6 = vsub.s32 3, %v95_v2  ;;  %v13061_v7 = vsub.s32 1, %v95_v2  ;;  %s16006_s1 = smov 15  }
   0x5   :  { %s16028_s20 = sld [smem:[#allocation6_spill]]  ;;  %s16014_s7 = smov 16   ;;  %vm16016_vm7 = vcmask 138240   ;;  %vm200_vm8 = vcmask 1042432   ;;  %vm196_vm9 = vcmask 23552  }
   0x6   :  { %s16029_s22 = sld [smem:[#allocation7_spill]]  ;;  %s12939_s28 = smov 121  }
   0x7   :  { %s16030_s27 = sld [smem:[#allocation8_spill]]  ;;  %s16022_s23 = smov 7  }
   0x8   :  { %v87_v51 = vld [vmem:[#allocation2 + $0x28] sm:$0x7]  ;;  %s16031_s0 = sld [smem:[#allocation9_spill]]  ;;  %s16018_s30 = smov 9  }
   0xb   :  { %v11781_v3 = vld [vmem:[%s16028_s20 + $0x1] ss:$8 sm:$0xf]  ;;  %v92_v14 = vld [vmem:[%s16028_s20] ss:$8 sm:$0xf] }
   0xc   :  { %v147_v8 = vrot.slane %v11781_v3, %v13057_v5  ;;  %v139_v9 = vrot.slane %v11781_v3, %v13055_v4  ;;  %v76_v10 = vld [vmem:[%s16029_s22 + $0x8] sm:$0x77]  ;;  %v75_v11 = vld [vmem:[%s16029_s22] sm:$0x77]  ;;  %v151_v12 = vrot.slane %v11781_v3, %v13059_v6  ;;  %v143_v13 = vrot.slane %v11781_v3, %v13061_v7  ;;  %s16004_s22 = smov 17  }
   0xd   :  { %85 = vst [vmem:[#allocation2] sm:$0x7] %v76_v10  ;;  %83 = vst [vmem:[#allocation2 + $0x10] sm:$0x7] %v75_v11  ;;  %v101_v15 = vrot.slane %v92_v14, %v13061_v7  ;;  %v97_v16 = vrot.slane %v92_v14, %v13055_v4  ;;  %v80_v17 = vcombine.high %v76_v10, %v76_v10 }
   0xe   :  { %156 = vrot.lane.b32.xlu1 %v147_v8, %s12927_s24  ;;  %152 = vrot.lane.b32.xlu0 %v139_v9, %s12927_s24  ;;  %v79_v18 = vcombine.high %v75_v11, %v75_v11  ;;  %v109_v19 = vrot.slane %v92_v14, %v13059_v6  ;;  %v105_v20 = vrot.slane %v92_v14, %v13057_v5  ;;  %v11795_v21 = vld [vmem:[%s16028_s20 + $0x2] ss:$8 sm:$0xf]  ;;  %v11803_v26 = vld [vmem:[%s16028_s20 + $0x3] ss:$8 sm:$0xf] }
   0xf   :  { %86 = vst [vmem:[#allocation2 + $0x18] sm:$0x7] %v80_v17  ;;  %v534_v22 = vrot.slane %v11795_v21, %v13061_v7  ;;  %v530_v23 = vrot.slane %v11795_v21, %v13055_v4  ;;  %v542_v24 = vrot.slane %v11795_v21, %v13059_v6  ;;  %v538_v25 = vrot.slane %v11795_v21, %v13057_v5  ;;  %v11818_v31 = vld [vmem:[%s16028_s20 + $0x5] ss:$8 sm:$0xf] }
  0x10   :  { %84 = vst [vmem:[#allocation2 + $0x8] sm:$0x7] %v79_v18  ;;  %v754_v27 = vrot.slane %v11803_v26, %v13061_v7  ;;  %v750_v28 = vrot.slane %v11803_v26, %v13055_v4  ;;  %v762_v29 = vrot.slane %v11803_v26, %v13059_v6  ;;  %v758_v30 = vrot.slane %v11803_v26, %v13057_v5  ;;  %v11826_v36 = vld [vmem:[%s16028_s20 + $0x6] ss:$8 sm:$0xf] }
  0x11   :  { %v1142_v32 = vrot.slane %v11818_v31, %v13061_v7  ;;  %v1138_v33 = vrot.slane %v11818_v31, %v13055_v4  ;;  %v1150_v34 = vrot.slane %v11818_v31, %v13059_v6  ;;  %v1146_v35 = vrot.slane %v11818_v31, %v13057_v5  ;;  %v11834_v41 = vld [vmem:[%s16028_s20 + $0x7] ss:$8 sm:$0xf]  ;;  %v11842_v46 = vld [vmem:[%s16028_s20 + $0x20] ss:$8 sm:$0xf] }
  0x12   :  { %158 = vrot.lane.b32.xlu1 %v151_v12, %s12927_s24  ;;  %154 = vrot.lane.b32.xlu0 %v143_v13, %s12927_s24  ;;  %v1360_v37 = vrot.slane %v11826_v36, %v13061_v7  ;;  %v1356_v38 = vrot.slane %v11826_v36, %v13055_v4  ;;  %v1368_v39 = vrot.slane %v11826_v36, %v13059_v6 }
  0x13   :  { %v1364_v40 = vrot.slane %v11826_v36, %v13057_v5  ;;  %v1574_v42 = vrot.slane %v11834_v41, %v13055_v4  ;;  %v1578_v43 = vrot.slane %v11834_v41, %v13061_v7  ;;  %v1582_v44 = vrot.slane %v11834_v41, %v13057_v5 }
  0x14   :  { %v1586_v45 = vrot.slane %v11834_v41, %v13059_v6  ;;  %v1795_v47 = vrot.slane %v11842_v46, %v13061_v7  ;;  %v1791_v48 = vrot.slane %v11842_v46, %v13055_v4  ;;  %v1803_v49 = vrot.slane %v11842_v46, %v13059_v6  ;;  %v13169_v18 = vld [vmem:[#allocation2 + $0x10] sm:$0x7]  ;;  %v13207_v41 = vld [vmem:[#allocation2] sm:$0x7] }
  0x15   :  { %v1799_v50 = vrot.slane %v11842_v46, %v13057_v5  ;;  %v13199_v36 = vld [vmem:[#allocation2 + $0x10] sm:$0x7] }
  0x16   :  { %112 = vrot.lane.b32.xlu1 %v101_v15, %s16008_s26  ;;  %110 = vrot.lane.b32.xlu0 %v97_v16, %s16008_s26  ;;  %v13154_v55 = vld [vmem:[#allocation2 + $0x18] sm:$0x7] }
  0x1a   :  { %116 = vrot.lane.b32.xlu1 %v109_v19, %s16008_s26  ;;  %114 = vrot.lane.b32.xlu0 %v105_v20, %s16008_s26 }
  0x1e   :  { %545 = vrot.lane.b32.xlu1 %v534_v22, %s16012_s29  ;;  %543 = vrot.lane.b32.xlu0 %v530_v23, %s16012_s29  ;;  %v13178_v22 = vld [vmem:[#allocation2 + $0x20] sm:$0x7] }
  0x22   :  { %549 = vrot.lane.b32.xlu1 %v542_v24, %s16012_s29  ;;  %547 = vrot.lane.b32.xlu0 %v538_v25, %s16012_s29 }
  0x26   :  { %765 = vrot.lane.b32.xlu1 %v754_v27, %s16010_s21  ;;  %763 = vrot.lane.b32.xlu0 %v750_v28, %s16010_s21 }
  0x2a   :  { %769 = vrot.lane.b32.xlu1 %v762_v29, %s16010_s21  ;;  %767 = vrot.lane.b32.xlu0 %v758_v30, %s16010_s21  ;;  %v13192_v30 = vld [vmem:[#allocation2 + $0x8] sm:$0x7] }
  0x2e   :  { %1153 = vrot.lane.b32.xlu1 %v1142_v32, %s12931_s5  ;;  %1151 = vrot.lane.b32.xlu0 %v1138_v33, %s12931_s5 }
  0x32   :  { %1157 = vrot.lane.b32.xlu1 %v1150_v34, %s12931_s5  ;;  %1155 = vrot.lane.b32.xlu0 %v1146_v35, %s12931_s5 }
  0x36   :  { %1371 = vrot.lane.b32.xlu1 %v1360_v37, %s16006_s1  ;;  %1369 = vrot.lane.b32.xlu0 %v1356_v38, %s16006_s1 }
  0x3a   :  { %1375 = vrot.lane.b32.xlu1 %v1368_v39, %s16006_s1  ;;  %1373 = vrot.lane.b32.xlu0 %v1364_v40, %s16006_s1 }
  0x3e   :  { %1587 = vrot.lane.b32.xlu0 %v1574_v42, %s16014_s7  ;;  %1589 = vrot.lane.b32.xlu1 %v1578_v43, %s16014_s7 }
  0x42   :  { %1591 = vrot.lane.b32.xlu0 %v1582_v44, %s16014_s7  ;;  %1593 = vrot.lane.b32.xlu1 %v1586_v45, %s16014_s7 }
  0x46   :  { %1806 = vrot.lane.b32.xlu1 %v1795_v47, %s16004_s22  ;;  %1804 = vrot.lane.b32.xlu0 %v1791_v48, %s16004_s22 }
  0x4a   :  { %1810 = vrot.lane.b32.xlu1 %v1803_v49, %s16004_s22  ;;  %1808 = vrot.lane.b32.xlu0 %v1799_v50, %s16004_s22 }
  0x80   :  { %v157_v52 = vpop.permute.xlu1 %156  ;;  %v153_v53 = vpop.permute.xlu0 %152 }
  0x81   :  { %v169_v54 = vmul.f32 %v153_v53, %v87_v51 }
  0x83   :  { %181 = vrot.lane.b32.xlu0 %v169_v54, %s16014_s7 }
  0x84   :  { %v159_v56 = vpop.permute.xlu1 %158  ;;  %v155_v57 = vpop.permute.xlu0 %154 }
  0x85   :  { %v173_v58 = vmul.f32 %v159_v56, %v13154_v55  ;;  %v162_v29 = vsel %vm160_vm0, %v155_v57, %v157_v52  ;;  %v161_v34 = vsel %vm160_vm0, %v153_v53, %v155_v57  ;;  %v163_v39 = vsel %vm160_vm0, %v157_v52, %v159_v56 }
  0x86   :  { %v171_v33 = vmul.f32 %v162_v29, %v13192_v30  ;;  %v170_v37 = vmul.f32 %v161_v34, %v13199_v36  ;;  %v172_v42 = vmul.f32 %v163_v39, %v13207_v41 }
  0x87   :  { %189 = vrot.lane.b32.xlu1 %v173_v58, %s16014_s7 }
  0x88   :  { %v113_v59 = vpop.permute.xlu1 %112  ;;  %v111_v60 = vpop.permute.xlu0 %110 }
  0x89   :  { %v127_v61 = vmul.f32 %v111_v60, %v87_v51  ;;  %v119_v35 = vsel %vm118_vm1, %v111_v60, %v113_v59  ;;  %v1129_v60 = vld [vmem:[#allocation2] sm:$0x7] }
  0x8a   :  { %v128_v38 = vmul.f32 %v119_v35, %v13199_v36 }
  0x8b   :  { %356 = vrot.lane.b32.xlu1 %v127_v61, %s16004_s22 }
  0x8c   :  { %v117_v62 = vpop.permute.xlu1 %116  ;;  %v115_v63 = vpop.permute.xlu0 %114 }
  0x8d   :  { %v131_v0 = vmul.f32 %v117_v62, %v13154_v55  ;;  %v121_v40 = vsel %vm118_vm1, %v115_v63, %v117_v62  ;;  %v120_v44 = vsel %vm118_vm1, %v113_v59, %v115_v63 }
  0x8e   :  { %v130_v43 = vmul.f32 %v121_v40, %v13207_v41  ;;  %v129_v47 = vmul.f32 %v120_v44, %v13192_v30 }
  0x8f   :  { %364 = vrot.lane.b32.xlu0 %v131_v0, %s16004_s22 }
  0x90   :  { %v546_v2 = vpop.permute.xlu1 %545  ;;  %v544_v3 = vpop.permute.xlu0 %543 }
  0x91   :  { %v560_v8 = vmul.f32 %v544_v3, %v87_v51  ;;  %v552_v48 = vsel %vm551_vm2, %v544_v3, %v546_v2 }
  0x93   :  { %572 = vrot.lane.b32.xlu0 %v560_v8, %s16006_s1  ;;  %v1128_v8 = vld [vmem:[#allocation2 + $0x8] sm:$0x7] }
  0x94   :  { %v550_v9 = vpop.permute.xlu1 %549  ;;  %v548_v10 = vpop.permute.xlu0 %547 }
  0x95   :  { %v564_v11 = vmul.f32 %v550_v9, %v13154_v55  ;;  %v553_v45 = vsel %vm551_vm2, %v546_v2, %v548_v10  ;;  %v554_v52 = vsel %vm551_vm2, %v548_v10, %v550_v9 }
  0x96   :  { %v562_v46 = vmul.f32 %v553_v45, %v13192_v30  ;;  %v563_v57 = vmul.f32 %v554_v52, %v13207_v41 }
  0x97   :  { %580 = vrot.lane.b32.xlu1 %v564_v11, %s16006_s1 }
  0x98   :  { %v13165_v12 = vpop.permute.xlu1 %765  ;;  %v764_v13 = vpop.permute.xlu0 %763 }
  0x99   :  { %v780_v14 = vmul.f32 %v764_v13, %v87_v51  ;;  %v772_v49 = vsel %vm771_vm3, %v764_v13, %v13165_v12  ;;  %v561_v51 = vmul.f32 %v552_v48, %v13199_v36 }
  0x9a   :  { %v781_v50 = vmul.f32 %v772_v49, %v13199_v36 }
  0x9b   :  { %792 = vrot.lane.b32.xlu1 %v780_v14, %s12931_s5 }
  0x9c   :  { %v770_v15 = vpop.permute.xlu1 %769  ;;  %v768_v16 = vpop.permute.xlu0 %767 }
  0x9d   :  { %v784_v17 = vmul.f32 %v770_v15, %v13154_v55  ;;  %v774_v53 = vsel %vm771_vm3, %v768_v16, %v770_v15  ;;  %v773_v58 = vsel %vm771_vm3, %v13165_v12, %v768_v16  ;;  %v1130_v15 = vld [vmem:[#allocation2 + $0x18] sm:$0x7] }
  0x9e   :  { %v783_v56 = vmul.f32 %v774_v53, %v13207_v41  ;;  %v782_v0 = vmul.f32 %v773_v58, %v13192_v30 }
  0x9f   :  { %800 = vrot.lane.b32.xlu0 %v784_v17, %s12931_s5 }
  0xa0   :  { %v13172_v19 = vpop.permute.xlu1 %1153  ;;  %v13174_v20 = vpop.permute.xlu0 %1151 }
  0xa1   :  { %v1167_v21 = vmul.f32 %v13174_v20, %v13169_v18  ;;  %v1159_v2 = vsel %vm802_vm4, %v13174_v20, %v13172_v19 }
  0xa2   :  { %v1168_v10 = vmul.f32 %v1159_v2, %v1128_v8 }
  0xa3   :  { %1179 = vrot.lane.b32.xlu0 %v1167_v21, %s16010_s21 }
  0xa4   :  { %v13181_v23 = vpop.permute.xlu1 %1157  ;;  %v13183_v24 = vpop.permute.xlu0 %1155 }
  0xa5   :  { %v1171_v25 = vmul.f32 %v13181_v23, %v13178_v22  ;;  %v1160_v59 = vsel %vm802_vm4, %v13172_v19, %v13183_v24  ;;  %v1161_v13 = vsel %vm802_vm4, %v13183_v24, %v13181_v23 }
  0xa6   :  { %v1169_v63 = vmul.f32 %v1160_v59, %v1129_v60  ;;  %v1170_v19 = vmul.f32 %v1161_v13, %v1130_v15 }
  0xa7   :  { %1187 = vrot.lane.b32.xlu1 %v1171_v25, %s16010_s21 }
  0xa8   :  { %v13188_v26 = vpop.permute.xlu1 %1371  ;;  %v1370_v27 = vpop.permute.xlu0 %1369 }
  0xa9   :  { %v1385_v28 = vmul.f32 %v1370_v27, %v13169_v18  ;;  %v1377_v3 = vsel %vm16017_vm5, %v1370_v27, %v13188_v26 }
  0xaa   :  { %v1386_v9 = vmul.f32 %v1377_v3, %v1128_v8 }
  0xab   :  { %1397 = vrot.lane.b32.xlu1 %v1385_v28, %s16012_s29 }
  0xac   :  { %v1376_v31 = vpop.permute.xlu1 %1375  ;;  %v1374_v54 = vpop.permute.xlu0 %1373 }
  0xad   :  { %v1389_v32 = vmul.f32 %v1376_v31, %v13178_v22  ;;  %v1379_v14 = vsel %vm16017_vm5, %v1374_v54, %v1376_v31  ;;  %v1378_v20 = vsel %vm16017_vm5, %v13188_v26, %v1374_v54 }
  0xae   :  { %v1388_v17 = vmul.f32 %v1379_v14, %v1130_v15  ;;  %v1387_v27 = vmul.f32 %v1378_v20, %v1129_v60  ;;  %v132_v14 = vld [vmem:[%s16031_s0] sm:$0xff] }
  0xaf   :  { %1405 = vrot.lane.b32.xlu0 %v1389_v32, %s16012_s29  ;;  %185 = vrot.lane.b32.xlu1 %v171_v33, %s16014_s7 }
  0xb0   :  { %v1588_v61 = vpop.permute.xlu0 %1587  ;;  %v1590_v62 = vpop.permute.xlu1 %1589 }
  0xb1   :  { %v1595_v25 = vsel %vm191_vm6, %v1588_v61, %v1590_v62  ;;  %v1603_v40 = vmul.f32 %v1588_v61, %v13169_v18 }
  0xb2   :  { %v1604_v29 = vmul.f32 %v1595_v25, %v1128_v8 }
  0xb3   :  { %183 = vrot.lane.b32.xlu0 %v170_v37, %s16014_s7  ;;  %358 = vrot.lane.b32.xlu1 %v128_v38, %s16004_s22 }
  0xb4   :  { %v1592_v11 = vpop.permute.xlu0 %1591  ;;  %v1594_v12 = vpop.permute.xlu1 %1593 }
  0xb5   :  { %v1596_v16 = vsel %vm191_vm6, %v1590_v62, %v1592_v11  ;;  %v1607_v28 = vmul.f32 %v1594_v12, %v13178_v22  ;;  %v1597_v26 = vsel %vm191_vm6, %v1592_v11, %v1594_v12 }
  0xb6   :  { %v1605_v21 = vmul.f32 %v1596_v16, %v1129_v60  ;;  %v1606_v35 = vmul.f32 %v1597_v26, %v1130_v15 }
  0xb7   :  { %187 = vrot.lane.b32.xlu0 %v172_v42, %s16014_s7  ;;  %362 = vrot.lane.b32.xlu1 %v130_v43, %s16004_s22  ;;  %v12935_v42 = vmov 0  }
  0xb8   :  { %v1807_v23 = vpop.permute.xlu1 %1806  ;;  %v1805_v24 = vpop.permute.xlu0 %1804  ;;  %12876 = vset.pattern.permute.xlu0 %v12935_v42  ;;  %12897 = vset.pattern.permute.xlu1 %v12935_v42  ;;  %v11819_v42 = vld [vmem:[%s16031_s0 + $0x28] sm:$0xff] }
  0xb9   :  { %v1812_v31 = vsel %vm16016_vm7, %v1805_v24, %v1807_v23  ;;  %v1820_v44 = vmul.f32 %v1805_v24, %v13169_v18 }
  0xba   :  { %v1821_v34 = vmul.f32 %v1812_v31, %v1128_v8 }
  0xbb   :  { %576 = vrot.lane.b32.xlu1 %v562_v46, %s16006_s1  ;;  %360 = vrot.lane.b32.xlu0 %v129_v47, %s16004_s22  ;;  %v2003_v46 = vld [vmem:[%s16030_s27] sm:$0xff]  ;;  %s16033_s22 = smov 127  }
  0xbc   :  { %v1811_v32 = vpop.permute.xlu1 %1810  ;;  %v1809_v33 = vpop.permute.xlu0 %1808 }
  0xbd   :  { %v1814_v37 = vsel %vm16016_vm7, %v1809_v33, %v1811_v32  ;;  %v1813_v39 = vsel %vm16016_vm7, %v1807_v23, %v1809_v33  ;;  %v1824_v45 = vmul.f32 %v1811_v32, %v13178_v22  ;;  %v11804_v33 = vld [vmem:[%s16031_s0 + $0x18] sm:$0xff] }
  0xbe   :  { %v1823_v38 = vmul.f32 %v1814_v37, %v1130_v15  ;;  %v1822_v43 = vmul.f32 %v1813_v39, %v1129_v60  ;;  %v11811_v39 = vld [vmem:[%s16031_s0 + $0x20] sm:$0xff] }
  0xbf   :  { %794 = vrot.lane.b32.xlu1 %v781_v50, %s12931_s5  ;;  %574 = vrot.lane.b32.xlu0 %v561_v51, %s16006_s1 }
  0xc3   :  { %798 = vrot.lane.b32.xlu1 %v783_v56, %s12931_s5  ;;  %578 = vrot.lane.b32.xlu0 %v563_v57, %s16006_s1  ;;  %s12938_s1 = smov 120  }
  0xc7   :  { %1183 = vrot.lane.b32.xlu1 %v1169_v63, %s16010_s21  ;;  %796 = vrot.lane.b32.xlu0 %v782_v0, %s12931_s5  ;;  %v11782_v63 = vld [vmem:[%s16031_s0 + $0x8] sm:$0xff] }
  0xcb   :  { %1399 = vrot.lane.b32.xlu1 %v1386_v9, %s16012_s29  ;;  %1181 = vrot.lane.b32.xlu0 %v1168_v10, %s16010_s21 }
  0xcf   :  { %1403 = vrot.lane.b32.xlu1 %v1388_v17, %s16012_s29  ;;  %1185 = vrot.lane.b32.xlu0 %v1170_v19, %s16010_s21 }
  0xd3   :  { %1619 = vrot.lane.b32.xlu1 %v1605_v21, %s12927_s24  ;;  %1401 = vrot.lane.b32.xlu0 %v1387_v27, %s16012_s29  ;;  %v11796_v21 = vld [vmem:[%s16031_s0 + $0x10] sm:$0xff] }
  0xd7   :  { %1623 = vrot.lane.b32.xlu1 %v1607_v28, %s12927_s24  ;;  %1617 = vrot.lane.b32.xlu0 %v1604_v29, %s12927_s24 }
  0xdb   :  { %1834 = vrot.lane.b32.xlu1 %v1821_v34, %s16008_s26  ;;  %1621 = vrot.lane.b32.xlu0 %v1606_v35, %s12927_s24 }
  0xdf   :  { %1838 = vrot.lane.b32.xlu1 %v1823_v38, %s16008_s26  ;;  %1615 = vrot.lane.b32.xlu0 %v1603_v40, %s12927_s24 }
  0xe3   :  { %1832 = vrot.lane.b32.xlu1 %v1820_v44, %s16008_s26  ;;  %1836 = vrot.lane.b32.xlu0 %v1822_v43, %s16008_s26 }
  0xe7   :  { %1840 = vrot.lane.b32.xlu0 %v1824_v45, %s16008_s26  ;;  %s12937_s26 = smov 119  }
  0xeb   :  { %2006 = vperm.xlu0 %12876, %v2003_v46  }
  0xf5   :  { %v182_v48 = vpop.permute.xlu0 %181 }
  0xf9   :  { %v190_v47 = vpop.permute.xlu1 %189 }
  0xfd   :  { %v357_v49 = vpop.permute.xlu1 %356 }
 0x101   :  { %v365_v50 = vpop.permute.xlu0 %364 }
 0x105   :  { %v573_v52 = vpop.permute.xlu0 %572 }
 0x109   :  { %v581_v51 = vpop.permute.xlu1 %580 }
 0x10d   :  { %v13281_v18 = vpop.permute.xlu1 %792 }
 0x111   :  { %v801_v53 = vpop.permute.xlu0 %800 }
 0x115   :  { %v13285_v56 = vpop.permute.xlu0 %1179 }
 0x119   :  { %v13283_v54 = vpop.permute.xlu1 %1187 }
 0x11d   :  { %v13287_v22 = vpop.permute.xlu1 %1397 }
 0x121   :  { %v13289_v57 = vpop.permute.xlu0 %1405  ;;  %v186_v58 = vpop.permute.xlu1 %185 }
 0x125   :  { %v184_v59 = vpop.permute.xlu0 %183  ;;  %v359_v60 = vpop.permute.xlu1 %358 }
 0x126   :  { %v193_v61 = vsel %vm191_vm6, %v184_v59, %v186_v58  ;;  %v192_v62 = vsel %vm191_vm6, %v182_v48, %v184_v59  ;;  %v367_v15 = vsel %vm16016_vm7, %v357_v49, %v359_v60  ;;  %v11827_v48 = vld [vmem:[%s16031_s0 + $0x30] sm:$0xff] }
 0x127   :  { %11783 = vmatprep.subr.msk.mxu0 %vm200_vm8, %v193_v61 }
 0x128   :  { %11784 = vmatpush1.msk.msra.mxu0 %vm200_vm8, %v192_v62 }
 0x129   :  { %v188_v0 = vpop.permute.xlu0 %187  ;;  %v363_v2 = vpop.permute.xlu1 %362  ;;  %11785 = vmatmul.mubr.msk.f32.vlgmr.msra.gmra.mxu0 %vm196_vm9, %v11782_v63 }
 0x12a   :  { %v195_v3 = vsel %vm191_vm6, %v188_v0, %v190_v47  ;;  %v194_v8 = vsel %vm191_vm6, %v186_v58, %v188_v0  ;;  %446 = vmatprep.mubr.f32.mxu0 %v12926_v1  ;;  %v370_v9 = vsel %vm16016_vm7, %v363_v2, %v365_v50  ;;  %v11843_v0 = vld [vmem:[%s16031_s0 + $0x40] sm:$0xff] }
 0x12b   :  { %11786 = vmatprep.subr.msk.mxu1 %vm200_vm8, %v195_v3 }
 0x12c   :  { %11787 = vmatpush1.msk.msra.mxu1 %vm200_vm8, %v194_v8 }
 0x12d   :  { %11792 = vmatprep.subr.msk.mxu1 %vm200_vm8, %v370_v9  ;;  %v577_v10 = vpop.permute.xlu1 %576  ;;  %v361_v11 = vpop.permute.xlu0 %360  ;;  %11788 = vmatmul.mubr.msk.f32.vlgmr.msra.gmra.mxu1 %vm196_vm9, %v11782_v63 }
 0x12e   :  { %v369_v12 = vsel %vm16016_vm7, %v361_v11, %v363_v2  ;;  %v368_v13 = vsel %vm16016_vm7, %v359_v60, %v361_v11  ;;  %517 = vmatprep.mubr.f32.mxu1 %v12926_v1  ;;  %vm12943_vm7 = vmmov 0  }
 0x12f   :  { %11789 = vmatprep.subr.msk.mxu0 %vm200_vm8, %v368_v13  ;;  %11793 = vmatpush1.msk.msra.mxu1 %vm200_vm8, %v369_v12 }
 0x130   :  { %11790 = vmatpush1.msk.msra.mxu0 %vm200_vm8, %v367_v15 }
 0x131   :  { %v795_v16 = vpop.permute.xlu1 %794  ;;  %v575_v17 = vpop.permute.xlu0 %574  ;;  %11791 = vmatmul.mubr.msk.f32.vlgmr.msra.gmra.mxu0 %vm196_vm9, %v132_v14  ;;  %11794 = vmatmul.mubr.msk.f32.vlgmr.msra.gmra.mxu1 %vm196_vm9, %v132_v14 }
 0x132   :  { %v583_v19 = vsel %vm16017_vm5, %v573_v52, %v575_v17  ;;  %v584_v20 = vsel %vm16017_vm5, %v575_v17, %v577_v10  ;;  %662 = vmatprep.mubr.f32.mxu0 %v12926_v1  ;;  %733 = vmatprep.mubr.f32.mxu1 %v12926_v1  ;;  %v803_v34 = vsel %vm802_vm4, %v13281_v18, %v795_v16 }
 0x133   :  { %11797 = vmatprep.subr.msk.mxu0 %vm200_vm8, %v584_v20 }
 0x134   :  { %11798 = vmatpush1.msk.msra.mxu0 %vm200_vm8, %v583_v19 }
 0x135   :  { %v799_v23 = vpop.permute.xlu1 %798  ;;  %v579_v24 = vpop.permute.xlu0 %578  ;;  %11799 = vmatmul.mubr.msk.f32.vlgmr.msra.gmra.mxu0 %vm196_vm9, %v11796_v21 }
 0x136   :  { %v585_v25 = vsel %vm16017_vm5, %v577_v10, %v579_v24  ;;  %v586_v27 = vsel %vm16017_vm5, %v579_v24, %v581_v51  ;;  %882 = vmatprep.mubr.f32.mxu0 %v12926_v1  ;;  %v806_v28 = vsel %vm802_vm4, %v799_v23, %v801_v53 }
 0x137   :  { %11800 = vmatprep.subr.msk.mxu1 %vm200_vm8, %v586_v27 }
 0x138   :  { %11801 = vmatpush1.msk.msra.mxu1 %vm200_vm8, %v585_v25 }
 0x139   :  { %v1184_v29 = vpop.permute.xlu1 %1183  ;;  %11802 = vmatmul.mubr.msk.f32.vlgmr.msra.gmra.mxu1 %vm196_vm9, %v11796_v21  ;;  %11808 = vmatprep.subr.msk.mxu1 %vm200_vm8, %v806_v28  ;;  %v797_v26 = vpop.permute.xlu0 %796 }
 0x13a   :  { %v805_v31 = vsel %vm802_vm4, %v797_v26, %v799_v23  ;;  %v804_v32 = vsel %vm802_vm4, %v795_v16, %v797_v26  ;;  %953 = vmatprep.mubr.f32.mxu1 %v12926_v1 }
 0x13b   :  { %11805 = vmatprep.subr.msk.mxu0 %vm200_vm8, %v804_v32  ;;  %11809 = vmatpush1.msk.msra.mxu1 %vm200_vm8, %v805_v31 }
 0x13c   :  { %11806 = vmatpush1.msk.msra.mxu0 %vm200_vm8, %v803_v34  ;;  %11815 = vmatprep.subr.msk.mxu1 %vm200_vm8, %v13154_v55 }
 0x13d   :  { %v1400_v35 = vpop.permute.xlu1 %1399  ;;  %11807 = vmatmul.mubr.msk.f32.vlgmr.msra.gmra.mxu0 %vm196_vm9, %v11804_v33  ;;  %11810 = vmatmul.mubr.msk.f32.vlgmr.msra.gmra.mxu1 %vm196_vm9, %v11804_v33  ;;  %v1182_v37 = vpop.permute.xlu0 %1181 }
 0x13e   :  { %11812 = vmatprep.subr.msk.mxu0 %vm200_vm8, %v13192_v30  ;;  %v1190_v38 = vsel %vm771_vm3, %v1182_v37, %v1184_v29  ;;  %1045 = vmatprep.mubr.f32.mxu0 %v12926_v1  ;;  %v1189_v55 = vsel %vm771_vm3, %v13285_v56, %v1182_v37  ;;  %v1407_v49 = vsel %vm551_vm2, %v13287_v22, %v1400_v35  ;;  %v11835_v22 = vld [vmem:[%s16031_s0 + $0x38] sm:$0xff]  ;;  %s16020_s0 = smov 8  }
 0x13f   :  { %11813 = vmatpush1.msk.msra.mxu0 %vm200_vm8, %v13199_v36  ;;  %11816 = vmatpush1.msk.msra.mxu1 %vm200_vm8, %v13207_v41 }
 0x140   :  { %11820 = vmatprep.subr.msk.mxu0 %vm200_vm8, %v1190_v38  ;;  %1116 = vmatprep.mubr.f32.mxu1 %v12926_v1 }
 0x141   :  { %v1404_v30 = vpop.permute.xlu1 %1403  ;;  %11814 = vmatmul.mubr.msk.f32.vlgmr.msra.gmra.mxu0 %vm196_vm9, %v11811_v39  ;;  %11817 = vmatmul.mubr.msk.f32.vlgmr.msra.gmra.mxu1 %vm196_vm9, %v11811_v39  ;;  %v1186_v40 = vpop.permute.xlu0 %1185 }
 0x142   :  { %11821 = vmatpush1.msk.msra.mxu0 %vm200_vm8, %v1189_v55  ;;  %v1191_v36 = vsel %vm771_vm3, %v1184_v29, %v1186_v40  ;;  %v1192_v41 = vsel %vm771_vm3, %v1186_v40, %v13283_v54  ;;  %1268 = vmatprep.mubr.f32.mxu0 %v12926_v1  ;;  %v1410_v44 = vsel %vm551_vm2, %v1404_v30, %v13289_v57 }
 0x143   :  { %11823 = vmatprep.subr.msk.mxu1 %vm200_vm8, %v1192_v41  ;;  %1339 = vmatprep.mubr.f32.mxu1 %v12926_v1 }
 0x144   :  { %11824 = vmatpush1.msk.msra.mxu1 %vm200_vm8, %v1191_v36 }
 0x145   :  { %v1620_v43 = vpop.permute.xlu1 %1619  ;;  %11822 = vmatmul.mubr.msk.f32.vlgmr.msra.gmra.mxu0 %vm196_vm9, %v11819_v42  ;;  %11825 = vmatmul.mubr.msk.f32.vlgmr.msra.gmra.mxu1 %vm196_vm9, %v11819_v42  ;;  %v1402_v45 = vpop.permute.xlu0 %1401 }
 0x146   :  { %11831 = vmatprep.subr.msk.mxu1 %vm200_vm8, %v1410_v44  ;;  %v1409_v46 = vsel %vm551_vm2, %v1402_v45, %v1404_v30  ;;  %v1408_v47 = vsel %vm551_vm2, %v1400_v35, %v1402_v45  ;;  %1486 = vmatprep.mubr.f32.mxu0 %v12926_v1 }
 0x147   :  { %11828 = vmatprep.subr.msk.mxu0 %vm200_vm8, %v1408_v47  ;;  %11832 = vmatpush1.msk.msra.mxu1 %vm200_vm8, %v1409_v46 }
 0x148   :  { %11829 = vmatpush1.msk.msra.mxu0 %vm200_vm8, %v1407_v49  ;;  %1557 = vmatprep.mubr.f32.mxu1 %v12926_v1 }
 0x149   :  { %v1624_v50 = vpop.permute.xlu1 %1623  ;;  %11830 = vmatmul.mubr.msk.f32.vlgmr.msra.gmra.mxu0 %vm196_vm9, %v11827_v48  ;;  %11833 = vmatmul.mubr.msk.f32.vlgmr.msra.gmra.mxu1 %vm196_vm9, %v11827_v48  ;;  %v1618_v51 = vpop.permute.xlu0 %1617 }
 0x14a   :  { %v1626_v52 = vsel %vm160_vm0, %v1618_v51, %v1620_v43  ;;  %1775 = vmatprep.mubr.f32.mxu1 %v12926_v1  ;;  %1704 = vmatprep.mubr.f32.mxu0 %v12926_v1 }
 0x14b   :  { %11836 = vmatprep.subr.msk.mxu0 %vm200_vm8, %v1626_v52 }
 0x14d   :  { %v1835_v18 = vpop.permute.xlu1 %1834  ;;  %v1622_v53 = vpop.permute.xlu0 %1621 }
 0x14e   :  { %v1627_v54 = vsel %vm160_vm0, %v1620_v43, %v1622_v53  ;;  %v1628_v56 = vsel %vm160_vm0, %v1622_v53, %v1624_v50 }
 0x14f   :  { %11839 = vmatprep.subr.msk.mxu1 %vm200_vm8, %v1628_v56 }
 0x150   :  { %11840 = vmatpush1.msk.msra.mxu1 %vm200_vm8, %v1627_v54 }
 0x151   :  { %v1839_v57 = vpop.permute.xlu1 %1838  ;;  %11841 = vmatmul.mubr.msk.f32.vlgmr.msra.gmra.mxu1 %vm196_vm9, %v11835_v22  ;;  %v1616_v58 = vpop.permute.xlu0 %1615 }
 0x152   :  { %v1625_v59 = vsel %vm160_vm0, %v1616_v58, %v1618_v51  ;;  %1992 = vmatprep.mubr.f32.mxu1 %v12926_v1 }
 0x153   :  { %11837 = vmatpush1.msk.msra.mxu0 %vm200_vm8, %v1625_v59  ;;  %v68_v59 = vld [vmem:[%s16028_s20] ss:$8 sm:$0xf] }
 0x154   :  { %11838 = vmatmul.mubr.msk.f32.vlgmr.msra.gmra.mxu0 %vm196_vm9, %v11835_v22 }
 0x155   :  { %v1833_v60 = vpop.permute.xlu1 %1832  ;;  %v1837_v61 = vpop.permute.xlu0 %1836  ;;  %1921 = vmatprep.mubr.f32.mxu0 %v12926_v1 }
 0x156   :  { %v1842_v62 = vsel %vm118_vm1, %v1833_v60, %v1835_v18  ;;  %v1843_v63 = vsel %vm118_vm1, %v1835_v18, %v1837_v61  ;;  %v1844_v8 = vsel %vm118_vm1, %v1837_v61, %v1839_v57  ;;  %v11780_v60 = vld [vmem:[%s16028_s20 + $0x20] ss:$8 sm:$0xf] }
 0x157   :  { %11844 = vmatprep.subr.msk.mxu0 %vm200_vm8, %v1843_v63 }
 0x158   :  { %11845 = vmatpush1.msk.msra.mxu0 %vm200_vm8, %v1842_v62 }
 0x159   :  { %11846 = vmatmul.mubr.msk.f32.vlgmr.msra.gmra.mxu0 %vm196_vm9, %v11843_v0  ;;  %v1841_v2 = vpop.permute.xlu0 %1840 }
 0x15a   :  { %v1845_v3 = vsel %vm118_vm1, %v1839_v57, %v1841_v2 }
 0x15b   :  { %11847 = vmatprep.subr.msk.mxu1 %vm200_vm8, %v1845_v3 }
 0x15c   :  { %11848 = vmatpush1.msk.msra.mxu1 %vm200_vm8, %v1844_v8 }
 0x15d   :  { %11849 = vmatmul.mubr.msk.f32.vlgmr.msra.gmra.mxu1 %vm196_vm9, %v11843_v0 }
 0x1e9   :  { %v275_v1 = vpop.f32.mrf.mxu0 }
 0x1eb   :  { %v277_v10 = vpop.f32.mrf.mxu0 }
 0x1ed   :  { %v346_v9 = vpop.f32.mrf.mxu1 }
 0x1ef   :  { %v348_v11 = vpop.f32.mrf.mxu1 }
 0x1f1   :  { %v448_v12 = vpop.f32.mrf.mxu0  ;;  %v519_v13 = vpop.f32.mrf.mxu1 }
 0x1f2   :  { %v449_v31 = vadd.f32 %v448_v12, %v275_v1  ;;  %v520_v34 = vadd.f32 %v519_v13, %v346_v9  ;;  %v71_v1 = vmul.f32 %v11780_v60, %v68_v59  ;;  %v2295_v59 = vld [vmem:[%s15984_s11 + $0x1c8] sm:$0xff]  ;;  %v2264_v60 = vld [vmem:[%s15984_s11 + $0xd0] sm:$0xff] }
 0x1f3   :  { %v450_v14 = vpop.f32.mrf.mxu0  ;;  %v521_v15 = vpop.f32.mrf.mxu1 }
 0x1f4   :  { %v451_v32 = vadd.f32 %v450_v14, %v277_v10  ;;  %v522_v55 = vadd.f32 %v521_v15, %v348_v11  ;;  %v2025_v13 = vrot.slane %v71_v1, %v13061_v7  ;;  %v2007_v14 = vpop.permute.xlu0 %2006 }
 0x1f5   :  { %v664_v16 = vpop.f32.mrf.mxu0 }
 0x1f6   :  { %v740_v37 = vadd.f32 %v664_v16, %v449_v31 }
 0x1f7   :  { %v666_v19 = vpop.f32.mrf.mxu0 }
 0x1f8   :  { %v741_v38 = vadd.f32 %v666_v19, %v451_v32 }
 0x1f9   :  { %v735_v17 = vpop.f32.mrf.mxu1 }
 0x1fa   :  { %v742_v30 = vadd.f32 %v735_v17, %v520_v34 }
 0x1fb   :  { %v737_v20 = vpop.f32.mrf.mxu1 }
 0x1fc   :  { %v743_v43 = vadd.f32 %v737_v20, %v522_v55  ;;  %v2285_v55 = vld [vmem:[%s15984_s11 + $0x178] sm:$0xff] }
 0x1fd   :  { %v884_v21 = vpop.f32.mrf.mxu0  ;;  %v955_v23 = vpop.f32.mrf.mxu1 }
 0x1fe   :  { %v960_v36 = vadd.f32 %v884_v21, %v740_v37  ;;  %v962_v44 = vadd.f32 %v955_v23, %v742_v30  ;;  %v2300_v30 = vld [vmem:[%s15984_s11 + $0x1f0] sm:$0xff] }
 0x1ff   :  { %v886_v24 = vpop.f32.mrf.mxu0  ;;  %v957_v25 = vpop.f32.mrf.mxu1 }
 0x200   :  { %v961_v41 = vadd.f32 %v886_v24, %v741_v38  ;;  %v963_v49 = vadd.f32 %v957_v25, %v743_v43  ;;  %v2029_v25 = vrot.slane %v71_v1, %v13057_v5  ;;  %v2299_v43 = vld [vmem:[%s15984_s11 + $0x1e8] sm:$0xff] }
 0x201   :  { %v1047_v27 = vpop.f32.mrf.mxu0  ;;  %v1118_v28 = vpop.f32.mrf.mxu1 }
 0x202   :  { %v1123_v46 = vadd.f32 %v1047_v27, %v960_v36  ;;  %v1125_v50 = vadd.f32 %v1118_v28, %v962_v44  ;;  %v2033_v28 = vrot.slane %v71_v1, %v13059_v6  ;;  %v2269_v36 = vld [vmem:[%s15984_s11 + $0xf8] sm:$0xff]  ;;  %v2268_v44 = vld [vmem:[%s15984_s11 + $0xf0] sm:$0xff] }
 0x203   :  { %v1049_v29 = vpop.f32.mrf.mxu0  ;;  %v1120_v26 = vpop.f32.mrf.mxu1  ;;  %12107 = vmatprep.subr.mxu0 %v2269_v36  ;;  %v2240_v36 = vld [vmem:[%s15984_s11 + $0x10] sm:$0xff] }
 0x204   :  { %v1124_v47 = vadd.f32 %v1049_v29, %v961_v41  ;;  %v1126_v22 = vadd.f32 %v1120_v26, %v963_v49  ;;  %v2284_v41 = vld [vmem:[%s15984_s11 + $0x170] sm:$0xff]  ;;  %v2267_v49 = vld [vmem:[%s15984_s11 + $0xe8] sm:$0xff] }
 0x205   :  { %v1270_v33 = vpop.f32.mrf.mxu0  ;;  %v1341_v35 = vpop.f32.mrf.mxu1 }
 0x206   :  { %v1346_v18 = vadd.f32 %v1270_v33, %v1123_v46  ;;  %v1348_v57 = vadd.f32 %v1341_v35, %v1125_v50  ;;  %v2021_v35 = vrot.slane %v71_v1, %v13055_v4  ;;  %v2252_v46 = vld [vmem:[%s15984_s11 + $0x70] sm:$0xff]  ;;  %v2282_v50 = vld [vmem:[%s15984_s11 + $0x160] sm:$0xff] }
 0x207   :  { %v1272_v39 = vpop.f32.mrf.mxu0  ;;  %v1343_v40 = vpop.f32.mrf.mxu1  ;;  %v2262_v1 = vld [vmem:[%s15984_s11 + $0xc0] sm:$0xff] }
 0x208   :  { %v1347_v53 = vadd.f32 %v1272_v39, %v1124_v47  ;;  %v1349_v62 = vadd.f32 %v1343_v40, %v1126_v22  ;;  %v2301_v39 = vld [vmem:[%s15984_s11 + $0x1f8] sm:$0xff]  ;;  %v2298_v47 = vld [vmem:[%s15984_s11 + $0x1e0] sm:$0xff] }
 0x209   :  { %v1488_v42 = vpop.f32.mrf.mxu0  ;;  %v1559_v45 = vpop.f32.mrf.mxu1  ;;  %12145 = vmatprep.subr.mxu1 %v2301_v39  ;;  %v2265_v22 = vld [vmem:[%s15984_s11 + $0xd8] sm:$0xff] }
 0x20a   :  { %v1564_v63 = vadd.f32 %v1488_v42, %v1346_v18  ;;  %v1566_v0 = vadd.f32 %v1559_v45, %v1348_v57  ;;  %v2253_v42 = vld [vmem:[%s15984_s11 + $0x78] sm:$0xff]  ;;  %12146 = vmatpush3.msra.mxu1 %v2285_v55  ;;  %v2283_v45 = vld [vmem:[%s15984_s11 + $0x168] sm:$0xff]  ;;  %v2266_v18 = vld [vmem:[%s15984_s11 + $0xe0] sm:$0xff] }
 0x20b   :  { %v1490_v48 = vpop.f32.mrf.mxu0  ;;  %v1561_v52 = vpop.f32.mrf.mxu1  ;;  %12147 = vmatprep.subr.mxu1 %v2300_v30  ;;  %12108 = vmatpush3.msra.mxu0 %v2253_v42  ;;  %v2280_v57 = vld [vmem:[%s15984_s11 + $0x150] sm:$0xff]  ;;  %v2271_v30 = vld [vmem:[%s15984_s11 + $0x108] sm:$0xff] }
 0x20c   :  { %v1565_v58 = vadd.f32 %v1490_v48, %v1347_v53  ;;  %v1567_v9 = vadd.f32 %v1561_v52, %v1349_v62  ;;  %12148 = vmatpush3.msra.mxu1 %v2284_v41  ;;  %v13489_v48 = vld [vmem:[#allocation2 + $0x28] sm:$0xff]  ;;  %12109 = vmatprep.subr.mxu0 %v2268_v44  ;;  %v2297_v52 = vld [vmem:[%s15984_s11 + $0x1d8] sm:$0xff]  ;;  %v2248_v62 = vld [vmem:[%s15984_s11 + $0x50] sm:$0xff] }
 0x20d   :  { %12149 = vmatprep.subr.mxu1 %v2299_v43  ;;  %12110 = vmatpush3.msra.mxu0 %v2252_v46  ;;  %v2281_v53 = vld [vmem:[%s15984_s11 + $0x158] sm:$0xff]  ;;  %v2256_v55 = vld [vmem:[%s15984_s11 + $0x90] sm:$0xff]  ;;  %v2286_v41 = vld [vmem:[%s15984_s11 + $0x180] sm:$0xff] }
 0x20e   :  { %12150 = vmatpush3.msra.mxu1 %v2283_v45  ;;  %12111 = vmatprep.subr.mxu0 %v2267_v49  ;;  %v2255_v43 = vld [vmem:[%s15984_s11 + $0x88] sm:$0xff]  ;;  %v2270_v44 = vld [vmem:[%s15984_s11 + $0x100] sm:$0xff] }
 0x20f   :  { %12151 = vmatprep.subr.mxu1 %v2298_v47  ;;  %v2239_v46 = vld [vmem:[%s15984_s11 + $0x8] sm:$0xff] }
 0x210   :  { %12152 = vmatpush3.msra.mxu1 %v2282_v50  ;;  %v2254_v50 = vld [vmem:[%s15984_s11 + $0x80] sm:$0xff] }
 0x211   :  { %v1777_v56 = vpop.f32.mrf.mxu1  ;;  %12153 = vmatprep.subr.mxu1 %v2297_v52  ;;  %v2238_v52 = vld [vmem:[%s15984_s11] sm:$0xff] }
 0x212   :  { %v1784_v10 = vadd.f32 %v1777_v56, %v1566_v0  ;;  %v2296_v56 = vld [vmem:[%s15984_s11 + $0x1d0] sm:$0xff]  ;;  %12154 = vmatpush3.msra.mxu1 %v2281_v53  ;;  %v2263_v0 = vld [vmem:[%s15984_s11 + $0xc8] sm:$0xff] }
 0x213   :  { %v1779_v3 = vpop.f32.mrf.mxu1  ;;  %12155 = vmatprep.subr.mxu1 %v2296_v56 }
 0x214   :  { %v1706_v51 = vpop.f32.mrf.mxu0  ;;  %v1785_v16 = vadd.f32 %v1779_v3, %v1567_v9  ;;  %12156 = vmatpush3.msra.mxu1 %v2280_v57  ;;  %v2247_v3 = vld [vmem:[%s15984_s11 + $0x48] sm:$0xff]  ;;  %v2277_v9 = vld [vmem:[%s15984_s11 + $0x138] sm:$0xff] }
 0x215   :  { %v1782_v11 = vadd.f32 %v1706_v51, %v1564_v63  ;;  %v2251_v51 = vld [vmem:[%s15984_s11 + $0x68] sm:$0xff]  ;;  %12157 = vmatprep.subr.mxu1 %v2295_v59  ;;  %v2294_v63 = vld [vmem:[%s15984_s11 + $0x1c0] sm:$0xff] }
 0x216   :  { %v1708_v54 = vpop.f32.mrf.mxu0  ;;  %12112 = vmatpush3.msra.mxu0 %v2251_v51 }
 0x217   :  { %v1783_v2 = vadd.f32 %v1708_v54, %v1565_v58  ;;  %v2250_v54 = vld [vmem:[%s15984_s11 + $0x60] sm:$0xff]  ;;  %12113 = vmatprep.subr.mxu0 %v2266_v18  ;;  %v2249_v58 = vld [vmem:[%s15984_s11 + $0x58] sm:$0xff] }
 0x218   :  { %12114 = vmatpush3.msra.mxu0 %v2250_v54 }
 0x219   :  { %v1923_v61 = vpop.f32.mrf.mxu0  ;;  %12115 = vmatprep.subr.mxu0 %v2265_v22 }
 0x21a   :  { %v1999_v17 = vadd.f32 %v1923_v61, %v1782_v11  ;;  %v2279_v61 = vld [vmem:[%s15984_s11 + $0x148] sm:$0xff]  ;;  %12116 = vmatpush3.msra.mxu0 %v2249_v58  ;;  %v2292_v11 = vld [vmem:[%s15984_s11 + $0x1b0] sm:$0xff] }
 0x21b   :  { %v1925_v8 = vpop.f32.mrf.mxu0  ;;  %12117 = vmatprep.subr.mxu0 %v2264_v60  ;;  %12158 = vmatpush3.msra.mxu1 %v2279_v61 }
 0x21c   :  { %v2000_v12 = vadd.f32 %v1925_v8, %v1783_v2  ;;  %v2009_v29 = vadd.f32 %v2007_v14, %v1999_v17  ;;  %12118 = vmatpush3.msra.mxu0 %v2248_v62  ;;  %12159 = vmatprep.subr.mxu1 %v2294_v63  ;;  %v2278_v2 = vld [vmem:[%s15984_s11 + $0x140] sm:$0xff]  ;;  %v2293_v8 = vld [vmem:[%s15984_s11 + $0x1b8] sm:$0xff]  ;;  %v2275_v17 = vld [vmem:[%s15984_s11 + $0x128] sm:$0xff] }
 0x21d   :  { %v1994_v15 = vpop.f32.mrf.mxu1  ;;  %12119 = vmatprep.subr.mxu0 %v2263_v0  ;;  %12160 = vmatpush3.msra.mxu1 %v2278_v2 }
 0x21e   :  { %v2010_v19 = vadd.f32 %v2007_v14, %v2000_v12  ;;  %v2001_v20 = vadd.f32 %v1994_v15, %v1784_v10  ;;  %v2013_v37 = vmax.f32 %v2009_v29, 0.0  ;;  %12120 = vmatpush3.msra.mxu0 %v2247_v3  ;;  %12161 = vmatprep.subr.mxu1 %v2293_v8  ;;  %v2246_v10 = vld [vmem:[%s15984_s11 + $0x40] sm:$0xff]  ;;  %v2261_v12 = vld [vmem:[%s15984_s11 + $0xb8] sm:$0xff]  ;;  %v2291_v15 = vld [vmem:[%s15984_s11 + $0x1a8] sm:$0xff] }
 0x21f   :  { %v1996_v21 = vpop.f32.mrf.mxu1  ;;  %12121 = vmatprep.subr.mxu0 %v2262_v1  ;;  %12162 = vmatpush3.msra.mxu1 %v2277_v9  ;;  %v2242_v29 = vld [vmem:[%s15984_s11 + $0x20] sm:$0xff] }
 0x220   :  { %v2014_v23 = vmax.f32 %v2010_v19, 0.0  ;;  %v2011_v24 = vadd.f32 %v2007_v14, %v2001_v20  ;;  %v2002_v27 = vadd.f32 %v1996_v21, %v1785_v16  ;;  %v13459_v40 = vmul.f32 %v2021_v35, %v2013_v37  ;;  %12122 = vmatpush3.msra.mxu0 %v2246_v10  ;;  %12163 = vmatprep.subr.mxu1 %v2292_v11  ;;  %v2260_v16 = vld [vmem:[%s15984_s11 + $0xb0] sm:$0xff]  ;;  %v2290_v20 = vld [vmem:[%s15984_s11 + $0x1a0] sm:$0xff]  ;;  %v2259_v21 = vld [vmem:[%s15984_s11 + $0xa8] sm:$0xff] }
 0x221   :  { %12123 = vmatprep.subr.mxu0 %v2261_v12  ;;  %v2244_v19 = vld [vmem:[%s15984_s11 + $0x30] sm:$0xff]  ;;  %v2241_v35 = vld [vmem:[%s15984_s11 + $0x18] sm:$0xff]  ;;  %v2287_v37 = vld [vmem:[%s15984_s11 + $0x188] sm:$0xff] }
 0x222   :  { %v13438_v26 = vmul.f32 %v2025_v13, %v2014_v23  ;;  %v2015_v31 = vmax.f32 %v2011_v24, 0.0  ;;  %v2012_v32 = vadd.f32 %v2007_v14, %v2002_v27  ;;  %v2276_v13 = vld [vmem:[%s15984_s11 + $0x130] sm:$0xff]  ;;  %v2245_v14 = vld [vmem:[%s15984_s11 + $0x38] sm:$0xff]  ;;  %v2274_v23 = vld [vmem:[%s15984_s11 + $0x120] sm:$0xff] }
 0x223   :  { %12164 = vmatpush3.msra.mxu1 %v2276_v13  ;;  %12124 = vmatpush3.msra.mxu0 %v2245_v14  ;;  %v2243_v24 = vld [vmem:[%s15984_s11 + $0x28] sm:$0xff]  ;;  %v2258_v27 = vld [vmem:[%s15984_s11 + $0xa0] sm:$0xff] }
 0x224   :  { %2043 = vst [vmem:[#allocation2 + $0x8] sm:$0xff] %v13438_v26  ;;  %v13441_v33 = vmul.f32 %v2029_v25, %v2015_v31  ;;  %v2016_v34 = vmax.f32 %v2012_v32, 0.0  ;;  %12165 = vmatprep.subr.mxu1 %v2291_v15  ;;  %12125 = vmatprep.subr.mxu0 %v2260_v16  ;;  %v2289_v25 = vld [vmem:[%s15984_s11 + $0x198] sm:$0xff]  ;;  %v2288_v31 = vld [vmem:[%s15984_s11 + $0x190] sm:$0xff] }
 0x225   :  { %12166 = vmatpush3.msra.mxu1 %v2275_v17  ;;  %12126 = vmatpush3.msra.mxu0 %v2244_v19  ;;  %v2257_v32 = vld [vmem:[%s15984_s11 + $0x98] sm:$0xff] }
 0x226   :  { %v13444_v38 = vmul.f32 %v2033_v28, %v2016_v34  ;;  %2060 = vrot.lane.b32.xlu1 %v13441_v33, %s16010_s21  ;;  %12167 = vmatprep.subr.mxu1 %v2290_v20  ;;  %v2273_v28 = vld [vmem:[%s15984_s11 + $0x118] sm:$0xff]  ;;  %v2272_v34 = vld [vmem:[%s15984_s11 + $0x110] sm:$0xff]  ;;  %s16032_s11 = smov 113  }
 0x227   :  { %12127 = vmatprep.subr.mxu0 %v2259_v21  ;;  %12168 = vmatpush3.msra.mxu1 %v2274_v23  ;;  %v12936_v21 = vmov 3.0  }
 0x228   :  { %2062 = vrot.lane.b32.xlu0 %v13444_v38, %s16010_s21  ;;  %12128 = vmatpush3.msra.mxu0 %v2243_v24 }
 0x229   :  { %12169 = vmatprep.subr.mxu1 %v2289_v25  ;;  %12129 = vmatprep.subr.mxu0 %v2258_v27 }
 0x22a   :  { %2058 = vrot.lane.b32.xlu1 %v13438_v26, %s16010_s21  ;;  %12170 = vmatpush3.msra.mxu1 %v2273_v28 }
 0x22b   :  { %12130 = vmatpush3.msra.mxu0 %v2242_v29  ;;  %12171 = vmatprep.subr.mxu1 %v2288_v31 }
 0x22c   :  { %2056 = vrot.lane.b32.xlu0 %v13459_v40, %s16010_s21  ;;  %12131 = vmatprep.subr.mxu0 %v2257_v32  ;;  %v13719_v32 = vld [vmem:[%s15985_s8] ss:$0 sm:$0xff] }
 0x22d   :  { %12172 = vmatpush3.msra.mxu1 %v2272_v34  ;;  %12132 = vmatpush3.msra.mxu0 %v2241_v35  ;;  %v13724_v34 = vld [vmem:[%s15985_s8 + $0x1] ss:$0 sm:$0xff]  ;;  %v13733_v35 = vld [vmem:[%s15985_s8 + $0x3] ss:$0 sm:$0xff] }
 0x22e   :  { %2064 = vrot.lane.b32.xlu1 %v13489_v48, %s16010_s21  ;;  %12173 = vmatprep.subr.mxu1 %v2287_v37  ;;  %v13738_v37 = vld [vmem:[%s15985_s8 + $0x2] ss:$0 sm:$0xff]  ;;  %s16036_s21 = smov 8  }
 0x22f   :  { %12133 = vmatprep.subr.mxu0 %v2256_v55  ;;  %12174 = vmatpush3.msra.mxu1 %v2271_v30  ;;  %v13752_v55 = vld [vmem:[%s15985_s8 + $0x5] ss:$0 sm:$0xff]  ;;  %v13761_v30 = vld [vmem:[%s15985_s8 + $0x8] ss:$0 sm:$0xff] }
 0x230   :  { %12134 = vmatpush3.msra.mxu0 %v2240_v36  ;;  %12175 = vmatprep.subr.mxu1 %v2286_v41  ;;  %v13766_v36 = vld [vmem:[%s15985_s8 + $0x7] ss:$0 sm:$0xff] }
 0x231   :  { %12135 = vmatprep.subr.mxu0 %v2255_v43  ;;  %12176 = vmatpush3.msra.mxu1 %v2270_v44 }
 0x232   :  { %12136 = vmatpush3.msra.mxu0 %v2239_v46  ;;  %12394 = vmatprep.subr.mxu1 %v13489_v48 }
 0x233   :  { %12137 = vmatprep.subr.mxu0 %v2254_v50 }
 0x234   :  { %12138 = vmatpush3.msra.mxu0 %v2238_v52 }
 0x235   :  { %12389 = vmatprep.subr.mxu0 %v13489_v48 }
 0x298   :  { %v2061_v39 = vpop.permute.xlu1 %2060 }
 0x29a   :  { %v2063_v42 = vpop.permute.xlu0 %2062 }
 0x29b   :  { %v2068_v45 = vsel %vm771_vm3, %v2061_v39, %v2063_v42 }
 0x29c   :  { %v2076_v47 = vmax.f32 %v13441_v33, %v2068_v45  ;;  %v2059_v49 = vpop.permute.xlu1 %2058 }
 0x29d   :  { %v2067_v51 = vsel %vm771_vm3, %v2059_v49, %v2061_v39  ;;  %v13747_v39 = vld [vmem:[%s15985_s8 + $0x6] ss:$0 sm:$0xff] }
 0x29e   :  { %v2075_v18 = vmax.f32 %v13438_v26, %v2067_v51  ;;  %2093 = vrot.lane.b32.xlu0 %v2076_v47, %s12927_s24  ;;  %v2057_v53 = vpop.permute.xlu0 %2056 }
 0x29f   :  { %v2066_v58 = vsel %vm771_vm3, %v2057_v53, %v2059_v49 }
 0x2a0   :  { %2091 = vrot.lane.b32.xlu1 %v2075_v18, %s12927_s24  ;;  %v2065_v54 = vpop.permute.xlu1 %2064  ;;  %v2074_v59 = vmax.f32 %v13459_v40, %v2066_v58 }
 0x2a1   :  { %v2069_v56 = vsel %vm771_vm3, %v2063_v42, %v2065_v54  ;;  %v2083_v22 = vmax.f32 %v13489_v48, %v2065_v54 }
 0x2a2   :  { %v2077_v57 = vmax.f32 %v13444_v38, %v2069_v56 }
 0x2a3   :  { %2097 = vrot.lane.b32.xlu0 %v2083_v22, %s12927_s24 }
 0x2a4   :  { %2095 = vrot.lane.b32.xlu1 %v2077_v57, %s12927_s24 }
 0x2a8   :  { %2089 = vrot.lane.b32.xlu1 %v2074_v59, %s12927_s24 }
 0x310   :  { %v2094_v60 = vpop.permute.xlu0 %2093 }
 0x312   :  { %v2092_v61 = vpop.permute.xlu1 %2091 }
 0x313   :  { %v2100_v62 = vsel %vm160_vm0, %v2092_v61, %v2094_v60 }
 0x314   :  { %v13669_v63 = vmax.f32 %v2075_v18, %v2100_v62 }
 0x315   :  { %v2098_v0 = vpop.permute.xlu0 %2097 }
 0x316   :  { %v2096_v2 = vpop.permute.xlu1 %2095  ;;  %2142 = vrot.lane.b32.xlu1 %v13669_v63, %s16014_s7  ;;  %2366 = vmatprep.mubr.f32.mxu0 %v13669_v63 }
 0x317   :  { %v2101_v3 = vsel %vm160_vm0, %v2094_v60, %v2096_v2  ;;  %v2102_v8 = vsel %vm160_vm0, %v2096_v2, %v2098_v0 }
 0x318   :  { %v13676_v1 = vmax.f32 %v2076_v47, %v2101_v3  ;;  %v13678_v9 = vmax.f32 %v2077_v57, %v2102_v8 }
 0x31a   :  { %v2090_v10 = vpop.permute.xlu1 %2089  ;;  %2146 = vrot.lane.b32.xlu1 %v13678_v9, %s16014_s7  ;;  %2441 = vmatprep.mubr.f32.mxu1 %v13678_v9 }
 0x31b   :  { %v2099_v11 = vsel %vm160_vm0, %v2090_v10, %v2092_v61  ;;  %2442 = vmatmul.mubr.f32.vlgmr.msra.gmra.mxu1 %v13676_v1 }
 0x31c   :  { %v13685_v12 = vmax.f32 %v2074_v59, %v2099_v11 }
 0x31e   :  { %2140 = vrot.lane.b32.xlu0 %v13685_v12, %s16014_s7  ;;  %2121 = vrot.lane.b32.xlu1 %v13669_v63, %s12931_s5 }
 0x31f   :  { %2367 = vmatmul.mubr.f32.vlgmr.msra.gmra.mxu0 %v13685_v12 }
 0x322   :  { %2144 = vrot.lane.b32.xlu0 %v13676_v1, %s16014_s7  ;;  %s16035_s7 = smov 7  }
 0x326   :  { %2119 = vrot.lane.b32.xlu0 %v13685_v12, %s12931_s5 }
 0x32a   :  { %2123 = vrot.lane.b32.xlu0 %v13676_v1, %s12931_s5 }
 0x388   :  { %v2143_v13 = vpop.permute.xlu1 %2142 }
 0x38c   :  { %v2147_v16 = vpop.permute.xlu1 %2146 }
 0x38d   :  { %vm2160_vm14 = vcmp.eq.f32.partialorder %v13489_v48, %v2147_v16 }
 0x38e   :  { %v2165_v31 = vsel %vm2160_vm14, 2.0, %v12936_v21 }
 0x390   :  { %v2141_v14 = vpop.permute.xlu0 %2140  ;;  %v2122_v42 = vpop.permute.xlu1 %2121 }
 0x391   :  { %v2148_v15 = vsel %vm191_vm6, %v2141_v14, %v2143_v13  ;;  %vm2156_vm10 = vcmp.eq.f32.partialorder %v13459_v40, %v2141_v14 }
 0x392   :  { %vm2157_vm11 = vcmp.eq.f32.partialorder %v13438_v26, %v2148_v15  ;;  %v2161_v23 = vsel %vm2156_vm10, 2.0, %v12936_v21 }
 0x393   :  { %v2162_v25 = vsel %vm2157_vm11, 2.0, %v12936_v21 }
 0x394   :  { %v2145_v17 = vpop.permute.xlu0 %2144 }
 0x395   :  { %v2149_v19 = vsel %vm191_vm6, %v2143_v13, %v2145_v17  ;;  %v2150_v20 = vsel %vm191_vm6, %v2145_v17, %v2147_v16 }
 0x396   :  { %vm2158_vm12 = vcmp.eq.f32.partialorder %v13441_v33, %v2149_v19  ;;  %vm2159_vm13 = vcmp.eq.f32.partialorder %v13444_v38, %v2150_v20 }
 0x397   :  { %v2164_v24 = vsel %vm2159_vm13, 2.0, %v12936_v21  ;;  %v2163_v27 = vsel %vm2158_vm12, 2.0, %v12936_v21  ;;  %vm2486_vm12 = vcmask 64512   ;;  %vm2112_vm13 = vcmp.eq.f32.partialorder %v13438_v26, %v13669_v63 }
 0x398   :  { %v12882_v28 = vpack.i.bf16 %v2161_v23, %v2164_v24  ;;  %v12877_v29 = vpack.i.bf16 %v2163_v27, %v2162_v25  ;;  %v2120_v41 = vpop.permute.xlu0 %2119  ;;  %vm12916_vm14 = vmneg %vm2112_vm13 }
 0x399   :  { %v2127_v47 = vsel %vm802_vm4, %v2120_v41, %v2122_v42  ;;  %vm2135_vm11 = vcmp.eq.f32.partialorder %v13459_v40, %v2120_v41 }
 0x39a   :  { %12883 = vrot.lane.b32.xlu0 %v12882_v28, %s16032_s11  ;;  %12878 = vrot.lane.b32.xlu1 %v12877_v29, %s16032_s11  ;;  %vm2136_vm15 = vcmp.eq.f32.partialorder %v13438_v26, %v2127_v47 }
 0x39c   :  { %v2124_v43 = vpop.permute.xlu0 %2123 }
 0x39d   :  { %v2128_v52 = vsel %vm802_vm4, %v2122_v42, %v2124_v43 }
 0x39e   :  { %2179 = vrot.lane.b32.xlu0 %v2165_v31, %s16032_s11  ;;  %2125 = vrot.lane.b32.xlu1 %v13678_v9, %s12931_s5  ;;  %vm2137_vm8 = vcmp.eq.f32.partialorder %v13441_v33, %v2128_v52 }
 0x3a2   :  { %2461 = vrot.lane.b32.xlu0 %v13719_v32, %s12937_s26  ;;  %2473 = vrot.lane.b32.xlu1 %v13724_v34, %s12938_s1 }
 0x3a6   :  { %2746 = vrot.lane.b32.xlu0 %v13733_v35, %s16033_s22  ;;  %2650 = vrot.lane.b32.xlu1 %v13738_v37, %s12939_s28 }
 0x3aa   :  { %3014 = vrot.lane.b32.xlu0 %v13747_v39, %s16022_s23  ;;  %2919 = vrot.lane.b32.xlu1 %v13752_v55, %s12931_s5 }
 0x3ae   :  { %3206 = vrot.lane.b32.xlu0 %v13761_v30, %s16018_s30  ;;  %3110 = vrot.lane.b32.xlu1 %v13766_v36, %s16020_s0 }
 0x3db   :  { %v12177_v18 = vpop.f32.mrf.mxu1 }
 0x3dd   :  { %v12178_v60 = vpop.f32.mrf.mxu1 }
 0x3de   :  { %v12179_v10 = vadd.f32 %v12178_v60, %v12177_v18 }
 0x3df   :  { %v12139_v44 = vpop.f32.mrf.mxu0 }
 0x3e1   :  { %v12140_v53 = vpop.f32.mrf.mxu0 }
 0x3e2   :  { %v12141_v2 = vadd.f32 %v12140_v53, %v12139_v44 }
 0x3e4   :  { %v13786_v16 = vadd.f32 %v12179_v10, %v12141_v2 }
 0x40c   :  { %v12879_v45 = vpop.permute.xlu1 %12878  ;;  %v12884_v46 = vpop.permute.xlu0 %12883 }
 0x40d   :  { %v12881_v49 = vunpack.i.h.bf16 %v12879_v45  ;;  %v12880_v50 = vunpack.i.l.bf16 %v12879_v45  ;;  %v12885_v51 = vunpack.i.l.bf16 %v12884_v46  ;;  %v12886_v58 = vunpack.i.h.bf16 %v12884_v46 }
 0x40f   :  { %v2182_v54 = vsel %vm551_vm2, %v12880_v50, %v12881_v49  ;;  %v2183_v56 = vsel %vm551_vm2, %v12881_v49, %v12885_v51  ;;  %v2181_v11 = vsel %vm551_vm2, %v12886_v58, %v12880_v50 }
 0x410   :  { %v2126_v22 = vpop.permute.xlu1 %2125  ;;  %v2180_v57 = vpop.permute.xlu0 %2179  ;;  %v2191_v62 = vsel %vm2136_vm15, 1.0, %v2182_v54  ;;  %v2192_v0 = vsel %vm2137_vm8, 1.0, %v2183_v56  ;;  %v2190_v17 = vsel %vm2135_vm11, 1.0, %v2181_v11  ;;  %v11875_v56 = vld [vmem:[%s16030_s27 + $0x8] sm:$0xff]  ;;  %vm2111_vm15 = vcmp.eq.f32.partialorder %v13459_v40, %v13685_v12  ;;  %v11861_v11 = vld [vmem:[%s15986_s2 + $0x20] sm:$0xff] }
 0x411   :  { %v2129_v59 = vsel %vm802_vm4, %v2124_v43, %v2126_v22  ;;  %vm2139_vm9 = vcmp.eq.f32.partialorder %v13489_v48, %v2126_v22  ;;  %v2184_v3 = vsel %vm551_vm2, %v12885_v51, %v2180_v57  ;;  %v12887_v14 = vpack.i.bf16 %v2192_v0, %v2191_v62  ;;  %vm12918_vm11 = vmneg %vm2111_vm15  ;;  %v2466_v0 = vld [vmem:[%s15986_s2] sm:$0xff] }
 0x412   :  { %v2194_v61 = vsel %vm2139_vm9, 1.0, %v2180_v57  ;;  %vm2138_vm10 = vcmp.eq.f32.partialorder %v13444_v38, %v2129_v59  ;;  %vm2113_vm8 = vcmp.eq.f32.partialorder %v13441_v33, %v13676_v1  ;;  %vm2114_vm9 = vcmp.eq.f32.partialorder %v13444_v38, %v13678_v9  ;;  %v11852_v38 = vld [vmem:[%s15986_s2 + $0x8] sm:$0xff]  ;;  %v11856_v33 = vld [vmem:[%s15986_s2 + $0x10] sm:$0xff] }
 0x413   :  { %2208 = vrot.lane.b32.xlu1 %v2194_v61, %s16033_s22  ;;  %v2193_v15 = vsel %vm2138_vm10, 1.0, %v2184_v3  ;;  %vm2568_vm10 = vcmask 72704   ;;  %vm12920_vm13 = vmneg %vm2114_vm9  ;;  %vm3123_vm15 = vcmask 982016  }
 0x414   :  { %v2474_v8 = vpop.permute.xlu1 %2473  ;;  %v12892_v19 = vpack.i.bf16 %v2193_v15, %v2190_v17  ;;  %v2462_v23 = vpop.permute.xlu0 %2461  ;;  %vm12922_vm5 = vmneg %vm2113_vm8  ;;  %v11864_v15 = vld [vmem:[%s15986_s2 + $0x28] sm:$0xff]  ;;  %vm3219_vm8 = vcmask 973824  }
 0x415   :  { %v2476_v13 = vmul.f32 %v13489_v48, %v2474_v8  ;;  %v2477_v20 = vmul.f32 %v2474_v8, %v13786_v16  ;;  %v2464_v24 = vmul.f32 %v13489_v48, %v2462_v23  ;;  %v2465_v25 = vmul.f32 %v2462_v23, %v13786_v16  ;;  %v11859_v8 = vld [vmem:[%s15986_s2 + $0x18] sm:$0xff]  ;;  %v11867_v23 = vld [vmem:[%s15986_s2 + $0x30] sm:$0xff] }
 0x417   :  { %2482 = vrot.lane.b32.xlu0 %v2476_v13, %s16020_s0  ;;  %12888 = vrot.lane.b32.xlu1 %v12887_v14, %s16033_s22 }
 0x418   :  { %v2651_v27 = vpop.permute.xlu1 %2650  ;;  %v2747_v31 = vpop.permute.xlu0 %2746 }
 0x419   :  { %v2653_v28 = vmul.f32 %v13489_v48, %v2651_v27  ;;  %v2654_v29 = vmul.f32 %v2651_v27, %v13786_v16  ;;  %v2749_v41 = vmul.f32 %v13489_v48, %v2747_v31  ;;  %v2750_v42 = vmul.f32 %v2747_v31, %v13786_v16 }
 0x41b   :  { %12893 = vrot.lane.b32.xlu0 %v12892_v19, %s16033_s22  ;;  %2484 = vrot.lane.b32.xlu1 %v2477_v20, %s16020_s0 }
 0x41c   :  { %v2920_v43 = vpop.permute.xlu1 %2919  ;;  %v3015_v46 = vpop.permute.xlu0 %3014 }
 0x41d   :  { %v2922_v44 = vmul.f32 %v2920_v43, %v13786_v16  ;;  %v2923_v45 = vmul.f32 %v2920_v43, %v13438_v26  ;;  %v3017_v47 = vmul.f32 %v3015_v46, %v13786_v16  ;;  %v3018_v49 = vmul.f32 %v3015_v46, %v13438_v26 }
 0x41f   :  { %2564 = vrot.lane.b32.xlu0 %v2464_v24, %s16018_s30  ;;  %2566 = vrot.lane.b32.xlu1 %v2465_v25, %s16018_s30 }
 0x420   :  { %v3111_v50 = vpop.permute.xlu1 %3110  ;;  %v3207_v18 = vpop.permute.xlu0 %3206 }
 0x421   :  { %v3113_v51 = vmul.f32 %v3111_v50, %v13786_v16  ;;  %v3114_v52 = vmul.f32 %v3111_v50, %v13438_v26  ;;  %v3209_v53 = vmul.f32 %v3207_v18, %v13786_v16  ;;  %v3210_v54 = vmul.f32 %v3207_v18, %v13438_v26 }
 0x423   :  { %2659 = vrot.lane.b32.xlu0 %v2653_v28, %s16022_s23  ;;  %2661 = vrot.lane.b32.xlu1 %v2654_v29, %s16022_s23  ;;  %v11870_v28 = vld [vmem:[%s15986_s2 + $0x38] sm:$0xff] }
 0x427   :  { %2755 = vrot.lane.b32.xlu0 %v2749_v41, %s12931_s5  ;;  %2757 = vrot.lane.b32.xlu1 %v2750_v42, %s12931_s5  ;;  %v11873_v42 = vld [vmem:[%s15986_s2 + $0x40] sm:$0xff] }
 0x42b   :  { %2928 = vrot.lane.b32.xlu0 %v2922_v44, %s16033_s22  ;;  %2930 = vrot.lane.b32.xlu1 %v2923_v45, %s16033_s22 }
 0x42f   :  { %3023 = vrot.lane.b32.xlu0 %v3017_v47, %s12939_s28  ;;  %3025 = vrot.lane.b32.xlu1 %v3018_v49, %s12939_s28 }
 0x433   :  { %3119 = vrot.lane.b32.xlu0 %v3113_v51, %s12938_s1  ;;  %3121 = vrot.lane.b32.xlu1 %v3114_v52, %s12938_s1 }
 0x437   :  { %3215 = vrot.lane.b32.xlu0 %v3209_v53, %s12937_s26  ;;  %3217 = vrot.lane.b32.xlu1 %v3210_v54, %s12937_s26 }
 0x43b   :  { %3300 = vperm.xlu0 %12876, %v11875_v56   ;;  %3333 = vrot.lane.b32.xlu1 %v13724_v34, %s12938_s1 }
 0x43f   :  { %3508 = vrot.lane.b32.xlu1 %v13738_v37, %s12939_s28  ;;  %3320 = vrot.lane.b32.xlu0 %v13719_v32, %s12937_s26 }
 0x443   :  { %3776 = vrot.lane.b32.xlu1 %v13752_v55, %s12931_s5  ;;  %3603 = vrot.lane.b32.xlu0 %v13733_v35, %s16033_s22 }
 0x447   :  { %3966 = vrot.lane.b32.xlu1 %v13766_v36, %s16020_s0  ;;  %3871 = vrot.lane.b32.xlu0 %v13747_v39, %s16022_s23 }
 0x44b   :  { %4061 = vrot.lane.b32.xlu0 %v13761_v30, %s16018_s30 }
 0x485   :  { %v2209_v34 = vpop.permute.xlu1 %2208 }
 0x489   :  { %v2483_v37 = vpop.permute.xlu0 %2482  ;;  %v12889_v22 = vpop.permute.xlu1 %12888 }
 0x48a   :  { %v12891_v57 = vunpack.i.h.bf16 %v12889_v22  ;;  %v12890_v32 = vunpack.i.l.bf16 %v12889_v22 }
 0x48c   :  { %v2211_v35 = vsel %vm771_vm3, %v12890_v32, %v12891_v57 }
 0x48d   :  { %v12894_v55 = vpop.permute.xlu0 %12893  ;;  %v2485_v58 = vpop.permute.xlu1 %2484  ;;  %12917 = vmatprep.mubr.msk.f32.mxu0 %vm12916_vm14, %v2211_v35  ;;  %vm2663_vm14 = vcmask 56320  }
 0x48e   :  { %v12896_v36 = vunpack.i.h.bf16 %v12894_v55  ;;  %v12895_v59 = vunpack.i.l.bf16 %v12894_v55  ;;  %v2487_v39 = vsel %vm2486_vm12, %v2483_v37, %v2485_v58 }
 0x48f   :  { %12390 = vmatpush3.msra.mxu0 %v2487_v39 }
 0x490   :  { %v2213_v63 = vsel %vm771_vm3, %v12896_v36, %v2209_v34  ;;  %v2210_v30 = vsel %vm771_vm3, %v12895_v59, %v12890_v32  ;;  %v2212_v60 = vsel %vm771_vm3, %v12891_v57, %v12896_v36  ;;  %12399 = vmatprep.subr.mxu0 %v13489_v48 }
 0x491   :  { %v2565_v61 = vpop.permute.xlu0 %2564  ;;  %v2567_v62 = vpop.permute.xlu1 %2566  ;;  %12919 = vmatmul.mubr.msk.f32.gmra.mxu0 %vm12918_vm11, %v2210_v30  ;;  %12921 = vmatprep.mubr.msk.f32.mxu1 %vm12920_vm13, %v2213_v63 }
 0x492   :  { %v2569_v40 = vsel %vm2568_vm10, %v2565_v61, %v2567_v62  ;;  %12391 = vmatprep.mubr.msk.f32.mxu0 %vm12943_vm7, %v13489_v48  ;;  %12923 = vmatmul.mubr.msk.f32.gmra.mxu1 %vm12922_vm5, %v2212_v60  ;;  %vm3027_vm5 = vcmask 990208  }
 0x493   :  { %12395 = vmatpush3.msra.mxu1 %v2569_v40  ;;  %12396 = vmatprep.mubr.msk.f32.mxu1 %vm12943_vm7, %v13489_v48 }
 0x494   :  { %12404 = vmatprep.subr.mxu1 %v13489_v48 }
 0x495   :  { %v2660_v9 = vpop.permute.xlu0 %2659  ;;  %v2662_v12 = vpop.permute.xlu1 %2661  ;;  %12392 = vmatmul.mubr.msk.f32.vlgmr.msra.gmra.mxu0 %vm2486_vm12, %v11852_v38 }
 0x496   :  { %v2664_v2 = vsel %vm2663_vm14, %v2660_v9, %v2662_v12  ;;  %12401 = vmatprep.mubr.msk.f32.mxu0 %vm12943_vm7, %v13489_v48  ;;  %12397 = vmatmul.mubr.msk.f32.vlgmr.msra.gmra.mxu1 %vm2486_vm12, %v2466_v0 }
 0x497   :  { %12400 = vmatpush3.msra.mxu0 %v2664_v2  ;;  %12406 = vmatprep.mubr.msk.f32.mxu1 %vm12943_vm7, %v13489_v48 }
 0x498   :  { %12409 = vmatprep.subr.mxu0 %v13489_v48 }
 0x499   :  { %v2756_v1 = vpop.permute.xlu0 %2755  ;;  %v2758_v3 = vpop.permute.xlu1 %2757  ;;  %12402 = vmatmul.mubr.msk.f32.vlgmr.msra.gmra.mxu0 %vm2486_vm12, %v11856_v33 }
 0x49a   :  { %v2759_v10 = vsel %vm802_vm4, %v2756_v1, %v2758_v3  ;;  %12410 = vmatpush3.msra.mxu0 %v13786_v16  ;;  %12411 = vmatprep.mubr.msk.f32.mxu0 %vm12943_vm7, %v13489_v48 }
 0x49b   :  { %12405 = vmatpush3.msra.mxu1 %v2759_v10  ;;  %12419 = vmatprep.subr.mxu0 %v13489_v48 }
 0x49c   :  { %12414 = vmatprep.subr.mxu1 %v13489_v48  ;;  %12407 = vmatmul.mubr.msk.f32.vlgmr.msra.gmra.mxu1 %vm2486_vm12, %v11859_v8 }
 0x49d   :  { %v2929_v13 = vpop.permute.xlu0 %2928  ;;  %v2931_v14 = vpop.permute.xlu1 %2930  ;;  %12412 = vmatmul.mubr.msk.f32.vlgmr.msra.gmra.mxu0 %vm2486_vm12, %v11861_v11  ;;  %12416 = vmatprep.mubr.msk.f32.mxu1 %vm12943_vm7, %v13489_v48  ;;  %v72_v11 = vld [vmem:[%s15985_s8] sm:$0x1] }
 0x49e   :  { %v2932_v17 = vsel %vm771_vm3, %v2929_v13, %v2931_v14  ;;  %12421 = vmatprep.mubr.msk.f32.mxu0 %vm12943_vm7, %v13489_v48  ;;  %v73_v13 = vld [vmem:[%s15985_s8 + $0x8] sm:$0x1] }
 0x49f   :  { %12415 = vmatpush3.msra.mxu1 %v2932_v17  ;;  %v74_v17 = vmul.f32 %v73_v13, %v72_v11  ;;  %v11897_v11 = vld [vmem:[%s15986_s2 + $0x80] sm:$0xff] }
 0x4a0   :  { %12424 = vmatprep.subr.mxu1 %v13489_v48  ;;  %12417 = vmatmul.mubr.msk.f32.vlgmr.msra.gmra.mxu1 %vm2486_vm12, %v11864_v15 }
 0x4a1   :  { %v3024_v19 = vpop.permute.xlu0 %3023  ;;  %v3026_v20 = vpop.permute.xlu1 %3025  ;;  %12426 = vmatprep.mubr.msk.f32.mxu1 %vm12943_vm7, %v13489_v48 }
 0x4a2   :  { %v3028_v24 = vsel %vm3027_vm5, %v3024_v19, %v3026_v20 }
 0x4a3   :  { %12420 = vmatpush3.msra.mxu0 %v3028_v24 }
 0x4a4   :  { %12422 = vmatmul.mubr.msk.f32.vlgmr.msra.gmra.mxu0 %vm2486_vm12, %v11867_v23  ;;  %12429 = vmatprep.subr.mxu0 %v13489_v48 }
 0x4a5   :  { %v3120_v25 = vpop.permute.xlu0 %3119  ;;  %v3122_v27 = vpop.permute.xlu1 %3121  ;;  %12431 = vmatprep.mubr.msk.f32.mxu0 %vm12943_vm7, %v13489_v48 }
 0x4a6   :  { %v3124_v29 = vsel %vm3123_vm15, %v3120_v25, %v3122_v27  ;;  %v13953_v25 = vrot.slane %v74_v17, %v13055_v4  ;;  %v11900_v17 = vld [vmem:[%s15986_s2 + $0x88] sm:$0xff] }
 0x4a7   :  { %12425 = vmatpush3.msra.mxu1 %v3124_v29 }
 0x4a8   :  { %12427 = vmatmul.mubr.msk.f32.vlgmr.msra.gmra.mxu1 %vm2486_vm12, %v11870_v28  ;;  %12434 = vmatprep.subr.mxu1 %v13489_v48 }
 0x4a9   :  { %v3216_v31 = vpop.permute.xlu0 %3215  ;;  %v3218_v41 = vpop.permute.xlu1 %3217  ;;  %12436 = vmatprep.mubr.msk.f32.mxu1 %vm12943_vm7, %v13489_v48 }
 0x4aa   :  { %v3220_v43 = vsel %vm3219_vm8, %v3216_v31, %v3218_v41 }
 0x4ab   :  { %12430 = vmatpush3.msra.mxu0 %v3220_v43 }
 0x4ac   :  { %12432 = vmatmul.mubr.msk.f32.vlgmr.msra.gmra.mxu0 %vm2486_vm12, %v11873_v42  ;;  %12439 = vmatprep.subr.mxu0 %v13489_v48 }
 0x4ad   :  { %v3334_v44 = vpop.permute.xlu1 %3333  ;;  %12441 = vmatprep.mubr.msk.f32.mxu0 %vm12943_vm7, %v13489_v48 }
 0x4ae   :  { %v3336_v45 = vmul.f32 %v13489_v48, %v3334_v44 }
 0x4b0   :  { %3342 = vrot.lane.b32.xlu1 %v3336_v45, %s16020_s0 }
 0x4b1   :  { %v13933_v46 = vpop.permute.xlu1 %3508 }
 0x4b2   :  { %v3511_v18 = vmul.f32 %v13489_v48, %v13933_v46 }
 0x4b5   :  { %v3777_v47 = vpop.permute.xlu1 %3776 }
 0x4b6   :  { %v3780_v49 = vmul.f32 %v3777_v47, %v13438_v26  ;;  %v3301_v50 = vpop.permute.xlu0 %3300 }
 0x4b8   :  { %3787 = vrot.lane.b32.xlu0 %v3780_v49, %s16033_s22 }
 0x4b9   :  { %v3967_v49 = vpop.permute.xlu1 %3966 }
 0x4ba   :  { %v3321_v51 = vpop.permute.xlu0 %3320 }
 0x4bb   :  { %v3323_v52 = vmul.f32 %v13489_v48, %v3321_v51 }
 0x4bd   :  { %3423 = vrot.lane.b32.xlu1 %v3323_v52, %s16018_s30 }
 0x4be   :  { %v3604_v53 = vpop.permute.xlu0 %3603 }
 0x4bf   :  { %v3606_v54 = vmul.f32 %v13489_v48, %v3604_v53 }
 0x4c1   :  { %3517 = vrot.lane.b32.xlu1 %v3511_v18, %s16022_s23 }
 0x4c2   :  { %v3872_v42 = vpop.permute.xlu0 %3871 }
 0x4c3   :  { %v3875_v18 = vmul.f32 %v3872_v42, %v13438_v26 }
 0x4c5   :  { %3612 = vrot.lane.b32.xlu1 %v3606_v54, %s12931_s5  ;;  %v13982_v54 = vld [vmem:[#allocation2 + $0x8] sm:$0xff] }
 0x551   :  { %v12142_v56 = vpop.f32.mrf.mxu0 }
 0x552   :  { %v12180_v34 = vpop.f32.mrf.mxu1 }
 0x553   :  { %v12143_v37 = vpop.f32.mrf.mxu0 }
 0x554   :  { %v12144_v22 = vadd.f32 %v12143_v37, %v12142_v56  ;;  %v12181_v57 = vpop.f32.mrf.mxu1 }
 0x555   :  { %v2558_v32 = vpop.f32.mrf.mxu0  ;;  %v12182_v35 = vadd.f32 %v12181_v57, %v12180_v34  ;;  %v3343_v34 = vpop.permute.xlu1 %3342 }
 0x556   :  { %v2640_v55 = vpop.f32.mrf.mxu1 }
 0x557   :  { %v12393_v58 = vpop.f32.mrf.mxu0  ;;  %v13944_v36 = vadd.f32 %v12182_v35, %v12144_v22  ;;  %v2641_v59 = vadd.f32 %v2640_v55, %v2558_v32 }
 0x558   :  { %v12398_v39 = vpop.f32.mrf.mxu1 }
 0x559   :  { %v2735_v63 = vpop.f32.mrf.mxu0  ;;  %v3424_v37 = vpop.permute.xlu1 %3423  ;;  %v11877_v39 = vld [vmem:[%s15986_s2 + $0x48] sm:$0xff] }
 0x55a   :  { %v2739_v30 = vadd.f32 %v2735_v63, %v2641_v59 }
 0x55b   :  { %v12403_v61 = vpop.f32.mrf.mxu0 }
 0x55c   :  { %v2830_v60 = vpop.f32.mrf.mxu1 }
 0x55d   :  { %v2834_v62 = vadd.f32 %v2830_v60, %v2739_v30  ;;  %v2906_v38 = vpop.f32.mrf.mxu0  ;;  %v3518_v22 = vpop.permute.xlu1 %3517  ;;  %v11883_v60 = vld [vmem:[%s15986_s2 + $0x58] sm:$0xff] }
 0x55e   :  { %v12408_v40 = vpop.f32.mrf.mxu1 }
 0x55f   :  { %v2910_v9 = vadd.f32 %v2906_v38, %v2834_v62  ;;  %v12413_v0 = vpop.f32.mrf.mxu0  ;;  %v14008_v40 = vld [vmem:[#allocation2 + $0x28] sm:$0xff] }
 0x560   :  { %v3003_v12 = vpop.f32.mrf.mxu1 }
 0x561   :  { %v3007_v33 = vadd.f32 %v3003_v12, %v2910_v9  ;;  %v3613_v32 = vpop.permute.xlu1 %3612  ;;  %v11886_v9 = vld [vmem:[%s15986_s2 + $0x60] sm:$0xff]  ;;  %v11888_v12 = vld [vmem:[%s15986_s2 + $0x68] sm:$0xff] }
 0x562   :  { %v12418_v2 = vpop.f32.mrf.mxu1 }
 0x564   :  { %v3099_v1 = vpop.f32.mrf.mxu0 }
 0x565   :  { %v3103_v8 = vadd.f32 %v3099_v1, %v3007_v33  ;;  %v11891_v1 = vld [vmem:[%s15986_s2 + $0x70] sm:$0xff] }
 0x566   :  { %v12423_v3 = vpop.f32.mrf.mxu0 }
 0x568   :  { %v3195_v10 = vpop.f32.mrf.mxu1 }
 0x569   :  { %v3199_v15 = vadd.f32 %v3195_v10, %v3103_v8  ;;  %v11894_v8 = vld [vmem:[%s15986_s2 + $0x78] sm:$0xff] }
 0x56a   :  { %v12428_v14 = vpop.f32.mrf.mxu1 }
 0x56c   :  { %v3291_v19 = vpop.f32.mrf.mxu0 }
 0x56d   :  { %v3295_v20 = vadd.f32 %v3291_v19, %v3199_v15 }
 0x56e   :  { %v12433_v23 = vpop.f32.mrf.mxu0 }
 0x56f   :  { %v3303_v24 = vadd.f32 %v3301_v50, %v3295_v20 }
 0x571   :  { %v3304_v27 = vmax.f32 %v3303_v24, 0.0 }
 0x573   :  { %v3309_v28 = vmul.f32 %v13953_v25, %v3304_v27 }
 0x575   :  { %v13957_v29 = vadd.f32 %v3309_v28, %v13786_v16 }
 0x577   :  { %v3779_v31 = vmul.f32 %v3777_v47, %v13957_v29  ;;  %v3337_v41 = vmul.f32 %v3334_v44, %v13957_v29  ;;  %v3874_v43 = vmul.f32 %v3872_v42, %v13957_v29  ;;  %v3324_v45 = vmul.f32 %v3321_v51, %v13957_v29  ;;  %v4062_v44 = vpop.permute.xlu0 %4061  ;;  %v11902_v51 = vld [vmem:[%s16030_s27 + $0x10] sm:$0xff] }
 0x578   :  { %v3969_v16 = vmul.f32 %v3967_v49, %v13957_v29  ;;  %v3512_v47 = vmul.f32 %v13933_v46, %v13957_v29  ;;  %v4064_v50 = vmul.f32 %v4062_v44, %v13957_v29  ;;  %v3607_v52 = vmul.f32 %v3604_v53, %v13957_v29  ;;  %v12911_v53 = vld [vmem:[#allocation2 + $0x8] sm:$0xff] }
 0x579   :  { %3785 = vrot.lane.b32.xlu1 %v3779_v31, %s16033_s22  ;;  %3344 = vrot.lane.b32.xlu0 %v3337_v41, %s16020_s0  ;;  %v3970_v46 = vmul.f32 %v3967_v49, %v13438_v26  ;;  %v4065_v56 = vmul.f32 %v12911_v53, %v4062_v44  ;;  %v11879_v26 = vld [vmem:[%s15986_s2 + $0x50] sm:$0xff] }
 0x57b   :  { %v3788_v57 = vpop.permute.xlu0 %3787 }
 0x57d   :  { %3880 = vrot.lane.b32.xlu1 %v3874_v43, %s12939_s28  ;;  %3425 = vrot.lane.b32.xlu0 %v3324_v45, %s16018_s30 }
 0x581   :  { %3975 = vrot.lane.b32.xlu1 %v3969_v16, %s12938_s1  ;;  %3519 = vrot.lane.b32.xlu0 %v3512_v47, %s16022_s23 }
 0x585   :  { %4070 = vrot.lane.b32.xlu1 %v4064_v50, %s12937_s26  ;;  %3614 = vrot.lane.b32.xlu0 %v3607_v52, %s12931_s5 }
 0x589   :  { %4154 = vperm.xlu1 %12897, %v11902_v51   ;;  %3882 = vrot.lane.b32.xlu0 %v3875_v18, %s12939_s28 }
 0x58d   :  { %4168 = vrot.lane.b32.xlu1 %v13982_v54, %s16033_s22  ;;  %3977 = vrot.lane.b32.xlu0 %v3970_v46, %s12938_s1 }
 0x591   :  { %4072 = vrot.lane.b32.xlu0 %v4065_v56, %s12937_s26 }
 0x5eb   :  { %v3345_v35 = vpop.permute.xlu0 %3344  ;;  %v3786_v58 = vpop.permute.xlu1 %3785 }
 0x5ec   :  { %v3346_v55 = vsel %vm2486_vm12, %v3343_v34, %v3345_v35  ;;  %v3789_v0 = vsel %vm771_vm3, %v3786_v58, %v3788_v57 }
 0x5ed   :  { %12435 = vmatpush3.msra.mxu1 %v3346_v55 }
 0x5ee   :  { %12437 = vmatmul.mubr.msk.f32.vlgmr.msra.gmra.mxu1 %vm2486_vm12, %v11879_v26  ;;  %12444 = vmatprep.subr.mxu1 %v13489_v48 }
 0x5ef   :  { %v3426_v59 = vpop.permute.xlu0 %3425  ;;  %12446 = vmatprep.mubr.msk.f32.mxu1 %vm12943_vm7, %v13489_v48  ;;  %v3881_v61 = vpop.permute.xlu1 %3880 }
 0x5f0   :  { %v3427_v63 = vsel %vm2568_vm10, %v3424_v37, %v3426_v59 }
 0x5f1   :  { %12440 = vmatpush3.msra.mxu0 %v3427_v63 }
 0x5f2   :  { %12442 = vmatmul.mubr.msk.f32.vlgmr.msra.gmra.mxu0 %vm2486_vm12, %v11877_v39  ;;  %12449 = vmatprep.subr.mxu0 %v13489_v48 }
 0x5f3   :  { %v3520_v30 = vpop.permute.xlu0 %3519  ;;  %12451 = vmatprep.mubr.msk.f32.mxu0 %vm12943_vm7, %v13489_v48  ;;  %v3976_v2 = vpop.permute.xlu1 %3975 }
 0x5f4   :  { %v3521_v62 = vsel %vm2663_vm14, %v3518_v22, %v3520_v30 }
 0x5f5   :  { %12445 = vmatpush3.msra.mxu1 %v3521_v62 }
 0x5f6   :  { %12454 = vmatprep.subr.mxu1 %v14008_v40  ;;  %12447 = vmatmul.mubr.msk.f32.vlgmr.msra.gmra.mxu1 %vm2486_vm12, %v11883_v60 }
 0x5f7   :  { %12455 = vmatpush3.msra.mxu1 %v13957_v29  ;;  %v3615_v38 = vpop.permute.xlu0 %3614  ;;  %12456 = vmatprep.mubr.msk.f32.mxu1 %vm12943_vm7, %v14008_v40  ;;  %v4071_v13 = vpop.permute.xlu1 %4070 }
 0x5f8   :  { %v3616_v48 = vsel %vm802_vm4, %v3613_v32, %v3615_v38  ;;  %12464 = vmatprep.subr.mxu1 %v14008_v40 }
 0x5f9   :  { %12450 = vmatpush3.msra.mxu0 %v3616_v48 }
 0x5fa   :  { %12452 = vmatmul.mubr.msk.f32.vlgmr.msra.gmra.mxu0 %vm2486_vm12, %v11886_v9  ;;  %12459 = vmatprep.subr.mxu0 %v14008_v40 }
 0x5fb   :  { %12460 = vmatpush3.msra.mxu0 %v3789_v0  ;;  %v3883_v33 = vpop.permute.xlu0 %3882  ;;  %12457 = vmatmul.mubr.msk.f32.vlgmr.msra.gmra.mxu1 %vm2486_vm12, %v11888_v12  ;;  %v4236_v0 = vld [vmem:[%s15987_s12 + $0x68] sm:$0xff] }
 0x5fc   :  { %v3884_v3 = vsel %vm3027_vm5, %v3881_v61, %v3883_v33  ;;  %12461 = vmatprep.mubr.msk.f32.mxu0 %vm12943_vm7, %v14008_v40  ;;  %12466 = vmatprep.mubr.msk.f32.mxu1 %vm12943_vm7, %v14008_v40 }
 0x5fd   :  { %12465 = vmatpush3.msra.mxu1 %v3884_v3  ;;  %12469 = vmatprep.subr.mxu0 %v14008_v40  ;;  %v4235_v3 = vld [vmem:[%s15987_s12 + $0x60] sm:$0xff] }
 0x5fe   :  { %12462 = vmatmul.mubr.msk.f32.vlgmr.msra.gmra.mxu0 %vm2486_vm12, %v11891_v1  ;;  %12474 = vmatprep.subr.mxu1 %v14008_v40 }
 0x5ff   :  { %v3978_v10 = vpop.permute.xlu0 %3977  ;;  %12467 = vmatmul.mubr.msk.f32.vlgmr.msra.gmra.mxu1 %vm2486_vm12, %v11894_v8  ;;  %12471 = vmatprep.mubr.msk.f32.mxu0 %vm12943_vm7, %v14008_v40  ;;  %v4234_v8 = vld [vmem:[%s15987_s12 + $0x58] sm:$0xff] }
 0x600   :  { %v3979_v14 = vsel %vm3123_vm15, %v3976_v2, %v3978_v10  ;;  %12476 = vmatprep.mubr.msk.f32.mxu1 %vm12943_vm7, %v14008_v40  ;;  %v4232_v10 = vld [vmem:[%s15987_s12 + $0x48] sm:$0xff] }
 0x601   :  { %12470 = vmatpush3.msra.mxu0 %v3979_v14  ;;  %v4229_v14 = vld [vmem:[%s15987_s12 + $0x30] sm:$0xff] }
 0x602   :  { %12472 = vmatmul.mubr.msk.f32.vlgmr.msra.gmra.mxu0 %vm2486_vm12, %v11897_v11  ;;  %v4231_v11 = vld [vmem:[%s15987_s12 + $0x40] sm:$0xff] }
 0x603   :  { %v4073_v15 = vpop.permute.xlu0 %4072 }
 0x604   :  { %v4074_v19 = vsel %vm3219_vm8, %v4071_v13, %v4073_v15  ;;  %v4155_v20 = vpop.permute.xlu1 %4154  ;;  %v4230_v13 = vld [vmem:[%s15987_s12 + $0x38] sm:$0xff]  ;;  %v4228_v15 = vld [vmem:[%s15987_s12 + $0x28] sm:$0xff] }
 0x605   :  { %12475 = vmatpush3.msra.mxu1 %v4074_v19  ;;  %v4226_v19 = vld [vmem:[%s15987_s12 + $0x18] sm:$0xff] }
 0x606   :  { %12477 = vmatmul.mubr.msk.f32.vlgmr.msra.gmra.mxu1 %vm2486_vm12, %v11900_v17  ;;  %12514 = vmatprep.subr.mxu1 %v14008_v40  ;;  %v4227_v17 = vld [vmem:[%s15987_s12 + $0x20] sm:$0xff] }
 0x607   :  { %12518 = vmatprep.mubr.msk.f32.mxu1 %vm12943_vm7, %v14008_v40 }
 0x608   :  { %v4169_v23 = vpop.permute.xlu1 %4168 }
 0x609   :  { %v4175_v24 = vmax.f32 %v13982_v54, %v4169_v23 }
 0x60b   :  { %4180 = vrot.lane.b32.xlu1 %v4175_v24, %s12938_s1 }
 0x67d   :  { %v4181_v62 = vpop.permute.xlu1 %4180 }
 0x6ae   :  { %v3417_v27 = vpop.f32.mrf.mxu1 }
 0x6b0   :  { %v12438_v28 = vpop.f32.mrf.mxu1 }
 0x6b2   :  { %v3498_v31 = vpop.f32.mrf.mxu0 }
 0x6b3   :  { %v3499_v41 = vadd.f32 %v3498_v31, %v3417_v27  ;;  %v4223_v27 = vld [vmem:[%s15987_s12] sm:$0xff] }
 0x6b4   :  { %v12443_v42 = vpop.f32.mrf.mxu0 }
 0x6b6   :  { %v3592_v43 = vpop.f32.mrf.mxu1 }
 0x6b7   :  { %v3596_v45 = vadd.f32 %v3592_v43, %v3499_v41 }
 0x6b8   :  { %v12448_v49 = vpop.f32.mrf.mxu1 }
 0x6ba   :  { %v3687_v16 = vpop.f32.mrf.mxu0 }
 0x6bb   :  { %v3691_v47 = vadd.f32 %v3687_v16, %v3596_v45  ;;  %v3763_v44 = vpop.f32.mrf.mxu1 }
 0x6bc   :  { %v12453_v50 = vpop.f32.mrf.mxu0 }
 0x6bd   :  { %v3767_v52 = vadd.f32 %v3763_v44, %v3691_v47  ;;  %v12458_v51 = vpop.f32.mrf.mxu1 }
 0x6be   :  { %v3860_v18 = vpop.f32.mrf.mxu0  ;;  %v4318_v51 = vld [vmem:[%s15988_s15] sm:$0xff] }
 0x6bf   :  { %v3864_v46 = vadd.f32 %v3860_v18, %v3767_v52  ;;  %v3955_v53 = vpop.f32.mrf.mxu1  ;;  %v4319_v52 = vld [vmem:[%s15988_s15 + $0x8] sm:$0xff] }
 0x6c0   :  { %v12463_v56 = vpop.f32.mrf.mxu0  ;;  %12515 = vmatpush3.msra.mxu1 %v4319_v52 }
 0x6c1   :  { %v3959_v34 = vadd.f32 %v3955_v53, %v3864_v46  ;;  %v12468_v37 = vpop.f32.mrf.mxu1  ;;  %12516 = vmatprep.subr.mxu1 %v14008_v40 }
 0x6c2   :  { %v4050_v22 = vpop.f32.mrf.mxu0  ;;  %12517 = vmatpush3.msra.mxu1 %v4318_v51  ;;  %v14160_v37 = vld [vmem:[%s15988_s15 + $0x18] sm:$0xff] }
 0x6c3   :  { %v4054_v32 = vadd.f32 %v4050_v22, %v3959_v34  ;;  %12521 = vmatprep.subr.mxu1 %v14008_v40  ;;  %v14168_v22 = vld [vmem:[%s15988_s15 + $0x10] sm:$0xff] }
 0x6c4   :  { %v12473_v57 = vpop.f32.mrf.mxu0 }
 0x6c6   :  { %v4145_v35 = vpop.f32.mrf.mxu1 }
 0x6c7   :  { %v4149_v26 = vadd.f32 %v4145_v35, %v4054_v32  ;;  %v14179_v32 = vld [vmem:[%s15988_s15 + $0x28] sm:$0xff]  ;;  %v14187_v35 = vld [vmem:[%s15988_s15 + $0x20] sm:$0xff] }
 0x6c8   :  { %v12478_v55 = vpop.f32.mrf.mxu1 }
 0x6c9   :  { %v4157_v58 = vadd.f32 %v4155_v20, %v4149_v26  ;;  %v4225_v20 = vld [vmem:[%s15987_s12 + $0x10] sm:$0xff] }
 0x6cb   :  { %v4158_v59 = vmax.f32 %v4157_v58, 0.0  ;;  %v11911_v58 = vld [vmem:[%s15988_s15 + $0x38] sm:$0xff] }
 0x6cd   :  { %v4159_v39 = vmul.f32 %v4158_v59, %v13953_v25  ;;  %v4238_v25 = vld [vmem:[%s15987_s12 + $0x78] sm:$0xff]  ;;  %v11910_v59 = vld [vmem:[%s15988_s15 + $0x30] sm:$0xff] }
 0x6ce   :  { %12479 = vmatprep.subr.mxu0 %v4238_v25 }
 0x6cf   :  { %v14063_v63 = vadd.f32 %v4159_v39, %v13957_v29  ;;  %v4237_v29 = vld [vmem:[%s15987_s12 + $0x70] sm:$0xff]  ;;  %12480 = vmatpush3.msra.mxu0 %v4238_v25 }
 0x6d0   :  { %12481 = vmatprep.subr.mxu0 %v4237_v29  ;;  %v11922_v25 = vld [vmem:[%s15988_s15 + $0x70] sm:$0xff] }
 0x6d1   :  { %4166 = vrot.lane.b32.xlu0 %v14063_v63, %s16033_s22  ;;  %12482 = vmatpush3.msra.mxu0 %v4237_v29 }
 0x6d2   :  { %12483 = vmatprep.subr.mxu0 %v4236_v0 }
 0x6d3   :  { %12484 = vmatpush3.msra.mxu0 %v4236_v0 }
 0x6d4   :  { %12485 = vmatprep.subr.mxu0 %v4235_v3 }
 0x6d5   :  { %12486 = vmatpush3.msra.mxu0 %v4235_v3 }
 0x6d6   :  { %12487 = vmatprep.subr.mxu0 %v4234_v8 }
 0x6d7   :  { %12488 = vmatpush3.msra.mxu0 %v4234_v8 }
 0x743   :  { %v4167_v30 = vpop.permute.xlu0 %4166 }
 0x744   :  { %v4170_v60 = vsel %vm771_vm3, %v4167_v30, %v4169_v23  ;;  %v4224_v23 = vld [vmem:[%s15987_s12 + $0x8] sm:$0xff] }
 0x745   :  { %v4172_v61 = vmax.f32 %v14063_v63, %v4170_v60  ;;  %v11914_v30 = vld [vmem:[%s15988_s15 + $0x48] sm:$0xff]  ;;  %v11913_v60 = vld [vmem:[%s15988_s15 + $0x40] sm:$0xff] }
 0x747   :  { %4178 = vrot.lane.b32.xlu0 %v4172_v61, %s12938_s1 }
 0x7b9   :  { %v4179_v38 = vpop.permute.xlu0 %4178 }
 0x7ba   :  { %v4182_v9 = vsel %vm3123_vm15, %v4179_v38, %v4181_v62  ;;  %v11916_v62 = vld [vmem:[%s15988_s15 + $0x50] sm:$0xff]  ;;  %v11920_v38 = vld [vmem:[%s15988_s15 + $0x68] sm:$0xff] }
 0x7bb   :  { %v14071_v48 = vmax.f32 %v4172_v61, %v4182_v9  ;;  %v11917_v61 = vld [vmem:[%s15988_s15 + $0x58] sm:$0xff]  ;;  %v11919_v9 = vld [vmem:[%s15988_s15 + $0x60] sm:$0xff] }
 0x7bd   :  { %4219 = vst [vmem:[#allocation3] sm:$0xff] %v14071_v48  ;;  %4187 = vrot.lane.b32.xlu1 %v14071_v48, %s12931_s5  ;;  %4192 = vrot.lane.b32.xlu0 %v14071_v48, %s16020_s0  ;;  %s16040_s0 = smov 17  }
 0x7be   :  { %12511 = vmatprep.mubr.f32.mxu0 %v14071_v48 }
 0x82f   :  { %v4193_v12 = vpop.permute.xlu0 %4192  ;;  %v4188_v24 = vpop.permute.xlu1 %4187 }
 0x830   :  { %vm4195_vm9 = vcmp.eq.f32.partialorder %v14063_v63, %v4193_v12  ;;  %vm4196_vm11 = vcmp.eq.f32.partialorder %v13982_v54, %v4193_v12  ;;  %vm4191_vm13 = vcmp.eq.f32.partialorder %v13982_v54, %v4188_v24 }
 0x831   :  { %v4197_v2 = vsel %vm4195_vm9, 2.0, %v12936_v21  ;;  %v4198_v33 = vsel %vm4196_vm11, 2.0, %v12936_v21  ;;  %v4233_v21 = vld [vmem:[%s15987_s12 + $0x50] sm:$0xff]  ;;  %vm4190_vm9 = vcmp.eq.f32.partialorder %v14063_v63, %v4188_v24  ;;  %vm4185_vm11 = vcmp.eq.f32.partialorder %v14063_v63, %v14071_v48  ;;  %v11923_v48 = vld [vmem:[%s15988_s15 + $0x78] sm:$0xff]  ;;  %s16037_s15 = smov 9  }
 0x832   :  { %v12898_v1 = vpack.i.bf16 %v4198_v33, %v4197_v2  ;;  %12489 = vmatprep.subr.mxu0 %v4233_v21 }
 0x833   :  { %12490 = vmatpush3.msra.mxu0 %v4233_v21  ;;  %v14294_v21 = vld [vmem:[%s15989_s17 + $0x18] sm:$0xff] }
 0x834   :  { %12899 = vrot.lane.b32.xlu0 %v12898_v1, %s12939_s28  ;;  %12491 = vmatprep.subr.mxu0 %v4232_v10 }
 0x835   :  { %12492 = vmatpush3.msra.mxu0 %v4232_v10  ;;  %v14299_v10 = vld [vmem:[%s15989_s17 + $0x38] sm:$0xff] }
 0x836   :  { %12493 = vmatprep.subr.mxu0 %v4231_v11 }
 0x837   :  { %12494 = vmatpush3.msra.mxu0 %v4231_v11  ;;  %v14308_v11 = vld [vmem:[%s15989_s17 + $0x10] sm:$0xff] }
 0x838   :  { %12495 = vmatprep.subr.mxu0 %v4230_v13 }
 0x839   :  { %12496 = vmatpush3.msra.mxu0 %v4230_v13  ;;  %v14313_v13 = vld [vmem:[%s15989_s17 + $0x30] sm:$0xff] }
 0x83a   :  { %12497 = vmatprep.subr.mxu0 %v4229_v14 }
 0x83b   :  { %12498 = vmatpush3.msra.mxu0 %v4229_v14  ;;  %v14322_v14 = vld [vmem:[%s15989_s17 + $0x8] sm:$0xff] }
 0x83c   :  { %12499 = vmatprep.subr.mxu0 %v4228_v15 }
 0x83d   :  { %12500 = vmatpush3.msra.mxu0 %v4228_v15  ;;  %v14327_v15 = vld [vmem:[%s15989_s17 + $0x28] sm:$0xff] }
 0x83e   :  { %12501 = vmatprep.subr.mxu0 %v4227_v17 }
 0x83f   :  { %12502 = vmatpush3.msra.mxu0 %v4227_v17  ;;  %v14336_v17 = vld [vmem:[%s15989_s17] sm:$0xff] }
 0x840   :  { %12503 = vmatprep.subr.mxu0 %v4226_v19 }
 0x841   :  { %12504 = vmatpush3.msra.mxu0 %v4226_v19  ;;  %v14341_v19 = vld [vmem:[%s15989_s17 + $0x20] sm:$0xff] }
 0x842   :  { %12505 = vmatprep.subr.mxu0 %v4225_v20 }
 0x843   :  { %12506 = vmatpush3.msra.mxu0 %v4225_v20 }
 0x844   :  { %12507 = vmatprep.subr.mxu0 %v4224_v23 }
 0x845   :  { %12508 = vmatpush3.msra.mxu0 %v4224_v23 }
 0x846   :  { %12509 = vmatprep.subr.mxu0 %v4223_v27 }
 0x847   :  { %12510 = vmatpush3.msra.mxu0 %v4223_v27 }
 0x848   :  { %12570 = vmatprep.subr.mxu0 %v14008_v40 }
 0x8a6   :  { %v12900_v28 = vpop.permute.xlu0 %12899 }
 0x8a7   :  { %v12902_v31 = vunpack.i.h.bf16 %v12900_v28  ;;  %v12901_v41 = vunpack.i.l.bf16 %v12900_v28 }
 0x8a9   :  { %v4209_v42 = vsel %vm4191_vm13, 1.0, %v12902_v31  ;;  %v4205_v43 = vsel %vm3027_vm5, %v12901_v41, %v12902_v31  ;;  %vm12924_vm13 = vmneg %vm4185_vm11  ;;  %v14358_v41 = vld [vmem:[%s15990_s16] sm:$0x1]  ;;  %s16034_s16 = smov 16  }
 0x8aa   :  { %v4208_v45 = vsel %vm4190_vm9, 1.0, %v4205_v43  ;;  %vm4314_vm9 = vcmask 261120  }
 0x8ab   :  { %v12903_v49 = vpack.i.bf16 %v4209_v42, %v4208_v45 }
 0x8ad   :  { %12904 = vrot.lane.b32.xlu1 %v12903_v49, %s16033_s22 }
 0x91f   :  { %v12905_v16 = vpop.permute.xlu1 %12904 }
 0x920   :  { %v12907_v47 = vunpack.i.h.bf16 %v12905_v16  ;;  %v12906_v44 = vunpack.i.l.bf16 %v12905_v16 }
 0x922   :  { %v4216_v54 = vsel %vm771_vm3, %v12906_v44, %v12907_v47 }
 0x923   :  { %v4218_v50 = vsel %vm4185_vm11, 0.0, %v4216_v54  ;;  %12925 = vmatmul.mubr.msk.f32.vlgmr.msra.gmra.mxu0 %vm12924_vm13, %v4216_v54  ;;  %vm5618_vm11 = vcmask 122880   ;;  %vm6241_vm13 = vcmask 254080  }
 0x924   :  { %4220 = vst [vmem:[#allocation3 + $0x20] sm:$0xff] %v4218_v50  ;;  %12574 = vmatprep.mubr.msk.f32.mxu0 %vm12943_vm7, %v14008_v40  ;;  %12571 = vmatpush3.msra.mxu0 %v4319_v52 }
 0x925   :  { %12572 = vmatprep.subr.mxu0 %v14008_v40 }
 0x926   :  { %12573 = vmatpush3.msra.mxu0 %v4318_v51 }
 0x927   :  { %12584 = vmatprep.subr.mxu0 %v14008_v40 }
 0x9e3   :  { %v12513_v18 = vpop.f32.mrf.mxu0 }
 0x9e4   :  { %6805 = vst.msk [vmem:[#allocation3 + $0x20] sm:$0xff] %vm4314_vm9, %v12513_v18 }
 0x9e5   :  { %v4305_v46 = vpop.f32.mrf.mxu0 }
 0x9e6   :  { %4315 = vst.msk [vmem:[#allocation4] sm:$0xff] %vm4314_vm9, %v4305_v46 }
 0x9eb   :  { %v14154_v53 = vld [vmem:[#allocation3 + $0x20] sm:$0xff] }
 0x9ec   :  { %7753 = vst [vmem:[#allocation3 + $0x20] sm:$0xff] %v13944_v36 }
 0x9ed   :  { %v4394_v56 = vld [vmem:[#allocation4 + $0x1] sm:$0x1]  ;;  %v4317_v34 = vld [vmem:[#allocation4] sm:$0x1]  ;;  %v4550_v36 = vld [vmem:[#allocation4 + $0x3] sm:$0x1] }
 0x9ee   :  { %5015 = vrot.lane.b32.xlu1 %v4394_v56, %s12927_s24  ;;  %4940 = vrot.lane.b32.xlu0 %v4317_v34, %s12927_s24  ;;  %v4472_v57 = vld [vmem:[#allocation4 + $0x2] sm:$0x1]  ;;  %v4706_v26 = vld [vmem:[#allocation4 + $0x5] sm:$0x1]  ;;  %v4628_v55 = vld [vmem:[#allocation4 + $0x4] sm:$0x1] }
 0x9ef   :  { %12519 = vmatmul.mubr.msk.f32.vlgmr.msra.gmra.mxu1 %vm191_vm6, %v4317_v34  ;;  %v4862_v39 = vld [vmem:[#allocation4 + $0x7] sm:$0x1]  ;;  %v4784_v63 = vld [vmem:[#allocation4 + $0x6] sm:$0x1] }
 0x9f0   :  { %12522 = vmatpush3.msra.mxu1 %v14160_v37  ;;  %12525 = vmatprep.mubr.msk.f32.mxu1 %vm12943_vm7, %v14008_v40 }
 0x9f1   :  { %12523 = vmatprep.subr.mxu1 %v14008_v40 }
 0x9f2   :  { %12524 = vmatpush3.msra.mxu1 %v14168_v22  ;;  %5165 = vrot.lane.b32.xlu1 %v4550_v36, %s12927_s24 }
 0x9f3   :  { %5090 = vrot.lane.b32.xlu0 %v4472_v57, %s12927_s24  ;;  %12526 = vmatmul.mubr.msk.f32.vlgmr.msra.gmra.mxu1 %vm191_vm6, %v4394_v56 }
 0x9f4   :  { %12528 = vmatprep.subr.mxu1 %v14008_v40  ;;  %12532 = vmatprep.mubr.msk.f32.mxu1 %vm12943_vm7, %v14008_v40 }
 0x9f5   :  { %12529 = vmatpush3.msra.mxu1 %v14179_v32 }
 0x9f6   :  { %12530 = vmatprep.subr.mxu1 %v14008_v40  ;;  %5315 = vrot.lane.b32.xlu1 %v4706_v26, %s12927_s24 }
 0x9f7   :  { %12531 = vmatpush3.msra.mxu1 %v14187_v35  ;;  %5240 = vrot.lane.b32.xlu0 %v4628_v55, %s12927_s24 }
 0x9f8   :  { %12533 = vmatmul.mubr.msk.f32.vlgmr.msra.gmra.mxu1 %vm191_vm6, %v4472_v57  ;;  %12535 = vmatprep.subr.mxu1 %v14008_v40  ;;  %v14371_v57 = vld [vmem:[%s15989_s17 + $0x78] sm:$0xff] }
 0x9f9   :  { %12536 = vmatpush3.msra.mxu1 %v11911_v58  ;;  %12539 = vmatprep.mubr.msk.f32.mxu1 %vm12943_vm7, %v14008_v40 }
 0x9fa   :  { %12537 = vmatprep.subr.mxu1 %v14008_v40  ;;  %5465 = vrot.lane.b32.xlu1 %v4862_v39, %s12927_s24 }
 0x9fb   :  { %12538 = vmatpush3.msra.mxu1 %v11910_v59  ;;  %5390 = vrot.lane.b32.xlu0 %v4784_v63, %s12927_s24 }
 0x9fc   :  { %12540 = vmatmul.mubr.msk.f32.vlgmr.msra.gmra.mxu1 %vm191_vm6, %v4550_v36  ;;  %12542 = vmatprep.subr.mxu1 %v14008_v40  ;;  %v14366_v36 = vld [vmem:[%s15989_s17 + $0x58] sm:$0xff] }
 0x9fd   :  { %12543 = vmatpush3.msra.mxu1 %v11914_v30  ;;  %12546 = vmatprep.mubr.msk.f32.mxu1 %vm12943_vm7, %v14008_v40 }
 0x9fe   :  { %12544 = vmatprep.subr.mxu1 %v14008_v40 }
 0x9ff   :  { %12545 = vmatpush3.msra.mxu1 %v11913_v60 }
 0xa00   :  { %12547 = vmatmul.mubr.msk.f32.vlgmr.msra.gmra.mxu1 %vm191_vm6, %v4628_v55  ;;  %12549 = vmatprep.subr.mxu1 %v14008_v40  ;;  %v14394_v55 = vld [vmem:[%s15989_s17 + $0x48] sm:$0xff] }
 0xa01   :  { %12550 = vmatpush3.msra.mxu1 %v11917_v61  ;;  %12553 = vmatprep.mubr.msk.f32.mxu1 %vm12943_vm7, %v14008_v40 }
 0xa02   :  { %12551 = vmatprep.subr.mxu1 %v14008_v40 }
 0xa03   :  { %12552 = vmatpush3.msra.mxu1 %v11916_v62 }
 0xa04   :  { %12554 = vmatmul.mubr.msk.f32.vlgmr.msra.gmra.mxu1 %vm191_vm6, %v4706_v26  ;;  %12556 = vmatprep.subr.mxu1 %v14008_v40  ;;  %v14385_v26 = vld [vmem:[%s15989_s17 + $0x70] sm:$0xff] }
 0xa05   :  { %12557 = vmatpush3.msra.mxu1 %v11920_v38  ;;  %12560 = vmatprep.mubr.msk.f32.mxu1 %vm12943_vm7, %v14008_v40 }
 0xa06   :  { %12558 = vmatprep.subr.mxu1 %v14008_v40 }
 0xa07   :  { %12559 = vmatpush3.msra.mxu1 %v11919_v9 }
 0xa08   :  { %12561 = vmatmul.mubr.msk.f32.vlgmr.msra.gmra.mxu1 %vm191_vm6, %v4784_v63  ;;  %12563 = vmatprep.subr.mxu1 %v14008_v40  ;;  %v14428_v63 = vld [vmem:[%s15989_s17 + $0x98] sm:$0xff] }
 0xa09   :  { %12564 = vmatpush3.msra.mxu1 %v11923_v48  ;;  %12567 = vmatprep.mubr.msk.f32.mxu1 %vm12943_vm7, %v14008_v40 }
 0xa0a   :  { %12565 = vmatprep.subr.mxu1 %v14008_v40 }
 0xa0b   :  { %12566 = vmatpush3.msra.mxu1 %v11922_v25 }
 0xa0c   :  { %12568 = vmatmul.mubr.msk.f32.vlgmr.msra.gmra.mxu1 %vm191_vm6, %v4862_v39  ;;  %12577 = vmatprep.subr.mxu1 %v14008_v40  ;;  %v14415_v39 = vld [vmem:[%s15989_s17 + $0x60] sm:$0xff] }
 0xa0d   :  { %12578 = vmatpush3.msra.mxu1 %v14160_v37  ;;  %12581 = vmatprep.mubr.msk.f32.mxu1 %vm12943_vm7, %v14008_v40 }
 0xa0e   :  { %12579 = vmatprep.subr.mxu1 %v14008_v40 }
 0xa0f   :  { %12580 = vmatpush3.msra.mxu1 %v14168_v22 }
 0xa10   :  { %12591 = vmatprep.subr.mxu1 %v14008_v40 }
 0xa60   :  { %v5016_v29 = vpop.permute.xlu1 %5015  ;;  %v4941_v12 = vpop.permute.xlu0 %4940 }
 0xa61   :  { %12575 = vmatmul.mubr.msk.f32.vlgmr.msra.gmra.mxu0 %vm191_vm6, %v4941_v12  ;;  %12582 = vmatmul.mubr.msk.f32.vlgmr.msra.gmra.mxu1 %vm191_vm6, %v5016_v29  ;;  %v14497_v29 = vld [vmem:[%s15989_s17 + $0xf8] sm:$0xff]  ;;  %v14508_v12 = vld [vmem:[%s15989_s17 + $0xd0] sm:$0xff] }
 0xa62   :  { %12585 = vmatpush3.msra.mxu0 %v14179_v32  ;;  %12592 = vmatpush3.msra.mxu1 %v11911_v58  ;;  %v14399_v58 = vld [vmem:[%s15989_s17 + $0x68] sm:$0xff] }
 0xa63   :  { %12586 = vmatprep.subr.mxu0 %v14008_v40  ;;  %12593 = vmatprep.subr.mxu1 %v14008_v40 }
 0xa64   :  { %v5166_v0 = vpop.permute.xlu1 %5165  ;;  %12587 = vmatpush3.msra.mxu0 %v14187_v35  ;;  %12588 = vmatprep.mubr.msk.f32.mxu0 %vm12943_vm7, %v14008_v40  ;;  %v14380_v35 = vld [vmem:[%s15989_s17 + $0x50] sm:$0xff] }
 0xa65   :  { %v5091_v2 = vpop.permute.xlu0 %5090  ;;  %12594 = vmatpush3.msra.mxu1 %v11910_v59  ;;  %12595 = vmatprep.mubr.msk.f32.mxu1 %vm12943_vm7, %v14008_v40  ;;  %v14408_v59 = vld [vmem:[%s15989_s17 + $0x40] sm:$0xff] }
 0xa66   :  { %12589 = vmatmul.mubr.msk.f32.vlgmr.msra.gmra.mxu0 %vm191_vm6, %v5091_v2  ;;  %12596 = vmatmul.mubr.msk.f32.vlgmr.msra.gmra.mxu1 %vm191_vm6, %v5166_v0  ;;  %v14513_v0 = vld [vmem:[%s15989_s17 + $0xf0] sm:$0xff]  ;;  %v14522_v2 = vld [vmem:[%s15989_s17 + $0xc8] sm:$0xff] }
 0xa67   :  { %12598 = vmatprep.subr.mxu0 %v14008_v40  ;;  %12605 = vmatprep.subr.mxu1 %v14008_v40 }
 0xa68   :  { %12599 = vmatpush3.msra.mxu0 %v11914_v30  ;;  %12606 = vmatpush3.msra.mxu1 %v11917_v61  ;;  %v5316_v33 = vpop.permute.xlu1 %5315  ;;  %v14433_v30 = vld [vmem:[%s15989_s17 + $0xb8] sm:$0xff]  ;;  %v14449_v61 = vld [vmem:[%s15989_s17 + $0xb0] sm:$0xff] }
 0xa69   :  { %12600 = vmatprep.subr.mxu0 %v14008_v40  ;;  %12607 = vmatprep.subr.mxu1 %v14008_v40  ;;  %v5241_v1 = vpop.permute.xlu0 %5240 }
 0xa6a   :  { %12601 = vmatpush3.msra.mxu0 %v11913_v60  ;;  %12602 = vmatprep.mubr.msk.f32.mxu0 %vm12943_vm7, %v14008_v40  ;;  %v14444_v60 = vld [vmem:[%s15989_s17 + $0x90] sm:$0xff] }
 0xa6b   :  { %12608 = vmatpush3.msra.mxu1 %v11916_v62  ;;  %12609 = vmatprep.mubr.msk.f32.mxu1 %vm12943_vm7, %v14008_v40  ;;  %v14458_v62 = vld [vmem:[%s15989_s17 + $0x88] sm:$0xff] }
 0xa6c   :  { %12603 = vmatmul.mubr.msk.f32.vlgmr.msra.gmra.mxu0 %vm191_vm6, %v5241_v1  ;;  %12610 = vmatmul.mubr.msk.f32.vlgmr.msra.gmra.mxu1 %vm191_vm6, %v5316_v33  ;;  %v5466_v3 = vpop.permute.xlu1 %5465  ;;  %v14527_v33 = vld [vmem:[%s15989_s17 + $0xe8] sm:$0xff]  ;;  %v14536_v1 = vld [vmem:[%s15989_s17 + $0xc0] sm:$0xff] }
 0xa6d   :  { %12612 = vmatprep.subr.mxu0 %v14008_v40  ;;  %12619 = vmatprep.subr.mxu1 %v14008_v40  ;;  %v5391_v8 = vpop.permute.xlu0 %5390 }
 0xa6e   :  { %12613 = vmatpush3.msra.mxu0 %v11920_v38  ;;  %12620 = vmatpush3.msra.mxu1 %v11923_v48  ;;  %v14463_v38 = vld [vmem:[%s15989_s17 + $0xa8] sm:$0xff]  ;;  %v14479_v48 = vld [vmem:[%s15989_s17 + $0xa0] sm:$0xff] }
 0xa6f   :  { %12614 = vmatprep.subr.mxu0 %v14008_v40  ;;  %12621 = vmatprep.subr.mxu1 %v14008_v40 }
 0xa70   :  { %12615 = vmatpush3.msra.mxu0 %v11919_v9  ;;  %12616 = vmatprep.mubr.msk.f32.mxu0 %vm12943_vm7, %v14008_v40  ;;  %v14472_v9 = vld [vmem:[%s15989_s17 + $0x80] sm:$0xff] }
 0xa71   :  { %12622 = vmatpush3.msra.mxu1 %v11922_v25  ;;  %12623 = vmatprep.mubr.msk.f32.mxu1 %vm12943_vm7, %v14008_v40  ;;  %v14492_v25 = vld [vmem:[%s15989_s17 + $0xd8] sm:$0xff] }
 0xa72   :  { %12617 = vmatmul.mubr.msk.f32.vlgmr.msra.gmra.mxu0 %vm191_vm6, %v5391_v8  ;;  %12624 = vmatmul.mubr.msk.f32.vlgmr.msra.gmra.mxu1 %vm191_vm6, %v5466_v3  ;;  %v14543_v3 = vld [vmem:[%s15989_s17 + $0xe0] sm:$0xff] }
 0xa73   :  { %12626 = vmatprep.subr.mxu0 %v14008_v40  ;;  %12637 = vmatprep.subr.mxu1 %v14008_v40 }
 0xa74   :  { %12627 = vmatpush3.msra.mxu0 %v14294_v21  ;;  %12638 = vmatpush3.msra.mxu1 %v14299_v10 }
 0xa75   :  { %12628 = vmatprep.subr.mxu0 %v14008_v40  ;;  %12639 = vmatprep.subr.mxu1 %v14008_v40 }
 0xa76   :  { %12629 = vmatpush3.msra.mxu0 %v14308_v11  ;;  %12640 = vmatpush3.msra.mxu1 %v14313_v13 }
 0xa77   :  { %12630 = vmatprep.subr.mxu0 %v14008_v40  ;;  %12641 = vmatprep.subr.mxu1 %v14008_v40 }
 0xa78   :  { %12631 = vmatpush3.msra.mxu0 %v14322_v14  ;;  %12642 = vmatpush3.msra.mxu1 %v14327_v15 }
 0xa79   :  { %12632 = vmatprep.subr.mxu0 %v14008_v40  ;;  %12643 = vmatprep.subr.mxu1 %v14008_v40 }
 0xa7a   :  { %12633 = vmatpush3.msra.mxu0 %v14336_v17  ;;  %12644 = vmatpush3.msra.mxu1 %v14341_v19 }
 0xa7b   :  { %12634 = vmatprep.mubr.msk.f32.mxu0 %vm12943_vm7, %v14008_v40  ;;  %12645 = vmatprep.mubr.msk.f32.mxu1 %vm12943_vm7, %v14008_v40 }
 0xa7c   :  { %12648 = vmatprep.subr.mxu0 %v14008_v40  ;;  %12659 = vmatprep.subr.mxu1 %v14008_v40 }
 0xaaf   :  { %v4389_v20 = vpop.f32.mrf.mxu1 }
 0xab0   :  { %v4393_v45 = vadd.f32 %v4389_v20, %v14358_v41 }
 0xab1   :  { %v12520_v23 = vpop.f32.mrf.mxu1 }
 0xab3   :  { %v4467_v24 = vpop.f32.mrf.mxu1 }
 0xab4   :  { %v4471_v16 = vadd.f32 %v4467_v24, %v4393_v45 }
 0xab5   :  { %v12527_v27 = vpop.f32.mrf.mxu1 }
 0xab8   :  { %v4545_v28 = vpop.f32.mrf.mxu1 }
 0xab9   :  { %v4549_v44 = vadd.f32 %v4545_v28, %v4471_v16 }
 0xaba   :  { %v12534_v31 = vpop.f32.mrf.mxu1 }
 0xabc   :  { %v4623_v42 = vpop.f32.mrf.mxu1 }
 0xabd   :  { %v4627_v50 = vadd.f32 %v4623_v42, %v4549_v44 }
 0xabe   :  { %v12541_v43 = vpop.f32.mrf.mxu1 }
 0xac0   :  { %v4701_v49 = vpop.f32.mrf.mxu1 }
 0xac1   :  { %v4705_v51 = vadd.f32 %v4701_v49, %v4627_v50  ;;  %v14606_v50 = vld [vmem:[#allocation2 + $0x28] sm:$0xff] }
 0xac2   :  { %v12548_v47 = vpop.f32.mrf.mxu1 }
 0xac4   :  { %v4779_v54 = vpop.f32.mrf.mxu1 }
 0xac5   :  { %v4783_v46 = vadd.f32 %v4779_v54, %v4705_v51 }
 0xac6   :  { %v12555_v52 = vpop.f32.mrf.mxu1 }
 0xac7   :  { %v5625_v52 = vld [vmem:[%s15991_s18 + $0x1] sm:$0x1] }
 0xac8   :  { %v4857_v18 = vpop.f32.mrf.mxu1 }
 0xac9   :  { %v4861_v34 = vadd.f32 %v4857_v18, %v4783_v46 }
 0xaca   :  { %v12562_v56 = vpop.f32.mrf.mxu1 }
 0xacc   :  { %v4935_v37 = vpop.f32.mrf.mxu1 }
 0xacd   :  { %v14361_v22 = vadd.f32 %v4935_v37, %v4861_v34 }
 0xace   :  { %v12569_v32 = vpop.f32.mrf.mxu1 }
 0xacf   :  { %12635 = vmatmul.mubr.msk.f32.vlgmr.msra.gmra.mxu0 %vm4314_vm9, %v14361_v22  ;;  %12646 = vmatmul.mubr.msk.f32.vlgmr.msra.gmra.mxu1 %vm4314_vm9, %v14361_v22 }
 0xad0   :  { %12649 = vmatpush3.msra.mxu0 %v14366_v36  ;;  %12660 = vmatpush3.msra.mxu1 %v14371_v57 }
 0xad1   :  { %12650 = vmatprep.subr.mxu0 %v14008_v40  ;;  %12661 = vmatprep.subr.mxu1 %v14008_v40 }
 0xad2   :  { %12651 = vmatpush3.msra.mxu0 %v14380_v35  ;;  %12662 = vmatpush3.msra.mxu1 %v14385_v26 }
 0xad3   :  { %12652 = vmatprep.subr.mxu0 %v14008_v40  ;;  %12663 = vmatprep.subr.mxu1 %v14008_v40 }
 0xad4   :  { %12653 = vmatpush3.msra.mxu0 %v14394_v55  ;;  %12664 = vmatpush3.msra.mxu1 %v14399_v58 }
 0xad5   :  { %12654 = vmatprep.subr.mxu0 %v14008_v40  ;;  %12665 = vmatprep.subr.mxu1 %v14008_v40 }
 0xad6   :  { %12655 = vmatpush3.msra.mxu0 %v14408_v59  ;;  %12656 = vmatprep.mubr.msk.f32.mxu0 %vm12943_vm7, %v14008_v40 }
 0xad7   :  { %12666 = vmatpush3.msra.mxu1 %v14415_v39  ;;  %12667 = vmatprep.mubr.msk.f32.mxu1 %vm12943_vm7, %v14008_v40 }
 0xad8   :  { %12657 = vmatmul.mubr.msk.f32.vlgmr.msra.gmra.mxu0 %vm4314_vm9, %v14361_v22  ;;  %12668 = vmatmul.mubr.msk.f32.vlgmr.msra.gmra.mxu1 %vm4314_vm9, %v14361_v22 }
 0xad9   :  { %12670 = vmatprep.subr.mxu0 %v14008_v40  ;;  %12681 = vmatprep.subr.mxu1 %v14008_v40 }
 0xada   :  { %12671 = vmatpush3.msra.mxu0 %v14428_v63  ;;  %12682 = vmatpush3.msra.mxu1 %v14433_v30 }
 0xadb   :  { %12672 = vmatprep.subr.mxu0 %v14008_v40  ;;  %12683 = vmatprep.subr.mxu1 %v14008_v40 }
 0xadc   :  { %12673 = vmatpush3.msra.mxu0 %v14444_v60  ;;  %12684 = vmatpush3.msra.mxu1 %v14449_v61 }
 0xadd   :  { %12674 = vmatprep.subr.mxu0 %v14008_v40  ;;  %12685 = vmatprep.subr.mxu1 %v14008_v40 }
 0xade   :  { %12675 = vmatpush3.msra.mxu0 %v14458_v62  ;;  %12686 = vmatpush3.msra.mxu1 %v14463_v38 }
 0xadf   :  { %12676 = vmatprep.subr.mxu0 %v14008_v40  ;;  %12687 = vmatprep.subr.mxu1 %v14008_v40 }
 0xae0   :  { %12677 = vmatpush3.msra.mxu0 %v14472_v9  ;;  %12678 = vmatprep.mubr.msk.f32.mxu0 %vm12943_vm7, %v14008_v40 }
 0xae1   :  { %12688 = vmatpush3.msra.mxu1 %v14479_v48  ;;  %12689 = vmatprep.mubr.msk.f32.mxu1 %vm12943_vm7, %v14008_v40 }
 0xae2   :  { %12679 = vmatmul.mubr.msk.f32.vlgmr.msra.gmra.mxu0 %vm4314_vm9, %v14361_v22  ;;  %12690 = vmatmul.mubr.msk.f32.vlgmr.msra.gmra.mxu1 %vm4314_vm9, %v14361_v22 }
 0xae3   :  { %12692 = vmatprep.subr.mxu0 %v14008_v40  ;;  %12703 = vmatprep.subr.mxu1 %v14008_v40 }
 0xae4   :  { %12693 = vmatpush3.msra.mxu0 %v14492_v25  ;;  %12704 = vmatpush3.msra.mxu1 %v14497_v29 }
 0xae5   :  { %12694 = vmatprep.subr.mxu0 %v14008_v40  ;;  %12705 = vmatprep.subr.mxu1 %v14008_v40 }
 0xae6   :  { %12695 = vmatpush3.msra.mxu0 %v14508_v12  ;;  %12706 = vmatpush3.msra.mxu1 %v14513_v0 }
 0xae7   :  { %12696 = vmatprep.subr.mxu0 %v14008_v40  ;;  %12707 = vmatprep.subr.mxu1 %v14008_v40 }
 0xae8   :  { %12697 = vmatpush3.msra.mxu0 %v14522_v2  ;;  %12708 = vmatpush3.msra.mxu1 %v14527_v33 }
 0xae9   :  { %12698 = vmatprep.subr.mxu0 %v14008_v40  ;;  %12709 = vmatprep.subr.mxu1 %v14008_v40 }
 0xaea   :  { %12699 = vmatpush3.msra.mxu0 %v14536_v1  ;;  %12700 = vmatprep.mubr.msk.f32.mxu0 %vm12943_vm7, %v14008_v40 }
 0xaeb   :  { %12710 = vmatpush3.msra.mxu1 %v14543_v3  ;;  %12711 = vmatprep.mubr.msk.f32.mxu1 %vm12943_vm7, %v14008_v40 }
 0xaec   :  { %12701 = vmatmul.mubr.msk.f32.vlgmr.msra.gmra.mxu0 %vm4314_vm9, %v14361_v22  ;;  %12712 = vmatmul.mubr.msk.f32.vlgmr.msra.gmra.mxu1 %vm4314_vm9, %v14361_v22  ;;  %v5702_v22 = vld [vmem:[%s15991_s18 + $0x2] sm:$0x1] }
 0xaed   :  { %12714 = vmatprep.subr.mxu0 %v14008_v40  ;;  %12725 = vmatprep.subr.mxu1 %v14008_v40 }
 0xaee   :  { %12715 = vmatpush3.msra.mxu0 %v14294_v21  ;;  %12726 = vmatpush3.msra.mxu1 %v14299_v10 }
 0xaef   :  { %12716 = vmatprep.subr.mxu0 %v14008_v40  ;;  %12727 = vmatprep.subr.mxu1 %v14008_v40 }
 0xaf0   :  { %12717 = vmatpush3.msra.mxu0 %v14308_v11  ;;  %12728 = vmatpush3.msra.mxu1 %v14313_v13 }
 0xaf1   :  { %12718 = vmatprep.subr.mxu0 %v14008_v40  ;;  %12729 = vmatprep.subr.mxu1 %v14008_v40 }
 0xaf2   :  { %12719 = vmatpush3.msra.mxu0 %v14322_v14  ;;  %12730 = vmatpush3.msra.mxu1 %v14327_v15 }
 0xaf3   :  { %12720 = vmatprep.subr.mxu0 %v14008_v40  ;;  %12731 = vmatprep.subr.mxu1 %v14008_v40 }
 0xaf4   :  { %12721 = vmatpush3.msra.mxu0 %v14336_v17  ;;  %12732 = vmatpush3.msra.mxu1 %v14341_v19 }
 0xaf5   :  { %12722 = vmatprep.mubr.msk.f32.mxu0 %vm12943_vm7, %v14008_v40  ;;  %12733 = vmatprep.mubr.msk.f32.mxu1 %vm12943_vm7, %v14008_v40 }
 0xaf6   :  { %12736 = vmatprep.subr.mxu0 %v14008_v40  ;;  %12747 = vmatprep.subr.mxu1 %v14008_v40 }
 0xb21   :  { %v5010_v8 = vpop.f32.mrf.mxu0  ;;  %v5085_v21 = vpop.f32.mrf.mxu1 }
 0xb22   :  { %v5014_v10 = vadd.f32 %v5010_v8, %v14358_v41 }
 0xb23   :  { %v12576_v11 = vpop.f32.mrf.mxu0  ;;  %v12583_v13 = vpop.f32.mrf.mxu1 }
 0xb24   :  { %v5089_v14 = vadd.f32 %v5085_v21, %v5014_v10 }
 0xb26   :  { %v5160_v15 = vpop.f32.mrf.mxu0  ;;  %v5235_v17 = vpop.f32.mrf.mxu1 }
 0xb27   :  { %v5164_v19 = vadd.f32 %v5160_v15, %v5089_v14  ;;  %v6327_v15 = vld [vmem:[%s15991_s18 + $0x2] sm:$0x1] }
 0xb28   :  { %v12590_v20 = vpop.f32.mrf.mxu0  ;;  %v12597_v23 = vpop.f32.mrf.mxu1 }
 0xb29   :  { %v5239_v24 = vadd.f32 %v5235_v17, %v5164_v19  ;;  %v6407_v17 = vld [vmem:[%s15991_s18 + $0x3] sm:$0x1] }
 0xb2c   :  { %v5310_v27 = vpop.f32.mrf.mxu0  ;;  %v5385_v28 = vpop.f32.mrf.mxu1 }
 0xb2d   :  { %v5314_v31 = vadd.f32 %v5310_v27, %v5239_v24 }
 0xb2e   :  { %v12604_v42 = vpop.f32.mrf.mxu0  ;;  %v12611_v43 = vpop.f32.mrf.mxu1 }
 0xb2f   :  { %v5389_v45 = vadd.f32 %v5385_v28, %v5314_v31  ;;  %v6487_v31 = vld [vmem:[%s15991_s18 + $0x4] sm:$0x1]  ;;  %v6567_v42 = vld [vmem:[%s15991_s18 + $0x5] sm:$0x1] }
 0xb32   :  { %v5460_v49 = vpop.f32.mrf.mxu0  ;;  %v5535_v16 = vpop.f32.mrf.mxu1 }
 0xb33   :  { %v5464_v47 = vadd.f32 %v5460_v49, %v5389_v45 }
 0xb34   :  { %v12618_v44 = vpop.f32.mrf.mxu0  ;;  %v12625_v41 = vpop.f32.mrf.mxu1 }
 0xb35   :  { %v5539_v54 = vadd.f32 %v5535_v16, %v5464_v47  ;;  %v6647_v41 = vld [vmem:[%s15991_s18 + $0x6] sm:$0x1] }
 0xb37   :  { %12723 = vmatmul.mubr.msk.f32.vlgmr.msra.gmra.mxu0 %vm4314_vm9, %v5539_v54  ;;  %12734 = vmatmul.mubr.msk.f32.vlgmr.msra.gmra.mxu1 %vm4314_vm9, %v5539_v54 }
 0xb38   :  { %12737 = vmatpush3.msra.mxu0 %v14366_v36  ;;  %12748 = vmatpush3.msra.mxu1 %v14371_v57  ;;  %v5779_v36 = vld [vmem:[%s15991_s18 + $0x3] sm:$0x1] }
 0xb39   :  { %12738 = vmatprep.subr.mxu0 %v14008_v40  ;;  %12749 = vmatprep.subr.mxu1 %v14008_v40 }
 0xb3a   :  { %12739 = vmatpush3.msra.mxu0 %v14380_v35  ;;  %12750 = vmatpush3.msra.mxu1 %v14385_v26 }
 0xb3b   :  { %12740 = vmatprep.subr.mxu0 %v14008_v40  ;;  %12751 = vmatprep.subr.mxu1 %v14008_v40 }
 0xb3c   :  { %12741 = vmatpush3.msra.mxu0 %v14394_v55  ;;  %12752 = vmatpush3.msra.mxu1 %v14399_v58 }
 0xb3d   :  { %12742 = vmatprep.subr.mxu0 %v14008_v40  ;;  %12753 = vmatprep.subr.mxu1 %v14008_v40 }
 0xb3e   :  { %12743 = vmatpush3.msra.mxu0 %v14408_v59  ;;  %12744 = vmatprep.mubr.msk.f32.mxu0 %vm12943_vm7, %v14008_v40  ;;  %v5856_v59 = vld [vmem:[%s15991_s18 + $0x4] sm:$0x1] }
 0xb3f   :  { %12754 = vmatpush3.msra.mxu1 %v14415_v39  ;;  %12755 = vmatprep.mubr.msk.f32.mxu1 %vm12943_vm7, %v14008_v40  ;;  %v5933_v39 = vld [vmem:[%s15991_s18 + $0x5] sm:$0x1] }
 0xb40   :  { %12745 = vmatmul.mubr.msk.f32.vlgmr.msra.gmra.mxu0 %vm4314_vm9, %v5539_v54  ;;  %12756 = vmatmul.mubr.msk.f32.vlgmr.msra.gmra.mxu1 %vm4314_vm9, %v5539_v54 }
 0xb41   :  { %12758 = vmatprep.subr.mxu0 %v14008_v40  ;;  %12769 = vmatprep.subr.mxu1 %v14008_v40  ;;  %v5544_v40 = vld [vmem:[%s15991_s18] sm:$0x1] }
 0xb42   :  { %12759 = vmatpush3.msra.mxu0 %v14428_v63  ;;  %12770 = vmatpush3.msra.mxu1 %v14433_v30 }
 0xb43   :  { %12760 = vmatprep.subr.mxu0 %v14606_v50  ;;  %12771 = vmatprep.subr.mxu1 %v14606_v50 }
 0xb44   :  { %12761 = vmatpush3.msra.mxu0 %v14444_v60  ;;  %12772 = vmatpush3.msra.mxu1 %v14449_v61 }
 0xb45   :  { %12762 = vmatprep.subr.mxu0 %v14606_v50  ;;  %12773 = vmatprep.subr.mxu1 %v14606_v50 }
 0xb46   :  { %12763 = vmatpush3.msra.mxu0 %v14458_v62  ;;  %12774 = vmatpush3.msra.mxu1 %v14463_v38 }
 0xb47   :  { %12764 = vmatprep.subr.mxu0 %v14606_v50  ;;  %12775 = vmatprep.subr.mxu1 %v14606_v50 }
 0xb48   :  { %12765 = vmatpush3.msra.mxu0 %v14472_v9  ;;  %12766 = vmatprep.mubr.msk.f32.mxu0 %vm12943_vm7, %v14606_v50  ;;  %v6010_v9 = vld [vmem:[%s15991_s18 + $0x6] sm:$0x1] }
 0xb49   :  { %12776 = vmatpush3.msra.mxu1 %v14479_v48  ;;  %12777 = vmatprep.mubr.msk.f32.mxu1 %vm12943_vm7, %v14606_v50  ;;  %v6087_v48 = vld [vmem:[%s15991_s18 + $0x7] sm:$0x1] }
 0xb4a   :  { %12767 = vmatmul.mubr.msk.f32.vlgmr.msra.gmra.mxu0 %vm4314_vm9, %v5539_v54  ;;  %12778 = vmatmul.mubr.msk.f32.vlgmr.msra.gmra.mxu1 %vm4314_vm9, %v5539_v54 }
 0xb4b   :  { %12780 = vmatprep.subr.mxu0 %v14606_v50  ;;  %12791 = vmatprep.subr.mxu1 %v14606_v50 }
 0xb4c   :  { %12781 = vmatpush3.msra.mxu0 %v14492_v25  ;;  %12792 = vmatpush3.msra.mxu1 %v14497_v29 }
 0xb4d   :  { %12782 = vmatprep.subr.mxu0 %v14606_v50  ;;  %12793 = vmatprep.subr.mxu1 %v14606_v50 }
 0xb4e   :  { %12783 = vmatpush3.msra.mxu0 %v14508_v12  ;;  %12794 = vmatpush3.msra.mxu1 %v14513_v0 }
 0xb4f   :  { %12784 = vmatprep.subr.mxu0 %v14606_v50  ;;  %12795 = vmatprep.subr.mxu1 %v14606_v50 }
 0xb50   :  { %12785 = vmatpush3.msra.mxu0 %v14522_v2  ;;  %12796 = vmatpush3.msra.mxu1 %v14527_v33 }
 0xb51   :  { %12786 = vmatprep.subr.mxu0 %v14606_v50  ;;  %12797 = vmatprep.subr.mxu1 %v14606_v50 }
 0xb52   :  { %12787 = vmatpush3.msra.mxu0 %v14536_v1  ;;  %12788 = vmatprep.mubr.msk.f32.mxu0 %vm12943_vm7, %v14606_v50  ;;  %v6163_v1 = vld [vmem:[%s15991_s18] sm:$0x1] }
 0xb53   :  { %12798 = vmatpush3.msra.mxu1 %v14543_v3  ;;  %12799 = vmatprep.mubr.msk.f32.mxu1 %vm12943_vm7, %v14606_v50  ;;  %v6247_v3 = vld [vmem:[%s15991_s18 + $0x1] sm:$0x1] }
 0xb54   :  { %12789 = vmatmul.mubr.msk.f32.vlgmr.msra.gmra.mxu0 %vm4314_vm9, %v5539_v54  ;;  %12800 = vmatmul.mubr.msk.f32.vlgmr.msra.gmra.mxu1 %vm4314_vm9, %v5539_v54  ;;  %v6727_v54 = vld [vmem:[%s15991_s18 + $0x7] sm:$0x1]  ;;  %s16038_s18 = smov 111  }
 0xb55   :  { %12813 = vmatprep.subr.mxu1 %v14606_v50  ;;  %12815 = vmatprep.mubr.msk.f32.mxu1 %vm12943_vm7, %v14606_v50 }
 0xb8f   :  { %v5614_v51 = vpop.f32.mrf.mxu0  ;;  %v5692_v18 = vpop.f32.mrf.mxu1 }
 0xb90   :  { %v5615_v46 = vadd.f32 %v5614_v51, %v5544_v40  ;;  %v5693_v56 = vadd.f32 %v5692_v18, %v5625_v52  ;;  %v6811_v40 = vld [vmem:[%s15992_s13 + $0x18] sm:$0xff]  ;;  %v6810_v52 = vld [vmem:[%s15992_s13 + $0x10] sm:$0xff] }
 0xb91   :  { %v12636_v34 = vpop.f32.mrf.mxu0  ;;  %v12647_v37 = vpop.f32.mrf.mxu1  ;;  %12802 = vmatprep.subr.mxu0 %v6811_v40 }
 0xb92   :  { %5619 = vst.msk [vmem:[#allocation5] sm:$0x1] %vm5618_vm11, %v5615_v46  ;;  %5696 = vst.msk [vmem:[#allocation5 + $0x1] sm:$0x1] %vm5618_vm11, %v5693_v56  ;;  %12803 = vmatpush3.msra.mxu0 %v6811_v40 }
 0xb93   :  { %12804 = vmatprep.subr.mxu0 %v6810_v52 }
 0xb94   :  { %12805 = vmatpush3.msra.mxu0 %v6810_v52 }
 0xb98   :  { %v5769_v57 = vpop.f32.mrf.mxu0  ;;  %v5846_v32 = vpop.f32.mrf.mxu1 }
 0xb99   :  { %v5770_v35 = vadd.f32 %v5769_v57, %v5702_v22  ;;  %v5847_v26 = vadd.f32 %v5846_v32, %v5779_v36  ;;  %v6809_v22 = vld [vmem:[%s15992_s13 + $0x8] sm:$0xff]  ;;  %v12010_v36 = vld [vmem:[%s15985_s8 + $0x1] ss:$0 sm:$0xff]  ;;  %v12009_v57 = vld [vmem:[%s15985_s8] ss:$0 sm:$0xff] }
 0xb9a   :  { %v12658_v55 = vpop.f32.mrf.mxu0  ;;  %v12669_v58 = vpop.f32.mrf.mxu1  ;;  %12806 = vmatprep.subr.mxu0 %v6809_v22  ;;  %v6808_v32 = vld [vmem:[%s15992_s13] sm:$0xff] }
 0xb9b   :  { %5773 = vst.msk [vmem:[#allocation5 + $0x2] sm:$0x1] %vm5618_vm11, %v5770_v35  ;;  %5850 = vst.msk [vmem:[#allocation5 + $0x3] sm:$0x1] %vm5618_vm11, %v5847_v26  ;;  %12807 = vmatpush3.msra.mxu0 %v6809_v22  ;;  %v12014_v35 = vld [vmem:[%s15985_s8 + $0x2] ss:$0 sm:$0xff] }
 0xb9c   :  { %12808 = vmatprep.subr.mxu0 %v6808_v32  ;;  %v12017_v26 = vld [vmem:[%s15985_s8 + $0x3] ss:$0 sm:$0xff]  ;;  %v12022_v55 = vld [vmem:[%s15985_s8 + $0x5] ss:$0 sm:$0xff]  ;;  %v12025_v58 = vld [vmem:[%s15985_s8 + $0x6] ss:$0 sm:$0xff] }
 0xb9d   :  { %12809 = vmatpush3.msra.mxu0 %v6808_v32 }
 0xb9e   :  { %12823 = vmatprep.subr.mxu0 %v14606_v50 }
 0xba2   :  { %v5923_v63 = vpop.f32.mrf.mxu0  ;;  %v6000_v30 = vpop.f32.mrf.mxu1 }
 0xba3   :  { %v5924_v60 = vadd.f32 %v5923_v63, %v5856_v59  ;;  %v6001_v61 = vadd.f32 %v6000_v30, %v5933_v39  ;;  %v12028_v59 = vld [vmem:[%s15985_s8 + $0x7] ss:$0 sm:$0xff]  ;;  %v12031_v39 = vld [vmem:[%s15985_s8 + $0x8] ss:$0 sm:$0xff]  ;;  %s16039_s8 = smov 15  }
 0xba4   :  { %v12680_v62 = vpop.f32.mrf.mxu0  ;;  %v12691_v38 = vpop.f32.mrf.mxu1 }
 0xba5   :  { %5927 = vst.msk [vmem:[#allocation5 + $0x4] sm:$0x1] %vm5618_vm11, %v5924_v60  ;;  %6004 = vst.msk [vmem:[#allocation5 + $0x5] sm:$0x1] %vm5618_vm11, %v6001_v61 }
 0xbac   :  { %v6077_v25 = vpop.f32.mrf.mxu0  ;;  %v6154_v29 = vpop.f32.mrf.mxu1 }
 0xbad   :  { %v6078_v12 = vadd.f32 %v6077_v25, %v6010_v9  ;;  %v6155_v0 = vadd.f32 %v6154_v29, %v6087_v48 }
 0xbae   :  { %v12702_v2 = vpop.f32.mrf.mxu0  ;;  %v12713_v33 = vpop.f32.mrf.mxu1 }
 0xbaf   :  { %6081 = vst.msk [vmem:[#allocation5 + $0x6] sm:$0x1] %vm5618_vm11, %v6078_v12  ;;  %6158 = vst.msk [vmem:[#allocation5 + $0x7] sm:$0x1] %vm5618_vm11, %v6155_v0 }
 0xbf7   :  { %v6233_v8 = vpop.f32.mrf.mxu0  ;;  %v6314_v21 = vpop.f32.mrf.mxu1 }
 0xbf8   :  { %v6234_v10 = vadd.f32 %v6233_v8, %v6163_v1  ;;  %v6315_v11 = vadd.f32 %v6314_v21, %v6247_v3  ;;  %v7361_v3 = vld [vmem:[#allocation2 + $0x8] sm:$0xff] }
 0xbf9   :  { %v12724_v13 = vpop.f32.mrf.mxu0  ;;  %v12735_v14 = vpop.f32.mrf.mxu1 }
 0xbfa   :  { %6238 = vrot.lane.b32.xlu0 %v6234_v10, %s16034_s16  ;;  %6319 = vrot.lane.b32.xlu1 %v6315_v11, %s16034_s16  ;;  %v12007_v14 = vld [vmem:[%s15993_s10] ss:$0 sm:$0xff] }
 0xc00   :  { %v6394_v19 = vpop.f32.mrf.mxu0  ;;  %v6474_v20 = vpop.f32.mrf.mxu1 }
 0xc01   :  { %v6395_v23 = vadd.f32 %v6394_v19, %v6327_v15  ;;  %v6475_v24 = vadd.f32 %v6474_v20, %v6407_v17 }
 0xc02   :  { %v12746_v27 = vpop.f32.mrf.mxu0  ;;  %v12757_v28 = vpop.f32.mrf.mxu1 }
 0xc03   :  { %6399 = vrot.lane.b32.xlu0 %v6395_v23, %s16034_s16  ;;  %6479 = vrot.lane.b32.xlu1 %v6475_v24, %s16034_s16 }
 0xc0a   :  { %v6554_v43 = vpop.f32.mrf.mxu0  ;;  %v6634_v45 = vpop.f32.mrf.mxu1 }
 0xc0b   :  { %v6555_v49 = vadd.f32 %v6554_v43, %v6487_v31  ;;  %v6635_v16 = vadd.f32 %v6634_v45, %v6567_v42 }
 0xc0c   :  { %v12768_v47 = vpop.f32.mrf.mxu0  ;;  %v12779_v44 = vpop.f32.mrf.mxu1 }
 0xc0d   :  { %6559 = vrot.lane.b32.xlu0 %v6555_v49, %s16034_s16  ;;  %6639 = vrot.lane.b32.xlu1 %v6635_v16, %s16034_s16  ;;  %v12034_v47 = vld [vmem:[%s16030_s27 + $0x18] sm:$0xff] }
 0xc14   :  { %v6714_v51 = vpop.f32.mrf.mxu0  ;;  %v6794_v18 = vpop.f32.mrf.mxu1 }
 0xc15   :  { %v6715_v46 = vadd.f32 %v6714_v51, %v6647_v41  ;;  %v6795_v56 = vadd.f32 %v6794_v18, %v6727_v54 }
 0xc16   :  { %v12790_v34 = vpop.f32.mrf.mxu0  ;;  %v12801_v37 = vpop.f32.mrf.mxu1 }
 0xc17   :  { %6719 = vrot.lane.b32.xlu0 %v6715_v46, %s16034_s16  ;;  %6799 = vrot.lane.b32.xlu1 %v6795_v56, %s16034_s16  ;;  %v12011_v34 = vld [vmem:[%s15994_s3 + $0x8] sm:$0xff] }
 0xc1b   :  { %6925 = vrot.lane.b32.xlu0 %v12010_v36, %s12938_s1  ;;  %6913 = vrot.lane.b32.xlu1 %v12009_v57, %s12937_s26  ;;  %v6918_v36 = vld [vmem:[%s15994_s3] sm:$0xff] }
 0xc1f   :  { %7100 = vrot.lane.b32.xlu0 %v12014_v35, %s12939_s28  ;;  %7195 = vrot.lane.b32.xlu1 %v12017_v26, %s16033_s22  ;;  %v12015_v26 = vld [vmem:[%s15994_s3 + $0x10] sm:$0xff] }
 0xc23   :  { %7368 = vrot.lane.b32.xlu0 %v12022_v55, %s12931_s5  ;;  %7463 = vrot.lane.b32.xlu1 %v12025_v58, %s16035_s7 }
 0xc27   :  { %7558 = vrot.lane.b32.xlu0 %v12028_v59, %s16036_s21  ;;  %7653 = vrot.lane.b32.xlu1 %v12031_v39, %s16037_s15  ;;  %v12018_v39 = vld [vmem:[%s15994_s3 + $0x18] sm:$0xff] }
 0xc6c   :  { %v6239_v63 = vpop.permute.xlu0 %6238  ;;  %v6320_v30 = vpop.permute.xlu1 %6319 }
 0xc6d   :  { %6242 = vst.msk [vmem:[#allocation5] sm:$0x1] %vm6241_vm13, %v6239_v63  ;;  %6322 = vst.msk [vmem:[#allocation5 + $0x1] sm:$0x1] %vm6241_vm13, %v6320_v30  ;;  %v12020_v30 = vld [vmem:[%s15994_s3 + $0x20] sm:$0xff] }
 0xc75   :  { %v6400_v60 = vpop.permute.xlu0 %6399  ;;  %v6480_v61 = vpop.permute.xlu1 %6479 }
 0xc76   :  { %6402 = vst.msk [vmem:[#allocation5 + $0x2] sm:$0x1] %vm6241_vm13, %v6400_v60  ;;  %6482 = vst.msk [vmem:[#allocation5 + $0x3] sm:$0x1] %vm6241_vm13, %v6480_v61 }
 0xc7f   :  { %v6560_v62 = vpop.permute.xlu0 %6559  ;;  %v6640_v38 = vpop.permute.xlu1 %6639 }
 0xc80   :  { %6562 = vst.msk [vmem:[#allocation5 + $0x4] sm:$0x1] %vm6241_vm13, %v6560_v62  ;;  %6642 = vst.msk [vmem:[#allocation5 + $0x5] sm:$0x1] %vm6241_vm13, %v6640_v38  ;;  %v12023_v62 = vld [vmem:[%s15994_s3 + $0x28] sm:$0xff] }
 0xc89   :  { %v6720_v9 = vpop.permute.xlu0 %6719  ;;  %v6800_v48 = vpop.permute.xlu1 %6799 }
 0xc8a   :  { %6722 = vst.msk [vmem:[#allocation5 + $0x6] sm:$0x1] %vm6241_vm13, %v6720_v9  ;;  %6802 = vst.msk [vmem:[#allocation5 + $0x7] sm:$0x1] %vm6241_vm13, %v6800_v48  ;;  %v12026_v9 = vld [vmem:[%s15994_s3 + $0x30] sm:$0xff] }
 0xc8d   :  { %v6926_v25 = vpop.permute.xlu0 %6925  ;;  %v6914_v12 = vpop.permute.xlu1 %6913 }
 0xc8e   :  { %v6928_v29 = vmul.f32 %v14606_v50, %v6926_v25  ;;  %v6916_v0 = vmul.f32 %v14606_v50, %v6914_v12 }
 0xc90   :  { %6934 = vrot.lane.b32.xlu0 %v6928_v29, %s16036_s21  ;;  %v12029_v29 = vld [vmem:[%s15994_s3 + $0x38] sm:$0xff] }
 0xc91   :  { %v6803_v2 = vld [vmem:[#allocation5] sm:$0xff]  ;;  %v7101_v33 = vpop.permute.xlu0 %7100  ;;  %v7196_v10 = vpop.permute.xlu1 %7195 }
 0xc92   :  { %6804 = vst.msk [vmem:[#allocation3] sm:$0xff] %vm4314_vm9, %v6803_v2  ;;  %v7103_v1 = vmul.f32 %v14606_v50, %v7101_v33  ;;  %v7198_v11 = vmul.f32 %v14606_v50, %v7196_v10 }
 0xc94   :  { %7015 = vrot.lane.b32.xlu0 %v6916_v0, %s16037_s15 }
 0xc95   :  { %v7369_v8 = vpop.permute.xlu0 %7368  ;;  %v7464_v24 = vpop.permute.xlu1 %7463 }
 0xc96   :  { %v7372_v21 = vmul.f32 %v7369_v8, %v7361_v3  ;;  %v7467_v44 = vmul.f32 %v7464_v24, %v7361_v3 }
 0xc98   :  { %7379 = vrot.lane.b32.xlu1 %v7372_v21, %s16033_s22  ;;  %7109 = vrot.lane.b32.xlu0 %v7103_v1, %s16035_s7  ;;  %v7816_v21 = vld [vmem:[%s15995_s14 + $0x1e0] sm:$0xff] }
 0xc99   :  { %v6806_v13 = vld [vmem:[#allocation3] sm:$0xff]  ;;  %v7559_v31 = vpop.permute.xlu0 %7558  ;;  %v7654_v45 = vpop.permute.xlu1 %7653 }
 0xc9a   :  { %12810 = vmatprep.mubr.msk.f32.mxu0 %vm4314_vm9, %v6806_v13  ;;  %v7562_v41 = vmul.f32 %v7559_v31, %v7361_v3  ;;  %v7657_v54 = vmul.f32 %v7654_v45, %v7361_v3  ;;  %v7817_v3 = vld [vmem:[%s15995_s14 + $0x1e8] sm:$0xff]  ;;  %v7812_v13 = vld [vmem:[%s15995_s14 + $0x1c0] sm:$0xff] }
 0xc9b   :  { %12811 = vmatmul.mubr.msk.f32.vlgmr.msra.gmra.mxu0 %vm4314_vm9, %v14154_v53 }
 0xc9c   :  { %7204 = vrot.lane.b32.xlu0 %v7198_v11, %s12931_s5  ;;  %12825 = vmatprep.mubr.msk.f32.mxu0 %vm12943_vm7, %v14606_v50  ;;  %v7815_v11 = vld [vmem:[%s15995_s14 + $0x1d8] sm:$0xff] }
 0xd02   :  { %v6935_v40 = vpop.permute.xlu0 %6934 }
 0xd06   :  { %v7016_v52 = vpop.permute.xlu0 %7015 }
 0xd0a   :  { %v7110_v51 = vpop.permute.xlu0 %7109  ;;  %v7380_v18 = vpop.permute.xlu1 %7379 }
 0xd0e   :  { %v7205_v46 = vpop.permute.xlu0 %7204 }
 0xd5b   :  { %v12812_v15 = vpop.f32.mrf.mxu0 }
 0xd5c   :  { %vm6900_vm11 = vcmp.eq.f32.partialorder %v12007_v14, %v12812_v15  ;;  %v7814_v14 = vld [vmem:[%s15995_s14 + $0x1d0] sm:$0xff]  ;;  %v7809_v15 = vld [vmem:[%s15995_s14 + $0x1a8] sm:$0xff] }
 0xd5d   :  { %v6884_v17 = vpop.f32.mrf.mxu0  ;;  %v12008_v19 = vsel %vm6900_vm11, 1.0, %v14606_v50 }
 0xd5e   :  { %v14787_v20 = vmul.f32 %v12008_v19, %v6884_v17  ;;  %v7811_v17 = vld [vmem:[%s15995_s14 + $0x1b8] sm:$0xff]  ;;  %v7808_v19 = vld [vmem:[%s15995_s14 + $0x1a0] sm:$0xff] }
 0xd60   :  { %v6929_v23 = vmul.f32 %v6926_v25, %v14787_v20  ;;  %v7371_v53 = vmul.f32 %v7369_v8, %v14787_v20  ;;  %v6917_v27 = vmul.f32 %v6914_v12, %v14787_v20  ;;  %v7466_v28 = vmul.f32 %v7464_v24, %v14787_v20  ;;  %v7819_v8 = vld [vmem:[%s15995_s14 + $0x1f8] sm:$0xff] }
 0xd61   :  { %v7104_v42 = vmul.f32 %v7101_v33, %v14787_v20  ;;  %v7561_v43 = vmul.f32 %v7559_v31, %v14787_v20  ;;  %v7199_v49 = vmul.f32 %v7196_v10, %v14787_v20  ;;  %v7656_v16 = vmul.f32 %v7654_v45, %v14787_v20  ;;  %v12032_v33 = vld [vmem:[%s15994_s3 + $0x40] sm:$0xff]  ;;  %v7818_v10 = vld [vmem:[%s15995_s14 + $0x1f0] sm:$0xff]  ;;  %v7807_v24 = vld [vmem:[%s15995_s14 + $0x198] sm:$0xff] }
 0xd62   :  { %6936 = vrot.lane.b32.xlu1 %v6929_v23, %s16036_s21  ;;  %7377 = vrot.lane.b32.xlu0 %v7371_v53, %s16033_s22  ;;  %v7810_v23 = vld [vmem:[%s15995_s14 + $0x1b0] sm:$0xff]  ;;  %v7805_v53 = vld [vmem:[%s15995_s14 + $0x188] sm:$0xff] }
 0xd63   :  { %v7801_v31 = vld [vmem:[%s15995_s14 + $0x168] sm:$0xff]  ;;  %v7802_v45 = vld [vmem:[%s15995_s14 + $0x170] sm:$0xff] }
 0xd66   :  { %7017 = vrot.lane.b32.xlu1 %v6917_v27, %s16037_s15  ;;  %7472 = vrot.lane.b32.xlu0 %v7466_v28, %s12939_s28  ;;  %v7804_v27 = vld [vmem:[%s15995_s14 + $0x180] sm:$0xff]  ;;  %v7806_v28 = vld [vmem:[%s15995_s14 + $0x190] sm:$0xff] }
 0xd6a   :  { %7111 = vrot.lane.b32.xlu1 %v7104_v42, %s16035_s7  ;;  %7567 = vrot.lane.b32.xlu0 %v7561_v43, %s12938_s1  ;;  %v7803_v42 = vld [vmem:[%s15995_s14 + $0x178] sm:$0xff]  ;;  %v7800_v43 = vld [vmem:[%s15995_s14 + $0x160] sm:$0xff] }
 0xd6e   :  { %7206 = vrot.lane.b32.xlu1 %v7199_v49, %s12931_s5  ;;  %7662 = vrot.lane.b32.xlu0 %v7656_v16, %s12937_s26  ;;  %v7797_v49 = vld [vmem:[%s15995_s14 + $0x148] sm:$0xff]  ;;  %v7799_v16 = vld [vmem:[%s15995_s14 + $0x158] sm:$0xff] }
 0xd72   :  { %7474 = vrot.lane.b32.xlu1 %v7467_v44, %s12939_s28  ;;  %7746 = vperm.xlu0 %12876, %v12034_v47   ;;  %v7796_v47 = vld [vmem:[%s15995_s14 + $0x140] sm:$0xff]  ;;  %v7798_v44 = vld [vmem:[%s15995_s14 + $0x150] sm:$0xff] }
 0xd76   :  { %7569 = vrot.lane.b32.xlu1 %v7562_v41, %s12938_s1  ;;  %v7793_v41 = vld [vmem:[%s15995_s14 + $0x128] sm:$0xff] }
 0xd7a   :  { %7664 = vrot.lane.b32.xlu1 %v7657_v54, %s12937_s26  ;;  %v7795_v54 = vld [vmem:[%s15995_s14 + $0x138] sm:$0xff] }
 0xdd4   :  { %v6937_v56 = vpop.permute.xlu1 %6936  ;;  %v7378_v32 = vpop.permute.xlu0 %7377 }
 0xdd5   :  { %v6938_v37 = vsel %vm2486_vm12, %v6935_v40, %v6937_v56  ;;  %v7381_v60 = vsel %vm771_vm3, %v7378_v32, %v7380_v18  ;;  %v7792_v40 = vld [vmem:[%s15995_s14 + $0x120] sm:$0xff]  ;;  %v7791_v18 = vld [vmem:[%s15995_s14 + $0x118] sm:$0xff]  ;;  %v7790_v56 = vld [vmem:[%s15995_s14 + $0x110] sm:$0xff] }
 0xdd6   :  { %12814 = vmatpush3.msra.mxu1 %v6938_v37  ;;  %v7787_v37 = vld [vmem:[%s15995_s14 + $0xf8] sm:$0xff] }
 0xdd7   :  { %12816 = vmatmul.mubr.msk.f32.vlgmr.msra.gmra.mxu1 %vm2486_vm12, %v12011_v34  ;;  %12818 = vmatprep.subr.mxu1 %v14606_v50  ;;  %v7785_v34 = vld [vmem:[%s15995_s14 + $0xe8] sm:$0xff]  ;;  %v7783_v32 = vld [vmem:[%s15995_s14 + $0xd8] sm:$0xff] }
 0xdd8   :  { %v7018_v22 = vpop.permute.xlu1 %7017  ;;  %12820 = vmatprep.mubr.msk.f32.mxu1 %vm12943_vm7, %v14606_v50  ;;  %v7473_v58 = vpop.permute.xlu0 %7472 }
 0xdd9   :  { %v7019_v57 = vsel %vm2568_vm10, %v7016_v52, %v7018_v22  ;;  %v7794_v52 = vld [vmem:[%s15995_s14 + $0x130] sm:$0xff]  ;;  %v7784_v22 = vld [vmem:[%s15995_s14 + $0xe0] sm:$0xff] }
 0xdda   :  { %12819 = vmatpush3.msra.mxu1 %v7019_v57  ;;  %v7781_v57 = vld [vmem:[%s15995_s14 + $0xc8] sm:$0xff] }
 0xddb   :  { %12821 = vmatmul.mubr.msk.f32.vlgmr.msra.gmra.mxu1 %vm2486_vm12, %v6918_v36  ;;  %12828 = vmatprep.subr.mxu1 %v14606_v50  ;;  %v7786_v36 = vld [vmem:[%s15995_s14 + $0xf0] sm:$0xff] }
 0xddc   :  { %v7112_v35 = vpop.permute.xlu1 %7111  ;;  %12830 = vmatprep.mubr.msk.f32.mxu1 %vm12943_vm7, %v14606_v50  ;;  %v7568_v48 = vpop.permute.xlu0 %7567 }
 0xddd   :  { %v7113_v55 = vsel %vm2663_vm14, %v7110_v51, %v7112_v35  ;;  %v7789_v51 = vld [vmem:[%s15995_s14 + $0x108] sm:$0xff]  ;;  %v7780_v35 = vld [vmem:[%s15995_s14 + $0xc0] sm:$0xff] }
 0xdde   :  { %12824 = vmatpush3.msra.mxu0 %v7113_v55  ;;  %v7777_v55 = vld [vmem:[%s15995_s14 + $0xa8] sm:$0xff] }
 0xddf   :  { %12826 = vmatmul.mubr.msk.f32.vlgmr.msra.gmra.mxu0 %vm2486_vm12, %v12015_v26  ;;  %12833 = vmatprep.subr.mxu0 %v14606_v50  ;;  %v7782_v26 = vld [vmem:[%s15995_s14 + $0xd0] sm:$0xff] }
 0xde0   :  { %12834 = vmatpush3.msra.mxu0 %v14787_v20  ;;  %v7207_v59 = vpop.permute.xlu1 %7206  ;;  %12835 = vmatprep.mubr.msk.f32.mxu0 %vm12943_vm7, %v14606_v50  ;;  %v7663_v0 = vpop.permute.xlu0 %7662 }
 0xde1   :  { %v7208_v63 = vsel %vm802_vm4, %v7205_v46, %v7207_v59  ;;  %12843 = vmatprep.subr.mxu0 %v14606_v50  ;;  %v7788_v46 = vld [vmem:[%s15995_s14 + $0x100] sm:$0xff] }
 0xde2   :  { %12829 = vmatpush3.msra.mxu1 %v7208_v63  ;;  %v7776_v59 = vld [vmem:[%s15995_s14 + $0xa0] sm:$0xff]  ;;  %v7773_v63 = vld [vmem:[%s15995_s14 + $0x88] sm:$0xff] }
 0xde3   :  { %12831 = vmatmul.mubr.msk.f32.vlgmr.msra.gmra.mxu1 %vm2486_vm12, %v12018_v39  ;;  %12838 = vmatprep.subr.mxu1 %v14606_v50  ;;  %v7778_v39 = vld [vmem:[%s15995_s14 + $0xb0] sm:$0xff] }
 0xde4   :  { %12839 = vmatpush3.msra.mxu1 %v7381_v60  ;;  %v7475_v61 = vpop.permute.xlu1 %7474  ;;  %12836 = vmatmul.mubr.msk.f32.vlgmr.msra.gmra.mxu0 %vm2486_vm12, %v12020_v30  ;;  %v7775_v30 = vld [vmem:[%s15995_s14 + $0x98] sm:$0xff]  ;;  %v7772_v60 = vld [vmem:[%s15995_s14 + $0x80] sm:$0xff] }
 0xde5   :  { %v7476_v38 = vsel %vm3027_vm5, %v7473_v58, %v7475_v61  ;;  %12840 = vmatprep.mubr.msk.f32.mxu1 %vm12943_vm7, %v14606_v50  ;;  %12845 = vmatprep.mubr.msk.f32.mxu0 %vm12943_vm7, %v14606_v50  ;;  %v7779_v58 = vld [vmem:[%s15995_s14 + $0xb8] sm:$0xff]  ;;  %v7774_v61 = vld [vmem:[%s15995_s14 + $0x90] sm:$0xff] }
 0xde6   :  { %12844 = vmatpush3.msra.mxu0 %v7476_v38  ;;  %12848 = vmatprep.subr.mxu1 %v14606_v50  ;;  %v7771_v38 = vld [vmem:[%s15995_s14 + $0x78] sm:$0xff] }
 0xde7   :  { %12841 = vmatmul.mubr.msk.f32.vlgmr.msra.gmra.mxu1 %vm2486_vm12, %v12023_v62  ;;  %12853 = vmatprep.subr.mxu0 %v14606_v50  ;;  %v7769_v62 = vld [vmem:[%s15995_s14 + $0x68] sm:$0xff] }
 0xde8   :  { %v7570_v25 = vpop.permute.xlu1 %7569  ;;  %12846 = vmatmul.mubr.msk.f32.vlgmr.msra.gmra.mxu0 %vm2486_vm12, %v12026_v9  ;;  %12850 = vmatprep.mubr.msk.f32.mxu1 %vm12943_vm7, %v14606_v50  ;;  %v7768_v9 = vld [vmem:[%s15995_s14 + $0x60] sm:$0xff] }
 0xde9   :  { %v7571_v12 = vsel %vm3123_vm15, %v7568_v48, %v7570_v25  ;;  %12855 = vmatprep.mubr.msk.f32.mxu0 %vm12943_vm7, %v14606_v50  ;;  %v7770_v48 = vld [vmem:[%s15995_s14 + $0x70] sm:$0xff]  ;;  %v7765_v25 = vld [vmem:[%s15995_s14 + $0x48] sm:$0xff]  ;;  %vm16041_vm15 = vcmask 121856  }
 0xdea   :  { %12849 = vmatpush3.msra.mxu1 %v7571_v12  ;;  %v7764_v12 = vld [vmem:[%s15995_s14 + $0x40] sm:$0xff]  ;;  %vm16043_vm9 = vmmov %vm16041_vm15 }
 0xdeb   :  { %12851 = vmatmul.mubr.msk.f32.vlgmr.msra.gmra.mxu1 %vm2486_vm12, %v12029_v29  ;;  %7820 = vmatprep.subr.mxu1 %v7817_v3  ;;  %v7767_v29 = vld [vmem:[%s15995_s14 + $0x58] sm:$0xff]  ;;  %v7762_v3 = vld [vmem:[%s15995_s14 + $0x30] sm:$0xff]  ;;  %vm16044_vm13 = vmmov %vm16043_vm9 }
 0xdec   :  { %v7665_v2 = vpop.permute.xlu1 %7664  ;;  %7884 = vmatprep.mubr.f32.mxu1 %v14606_v50  ;;  %7821 = vmatpush1.msra.mxu1 %v7816_v21  ;;  %v7759_v21 = vld [vmem:[%s15995_s14 + $0x18] sm:$0xff] }
 0xded   :  { %v7666_v1 = vsel %vm3219_vm8, %v7663_v0, %v7665_v2  ;;  %v7766_v0 = vld [vmem:[%s15995_s14 + $0x50] sm:$0xff]  ;;  %v7761_v2 = vld [vmem:[%s15995_s14 + $0x28] sm:$0xff]  ;;  %vm16042_vm8 = vcmask 138240  }
 0xdee   :  { %12854 = vmatpush3.msra.mxu0 %v7666_v1  ;;  %v7760_v1 = vld [vmem:[%s15995_s14 + $0x20] sm:$0xff]  ;;  %vm16045_vm11 = vmmov %vm16042_vm8 }
 0xdef   :  { %12856 = vmatmul.mubr.msk.f32.vlgmr.msra.gmra.mxu0 %vm2486_vm12, %v12032_v33  ;;  %7897 = vmatprep.subr.mxu0 %v7819_v8  ;;  %v7763_v33 = vld [vmem:[%s15995_s14 + $0x38] sm:$0xff]  ;;  %v7757_v8 = vld [vmem:[%s15995_s14 + $0x8] sm:$0xff] }
 0xdf0   :  { %7961 = vmatprep.mubr.f32.mxu0 %v14606_v50  ;;  %7898 = vmatpush1.msra.mxu0 %v7818_v10  ;;  %v7813_v50 = vld [vmem:[%s15995_s14 + $0x1c8] sm:$0xff]  ;;  %v7756_v10 = vld [vmem:[%s15995_s14] sm:$0xff] }
 0xdf1   :  { %7822 = vmatprep.subr.mxu1 %v7813_v50  ;;  %7899 = vmatprep.subr.mxu0 %v7815_v11  ;;  %v7758_v50 = vld [vmem:[%s15995_s14 + $0x10] sm:$0xff] }
 0xdf2   :  { %7823 = vmatpush1.msra.mxu1 %v7812_v13  ;;  %7900 = vmatpush1.msra.mxu0 %v7814_v14  ;;  %v12040_v11 = vld [vmem:[%s16028_s20 + $0x1] ss:$8 sm:$0xf] }
 0xdf3   :  { %7824 = vmatprep.subr.mxu1 %v7809_v15  ;;  %7901 = vmatprep.subr.mxu0 %v7811_v17  ;;  %v8067_v13 = vrot.slane %v12040_v11, %v13055_v4  ;;  %v8071_v14 = vrot.slane %v12040_v11, %v13061_v7  ;;  %v8075_v15 = vrot.slane %v12040_v11, %v13057_v5 }
 0xdf4   :  { %7825 = vmatpush1.msra.mxu1 %v7808_v19  ;;  %7902 = vmatpush1.msra.mxu0 %v7810_v23  ;;  %v8079_v17 = vrot.slane %v12040_v11, %v13059_v6  ;;  %v8021_v19 = vld [vmem:[%s16028_s20] ss:$8 sm:$0xf] }
 0xdf5   :  { %7826 = vmatprep.subr.mxu1 %v7805_v53  ;;  %7903 = vmatprep.subr.mxu0 %v7807_v24  ;;  %v8026_v23 = vrot.slane %v8021_v19, %v13055_v4  ;;  %v8030_v53 = vrot.slane %v8021_v19, %v13061_v7  ;;  %v8034_v24 = vrot.slane %v8021_v19, %v13057_v5 }
 0xdf6   :  { %7827 = vmatpush1.msra.mxu1 %v7804_v27  ;;  %7904 = vmatpush1.msra.mxu0 %v7806_v28  ;;  %v8038_v27 = vrot.slane %v8021_v19, %v13059_v6  ;;  %v12046_v28 = vld [vmem:[%s16028_s20 + $0x2] ss:$8 sm:$0xf] }
 0xdf7   :  { %7828 = vmatprep.subr.mxu1 %v7801_v31  ;;  %7905 = vmatprep.subr.mxu0 %v7803_v42  ;;  %v8444_v31 = vrot.slane %v12046_v28, %v13055_v4  ;;  %v8448_v42 = vrot.slane %v12046_v28, %v13061_v7 }
 0xdf8   :  { %7829 = vmatpush1.msra.mxu1 %v7800_v43  ;;  %7906 = vmatpush1.msra.mxu0 %v7802_v45  ;;  %v8452_v43 = vrot.slane %v12046_v28, %v13057_v5  ;;  %v8456_v45 = vrot.slane %v12046_v28, %v13059_v6  ;;  %v15161_v28 = vld [vmem:[#allocation2 + $0x28] sm:$0xff] }
 0xdf9   :  { %7830 = vmatprep.subr.mxu1 %v7797_v49  ;;  %7907 = vmatprep.subr.mxu0 %v7799_v16  ;;  %v12050_v49 = vld [vmem:[%s16028_s20 + $0x3] ss:$8 sm:$0xf] }
 0xdfa   :  { %7831 = vmatpush1.msra.mxu1 %v7796_v47  ;;  %7908 = vmatpush1.msra.mxu0 %v7798_v44  ;;  %v8657_v16 = vrot.slane %v12050_v49, %v13055_v4  ;;  %v8661_v47 = vrot.slane %v12050_v49, %v13061_v7  ;;  %v8665_v44 = vrot.slane %v12050_v49, %v13057_v5 }
 0xdfb   :  { %7832 = vmatprep.subr.mxu1 %v7793_v41  ;;  %7909 = vmatprep.subr.mxu0 %v7795_v54  ;;  %v8669_v41 = vrot.slane %v12050_v49, %v13059_v6  ;;  %v12057_v54 = vld [vmem:[%s16028_s20 + $0x5] ss:$8 sm:$0xf] }
 0xdfc   :  { %7833 = vmatpush1.msra.mxu1 %v7792_v40  ;;  %7910 = vmatpush1.msra.mxu0 %v7794_v52  ;;  %v9026_v40 = vrot.slane %v12057_v54, %v13055_v4  ;;  %v9030_v52 = vrot.slane %v12057_v54, %v13061_v7 }
 0xdfd   :  { %7834 = vmatprep.subr.mxu1 %v7789_v51  ;;  %7911 = vmatprep.subr.mxu0 %v7791_v18  ;;  %v9034_v51 = vrot.slane %v12057_v54, %v13057_v5  ;;  %v9038_v18 = vrot.slane %v12057_v54, %v13059_v6  ;;  %v7755_v54 = vld [vmem:[#allocation3 + $0x20] sm:$0xff] }
 0xdfe   :  { %7835 = vmatpush1.msra.mxu1 %v7788_v46  ;;  %7912 = vmatpush1.msra.mxu0 %v7790_v56  ;;  %v12061_v46 = vld [vmem:[%s16028_s20 + $0x6] ss:$8 sm:$0xf] }
 0xdff   :  { %7836 = vmatprep.subr.mxu1 %v7785_v34  ;;  %7913 = vmatprep.subr.mxu0 %v7787_v37  ;;  %v9239_v56 = vrot.slane %v12061_v46, %v13055_v4  ;;  %v9243_v34 = vrot.slane %v12061_v46, %v13061_v7  ;;  %v9247_v37 = vrot.slane %v12061_v46, %v13057_v5 }
 0xe00   :  { %7837 = vmatpush1.msra.mxu1 %v7784_v22  ;;  %7914 = vmatpush1.msra.mxu0 %v7786_v36  ;;  %v9251_v22 = vrot.slane %v12061_v46, %v13059_v6  ;;  %v12065_v36 = vld [vmem:[%s16028_s20 + $0x7] ss:$8 sm:$0xf] }
 0xe01   :  { %7838 = vmatprep.subr.mxu1 %v7781_v57  ;;  %7915 = vmatprep.subr.mxu0 %v7783_v32  ;;  %v9452_v57 = vrot.slane %v12065_v36, %v13055_v4  ;;  %v9456_v32 = vrot.slane %v12065_v36, %v13061_v7 }
 0xe02   :  { %7839 = vmatpush1.msra.mxu1 %v7780_v35  ;;  %7916 = vmatpush1.msra.mxu0 %v7782_v26  ;;  %v9460_v35 = vrot.slane %v12065_v36, %v13057_v5  ;;  %v9464_v26 = vrot.slane %v12065_v36, %v13059_v6 }
 0xe03   :  { %7840 = vmatprep.subr.mxu1 %v7777_v55  ;;  %7917 = vmatprep.subr.mxu0 %v7779_v58  ;;  %v12069_v55 = vld [vmem:[%s16028_s20 + $0x20] ss:$8 sm:$0xf] }
 0xe04   :  { %7841 = vmatpush1.msra.mxu1 %v7776_v59  ;;  %7918 = vmatpush1.msra.mxu0 %v7778_v39  ;;  %v9665_v58 = vrot.slane %v12069_v55, %v13055_v4  ;;  %v9669_v59 = vrot.slane %v12069_v55, %v13061_v7  ;;  %v9673_v39 = vrot.slane %v12069_v55, %v13057_v5 }
 0xe05   :  { %7842 = vmatprep.subr.mxu1 %v7773_v63  ;;  %7919 = vmatprep.subr.mxu0 %v7775_v30  ;;  %v9677_v63 = vrot.slane %v12069_v55, %v13059_v6 }
 0xe06   :  { %7843 = vmatpush1.msra.mxu1 %v7772_v60  ;;  %7920 = vmatpush1.msra.mxu0 %v7774_v61 }
 0xe07   :  { %7844 = vmatprep.subr.mxu1 %v7769_v62  ;;  %7921 = vmatprep.subr.mxu0 %v7771_v38 }
 0xe08   :  { %7845 = vmatpush1.msra.mxu1 %v7768_v9  ;;  %7922 = vmatpush1.msra.mxu0 %v7770_v48 }
 0xe09   :  { %7846 = vmatprep.subr.mxu1 %v7765_v25  ;;  %7923 = vmatprep.subr.mxu0 %v7767_v29 }
 0xe0a   :  { %7847 = vmatpush1.msra.mxu1 %v7764_v12  ;;  %7924 = vmatpush1.msra.mxu0 %v7766_v0 }
 0xe0b   :  { %7848 = vmatprep.subr.mxu1 %v7761_v2  ;;  %7925 = vmatprep.subr.mxu0 %v7763_v33 }
 0xe0c   :  { %7849 = vmatpush1.msra.mxu1 %v7760_v1  ;;  %7926 = vmatpush1.msra.mxu0 %v7762_v3 }
 0xe0d   :  { %7850 = vmatprep.subr.mxu1 %v7757_v8  ;;  %7927 = vmatprep.subr.mxu0 %v7759_v21 }
 0xe0e   :  { %7851 = vmatpush1.msra.mxu1 %v7756_v10  ;;  %7928 = vmatpush1.msra.mxu0 %v7758_v50 }
 0xe0f   :  { %8080 = vrot.lane.b32.xlu1 %v8067_v13, %s12927_s24  ;;  %8082 = vrot.lane.b32.xlu0 %v8071_v14, %s12927_s24 }
 0xe13   :  { %8084 = vrot.lane.b32.xlu1 %v8075_v15, %s12927_s24  ;;  %8086 = vrot.lane.b32.xlu0 %v8079_v17, %s12927_s24  ;;  %v7747_v15 = vpop.permute.xlu0 %7746 }
 0xe17   :  { %8039 = vrot.lane.b32.xlu1 %v8026_v23, %s16038_s18  ;;  %8041 = vrot.lane.b32.xlu0 %v8030_v53, %s16038_s18 }
 0xe1b   :  { %8043 = vrot.lane.b32.xlu1 %v8034_v24, %s16038_s18  ;;  %8045 = vrot.lane.b32.xlu0 %v8038_v27, %s16038_s18 }
 0xe1f   :  { %8457 = vrot.lane.b32.xlu1 %v8444_v31, %s16032_s11  ;;  %8459 = vrot.lane.b32.xlu0 %v8448_v42, %s16032_s11 }
 0xe23   :  { %8461 = vrot.lane.b32.xlu1 %v8452_v43, %s16032_s11  ;;  %8463 = vrot.lane.b32.xlu0 %v8456_v45, %s16032_s11 }
 0xe27   :  { %8670 = vrot.lane.b32.xlu1 %v8657_v16, %s16033_s22  ;;  %8672 = vrot.lane.b32.xlu0 %v8661_v47, %s16033_s22 }
 0xe2b   :  { %8674 = vrot.lane.b32.xlu1 %v8665_v44, %s16033_s22  ;;  %8676 = vrot.lane.b32.xlu0 %v8669_v41, %s16033_s22 }
 0xe2f   :  { %9039 = vrot.lane.b32.xlu1 %v9026_v40, %s12931_s5  ;;  %9041 = vrot.lane.b32.xlu0 %v9030_v52, %s12931_s5 }
 0xe33   :  { %9043 = vrot.lane.b32.xlu1 %v9034_v51, %s12931_s5  ;;  %9045 = vrot.lane.b32.xlu0 %v9038_v18, %s12931_s5 }
 0xe37   :  { %9252 = vrot.lane.b32.xlu1 %v9239_v56, %s16039_s8  ;;  %9254 = vrot.lane.b32.xlu0 %v9243_v34, %s16039_s8 }
 0xe3b   :  { %9256 = vrot.lane.b32.xlu1 %v9247_v37, %s16039_s8  ;;  %9258 = vrot.lane.b32.xlu0 %v9251_v22, %s16039_s8 }
 0xe3f   :  { %9465 = vrot.lane.b32.xlu1 %v9452_v57, %s16034_s16  ;;  %9467 = vrot.lane.b32.xlu0 %v9456_v32, %s16034_s16 }
 0xe43   :  { %9469 = vrot.lane.b32.xlu1 %v9460_v35, %s16034_s16  ;;  %9471 = vrot.lane.b32.xlu0 %v9464_v26, %s16034_s16 }
 0xe47   :  { %9678 = vrot.lane.b32.xlu1 %v9665_v58, %s16040_s0  ;;  %9680 = vrot.lane.b32.xlu0 %v9669_v59, %s16040_s0 }
 0xe4b   :  { %9682 = vrot.lane.b32.xlu1 %v9673_v39, %s16040_s0  ;;  %9684 = vrot.lane.b32.xlu0 %v9677_v63, %s16040_s0  ;;  %v7974_v63 = vld [vmem:[%s15996_s9] sm:$0xf] }
 0xe81   :  { %v15159_v24 = vpop.permute.xlu1 %8080  ;;  %v15165_v42 = vpop.permute.xlu0 %8082 }
 0xe82   :  { %v8096_v31 = vmul.f32 %v15161_v28, %v15159_v24 }
 0xe84   :  { %8108 = vrot.lane.b32.xlu1 %v8096_v31, %s16034_s16 }
 0xe85   :  { %v15168_v45 = vpop.permute.xlu1 %8084  ;;  %v15171_v16 = vpop.permute.xlu0 %8086 }
 0xe89   :  { %v8040_v47 = vpop.permute.xlu1 %8039  ;;  %v15176_v41 = vpop.permute.xlu0 %8041 }
 0xe8a   :  { %v8055_v44 = vmul.f32 %v15161_v28, %v8040_v47 }
 0xe8c   :  { %8276 = vrot.lane.b32.xlu0 %v8055_v44, %s16040_s0 }
 0xe8d   :  { %v15178_v40 = vpop.permute.xlu1 %8043 }
 0xe91   :  { %v8458_v52 = vpop.permute.xlu1 %8457 }
 0xe92   :  { %v8473_v51 = vmul.f32 %v15161_v28, %v8458_v52 }
 0xe94   :  { %8485 = vrot.lane.b32.xlu1 %v8473_v51, %s16039_s8 }
 0xe95   :  { %v15189_v46 = vpop.permute.xlu1 %8461 }
 0xe97   :  { %v7009_v30 = vpop.f32.mrf.mxu1 }
 0xe99   :  { %v12817_v60 = vpop.f32.mrf.mxu1  ;;  %v8671_v34 = vpop.permute.xlu1 %8670 }
 0xe9a   :  { %v8686_v37 = vmul.f32 %v15161_v28, %v8671_v34 }
 0xe9b   :  { %v7090_v61 = vpop.f32.mrf.mxu1 }
 0xe9c   :  { %v7091_v38 = vadd.f32 %v7090_v61, %v7009_v30  ;;  %8698 = vrot.lane.b32.xlu0 %v8686_v37, %s12931_s5  ;;  %v7979_v61 = vrot.slane %v7974_v63, %v13055_v4 }
 0xe9d   :  { %v12822_v62 = vpop.f32.mrf.mxu1  ;;  %v15213_v59 = vpop.permute.xlu1 %8674 }
 0xe9e   :  { %v7987_v62 = vrot.slane %v7974_v63, %v13057_v5 }
 0xe9f   :  { %v7184_v9 = vpop.f32.mrf.mxu0 }
 0xea0   :  { %v7188_v25 = vadd.f32 %v7184_v9, %v7091_v38 }
 0xea1   :  { %v12827_v48 = vpop.f32.mrf.mxu0  ;;  %v15215_v39 = vpop.permute.xlu1 %9039 }
 0xea3   :  { %v7279_v29 = vpop.f32.mrf.mxu1 }
 0xea4   :  { %v7283_v12 = vadd.f32 %v7279_v29, %v7188_v25  ;;  %v7355_v0 = vpop.f32.mrf.mxu0 }
 0xea5   :  { %v12832_v2 = vpop.f32.mrf.mxu1  ;;  %v15222_v48 = vpop.permute.xlu1 %9043 }
 0xea6   :  { %v7359_v33 = vadd.f32 %v7355_v0, %v7283_v12  ;;  %v12837_v1 = vpop.f32.mrf.mxu0 }
 0xea7   :  { %v7452_v3 = vpop.f32.mrf.mxu1  ;;  %v8047_v1 = vsel %vm118_vm1, %v8040_v47, %v15176_v41 }
 0xea8   :  { %v7456_v8 = vadd.f32 %v7452_v3, %v7359_v33  ;;  %v7547_v21 = vpop.f32.mrf.mxu0  ;;  %v8088_v33 = vsel %vm160_vm0, %v15159_v24, %v15165_v42  ;;  %v7983_v24 = vrot.slane %v7974_v63, %v13061_v7 }
 0xea9   :  { %v12842_v10 = vpop.f32.mrf.mxu1  ;;  %v15233_v3 = vpop.permute.xlu1 %9252 }
 0xeaa   :  { %v7551_v50 = vadd.f32 %v7547_v21, %v7456_v8  ;;  %v12847_v11 = vpop.f32.mrf.mxu0 }
 0xeab   :  { %v7642_v13 = vpop.f32.mrf.mxu1 }
 0xeac   :  { %v7646_v17 = vadd.f32 %v7642_v13, %v7551_v50  ;;  %v8090_v50 = vsel %vm160_vm0, %v15168_v45, %v15171_v16 }
 0xead   :  { %v12852_v14 = vpop.f32.mrf.mxu1 }
 0xeaf   :  { %v7737_v19 = vpop.f32.mrf.mxu0 }
 0xeb0   :  { %v7741_v23 = vadd.f32 %v7737_v19, %v7646_v17 }
 0xeb1   :  { %v12857_v53 = vpop.f32.mrf.mxu0 }
 0xeb2   :  { %v7749_v27 = vadd.f32 %v7747_v15, %v7741_v23  ;;  %v15249_v15 = vpop.permute.xlu1 %9256 }
 0xeb4   :  { %v7750_v43 = vmax.f32 %v7749_v27, 0.0 }
 0xeb6   :  { %v7751_v49 = vadd.f32 %v7750_v43, %v14787_v20  ;;  %v15182_v20 = vpop.permute.xlu0 %8045 }
 0xeb7   :  { %v8049_v11 = vsel %vm118_vm1, %v15178_v40, %v15182_v20 }
 0xeb8   :  { %7752 = vst [vmem:[#allocation3] sm:$0xff] %v7751_v49  ;;  %7885 = vmatmul.mubr.f32.vlgmr.msra.gmra.mxu1 %v7751_v49  ;;  %7962 = vmatmul.mubr.f32.vlgmr.msra.gmra.mxu0 %v7751_v49  ;;  %v15268_v49 = vpop.permute.xlu1 %9465 }
 0xeb9   :  { %7890 = vmatprep.mubr.f32.mxu1 %v15161_v28  ;;  %7967 = vmatprep.mubr.f32.mxu0 %v15161_v28 }
 0xeba   :  { %v15186_v18 = vpop.permute.xlu0 %8459 }
 0xebb   :  { %v8465_v17 = vsel %vm551_vm2, %v8458_v52, %v15186_v18 }
 0xebc   :  { %7891 = vmatmul.mubr.f32.gmra.mxu1 %v7755_v54  ;;  %7968 = vmatmul.mubr.f32.gmra.mxu0 %v7755_v54  ;;  %v7991_v54 = vrot.slane %v7974_v63, %v13059_v6 }
 0xebd   :  { %8193 = vmatprep.mubr.f32.mxu1 %v15161_v28  ;;  %8264 = vmatprep.mubr.f32.mxu0 %v15161_v28 }
 0xebe   :  { %v15191_v56 = vpop.permute.xlu0 %8463 }
 0xebf   :  { %v8467_v27 = vsel %vm551_vm2, %v15189_v46, %v15191_v56 }
 0xec2   :  { %v15194_v22 = vpop.permute.xlu0 %8672 }
 0xec3   :  { %v8678_v19 = vsel %vm771_vm3, %v8671_v34, %v15194_v22 }
 0xec6   :  { %v15197_v36 = vpop.permute.xlu0 %8676 }
 0xec7   :  { %v8680_v31 = vsel %vm771_vm3, %v15213_v59, %v15197_v36 }
 0xeca   :  { %v15199_v57 = vpop.permute.xlu0 %9041 }
 0xecb   :  { %v9048_v52 = vsel %vm802_vm4, %v15199_v57, %v15222_v48 }
 0xece   :  { %v15201_v32 = vpop.permute.xlu0 %9045 }
 0xecf   :  { %v9059_v35 = vmul.f32 %v15161_v28, %v15201_v32 }
 0xed1   :  { %9075 = vrot.lane.b32.xlu0 %v9059_v35, %s16033_s22 }
 0xed2   :  { %v15206_v26 = vpop.permute.xlu0 %9254 }
 0xed3   :  { %v9261_v63 = vsel %vm16041_vm15, %v15206_v26, %v15249_v15 }
 0xed6   :  { %v15208_v55 = vpop.permute.xlu0 %9258 }
 0xed7   :  { %v9272_v58 = vmul.f32 %v15161_v28, %v15208_v55 }
 0xed9   :  { %9288 = vrot.lane.b32.xlu1 %v9272_v58, %s16032_s11  ;;  %v15282_v58 = vpop.permute.xlu1 %9469 }
 0xf78   :  { %v7886_v30 = vpop.f32.mrf.mxu1  ;;  %v7963_v60 = vpop.f32.mrf.mxu0 }
 0xf7a   :  { %v7888_v38 = vpop.f32.mrf.mxu1  ;;  %v7965_v9 = vpop.f32.mrf.mxu0 }
 0xf7c   :  { %v7892_v25 = vpop.f32.mrf.mxu1  ;;  %v7969_v29 = vpop.f32.mrf.mxu0 }
 0xf7d   :  { %vm7996_vm7 = vcmp.eq.f32.partialorder %v7979_v61, %v7892_v25  ;;  %vm7998_vm10 = vcmp.eq.f32.partialorder %v7987_v62, %v7969_v29  ;;  %v8089_v29 = vsel %vm160_vm0, %v15165_v42, %v15168_v45 }
 0xf7e   :  { %v12035_v12 = vsel %vm7996_vm7, 1.0, %v15161_v28  ;;  %v12037_v2 = vsel %vm7998_vm10, 1.0, %v15161_v28  ;;  %v7894_v43 = vpop.f32.mrf.mxu1  ;;  %v7971_v51 = vpop.f32.mrf.mxu0  ;;  %vm16046_vm7 = vmmov %vm16042_vm8 }
 0xf7f   :  { %v15225_v0 = vmul.f32 %v12035_v12, %v7886_v30  ;;  %v15235_v8 = vmul.f32 %v12037_v2, %v7963_v60  ;;  %vm7997_vm14 = vcmp.eq.f32.partialorder %v7983_v24, %v7894_v43  ;;  %vm7999_vm5 = vcmp.eq.f32.partialorder %v7991_v54, %v7971_v51  ;;  %v9468_v30 = vpop.permute.xlu0 %9467  ;;  %v9679_v2 = vpop.permute.xlu1 %9678  ;;  %v12073_v54 = vld [vmem:[%s16030_s27 + $0x20] sm:$0xff]  ;;  %vm16047_vm10 = vmmov %vm16046_vm7 }
 0xf80   :  { %v12036_v35 = vsel %vm7997_vm14, 1.0, %v15161_v28  ;;  %v12038_v25 = vsel %vm7999_vm5, 1.0, %v15161_v28  ;;  %vm16048_vm14 = vmmov %vm16046_vm7 }
 0xf81   :  { %v8097_v21 = vmul.f32 %v8088_v33, %v15225_v0  ;;  %v8056_v10 = vmul.f32 %v8047_v1, %v15225_v0  ;;  %v8099_v13 = vmul.f32 %v8090_v50, %v15235_v8  ;;  %v8058_v14 = vmul.f32 %v8049_v11, %v15235_v8  ;;  %vm16049_vm5 = vmmov %vm16046_vm7 }
 0xf82   :  { %v8474_v23 = vmul.f32 %v8465_v17, %v15225_v0  ;;  %v8687_v53 = vmul.f32 %v8678_v19, %v15225_v0  ;;  %v8476_v47 = vmul.f32 %v8467_v27, %v15235_v8  ;;  %v8689_v44 = vmul.f32 %v8680_v31, %v15235_v8  ;;  %vm16050_vm15 = vmmov %vm16049_vm5 }
 0xf83   :  { %8110 = vrot.lane.b32.xlu1 %v8097_v21, %s16034_s16  ;;  %8278 = vrot.lane.b32.xlu0 %v8056_v10, %s16040_s0  ;;  %v9055_v34 = vmul.f32 %v15215_v39, %v15225_v0  ;;  %v9057_v37 = vmul.f32 %v9048_v52, %v15235_v8  ;;  %v15289_v60 = vmul.f32 %v12036_v35, %v7888_v38  ;;  %v9472_v21 = vpop.permute.xlu0 %9471  ;;  %v9683_v45 = vpop.permute.xlu1 %9682 }
 0xf84   :  { %v9270_v61 = vmul.f32 %v9261_v63, %v15235_v8  ;;  %v9268_v62 = vmul.f32 %v15233_v3, %v15225_v0  ;;  %v8048_v38 = vsel %vm118_vm1, %v15176_v41, %v15178_v40  ;;  %v15303_v12 = vmul.f32 %v12038_v25, %v7965_v9 }
 0xf85   :  { %v8098_v33 = vmul.f32 %v8089_v29, %v15289_v60  ;;  %v8057_v1 = vmul.f32 %v8048_v38, %v15289_v60  ;;  %v8466_v41 = vsel %vm551_vm2, %v15186_v18, %v15189_v46  ;;  %v9481_v50 = vmul.f32 %v15268_v49, %v15225_v0  ;;  %v12084_v38 = vld [vmem:[%s16028_s20 + $0x3] ss:$8 sm:$0xf] }
 0xf86   :  { %v8100_v10 = vmul.f32 %v15171_v16, %v15303_v12  ;;  %v8059_v42 = vmul.f32 %v15182_v20, %v15303_v12  ;;  %v8475_v9 = vmul.f32 %v8466_v41, %v15289_v60  ;;  %v8477_v11 = vmul.f32 %v15191_v56, %v15303_v12 }
 0xf87   :  { %8114 = vrot.lane.b32.xlu1 %v8099_v13, %s16034_s16  ;;  %8282 = vrot.lane.b32.xlu0 %v8058_v14, %s16040_s0  ;;  %v9681_v40 = vpop.permute.xlu0 %9680  ;;  %v9474_v18 = vsel %vm191_vm6, %v9468_v30, %v15282_v58  ;;  %v8679_v46 = vsel %vm771_vm3, %v15194_v22, %v15213_v59  ;;  %v9485_v56 = vmul.f32 %v15161_v28, %v9472_v21  ;;  %v8109_v41 = vpop.permute.xlu1 %8108 }
 0xf88   :  { %v9687_v16 = vsel %vm16042_vm8, %v9681_v40, %v9683_v45  ;;  %v9483_v13 = vmul.f32 %v9474_v18, %v15235_v8  ;;  %v8688_v14 = vmul.f32 %v8679_v46, %v15289_v60  ;;  %v8690_v17 = vmul.f32 %v15197_v36, %v15303_v12  ;;  %vm16051_vm8 = vmmov %vm16043_vm9 }
 0xf89   :  { %v9696_v20 = vmul.f32 %v9687_v16, %v15235_v8  ;;  %v9047_v22 = vsel %vm802_vm4, %v15215_v39, %v15199_v57  ;;  %v9260_v59 = vsel %vm16043_vm9, %v15233_v3, %v15206_v26  ;;  %v9049_v36 = vsel %vm802_vm4, %v15222_v48, %v15201_v32  ;;  %v12095_v16 = vld [vmem:[%s16028_s20 + $0x6] ss:$8 sm:$0xf]  ;;  %vm16052_vm9 = vmmov %vm16051_vm8 }
 0xf8a   :  { %v9269_v19 = vmul.f32 %v9260_v59, %v15289_v60  ;;  %v9262_v57 = vsel %vm16044_vm13, %v15249_v15, %v15208_v55  ;;  %v9058_v26 = vmul.f32 %v9049_v36, %v15303_v12  ;;  %v9473_v3 = vsel %vm191_vm6, %v15268_v49, %v9468_v30  ;;  %v12080_v30 = vld [vmem:[%s16028_s20 + $0x2] ss:$8 sm:$0xf]  ;;  %vm16053_vm13 = vmmov %vm16051_vm8 }
 0xf8b   :  { %8487 = vrot.lane.b32.xlu1 %v8474_v23, %s16039_s8  ;;  %8700 = vrot.lane.b32.xlu0 %v8687_v53, %s12931_s5  ;;  %v9056_v23 = vmul.f32 %v9047_v22, %v15289_v60  ;;  %v9271_v39 = vmul.f32 %v9262_v57, %v15303_v12  ;;  %v9686_v53 = vsel %vm16045_vm11, %v9679_v2, %v9681_v40  ;;  %v9685_v24 = vpop.permute.xlu0 %9684  ;;  %vm16054_vm11 = vmmov %vm16051_vm8 }
 0xf8c   :  { %v9695_v32 = vmul.f32 %v9686_v53, %v15289_v60  ;;  %v9482_v48 = vmul.f32 %v9473_v3, %v15289_v60  ;;  %v9475_v55 = vsel %vm191_vm6, %v15282_v58, %v9472_v21  ;;  %v9688_v15 = vsel %vm16046_vm7, %v9683_v45, %v9685_v24  ;;  %vm16055_vm7 = vmmov %vm16051_vm8 }
 0xf8d   :  { %v9484_v27 = vmul.f32 %v9475_v55, %v15303_v12  ;;  %v9697_v31 = vmul.f32 %v9688_v15, %v15303_v12  ;;  %v9694_v43 = vmul.f32 %v9679_v2, %v15225_v0  ;;  %v9698_v49 = vmul.f32 %v15161_v28, %v9685_v24 }
 0xf8e   :  { %v10327_v25 = vrot.slane %v12080_v30, %v13061_v7  ;;  %v10331_v29 = vrot.slane %v12080_v30, %v13057_v5  ;;  %v10335_v2 = vrot.slane %v12080_v30, %v13059_v6  ;;  %v10544_v21 = vrot.slane %v12084_v38, %v13057_v5 }
 0xf8f   :  { %8491 = vrot.lane.b32.xlu1 %v8476_v47, %s16039_s8  ;;  %8704 = vrot.lane.b32.xlu0 %v8689_v44, %s12931_s5  ;;  %v12074_v47 = vld [vmem:[%s16028_s20 + $0x1] ss:$8 sm:$0xf]  ;;  %v15431_v40 = vpop.permute.xlu0 %8276  ;;  %v11118_v46 = vrot.slane %v12095_v16, %v13055_v4  ;;  %v11130_v59 = vrot.slane %v12095_v16, %v13059_v6 }
 0xf90   :  { %v9946_v44 = vrot.slane %v12074_v47, %v13055_v4  ;;  %v9950_v52 = vrot.slane %v12074_v47, %v13061_v7  ;;  %v9954_v51 = vrot.slane %v12074_v47, %v13057_v5 }
 0xf93   :  { %9067 = vrot.lane.b32.xlu1 %v9055_v34, %s16033_s22  ;;  %9071 = vrot.lane.b32.xlu0 %v9057_v37, %s16033_s22  ;;  %v9901_v34 = vld [vmem:[%s16028_s20] ss:$8 sm:$0xf]  ;;  %v9958_v37 = vrot.slane %v12074_v47, %v13059_v6 }
 0xf94   :  { %v9906_v35 = vrot.slane %v9901_v34, %v13055_v4  ;;  %v9910_v58 = vrot.slane %v9901_v34, %v13061_v7  ;;  %v9914_v63 = vrot.slane %v9901_v34, %v13057_v5 }
 0xf97   :  { %9284 = vrot.lane.b32.xlu1 %v9270_v61, %s16032_s11  ;;  %9280 = vrot.lane.b32.xlu0 %v9268_v62, %s16032_s11  ;;  %v9918_v61 = vrot.slane %v9901_v34, %v13059_v6  ;;  %v10323_v62 = vrot.slane %v12080_v30, %v13055_v4  ;;  %v12039_v30 = vld [vmem:[%s15994_s3 + $0x48] sm:$0xff] }
 0xf9b   :  { %8112 = vrot.lane.b32.xlu0 %v8098_v33, %s16034_s16  ;;  %8280 = vrot.lane.b32.xlu1 %v8057_v1, %s16040_s0  ;;  %v10536_v33 = vrot.slane %v12084_v38, %v13055_v4  ;;  %v10540_v1 = vrot.slane %v12084_v38, %v13061_v7 }
 0xf9f   :  { %8116 = vrot.lane.b32.xlu0 %v8100_v10, %s16034_s16  ;;  %8284 = vrot.lane.b32.xlu1 %v8059_v42, %s16040_s0  ;;  %v12091_v10 = vld [vmem:[%s16028_s20 + $0x5] ss:$8 sm:$0xf]  ;;  %v10548_v42 = vrot.slane %v12084_v38, %v13059_v6 }
 0xfa0   :  { %v10905_v45 = vrot.slane %v12091_v10, %v13055_v4  ;;  %v10917_v18 = vrot.slane %v12091_v10, %v13059_v6 }
 0xfa3   :  { %8489 = vrot.lane.b32.xlu0 %v8475_v9, %s16039_s8  ;;  %9493 = vrot.lane.b32.xlu1 %v9481_v50, %s12927_s24  ;;  %v10909_v9 = vrot.slane %v12091_v10, %v13061_v7  ;;  %v10913_v50 = vrot.slane %v12091_v10, %v13057_v5 }
 0xfa7   :  { %8493 = vrot.lane.b32.xlu0 %v8477_v11, %s16039_s8  ;;  %9710 = vrot.lane.b32.xlu1 %v9696_v20, %s16038_s18  ;;  %v15440_v20 = vpop.permute.xlu1 %8485  ;;  %v15442_v11 = vpop.permute.xlu0 %8698 }
 0xfab   :  { %9497 = vrot.lane.b32.xlu0 %v9483_v13, %s12927_s24  ;;  %8702 = vrot.lane.b32.xlu1 %v8688_v14, %s12931_s5  ;;  %v15448_v13 = vpop.permute.xlu1 %9288  ;;  %v11122_v14 = vrot.slane %v12095_v16, %v13061_v7  ;;  %v15457_v22 = vpop.permute.xlu0 %9075 }
 0xfaf   :  { %9501 = vrot.lane.b32.xlu0 %v9485_v56, %s12927_s24  ;;  %8706 = vrot.lane.b32.xlu1 %v8690_v17, %s12931_s5  ;;  %v11126_v56 = vrot.slane %v12095_v16, %v13057_v5  ;;  %v12099_v17 = vld [vmem:[%s16028_s20 + $0x7] ss:$8 sm:$0xf] }
 0xfb0   :  { %v11335_v57 = vrot.slane %v12099_v17, %v13061_v7  ;;  %v11343_v24 = vrot.slane %v12099_v17, %v13059_v6 }
 0xfb3   :  { %9282 = vrot.lane.b32.xlu0 %v9269_v19, %s16032_s11  ;;  %9069 = vrot.lane.b32.xlu1 %v9056_v23, %s16033_s22  ;;  %v11331_v19 = vrot.slane %v12099_v17, %v13055_v4 }
 0xfb7   :  { %9286 = vrot.lane.b32.xlu0 %v9271_v39, %s16032_s11  ;;  %9073 = vrot.lane.b32.xlu1 %v9058_v26, %s16033_s22  ;;  %v11339_v39 = vrot.slane %v12099_v17, %v13057_v5  ;;  %v12103_v26 = vld [vmem:[%s16028_s20 + $0x20] ss:$8 sm:$0xf] }
 0xfb8   :  { %v11548_v15 = vrot.slane %v12103_v26, %v13061_v7 }
 0xfbb   :  { %9708 = vrot.lane.b32.xlu0 %v9695_v32, %s16038_s18  ;;  %9495 = vrot.lane.b32.xlu1 %v9482_v48, %s12927_s24  ;;  %v11544_v32 = vrot.slane %v12103_v26, %v13055_v4  ;;  %v11556_v4 = vrot.slane %v12103_v26, %v13059_v6 }
 0xfbf   :  { %9712 = vrot.lane.b32.xlu0 %v9697_v31, %s16038_s18  ;;  %9499 = vrot.lane.b32.xlu1 %v9484_v27, %s12927_s24  ;;  %v11552_v27 = vrot.slane %v12103_v26, %v13057_v5 }
 0xfc3   :  { %9706 = vrot.lane.b32.xlu0 %v9694_v43, %s16038_s18  ;;  %9714 = vrot.lane.b32.xlu1 %v9698_v49, %s16038_s18 }
 0xfc7   :  { %9877 = vperm.xlu1 %12897, %v12073_v54   ;;  %9959 = vrot.lane.b32.xlu0 %v9946_v44, %s12927_s24 }
 0xfcb   :  { %9961 = vrot.lane.b32.xlu1 %v9950_v52, %s12927_s24  ;;  %9963 = vrot.lane.b32.xlu0 %v9954_v51, %s12927_s24  ;;  %v12041_v51 = vld [vmem:[%s15994_s3 + $0x50] sm:$0xff] }
 0xfcf   :  { %9965 = vrot.lane.b32.xlu1 %v9958_v37, %s12927_s24  ;;  %9919 = vrot.lane.b32.xlu0 %v9906_v35, %s16038_s18 }
 0xfd3   :  { %9921 = vrot.lane.b32.xlu1 %v9910_v58, %s16038_s18  ;;  %9923 = vrot.lane.b32.xlu0 %v9914_v63, %s16038_s18 }
 0xfd7   :  { %9925 = vrot.lane.b32.xlu1 %v9918_v61, %s16038_s18  ;;  %10336 = vrot.lane.b32.xlu0 %v10323_v62, %s16032_s11 }
 0xfdb   :  { %10338 = vrot.lane.b32.xlu1 %v10327_v25, %s16032_s11  ;;  %10340 = vrot.lane.b32.xlu0 %v10331_v29, %s16032_s11 }
 0xfdf   :  { %10342 = vrot.lane.b32.xlu1 %v10335_v2, %s16032_s11  ;;  %10549 = vrot.lane.b32.xlu0 %v10536_v33, %s16033_s22  ;;  %v12047_v33 = vld [vmem:[%s15994_s3 + $0x58] sm:$0xff] }
 0xfe3   :  { %10551 = vrot.lane.b32.xlu1 %v10540_v1, %s16033_s22  ;;  %10553 = vrot.lane.b32.xlu0 %v10544_v21, %s16033_s22 }
 0xfe7   :  { %10555 = vrot.lane.b32.xlu1 %v10548_v42, %s16033_s22  ;;  %10918 = vrot.lane.b32.xlu0 %v10905_v45, %s12931_s5 }
 0xfeb   :  { %10920 = vrot.lane.b32.xlu1 %v10909_v9, %s12931_s5  ;;  %10922 = vrot.lane.b32.xlu0 %v10913_v50, %s12931_s5  ;;  %v12051_v50 = vld [vmem:[%s15994_s3 + $0x60] sm:$0xff] }
 0xfef   :  { %10924 = vrot.lane.b32.xlu1 %v10917_v18, %s12931_s5  ;;  %11131 = vrot.lane.b32.xlu0 %v11118_v46, %s16039_s8 }
 0xff3   :  { %11133 = vrot.lane.b32.xlu1 %v11122_v14, %s16039_s8  ;;  %11135 = vrot.lane.b32.xlu0 %v11126_v56, %s16039_s8  ;;  %v12054_v14 = vld [vmem:[%s15994_s3 + $0x68] sm:$0xff] }
 0xff5   :  { %v8111_v23 = vpop.permute.xlu1 %8110  ;;  %v8279_v36 = vpop.permute.xlu0 %8278 }
 0xff6   :  { %v8118_v6 = vsel %vm191_vm6, %v8109_v41, %v8111_v23  ;;  %v8286_v58 = vsel %vm16048_vm14, %v15431_v40, %v8279_v36  ;;  %vm16057_vm14 = vmmov %vm16055_vm7 }
 0xff7   :  { %11137 = vrot.lane.b32.xlu1 %v11130_v59, %s16039_s8  ;;  %11344 = vrot.lane.b32.xlu0 %v11331_v19, %s16034_s16 }
 0xff9   :  { %v8115_v3 = vpop.permute.xlu1 %8114  ;;  %v8283_v53 = vpop.permute.xlu0 %8282 }
 0xffb   :  { %11346 = vrot.lane.b32.xlu1 %v11335_v57, %s16034_s16  ;;  %11348 = vrot.lane.b32.xlu0 %v11339_v39, %s16034_s16 }
 0xffd   :  { %v8488_v48 = vpop.permute.xlu1 %8487  ;;  %v15474_v55 = vpop.permute.xlu0 %8700 }
 0xffe   :  { %v8495_v1 = vsel %vm16052_vm9, %v15440_v20, %v8488_v48  ;;  %v8708_v16 = vsel %vm802_vm4, %v15442_v11, %v15474_v55 }
 0xfff   :  { %11350 = vrot.lane.b32.xlu1 %v11343_v24, %s16034_s16  ;;  %11557 = vrot.lane.b32.xlu0 %v11544_v32, %s16040_s0  ;;  %v12062_v24 = vld [vmem:[%s15994_s3 + $0x78] sm:$0xff] }
0x1001   :  { %v8492_v31 = vpop.permute.xlu1 %8491  ;;  %v15480_v43 = vpop.permute.xlu0 %8704 }
0x1003   :  { %11559 = vrot.lane.b32.xlu1 %v11548_v15, %s16040_s0  ;;  %11561 = vrot.lane.b32.xlu0 %v11552_v27, %s16040_s0 }
0x1005   :  { %v15485_v49 = vpop.permute.xlu1 %9067  ;;  %v15487_v47 = vpop.permute.xlu0 %9071 }
0x1007   :  { %11563 = vrot.lane.b32.xlu1 %v11556_v4, %s16040_s0 }
0x1009   :  { %v15490_v44 = vpop.permute.xlu1 %9284  ;;  %v15492_v7 = vpop.permute.xlu0 %9280 }
0x100d   :  { %v8113_v5 = vpop.permute.xlu0 %8112  ;;  %v8281_v54 = vpop.permute.xlu1 %8280 }
0x100e   :  { %v8119_v52 = vsel %vm191_vm6, %v8111_v23, %v8113_v5  ;;  %v8287_v34 = vsel %vm16047_vm10, %v8279_v36, %v8281_v54  ;;  %v8120_v61 = vsel %vm191_vm6, %v8113_v5, %v8115_v3  ;;  %v8288_v38 = vsel %vm16050_vm15, %v8281_v54, %v8283_v53  ;;  %v12058_v23 = vld [vmem:[%s15994_s3 + $0x70] sm:$0xff]  ;;  %v12070_v5 = vld [vmem:[%s15994_s3 + $0x88] sm:$0xff]  ;;  %vm16056_vm10 = vmmov %vm16049_vm5 }
0x100f   :  { %8159 = vmatprep.subr.mxu1 %v8119_v52  ;;  %vm16059_vm15 = vmmov %vm16056_vm10 }
0x1010   :  { %8160 = vmatpush1.msra.mxu1 %v8118_v6 }
0x1011   :  { %12042 = vmatmul.mubr.msk.f32.vlgmr.msra.gmra.mxu1 %vm2486_vm12, %v12041_v51  ;;  %v8117_v37 = vpop.permute.xlu0 %8116  ;;  %8327 = vmatprep.subr.mxu1 %v8287_v34  ;;  %v8285_v35 = vpop.permute.xlu1 %8284 }
0x1012   :  { %8328 = vmatpush1.msra.mxu1 %v8286_v58  ;;  %v8121_v63 = vsel %vm191_vm6, %v8115_v3, %v8117_v37  ;;  %8361 = vmatprep.mubr.f32.mxu1 %v15161_v28  ;;  %v8289_v25 = vsel %vm16049_vm5, %v8283_v53, %v8285_v35  ;;  %vm16058_vm5 = vmmov %vm16055_vm7 }
0x1013   :  { %8230 = vmatprep.subr.mxu0 %v8121_v63 }
0x1014   :  { %8231 = vmatpush1.msra.mxu0 %v8120_v61 }
0x1015   :  { %12043 = vmatmul.mubr.msk.f32.vlgmr.msra.gmra.mxu0 %vm2486_vm12, %v12041_v51  ;;  %v8490_v62 = vpop.permute.xlu0 %8489  ;;  %12044 = vmatmul.mubr.msk.f32.vlgmr.msra.gmra.mxu1 %vm2486_vm12, %v12039_v30  ;;  %v15512_v29 = vpop.permute.xlu1 %9493 }
0x1016   :  { %8398 = vmatprep.subr.mxu0 %v8289_v25  ;;  %v8496_v2 = vsel %vm16051_vm8, %v8488_v48, %v8490_v62  ;;  %8432 = vmatprep.mubr.f32.mxu0 %v15161_v28  ;;  %v8497_v45 = vsel %vm16054_vm11, %v8490_v62, %v8492_v31  ;;  %vm16060_vm8 = vmmov %vm16056_vm10 }
0x1017   :  { %8399 = vmatpush1.msra.mxu0 %v8288_v38  ;;  %8536 = vmatprep.subr.mxu1 %v8496_v2  ;;  %vm16061_vm9 = vmmov %vm16060_vm8 }
0x1018   :  { %8537 = vmatpush1.msra.mxu1 %v8495_v1  ;;  %8570 = vmatprep.mubr.f32.mxu1 %v15161_v28  ;;  %vm16063_vm11 = vmmov %vm16060_vm8 }
0x1019   :  { %v8494_v21 = vpop.permute.xlu0 %8493  ;;  %12045 = vmatmul.mubr.msk.f32.vlgmr.msra.gmra.mxu0 %vm2486_vm12, %v12039_v30  ;;  %12048 = vmatmul.mubr.msk.f32.vlgmr.msra.gmra.mxu1 %vm2486_vm12, %v12047_v33  ;;  %v15525_v10 = vpop.permute.xlu1 %9710 }
0x101a   :  { %v8498_v42 = vsel %vm16053_vm13, %v8492_v31, %v8494_v21  ;;  %8641 = vmatprep.mubr.f32.mxu0 %v15161_v28  ;;  %8783 = vmatprep.mubr.f32.mxu1 %v15161_v28  ;;  %v12066_v31 = vld [vmem:[%s15994_s3 + $0x80] sm:$0xff]  ;;  %vm16062_vm13 = vmmov %vm16060_vm8 }
0x101b   :  { %8607 = vmatprep.subr.mxu0 %v8498_v42 }
0x101c   :  { %8608 = vmatpush1.msra.mxu0 %v8497_v45 }
0x101d   :  { %v15531_v41 = vpop.permute.xlu0 %9497  ;;  %12049 = vmatmul.mubr.msk.f32.vlgmr.msra.gmra.mxu0 %vm2486_vm12, %v12047_v33  ;;  %v8703_v40 = vpop.permute.xlu1 %8702 }
0x101e   :  { %v8709_v9 = vsel %vm802_vm4, %v15474_v55, %v8703_v40  ;;  %8854 = vmatprep.mubr.f32.mxu0 %v15161_v28  ;;  %v8710_v11 = vsel %vm802_vm4, %v8703_v40, %v15480_v43 }
0x101f   :  { %8749 = vmatprep.subr.mxu1 %v8709_v9 }
0x1020   :  { %8750 = vmatpush1.msra.mxu1 %v8708_v16 }
0x1021   :  { %v9502_v20 = vpop.permute.xlu0 %9501  ;;  %12052 = vmatmul.mubr.msk.f32.vlgmr.msra.gmra.mxu1 %vm2486_vm12, %v12051_v50  ;;  %8900 = vmatprep.subr.mxu1 %v15289_v60  ;;  %v8707_v18 = vpop.permute.xlu1 %8706 }
0x1022   :  { %8901 = vmatpush1.msra.mxu1 %v15225_v0  ;;  %v8711_v46 = vsel %vm802_vm4, %v15480_v43, %v8707_v18  ;;  %8934 = vmatprep.mubr.f32.mxu1 %v15161_v28 }
0x1023   :  { %8820 = vmatprep.subr.mxu0 %v8711_v46 }
0x1024   :  { %8821 = vmatpush1.msra.mxu0 %v8710_v11 }
0x1025   :  { %v9283_v56 = vpop.permute.xlu0 %9282  ;;  %12053 = vmatmul.mubr.msk.f32.vlgmr.msra.gmra.mxu0 %vm2486_vm12, %v12051_v50  ;;  %12055 = vmatmul.mubr.msk.f32.vlgmr.msra.gmra.mxu1 %vm2486_vm12, %v12054_v14  ;;  %v9070_v17 = vpop.permute.xlu1 %9069 }
0x1026   :  { %8971 = vmatprep.subr.mxu0 %v15303_v12  ;;  %v9077_v59 = vsel %vm771_vm3, %v15485_v49, %v9070_v17  ;;  %v9078_v19 = vsel %vm771_vm3, %v9070_v17, %v15487_v47  ;;  %9005 = vmatprep.mubr.f32.mxu0 %v15161_v28  ;;  %v9291_v57 = vsel %vm551_vm2, %v9283_v56, %v15490_v44 }
0x1027   :  { %8972 = vmatpush1.msra.mxu0 %v15235_v8  ;;  %9118 = vmatprep.subr.mxu1 %v9078_v19  ;;  %v9290_v26 = vsel %vm551_vm2, %v15492_v7, %v9283_v56 }
0x1028   :  { %9119 = vmatpush1.msra.mxu1 %v9077_v59  ;;  %9152 = vmatprep.mubr.f32.mxu1 %v15161_v28 }
0x1029   :  { %v9287_v36 = vpop.permute.xlu0 %9286  ;;  %12056 = vmatmul.mubr.msk.f32.vlgmr.msra.gmra.mxu0 %vm2486_vm12, %v12054_v14  ;;  %12059 = vmatmul.mubr.msk.f32.vlgmr.msra.gmra.mxu1 %vm2486_vm12, %v12058_v23  ;;  %v9074_v39 = vpop.permute.xlu1 %9073 }
0x102a   :  { %9331 = vmatprep.subr.mxu1 %v9291_v57  ;;  %v9079_v3 = vsel %vm771_vm3, %v15487_v47, %v9074_v39  ;;  %v9080_v53 = vsel %vm771_vm3, %v9074_v39, %v15457_v22  ;;  %9223 = vmatprep.mubr.f32.mxu0 %v15161_v28  ;;  %v9293_v48 = vsel %vm551_vm2, %v9287_v36, %v15448_v13 }
0x102b   :  { %9332 = vmatpush1.msra.mxu1 %v9290_v26  ;;  %9189 = vmatprep.subr.mxu0 %v9080_v53  ;;  %v9292_v55 = vsel %vm551_vm2, %v15490_v44, %v9287_v36 }
0x102c   :  { %9190 = vmatpush1.msra.mxu0 %v9079_v3  ;;  %9365 = vmatprep.mubr.f32.mxu1 %v15161_v28 }
0x102d   :  { %v9709_v32 = vpop.permute.xlu0 %9708  ;;  %12060 = vmatmul.mubr.msk.f32.vlgmr.msra.gmra.mxu0 %vm2486_vm12, %v12058_v23  ;;  %12063 = vmatmul.mubr.msk.f32.vlgmr.msra.gmra.mxu1 %vm2486_vm12, %v12062_v24  ;;  %v9496_v22 = vpop.permute.xlu1 %9495 }
0x102e   :  { %9402 = vmatprep.subr.mxu0 %v9293_v48  ;;  %v9503_v15 = vsel %vm160_vm0, %v15512_v29, %v9496_v22  ;;  %v9504_v27 = vsel %vm160_vm0, %v9496_v22, %v15531_v41  ;;  %9436 = vmatprep.mubr.f32.mxu0 %v15161_v28  ;;  %v9717_v43 = vsel %vm118_vm1, %v9709_v32, %v15525_v10 }
0x102f   :  { %9403 = vmatpush1.msra.mxu0 %v9292_v55  ;;  %9544 = vmatprep.subr.mxu1 %v9504_v27 }
0x1030   :  { %9545 = vmatpush1.msra.mxu1 %v9503_v15  ;;  %9578 = vmatprep.mubr.f32.mxu1 %v15161_v28 }
0x1031   :  { %v9713_v13 = vpop.permute.xlu0 %9712  ;;  %12064 = vmatmul.mubr.msk.f32.vlgmr.msra.gmra.mxu0 %vm2486_vm12, %v12062_v24  ;;  %12067 = vmatmul.mubr.msk.f32.vlgmr.msra.gmra.mxu1 %vm2486_vm12, %v12066_v31  ;;  %v9500_v4 = vpop.permute.xlu1 %9499 }
0x1032   :  { %9757 = vmatprep.subr.mxu1 %v9717_v43  ;;  %v9505_v49 = vsel %vm160_vm0, %v15531_v41, %v9500_v4  ;;  %v9506_v47 = vsel %vm160_vm0, %v9500_v4, %v9502_v20  ;;  %9649 = vmatprep.mubr.f32.mxu0 %v15161_v28  ;;  %v9718_v51 = vsel %vm118_vm1, %v15525_v10, %v9713_v13 }
0x1033   :  { %9615 = vmatprep.subr.mxu0 %v9506_v47  ;;  %9791 = vmatprep.mubr.f32.mxu1 %v15161_v28 }
0x1034   :  { %9616 = vmatpush1.msra.mxu0 %v9505_v49 }
0x1035   :  { %v9707_v44 = vpop.permute.xlu0 %9706  ;;  %12068 = vmatmul.mubr.msk.f32.vlgmr.msra.gmra.mxu0 %vm2486_vm12, %v12066_v31  ;;  %v9715_v7 = vpop.permute.xlu1 %9714 }
0x1036   :  { %v9716_v54 = vsel %vm118_vm1, %v9707_v44, %v9709_v32  ;;  %v9719_v52 = vsel %vm118_vm1, %v9713_v13, %v9715_v7  ;;  %9862 = vmatprep.mubr.f32.mxu0 %v15161_v28 }
0x1037   :  { %9758 = vmatpush1.msra.mxu1 %v9716_v54  ;;  %9828 = vmatprep.subr.mxu0 %v9719_v52 }
0x1038   :  { %12071 = vmatmul.mubr.msk.f32.vlgmr.msra.gmra.mxu1 %vm2486_vm12, %v12070_v5  ;;  %9829 = vmatpush1.msra.mxu0 %v9718_v51 }
0x1039   :  { %12072 = vmatmul.mubr.msk.f32.vlgmr.msra.gmra.mxu0 %vm2486_vm12, %v12070_v5  ;;  %v9960_v6 = vpop.permute.xlu0 %9959  ;;  %10072 = vmatprep.mubr.f32.mxu1 %v15161_v28 }
0x103a   :  { %v9975_v34 = vmul.f32 %v15161_v28, %v9960_v6  ;;  %10143 = vmatprep.mubr.f32.mxu0 %v15161_v28 }
0x103c   :  { %9987 = vrot.lane.b32.xlu0 %v9975_v34, %s16034_s16 }
0x103d   :  { %v15623_v58 = vpop.permute.xlu0 %9963 }
0x1041   :  { %v9920_v62 = vpop.permute.xlu0 %9919 }
0x1042   :  { %v15621_v37 = vpop.permute.xlu1 %9877  ;;  %v9935_v25 = vmul.f32 %v15161_v28, %v9920_v62 }
0x1044   :  { %10155 = vrot.lane.b32.xlu1 %v9935_v25, %s16040_s0 }
0x1045   :  { %v15635_v38 = vpop.permute.xlu0 %9923 }
0x1046   :  { %v9962_v35 = vpop.permute.xlu1 %9961 }
0x1047   :  { %v15626_v63 = vsel %vm160_vm0, %v9960_v6, %v9962_v35  ;;  %v15630_v30 = vsel %vm160_vm0, %v9962_v35, %v15623_v58 }
0x1049   :  { %v10337_v21 = vpop.permute.xlu0 %10336 }
0x104a   :  { %v15632_v61 = vpop.permute.xlu1 %9965  ;;  %v10352_v42 = vmul.f32 %v15161_v28, %v10337_v21 }
0x104c   :  { %10364 = vrot.lane.b32.xlu0 %v10352_v42, %s16039_s8 }
0x104d   :  { %v15648_v45 = vpop.permute.xlu0 %10340 }
0x104e   :  { %v9922_v29 = vpop.permute.xlu1 %9921 }
0x104f   :  { %v15639_v2 = vsel %vm118_vm1, %v9920_v62, %v9922_v29  ;;  %v15645_v1 = vsel %vm118_vm1, %v9922_v29, %v15635_v38 }
0x1051   :  { %v10550_v50 = vpop.permute.xlu0 %10549 }
0x1052   :  { %v15641_v33 = vpop.permute.xlu1 %9925  ;;  %v10565_v20 = vmul.f32 %v15161_v28, %v10550_v50 }
0x1054   :  { %10577 = vrot.lane.b32.xlu1 %v10565_v20, %s12931_s5 }
0x1056   :  { %v10339_v10 = vpop.permute.xlu1 %10338 }
0x1057   :  { %v15651_v41 = vsel %vm551_vm2, %v10337_v21, %v10339_v10  ;;  %v15658_v9 = vsel %vm551_vm2, %v10339_v10, %v15648_v45 }
0x105a   :  { %v15654_v40 = vpop.permute.xlu1 %10342 }
0x105e   :  { %v15660_v16 = vpop.permute.xlu1 %10551 }
0x105f   :  { %v15665_v18 = vsel %vm771_vm3, %v10550_v50, %v15660_v16  ;;  %v15684_v50 = vpop.permute.xlu0 %10553 }
0x1062   :  { %v15668_v46 = vpop.permute.xlu1 %10555 }
0x1066   :  { %v15670_v14 = vpop.permute.xlu1 %10920 }
0x106a   :  { %v15672_v11 = vpop.permute.xlu1 %10924 }
0x106b   :  { %v10938_v56 = vmul.f32 %v15161_v28, %v15672_v11 }
0x106d   :  { %10954 = vrot.lane.b32.xlu1 %v10938_v56, %s16033_s22 }
0x106e   :  { %v15677_v17 = vpop.permute.xlu1 %11133 }
0x1072   :  { %v15679_v59 = vpop.permute.xlu1 %11137 }
0x1073   :  { %v11151_v19 = vmul.f32 %v15161_v28, %v15679_v59 }
0x1075   :  { %11167 = vrot.lane.b32.xlu0 %v11151_v19, %s16032_s11 }
0x10d1   :  { %v8195_v23 = vpop.f32.mrf.mxu1 }
0x10d3   :  { %v8197_v36 = vpop.f32.mrf.mxu1 }
0x10d5   :  { %v8266_v57 = vpop.f32.mrf.mxu0  ;;  %v8363_v39 = vpop.f32.mrf.mxu1 }
0x10d6   :  { %v8364_v4 = vadd.f32 %v8363_v39, %v8195_v23 }
0x10d7   :  { %v8268_v26 = vpop.f32.mrf.mxu0  ;;  %v8365_v3 = vpop.f32.mrf.mxu1 }
0x10d8   :  { %v8366_v7 = vadd.f32 %v8365_v3, %v8197_v36 }
0x10d9   :  { %v8434_v53 = vpop.f32.mrf.mxu0  ;;  %v8572_v24 = vpop.f32.mrf.mxu1 }
0x10da   :  { %v8435_v44 = vadd.f32 %v8434_v53, %v8266_v57  ;;  %v8648_v51 = vadd.f32 %v8572_v24, %v8364_v4 }
0x10db   :  { %v8436_v32 = vpop.f32.mrf.mxu0  ;;  %v8574_v48 = vpop.f32.mrf.mxu1 }
0x10dc   :  { %v8437_v52 = vadd.f32 %v8436_v32, %v8268_v26  ;;  %v8649_v62 = vadd.f32 %v8574_v48, %v8366_v7 }
0x10dd   :  { %v8643_v22 = vpop.f32.mrf.mxu0 }
0x10de   :  { %v8650_v35 = vadd.f32 %v8643_v22, %v8435_v44 }
0x10df   :  { %v8645_v15 = vpop.f32.mrf.mxu0 }
0x10e0   :  { %v8651_v10 = vadd.f32 %v8645_v15, %v8437_v52 }
0x10e1   :  { %v8785_v55 = vpop.f32.mrf.mxu1 }
0x10e2   :  { %v8861_v25 = vadd.f32 %v8785_v55, %v8648_v51  ;;  %v15686_v55 = vpop.permute.xlu0 %10918 }
0x10e3   :  { %v8787_v27 = vpop.f32.mrf.mxu1 }
0x10e4   :  { %v8862_v20 = vadd.f32 %v8787_v27, %v8649_v62 }
0x10e5   :  { %v8856_v31 = vpop.f32.mrf.mxu0  ;;  %v8936_v13 = vpop.f32.mrf.mxu1 }
0x10e6   :  { %v8863_v42 = vadd.f32 %v8856_v31, %v8650_v35  ;;  %v9012_v56 = vadd.f32 %v8936_v13, %v8861_v25  ;;  %v15689_v62 = vpop.permute.xlu0 %10922 }
0x10e7   :  { %v8858_v43 = vpop.f32.mrf.mxu0  ;;  %v8938_v28 = vpop.f32.mrf.mxu1 }
0x10e8   :  { %v8864_v23 = vadd.f32 %v8858_v43, %v8651_v10  ;;  %v9013_v39 = vadd.f32 %v8938_v28, %v8862_v20 }
0x10e9   :  { %v9007_v49 = vpop.f32.mrf.mxu0  ;;  %v9154_v47 = vpop.f32.mrf.mxu1 }
0x10ea   :  { %v9014_v36 = vadd.f32 %v9007_v49, %v8863_v42  ;;  %v9230_v26 = vadd.f32 %v9154_v47, %v9012_v56 }
0x10eb   :  { %v9009_v5 = vpop.f32.mrf.mxu0  ;;  %v9156_v54 = vpop.f32.mrf.mxu1 }
0x10ec   :  { %v9015_v53 = vadd.f32 %v9009_v5, %v8864_v23  ;;  %v9231_v32 = vadd.f32 %v9156_v54, %v9013_v39 }
0x10ed   :  { %v9225_v6 = vpop.f32.mrf.mxu0  ;;  %v9367_v34 = vpop.f32.mrf.mxu1 }
0x10ee   :  { %v9232_v24 = vadd.f32 %v9225_v6, %v9014_v36  ;;  %v9443_v48 = vadd.f32 %v9367_v34, %v9230_v26  ;;  %v15706_v26 = vpop.permute.xlu0 %11131 }
0x10ef   :  { %v9227_v29 = vpop.f32.mrf.mxu0  ;;  %v9369_v21 = vpop.f32.mrf.mxu1 }
0x10f0   :  { %v9233_v15 = vadd.f32 %v9227_v29, %v9015_v53  ;;  %v9444_v44 = vadd.f32 %v9369_v21, %v9231_v32  ;;  %v10346_v53 = vsel %vm551_vm2, %v15648_v45, %v15654_v40 }
0x10f1   :  { %v9438_v19 = vpop.f32.mrf.mxu0  ;;  %v9580_v57 = vpop.f32.mrf.mxu1 }
0x10f2   :  { %v9445_v31 = vadd.f32 %v9438_v19, %v9232_v24  ;;  %v9656_v27 = vadd.f32 %v9580_v57, %v9443_v48 }
0x10f3   :  { %v9440_v3 = vpop.f32.mrf.mxu0  ;;  %v9582_v4 = vpop.f32.mrf.mxu1 }
0x10f4   :  { %v9446_v7 = vadd.f32 %v9440_v3, %v9233_v15  ;;  %v9657_v52 = vadd.f32 %v9582_v4, %v9444_v44  ;;  %v11347_v4 = vpop.permute.xlu1 %11346 }
0x10f5   :  { %v9651_v22 = vpop.f32.mrf.mxu0 }
0x10f6   :  { %v9658_v43 = vadd.f32 %v9651_v22, %v9445_v31 }
0x10f7   :  { %v9653_v13 = vpop.f32.mrf.mxu0 }
0x10f8   :  { %v9793_v49 = vpop.f32.mrf.mxu1  ;;  %v9659_v51 = vadd.f32 %v9653_v13, %v9446_v7 }
0x10f9   :  { %v9869_v28 = vadd.f32 %v9793_v49, %v9656_v27  ;;  %v9864_v47 = vpop.f32.mrf.mxu0 }
0x10fa   :  { %v9871_v5 = vadd.f32 %v9864_v47, %v9658_v43  ;;  %v9795_v6 = vpop.f32.mrf.mxu1  ;;  %v11351_v43 = vpop.permute.xlu1 %11350 }
0x10fb   :  { %v9880_v54 = vadd.f32 %v15621_v37, %v9869_v28  ;;  %v9870_v34 = vadd.f32 %v9795_v6, %v9657_v52  ;;  %v9866_v35 = vpop.f32.mrf.mxu0 }
0x10fc   :  { %v9882_v25 = vadd.f32 %v15621_v37, %v9871_v5  ;;  %v9872_v29 = vadd.f32 %v9866_v35, %v9659_v51 }
0x10fd   :  { %v9884_v21 = vmax.f32 %v9880_v54, 0.0  ;;  %v9881_v10 = vadd.f32 %v15621_v37, %v9870_v34 }
0x10fe   :  { %v9886_v42 = vmax.f32 %v9882_v25, 0.0  ;;  %v9883_v20 = vadd.f32 %v15621_v37, %v9872_v29  ;;  %v11560_v47 = vpop.permute.xlu1 %11559 }
0x10ff   :  { %v15695_v56 = vadd.f32 %v9884_v21, %v15225_v0  ;;  %v9885_v19 = vmax.f32 %v9881_v10, 0.0 }
0x1100   :  { %v15698_v23 = vadd.f32 %v9886_v42, %v15235_v8  ;;  %v9887_v36 = vmax.f32 %v9883_v20, 0.0 }
0x1101   :  { %9892 = vst [vmem:[#allocation2 + $0x10] sm:$0xff] %v15695_v56  ;;  %v15702_v57 = vadd.f32 %v9885_v19, %v15289_v60  ;;  %v9936_v39 = vmul.f32 %v15639_v2, %v15695_v56  ;;  %v9976_v8 = vmul.f32 %v15626_v63, %v15695_v56  ;;  %v9929_v60 = vsel %vm118_vm1, %v15635_v38, %v15641_v33  ;;  %v15727_v2 = vpop.permute.xlu0 %11135 }
0x1102   :  { %9894 = vst [vmem:[#allocation2] sm:$0xff] %v15698_v23  ;;  %v15710_v0 = vadd.f32 %v9887_v36, %v15303_v12  ;;  %v9969_v12 = vsel %vm160_vm0, %v15623_v58, %v15632_v61  ;;  %v9938_v37 = vmul.f32 %v9929_v60, %v15698_v23  ;;  %v10566_v38 = vmul.f32 %v15665_v18, %v15695_v56  ;;  %v11564_v42 = vpop.permute.xlu1 %11563 }
0x1103   :  { %9893 = vst [vmem:[#allocation2 + $0x8] sm:$0xff] %v15702_v57  ;;  %10157 = vrot.lane.b32.xlu1 %v9936_v39, %s16040_s0  ;;  %9989 = vrot.lane.b32.xlu0 %v9976_v8, %s16034_s16  ;;  %v9978_v63 = vmul.f32 %v9969_v12, %v15698_v23  ;;  %v10353_v3 = vmul.f32 %v15651_v41, %v15695_v56  ;;  %v11752_v8 = vld [vmem:[%s15997_s6] sm:$0x7] }
0x1104   :  { %9895 = vst [vmem:[#allocation2 + $0x18] sm:$0xff] %v15710_v0  ;;  %v10559_v58 = vsel %vm771_vm3, %v15684_v50, %v15668_v46  ;;  %v10355_v18 = vmul.f32 %v10346_v53, %v15698_v23  ;;  %v10927_v41 = vsel %vm802_vm4, %v15670_v14, %v15689_v62  ;;  %v10934_v22 = vmul.f32 %v15686_v55, %v15695_v56 }
0x1105   :  { %v10568_v24 = vmul.f32 %v10559_v58, %v15698_v23  ;;  %v11345_v32 = vpop.permute.xlu0 %11344  ;;  %v10936_v48 = vmul.f32 %v10927_v41, %v15698_v23  ;;  %v11140_v15 = vsel %vm16055_vm7, %v15677_v17, %v15727_v2  ;;  %v11147_v31 = vmul.f32 %v15706_v26, %v15695_v56  ;;  %vm16064_vm7 = vmmov %vm16060_vm8 }
0x1106   :  { %v11149_v44 = vmul.f32 %v11140_v15, %v15698_v23  ;;  %v9977_v27 = vmul.f32 %v15630_v30, %v15702_v57  ;;  %v9937_v7 = vmul.f32 %v15645_v1, %v15702_v57  ;;  %v9979_v49 = vmul.f32 %v15632_v61, %v15710_v0  ;;  %v10156_v60 = vpop.permute.xlu1 %10155 }
0x1107   :  { %10161 = vrot.lane.b32.xlu1 %v9938_v37, %s16040_s0  ;;  %9993 = vrot.lane.b32.xlu0 %v9978_v63, %s16034_s16  ;;  %v9939_v52 = vmul.f32 %v15641_v33, %v15710_v0  ;;  %v10354_v30 = vmul.f32 %v15658_v9, %v15702_v57  ;;  %v11360_v1 = vmul.f32 %v11345_v32, %v15695_v56 }
0x1108   :  { %v10356_v61 = vmul.f32 %v15654_v40, %v15710_v0  ;;  %v10558_v9 = vsel %vm771_vm3, %v15660_v16, %v15684_v50  ;;  %v15793_v40 = vld [vmem:[#allocation2 + $0x28] sm:$0xff]  ;;  %v10569_v35 = vmul.f32 %v15668_v46, %v15710_v0  ;;  %v11139_v16 = vsel %vm16057_vm14, %v15706_v26, %v15677_v17  ;;  %vm16067_vm14 = vmmov %vm16058_vm5 }
0x1109   :  { %v11349_v45 = vpop.permute.xlu0 %11348  ;;  %v10567_v54 = vmul.f32 %v10558_v9, %v15702_v57  ;;  %v11364_v34 = vmul.f32 %v15793_v40, %v11351_v43  ;;  %v10926_v50 = vsel %vm802_vm4, %v15686_v55, %v15670_v14  ;;  %v11148_v25 = vmul.f32 %v11139_v16, %v15702_v57 }
0x110a   :  { %v11353_v33 = vsel %vm191_vm6, %v11347_v4, %v11349_v45  ;;  %v10935_v29 = vmul.f32 %v10926_v50, %v15702_v57  ;;  %v11141_v46 = vsel %vm16058_vm5, %v15727_v2, %v15679_v59  ;;  %v10928_v17 = vsel %vm802_vm4, %v15689_v62, %v15672_v11  ;;  %v15839_v37 = vpop.permute.xlu1 %10577 }
0x110b   :  { %10579 = vrot.lane.b32.xlu1 %v10566_v38, %s12931_s5  ;;  %10366 = vrot.lane.b32.xlu0 %v10353_v3, %s16039_s8  ;;  %v11362_v6 = vmul.f32 %v11353_v33, %v15698_v23  ;;  %v11150_v21 = vmul.f32 %v11141_v46, %v15710_v0  ;;  %v10937_v55 = vmul.f32 %v10928_v17, %v15710_v0  ;;  %v12085_v17 = vld [vmem:[%s15998_s4 + $0xc] sm:$0x7] }
0x110c   :  { %v11352_v10 = vsel %vm191_vm6, %v11345_v32, %v11347_v4  ;;  %v11354_v11 = vsel %vm191_vm6, %v11349_v45, %v11351_v43  ;;  %v11577_v26 = vmul.f32 %v15793_v40, %v11564_v42 }
0x110d   :  { %v11558_v13 = vpop.permute.xlu0 %11557  ;;  %v11361_v20 = vmul.f32 %v11352_v10, %v15702_v57  ;;  %v11363_v36 = vmul.f32 %v11354_v11, %v15710_v0  ;;  %v12092_v11 = vld [vmem:[%s15998_s4 + $0x14] sm:$0x7] }
0x110e   :  { %v11565_v14 = vsel %vm16059_vm15, %v11558_v13, %v11560_v47  ;;  %v11573_v39 = vmul.f32 %v11558_v13, %v15695_v56  ;;  %v15843_v38 = vpop.permute.xlu1 %10954  ;;  %v12075_v13 = vld [vmem:[%s15998_s4 + $0x4] sm:$0x7] }
0x110f   :  { %10583 = vrot.lane.b32.xlu1 %v10568_v24, %s12931_s5  ;;  %10370 = vrot.lane.b32.xlu0 %v10355_v18, %s16039_s8  ;;  %v11574_v59 = vmul.f32 %v11565_v14, %v15702_v57 }
0x1111   :  { %v11562_v28 = vpop.permute.xlu0 %11561 }
0x1112   :  { %v11566_v51 = vsel %vm16056_vm10, %v11560_v47, %v11562_v28  ;;  %v11567_v19 = vsel %vm16060_vm8, %v11562_v28, %v11564_v42  ;;  %v9940_v47 = vld [vmem:[%s15998_s4] sm:$0x7]  ;;  %vm16065_vm10 = vmmov %vm16058_vm5  ;;  %v12088_v42 = vld [vmem:[%s15998_s4 + $0x10] sm:$0x7] }
0x1113   :  { %10950 = vrot.lane.b32.xlu1 %v10936_v48, %s16033_s22  ;;  %10946 = vrot.lane.b32.xlu0 %v10934_v22, %s16033_s22  ;;  %v11575_v5 = vmul.f32 %v11566_v51, %v15698_v23  ;;  %v11576_v62 = vmul.f32 %v11567_v19, %v15710_v0 }
0x1115   :  { %v9988_v12 = vpop.permute.xlu0 %9987 }
0x1117   :  { %11159 = vrot.lane.b32.xlu1 %v11147_v31, %s16032_s11  ;;  %11163 = vrot.lane.b32.xlu0 %v11149_v44, %s16032_s11 }
0x1119   :  { %v10365_v63 = vpop.permute.xlu0 %10364 }
0x111b   :  { %9991 = vrot.lane.b32.xlu1 %v9977_v27, %s16034_s16  ;;  %10159 = vrot.lane.b32.xlu0 %v9937_v7, %s16040_s0 }
0x111d   :  { %v15841_v2 = vpop.permute.xlu0 %11167 }
0x111f   :  { %9995 = vrot.lane.b32.xlu1 %v9979_v49, %s16034_s16  ;;  %10163 = vrot.lane.b32.xlu0 %v9939_v52, %s16040_s0 }
0x1123   :  { %10368 = vrot.lane.b32.xlu1 %v10354_v30, %s16039_s8  ;;  %11372 = vrot.lane.b32.xlu0 %v11360_v1, %s12927_s24 }
0x1127   :  { %10372 = vrot.lane.b32.xlu1 %v10356_v61, %s16039_s8  ;;  %11589 = vrot.lane.b32.xlu0 %v11575_v5, %s16038_s18 }
0x112b   :  { %11376 = vrot.lane.b32.xlu1 %v11362_v6, %s12927_s24  ;;  %10581 = vrot.lane.b32.xlu0 %v10567_v54, %s12931_s5  ;;  %v12081_v54 = vld [vmem:[%s15998_s4 + $0x8] sm:$0x7] }
0x112f   :  { %11380 = vrot.lane.b32.xlu1 %v11364_v34, %s12927_s24  ;;  %10585 = vrot.lane.b32.xlu0 %v10569_v35, %s12931_s5 }
0x1133   :  { %11161 = vrot.lane.b32.xlu1 %v11148_v25, %s16032_s11  ;;  %10948 = vrot.lane.b32.xlu0 %v10935_v29, %s16033_s22 }
0x1137   :  { %11165 = vrot.lane.b32.xlu1 %v11150_v21, %s16032_s11  ;;  %10952 = vrot.lane.b32.xlu0 %v10937_v55, %s16033_s22 }
0x113b   :  { %11587 = vrot.lane.b32.xlu1 %v11574_v59, %s16038_s18  ;;  %11374 = vrot.lane.b32.xlu0 %v11361_v20, %s12927_s24 }
0x113f   :  { %11591 = vrot.lane.b32.xlu1 %v11576_v62, %s16038_s18  ;;  %11378 = vrot.lane.b32.xlu0 %v11363_v36, %s12927_s24 }
0x1143   :  { %11585 = vrot.lane.b32.xlu1 %v11573_v39, %s16038_s18  ;;  %11593 = vrot.lane.b32.xlu0 %v11577_v26, %s16038_s18 }
0x1147   :  { %11755 = vperm.xlu0 %12876, %v11752_v8   ;;  %v12096_v8 = vld [vmem:[%s15998_s4 + $0x18] sm:$0x7] }
0x1175   :  { %v10158_v3 = vpop.permute.xlu1 %10157  ;;  %v9990_v58 = vpop.permute.xlu0 %9989 }
0x1176   :  { %v9997_v7 = vsel %vm191_vm6, %v9988_v12, %v9990_v58  ;;  %v10165_v49 = vsel %vm16062_vm13, %v10156_v60, %v10158_v3 }
0x1179   :  { %v10162_v53 = vpop.permute.xlu1 %10161  ;;  %v9994_v24 = vpop.permute.xlu0 %9993 }
0x117d   :  { %v10580_v32 = vpop.permute.xlu1 %10579  ;;  %v10367_v18 = vpop.permute.xlu0 %10366 }
0x117e   :  { %v10587_v21 = vsel %vm802_vm4, %v15839_v37, %v10580_v32 }
0x1181   :  { %v15845_v41 = vpop.permute.xlu1 %10583  ;;  %v10371_v48 = vpop.permute.xlu0 %10370 }
0x1185   :  { %v15847_v22 = vpop.permute.xlu1 %10950  ;;  %v15849_v45 = vpop.permute.xlu0 %10946 }
0x1189   :  { %v15851_v15 = vpop.permute.xlu1 %11159  ;;  %v15853_v31 = vpop.permute.xlu0 %11163 }
0x118d   :  { %v9992_v4 = vpop.permute.xlu1 %9991  ;;  %v10160_v44 = vpop.permute.xlu0 %10159 }
0x118e   :  { %v9998_v27 = vsel %vm191_vm6, %v9990_v58, %v9992_v4  ;;  %v10166_v43 = vsel %vm16061_vm9, %v10158_v3, %v10160_v44  ;;  %v9999_v1 = vsel %vm191_vm6, %v9992_v4, %v9994_v24  ;;  %v10167_v61 = vsel %vm16064_vm7, %v10160_v44, %v10162_v53  ;;  %v12100_v58 = vld [vmem:[%s15998_s4 + $0x1c] sm:$0x7] }
0x118f   :  { %10038 = vmatprep.subr.mxu1 %v9998_v27 }
0x1190   :  { %10039 = vmatpush1.msra.mxu1 %v9997_v7 }
0x1191   :  { %10206 = vmatprep.subr.mxu1 %v10166_v43  ;;  %v9996_v52 = vpop.permute.xlu1 %9995  ;;  %12076 = vmatmul.mubr.msk.f32.vlgmr.msra.gmra.mxu1 %vm2486_vm12, %v12075_v13  ;;  %v10164_v28 = vpop.permute.xlu0 %10163 }
0x1192   :  { %10207 = vmatpush1.msra.mxu1 %v10165_v49  ;;  %v10000_v30 = vsel %vm191_vm6, %v9994_v24, %v9996_v52  ;;  %10240 = vmatprep.mubr.f32.mxu1 %v15793_v40  ;;  %v10168_v51 = vsel %vm16063_vm11, %v10162_v53, %v10164_v28  ;;  %vm16066_vm6 = vmmov %vm16058_vm5 }
0x1193   :  { %10109 = vmatprep.subr.mxu0 %v10000_v30  ;;  %v10374_v6 = vsel %vm16066_vm6, %v10365_v63, %v10367_v18 }
0x1194   :  { %10110 = vmatpush1.msra.mxu0 %v9999_v1 }
0x1195   :  { %12077 = vmatmul.mubr.msk.f32.vlgmr.msra.gmra.mxu0 %vm2486_vm12, %v12075_v13  ;;  %10277 = vmatprep.subr.mxu0 %v10168_v51  ;;  %v10369_v33 = vpop.permute.xlu1 %10368  ;;  %v15872_v5 = vpop.permute.xlu0 %11372 }
0x1196   :  { %10278 = vmatpush1.msra.mxu0 %v10167_v61  ;;  %v10375_v9 = vsel %vm16065_vm10, %v10367_v18, %v10369_v33  ;;  %12078 = vmatmul.mubr.msk.f32.vlgmr.msra.gmra.mxu1 %vm2486_vm12, %v9940_v47  ;;  %v10376_v50 = vsel %vm16058_vm5, %v10369_v33, %v10371_v48 }
0x1197   :  { %10415 = vmatprep.subr.mxu1 %v10375_v9  ;;  %10311 = vmatprep.mubr.f32.mxu0 %v15793_v40 }
0x1198   :  { %10416 = vmatpush1.msra.mxu1 %v10374_v6  ;;  %10449 = vmatprep.mubr.f32.mxu1 %v15793_v40 }
0x1199   :  { %12079 = vmatmul.mubr.msk.f32.vlgmr.msra.gmra.mxu0 %vm2486_vm12, %v9940_v47  ;;  %v10373_v34 = vpop.permute.xlu1 %10372  ;;  %v15883_v35 = vpop.permute.xlu0 %11589 }
0x119a   :  { %v10377_v16 = vsel %vm16067_vm14, %v10371_v48, %v10373_v34  ;;  %12082 = vmatmul.mubr.msk.f32.vlgmr.msra.gmra.mxu1 %vm2486_vm12, %v12081_v54  ;;  %10520 = vmatprep.mubr.f32.mxu0 %v15793_v40  ;;  %v12104_v48 = vld [vmem:[%s15998_s4 + $0x20] sm:$0x7] }
0x119b   :  { %10486 = vmatprep.subr.mxu0 %v10377_v16  ;;  %10662 = vmatprep.mubr.f32.mxu1 %v15793_v40 }
0x119c   :  { %10487 = vmatpush1.msra.mxu0 %v10376_v50 }
0x119d   :  { %12083 = vmatmul.mubr.msk.f32.vlgmr.msra.gmra.mxu0 %vm2486_vm12, %v12081_v54  ;;  %v15891_v25 = vpop.permute.xlu1 %11376  ;;  %v10582_v29 = vpop.permute.xlu0 %10581 }
0x119e   :  { %10733 = vmatprep.mubr.f32.mxu0 %v15793_v40  ;;  %v10588_v46 = vsel %vm802_vm4, %v10580_v32, %v10582_v29  ;;  %v10589_v59 = vsel %vm802_vm4, %v10582_v29, %v15845_v41 }
0x119f   :  { %10628 = vmatprep.subr.mxu1 %v10588_v46 }
0x11a0   :  { %10629 = vmatpush1.msra.mxu1 %v10587_v21 }
0x11a1   :  { %v11381_v14 = vpop.permute.xlu1 %11380  ;;  %v10586_v55 = vpop.permute.xlu0 %10585  ;;  %12086 = vmatmul.mubr.msk.f32.vlgmr.msra.gmra.mxu1 %vm2486_vm12, %v12085_v17  ;;  %10779 = vmatprep.subr.mxu1 %v15702_v57 }
0x11a2   :  { %10780 = vmatpush1.msra.mxu1 %v15695_v56  ;;  %v10590_v10 = vsel %vm802_vm4, %v15845_v41, %v10586_v55  ;;  %10813 = vmatprep.mubr.f32.mxu1 %v15793_v40 }
0x11a3   :  { %10699 = vmatprep.subr.mxu0 %v10590_v10 }
0x11a4   :  { %10700 = vmatpush1.msra.mxu0 %v10589_v59 }
0x11a5   :  { %v11162_v20 = vpop.permute.xlu1 %11161  ;;  %v10949_v19 = vpop.permute.xlu0 %10948  ;;  %12087 = vmatmul.mubr.msk.f32.vlgmr.msra.gmra.mxu0 %vm2486_vm12, %v12085_v17  ;;  %12089 = vmatmul.mubr.msk.f32.vlgmr.msra.gmra.mxu1 %vm2486_vm12, %v12088_v42 }
0x11a6   :  { %v10956_v56 = vsel %vm771_vm3, %v15849_v45, %v10949_v19  ;;  %10850 = vmatprep.subr.mxu0 %v15710_v0  ;;  %v10957_v57 = vsel %vm771_vm3, %v10949_v19, %v15847_v22  ;;  %10884 = vmatprep.mubr.f32.mxu0 %v15793_v40  ;;  %v11170_v0 = vsel %vm551_vm2, %v11162_v20, %v15853_v31 }
0x11a7   :  { %10851 = vmatpush1.msra.mxu0 %v15698_v23  ;;  %10997 = vmatprep.subr.mxu1 %v10957_v57  ;;  %v11169_v39 = vsel %vm551_vm2, %v15851_v15, %v11162_v20 }
0x11a8   :  { %10998 = vmatpush1.msra.mxu1 %v10956_v56  ;;  %11031 = vmatprep.mubr.f32.mxu1 %v15793_v40 }
0x11a9   :  { %v11166_v62 = vpop.permute.xlu1 %11165  ;;  %v10953_v36 = vpop.permute.xlu0 %10952  ;;  %12090 = vmatmul.mubr.msk.f32.vlgmr.msra.gmra.mxu0 %vm2486_vm12, %v12088_v42  ;;  %12093 = vmatmul.mubr.msk.f32.vlgmr.msra.gmra.mxu1 %vm2486_vm12, %v12092_v11 }
0x11aa   :  { %v10958_v26 = vsel %vm771_vm3, %v15847_v22, %v10953_v36  ;;  %11210 = vmatprep.subr.mxu1 %v11170_v0  ;;  %v10959_v23 = vsel %vm771_vm3, %v10953_v36, %v15843_v38  ;;  %11102 = vmatprep.mubr.f32.mxu0 %v15793_v40  ;;  %v11172_v37 = vsel %vm551_vm2, %v11166_v62, %v15841_v2 }
0x11ab   :  { %11211 = vmatpush1.msra.mxu1 %v11169_v39  ;;  %11068 = vmatprep.subr.mxu0 %v10959_v23  ;;  %v11171_v63 = vsel %vm551_vm2, %v15853_v31, %v11166_v62 }
0x11ac   :  { %11069 = vmatpush1.msra.mxu0 %v10958_v26  ;;  %11244 = vmatprep.mubr.f32.mxu1 %v15793_v40 }
0x11ad   :  { %v11588_v60 = vpop.permute.xlu1 %11587  ;;  %v11375_v12 = vpop.permute.xlu0 %11374  ;;  %12094 = vmatmul.mubr.msk.f32.vlgmr.msra.gmra.mxu0 %vm2486_vm12, %v12092_v11  ;;  %12097 = vmatmul.mubr.msk.f32.vlgmr.msra.gmra.mxu1 %vm2486_vm12, %v12096_v8 }
0x11ae   :  { %v11382_v38 = vsel %vm160_vm0, %v15872_v5, %v11375_v12  ;;  %11281 = vmatprep.subr.mxu0 %v11172_v37  ;;  %v11383_v3 = vsel %vm160_vm0, %v11375_v12, %v15891_v25  ;;  %11315 = vmatprep.mubr.f32.mxu0 %v15793_v40  ;;  %v11596_v24 = vsel %vm118_vm1, %v11588_v60, %v15883_v35 }
0x11af   :  { %11282 = vmatpush1.msra.mxu0 %v11171_v63  ;;  %11423 = vmatprep.subr.mxu1 %v11383_v3 }
0x11b0   :  { %11424 = vmatpush1.msra.mxu1 %v11382_v38  ;;  %11457 = vmatprep.mubr.f32.mxu1 %v15793_v40 }
0x11b1   :  { %v11592_v2 = vpop.permute.xlu1 %11591  ;;  %v11379_v53 = vpop.permute.xlu0 %11378  ;;  %12098 = vmatmul.mubr.msk.f32.vlgmr.msra.gmra.mxu0 %vm2486_vm12, %v12096_v8  ;;  %12101 = vmatmul.mubr.msk.f32.vlgmr.msra.gmra.mxu1 %vm2486_vm12, %v12100_v58 }
0x11b2   :  { %v11384_v32 = vsel %vm160_vm0, %v15891_v25, %v11379_v53  ;;  %11636 = vmatprep.subr.mxu1 %v11596_v24  ;;  %v11385_v18 = vsel %vm160_vm0, %v11379_v53, %v11381_v14  ;;  %11528 = vmatprep.mubr.f32.mxu0 %v15793_v40  ;;  %v11597_v31 = vsel %vm118_vm1, %v15883_v35, %v11592_v2 }
0x11b3   :  { %11494 = vmatprep.subr.mxu0 %v11385_v18  ;;  %11670 = vmatprep.mubr.f32.mxu1 %v15793_v40 }
0x11b4   :  { %11495 = vmatpush1.msra.mxu0 %v11384_v32 }
0x11b5   :  { %v11586_v41 = vpop.permute.xlu1 %11585  ;;  %v11594_v22 = vpop.permute.xlu0 %11593  ;;  %12102 = vmatmul.mubr.msk.f32.vlgmr.msra.gmra.mxu0 %vm2486_vm12, %v12100_v58 }
0x11b6   :  { %v11595_v45 = vsel %vm118_vm1, %v11586_v41, %v11588_v60  ;;  %v11598_v15 = vsel %vm118_vm1, %v11592_v2, %v11594_v22  ;;  %11741 = vmatprep.mubr.f32.mxu0 %v15793_v40 }
0x11b7   :  { %11637 = vmatpush1.msra.mxu1 %v11595_v45  ;;  %11707 = vmatprep.subr.mxu0 %v11598_v15 }
0x11b8   :  { %12105 = vmatmul.mubr.msk.f32.vlgmr.msra.gmra.mxu1 %vm2486_vm12, %v12104_v48  ;;  %11708 = vmatpush1.msra.mxu0 %v11597_v31 }
0x11b9   :  { %12106 = vmatmul.mubr.msk.f32.vlgmr.msra.gmra.mxu0 %vm2486_vm12, %v12104_v48 }
0x11c2   :  { %v11756_v18 = vpop.permute.xlu0 %11755 }
0x1251   :  { %v10074_v4 = vpop.f32.mrf.mxu1 }
0x1253   :  { %v10076_v44 = vpop.f32.mrf.mxu1 }
0x1255   :  { %v10145_v27 = vpop.f32.mrf.mxu0 }
0x1256   :  { %v10242_v13 = vpop.f32.mrf.mxu1 }
0x1257   :  { %v10147_v7 = vpop.f32.mrf.mxu0  ;;  %v10243_v6 = vadd.f32 %v10242_v13, %v10074_v4 }
0x1258   :  { %v10244_v43 = vpop.f32.mrf.mxu1 }
0x1259   :  { %v10313_v49 = vpop.f32.mrf.mxu0  ;;  %v10245_v35 = vadd.f32 %v10244_v43, %v10076_v44 }
0x125a   :  { %v10451_v28 = vpop.f32.mrf.mxu1  ;;  %v10314_v25 = vadd.f32 %v10313_v49, %v10145_v27 }
0x125b   :  { %v10315_v52 = vpop.f32.mrf.mxu0  ;;  %v10527_v29 = vadd.f32 %v10451_v28, %v10243_v6 }
0x125c   :  { %v10453_v40 = vpop.f32.mrf.mxu1  ;;  %v10316_v21 = vadd.f32 %v10315_v52, %v10147_v7 }
0x125d   :  { %v10522_v30 = vpop.f32.mrf.mxu0  ;;  %v10528_v55 = vadd.f32 %v10453_v40, %v10245_v35 }
0x125e   :  { %v10529_v14 = vadd.f32 %v10522_v30, %v10314_v25 }
0x125f   :  { %v10524_v47 = vpop.f32.mrf.mxu0 }
0x1260   :  { %v10530_v20 = vadd.f32 %v10524_v47, %v10316_v21 }
0x1261   :  { %v10664_v1 = vpop.f32.mrf.mxu1 }
0x1262   :  { %v10740_v10 = vadd.f32 %v10664_v1, %v10527_v29 }
0x1263   :  { %v10666_v51 = vpop.f32.mrf.mxu1 }
0x1264   :  { %v10741_v19 = vadd.f32 %v10666_v51, %v10528_v55 }
0x1265   :  { %v10735_v61 = vpop.f32.mrf.mxu0  ;;  %v10815_v33 = vpop.f32.mrf.mxu1 }
0x1266   :  { %v10742_v56 = vadd.f32 %v10735_v61, %v10529_v14  ;;  %v10891_v57 = vadd.f32 %v10815_v33, %v10740_v10 }
0x1267   :  { %v10737_v5 = vpop.f32.mrf.mxu0  ;;  %v10817_v9 = vpop.f32.mrf.mxu1 }
0x1268   :  { %v10743_v36 = vadd.f32 %v10737_v5, %v10530_v20  ;;  %v10892_v0 = vadd.f32 %v10817_v9, %v10741_v19 }
0x1269   :  { %v10886_v54 = vpop.f32.mrf.mxu0  ;;  %v11033_v34 = vpop.f32.mrf.mxu1 }
0x126a   :  { %v10893_v39 = vadd.f32 %v10886_v54, %v10742_v56  ;;  %v11109_v26 = vadd.f32 %v11033_v34, %v10891_v57 }
0x126b   :  { %v10888_v16 = vpop.f32.mrf.mxu0  ;;  %v11035_v50 = vpop.f32.mrf.mxu1 }
0x126c   :  { %v10894_v8 = vadd.f32 %v10888_v16, %v10743_v36  ;;  %v11110_v60 = vadd.f32 %v11035_v50, %v10892_v0 }
0x126d   :  { %v11104_v46 = vpop.f32.mrf.mxu0  ;;  %v11246_v17 = vpop.f32.mrf.mxu1 }
0x126e   :  { %v11111_v12 = vadd.f32 %v11104_v46, %v10893_v39  ;;  %v11322_v37 = vadd.f32 %v11246_v17, %v11109_v26 }
0x126f   :  { %v11106_v42 = vpop.f32.mrf.mxu0  ;;  %v11248_v59 = vpop.f32.mrf.mxu1 }
0x1270   :  { %v11112_v3 = vadd.f32 %v11106_v42, %v10894_v8  ;;  %v11323_v58 = vadd.f32 %v11248_v59, %v11110_v60 }
0x1271   :  { %v11317_v11 = vpop.f32.mrf.mxu0  ;;  %v11459_v62 = vpop.f32.mrf.mxu1 }
0x1272   :  { %v11324_v2 = vadd.f32 %v11317_v11, %v11111_v12  ;;  %v11535_v53 = vadd.f32 %v11459_v62, %v11322_v37 }
0x1273   :  { %v11319_v23 = vpop.f32.mrf.mxu0  ;;  %v11461_v63 = vpop.f32.mrf.mxu1 }
0x1274   :  { %v11325_v41 = vadd.f32 %v11319_v23, %v11112_v3  ;;  %v11536_v48 = vadd.f32 %v11461_v63, %v11323_v58 }
0x1275   :  { %v11530_v38 = vpop.f32.mrf.mxu0 }
0x1276   :  { %v11537_v22 = vadd.f32 %v11530_v38, %v11324_v2 }
0x1277   :  { %v11532_v24 = vpop.f32.mrf.mxu0 }
0x1278   :  { %v11672_v32 = vpop.f32.mrf.mxu1  ;;  %v11538_v4 = vadd.f32 %v11532_v24, %v11325_v41 }
0x1279   :  { %v11748_v45 = vadd.f32 %v11672_v32, %v11535_v53  ;;  %v11743_v15 = vpop.f32.mrf.mxu0 }
0x127a   :  { %v11674_v31 = vpop.f32.mrf.mxu1  ;;  %v11750_v27 = vadd.f32 %v11743_v15, %v11537_v22 }
0x127b   :  { %v11758_v44 = vadd.f32 %v11756_v18, %v11748_v45  ;;  %v11749_v13 = vadd.f32 %v11674_v31, %v11536_v48  ;;  %v11745_v7 = vpop.f32.mrf.mxu0 }
0x127c   :  { %v11760_v43 = vadd.f32 %v11756_v18, %v11750_v27  ;;  %v11751_v52 = vadd.f32 %v11745_v7, %v11538_v4 }
0x127d   :  { %v11759_v49 = vadd.f32 %v11756_v18, %v11749_v13  ;;  %v11762_v28 = vmax.f32 %v11758_v44, 0.0 }
0x127e   :  { %v11761_v40 = vadd.f32 %v11756_v18, %v11751_v52  ;;  %v11764_v1 = vmax.f32 %v11760_v43, 0.0 }
0x127f   :  { %v11763_v30 = vmax.f32 %v11759_v49, 0.0 }
0x1280   :  { %v11765_v51 = vmax.f32 %v11761_v40, 0.0 }
0x1281   :  { %v11770_v47 = vcombine.low %v11762_v28, %v11763_v30 }
0x1282   :  { %v11771_v61 = vcombine.low %v11764_v1, %v11765_v51 }
0x1283   :  { %11774 = vst [vmem:[%s15999_s19] sm:$0x77] %v11770_v47 }
0x1284   :  { %11775 = vst [vmem:[%s15999_s19 + $0x8] sm:$0x77] %v11771_v61 }

</bundles_post_ra>
